<compile_context>
chip_gen: v7x
topology: tpu7x:2x2x1
jax: 0.10.0
libtpu: 0.0.40
codegen_flags: <defaults>
</compile_context>

<pallas_src>
import jax
import jax.numpy as jnp
from jax import lax
from jax.experimental import pallas as pl
from jax.experimental.pallas import tpu as pltpu


# -----------------------------------------------------------------------------
# Fused (affine -> LeakyReLU -> matmul -> +bias [-> batch stats]) Pallas kernel.
#   w: (N, K) bf16, x: (K, M), s/t: (K, 1) f32, b: (N, 1) f32  ->  out (N, M) f32
#   optional stats output: (grid, N, 2) f32 per-tile [sum, sum_of_squares] of out rows.
# -----------------------------------------------------------------------------
def _fused_act_matmul(w_bf16, x, s, t, b, alpha, *, with_stats=False):
    N, K = w_bf16.shape
    K2, M = x.shape
    assert K == K2
    if M % 256 == 0:
        TM = 256
    elif M % 128 == 0:
        TM = 128
    else:
        TM = M                      # small tail layers (M = 32, 2, ...): single tile
    G = M // TM

    def prologue_and_matmul(w_ref, x_ref, s_ref, t_ref, b_ref):
        y = x_ref[...].astype(jnp.float32) * s_ref[...] + t_ref[...]   # fused BN affine
        a = jnp.maximum(y, alpha * y)                                  # LeakyReLU(alpha)
        acc = jnp.dot(w_ref[...], a.astype(jnp.bfloat16),
                      preferred_element_type=jnp.float32)              # single MXU matmul
        return acc + b_ref[...]

    def kernel_nostats(w_ref, x_ref, s_ref, t_ref, b_ref, o_ref):
        o = prologue_and_matmul(w_ref, x_ref, s_ref, t_ref, b_ref)
        o_ref[...] = o.astype(o_ref.dtype)

    def kernel_stats(w_ref, x_ref, s_ref, t_ref, b_ref, o_ref, st_ref):
        o = prologue_and_matmul(w_ref, x_ref, s_ref, t_ref, b_ref)
        o_ref[...] = o.astype(o_ref.dtype)
        # BN batch statistics for the NEXT layer, fused while `o` is still in vregs.
        sums = jnp.sum(o, axis=1, keepdims=True)        # (N, 1)
        sqs = jnp.sum(o * o, axis=1, keepdims=True)     # (N, 1)
        st_ref[...] = jnp.concatenate([sums, sqs], axis=1)[None]   # (1, N, 2)

    in_specs = [
        pl.BlockSpec((N, K), lambda i: (0, 0)),
        pl.BlockSpec((K, TM), lambda i: (0, i)),
        pl.BlockSpec((K, 1), lambda i: (0, 0)),
        pl.BlockSpec((K, 1), lambda i: (0, 0)),
        pl.BlockSpec((N, 1), lambda i: (0, 0)),
    ]
    out_spec_main = pl.BlockSpec((N, TM), lambda i: (0, i))
    cparams = pltpu.CompilerParams(dimension_semantics=("parallel",))

    if with_stats:
        out, stats = pl.pallas_call(
            kernel_stats,
            out_shape=(jax.ShapeDtypeStruct((N, M), jnp.float32),
                       jax.ShapeDtypeStruct((G, N, 2), jnp.float32)),
            grid=(G,),
            in_specs=in_specs,
            out_specs=(out_spec_main,
                       pl.BlockSpec((1, N, 2), lambda i: (i, 0, 0))),
            compiler_params=cparams,
        )(w_bf16, x, s, t, b)
        return out, stats

    out = pl.pallas_call(
        kernel_nostats,
        out_shape=jax.ShapeDtypeStruct((N, M), jnp.float32),
        grid=(G,),
        in_specs=in_specs,
        out_specs=out_spec_main,
        compiler_params=cparams,
    )(w_bf16, x, s, t, b)
    return out, None


# -----------------------------------------------------------------------------
# Conv2d 4x4 / stride 2 / pad 1, with fused pre-activation, via space-to-depth + im2col.
# x_cm: (C, B, H, W) channel-major, pre-activation values.  Returns (Cout, B, H/2, W/2)
# plus (optionally) the per-tile batch-stat partials of its output.
# -----------------------------------------------------------------------------
def _conv4x4_s2(x_cm, scale, shift, alpha, w_packed, b_col, *, with_stats=False):
    C, B, H, W = x_cm.shape
    # pad with -t/s so the in-kernel affine+LeakyReLU maps padded positions to exactly 0
    pad_val = (-shift / scale).astype(x_cm.dtype).reshape(C, 1, 1, 1)
    xp = jnp.broadcast_to(pad_val, (C, B, H + 2, W + 2)).at[:, :, 1:-1, 1:-1].set(x_cm)
    h2, w2 = (H + 2) // 2, (W + 2) // 2
    Ho, Wo = h2 - 1, w2 - 1
    # space-to-depth: channel index becomes (dh, dw, c)
    s2d = xp.reshape(C, B, h2, 2, w2, 2).transpose(3, 5, 0, 1, 2, 4).reshape(4 * C, B, h2, w2)
    # im2col for the resulting 2x2 stride-1 conv: row index becomes (sh, sw, dh, dw, c)
    cols = jnp.concatenate(
        [s2d[:, :, sh:sh + Ho, sw:sw + Wo] for sh in (0, 1) for sw in (0, 1)],
        axis=0).reshape(16 * C, B * Ho * Wo)
    s16 = jnp.tile(scale, 16).reshape(16 * C, 1)
    t16 = jnp.tile(shift, 16).reshape(16 * C, 1)
    out, stats = _fused_act_matmul(w_packed, cols, s16, t16, b_col, alpha,
                                   with_stats=with_stats)
    Cout = w_packed.shape[0]
    return out.reshape(Cout, B, Ho, Wo), stats


# training-mode BatchNorm affine (s, t) from fused per-tile (sum, sumsq) partials
def _bn_affine_from_stats(stats, count, gamma, beta, eps=1e-5):
    tot = jnp.sum(stats, axis=0)                    # (C, 2)
    mean = tot[:, 0] / count
    var = jnp.maximum(tot[:, 1] / count - mean * mean, 0.0)   # biased, like PyTorch
    s = gamma * lax.rsqrt(var + eps)
    t = beta - mean * s
    return s, t


# -----------------------------------------------------------------------------
# Parameters (PyTorch-like layout) and one-time packing into matmul layout (hoisted).
# -----------------------------------------------------------------------------
def init_params(key, n_classes, in_dim=3, dim=16, dim_mults=(1, 2, 4)):
    dims = [dim * m for m in dim_mults]
    nl = len(dim_mults) - 1
    keys = jax.random.split(key, 3 + nl)

    def w(k, cout, cin):
        return 0.02 * jax.random.normal(k, (cout, cin, 4, 4), jnp.float32)

    params = {
        "first_w": w(keys[0], dims[0], in_dim),
        "first_b": jnp.zeros((dims[0],), jnp.float32),
        "layers": [],
        "last_gamma": jnp.ones((dims[-1],), jnp.float32),
        "last_beta": jnp.zeros((dims[-1],), jnp.float32),
        "disc_w": w(keys[1], 1, dims[-1]),
        "disc_b": jnp.zeros((1,), jnp.float32),
        "cls_w": w(keys[2], n_classes, dims[-1]),
        "cls_b": jnp.zeros((n_classes,), jnp.float32),
    }
    for i in range(nl):
        params["layers"].append({
            "gamma": jnp.ones((dims[i],), jnp.float32) if i > 0 else None,   # i==0: Identity
            "beta": jnp.zeros((dims[i],), jnp.float32) if i > 0 else None,
            "w": w(keys[3 + i], dims[i + 1], dims[i]),
            "b": jnp.zeros((dims[i + 1],), jnp.float32),
        })
    return params


def pack_params(params):
    def pack_conv_w(w_pt):   # (Cout, Cin, 4, 4) -> (Cout, 16*Cin), cols ordered (sh,sw,dh,dw,c)
        cout, cin = w_pt.shape[0], w_pt.shape[1]
        w = w_pt.reshape(cout, cin, 2, 2, 2, 2)            # (cout, c, sh, dh, sw, dw)
        w = jnp.transpose(w, (0, 2, 4, 3, 5, 1))           # (cout, sh, sw, dh, dw, c)
        return w.reshape(cout, 16 * cin).astype(jnp.bfloat16)

    def pack_head_w(w_pt):   # (Cout, Cin, 4, 4) -> (Cout, 16*Cin), cols ordered (h, w, c)
        cout, cin = w_pt.shape[0], w_pt.shape[1]
        w = jnp.transpose(w_pt, (0, 2, 3, 1))              # (cout, h, w, c)
        return w.reshape(cout, 16 * cin).astype(jnp.bfloat16)

    packed = {
        "first_w": pack_conv_w(params["first_w"]),
        "first_b": params["first_b"].reshape(-1, 1),
        "layers": [],
        "last_gamma": params["last_gamma"],
        "last_beta": params["last_beta"],
        "heads_w": jnp.concatenate([pack_head_w(params["disc_w"]),
                                    pack_head_w(params["cls_w"])], axis=0),
        "heads_b": jnp.concatenate([params["disc_b"], params["cls_b"]]).reshape(-1, 1),
    }
    for lyr in params["layers"]:
        packed["layers"].append({
            "gamma": lyr["gamma"],
            "beta": lyr["beta"],
            "w": pack_conv_w(lyr["w"]),
            "b": lyr["b"].reshape(-1, 1),
        })
    return packed


# -----------------------------------------------------------------------------
# Forward pass (mirrors DiscriminatorConditionalAC.forward)
# -----------------------------------------------------------------------------
def discriminator_forward(packed, X):
    # X: (B, in_dim, H, W) NCHW, like PyTorch
    x = jnp.transpose(X, (1, 0, 2, 3))                    # channel-major (C, B, H, W)
    C0 = x.shape[0]
    one0 = jnp.ones((C0,), jnp.float32)
    zero0 = jnp.zeros((C0,), jnp.float32)
    nl = len(packed["layers"])
    # first_conv: plain conv on the raw input (identity prologue).  Its output feeds the
    # Identity norm of layers[0], so stats are only needed in the degenerate nl==0 case.
    x, stats = _conv4x4_s2(x, one0, zero0, 1.0, packed["first_w"], packed["first_b"],
                           with_stats=(nl == 0))
    for lyr in packed["layers"]:
        C = x.shape[0]
        if lyr["gamma"] is None:                           # layer i==0: Identity (no BN)
            s = jnp.ones((C,), jnp.float32)
            t = jnp.zeros((C,), jnp.float32)
        else:                                              # BN from fused batch stats
            count = x.shape[1] * x.shape[2] * x.shape[3]
            s, t = _bn_affine_from_stats(stats, count, lyr["gamma"], lyr["beta"])
        # fused BN + LeakyReLU + conv, emitting stats for the next BN
        x, stats = _conv4x4_s2(x, s, t, 0.2, lyr["w"], lyr["b"], with_stats=True)
    # last: BN + LeakyReLU, fused into the (disc | cls) head matmul (4x4 valid conv)
    count = x.shape[1] * x.shape[2] * x.shape[3]
    s, t = _bn_affine_from_stats(stats, count, packed["last_gamma"], packed["last_beta"])
    C, B, Hh, Wh = x.shape
    cols = x.transpose(2, 3, 0, 1).reshape(Hh * Wh * C, B)            # rows ordered (h, w, c)
    s16 = jnp.tile(s, Hh * Wh).reshape(-1, 1)
    t16 = jnp.tile(t, Hh * Wh).reshape(-1, 1)
    out, _ = _fused_act_matmul(packed["heads_w"], cols, s16, t16, packed["heads_b"], 0.2)
    disc = out[0, :]                                       # == disc.squeeze() -> (B,)
    cls = out[1:, :].T                                     # == cls.squeeze()  -> (B, n_classes)
    return disc, cls


# -----------------------------------------------------------------------------
# Pure-JAX reference (f32, HIGHEST precision) for a correctness sanity check
# -----------------------------------------------------------------------------
def _conv2d_ref(x_nhwc, w_pt, b, stride, padding):
    w = jnp.transpose(w_pt, (2, 3, 1, 0))                  # HWIO
    dn = lax.conv_dimension_numbers(x_nhwc.shape, w.shape, ("NHWC", "HWIO", "NHWC"))
    out = lax.conv_general_dilated(x_nhwc, w, (stride, stride),
                                   [(padding, padding), (padding, padding)],
                                   dimension_numbers=dn, precision=lax.Precision.HIGHEST)
    return out + b.reshape(1, 1, 1, -1)


def _bn_ref(x, gamma, beta, eps=1e-5):
    mean = jnp.mean(x, axis=(0, 1, 2), keepdims=True)
    var = jnp.mean(jnp.square(x - mean), axis=(0, 1, 2), keepdims=True)
    return (x - mean) * lax.rsqrt(var + eps) * gamma.reshape(1, 1, 1, -1) + beta.reshape(1, 1, 1, -1)


def _lrelu_ref(x, alpha=0.2):
    return jnp.where(x >= 0, x, alpha * x)


def discriminator_forward_ref(params, X, n_classes):
    x = jnp.transpose(X, (0, 2, 3, 1))                     # NHWC
    x = _conv2d_ref(x, params["first_w"], params["first_b"], 2, 1)
    for i, lyr in enumerate(params["layers"]):
        if i > 0:
            x = _bn_ref(x, lyr["gamma"], lyr["beta"])
        x = _lrelu_ref(x)
        x = _conv2d_ref(x, lyr["w"], lyr["b"], 2, 1)
    x = _bn_ref(x, params["last_gamma"], params["last_beta"])
    x = _lrelu_ref(x)
    disc = _conv2d_ref(x, params["disc_w"], params["disc_b"], 1, 0)
    cls = _conv2d_ref(x, params["cls_w"], params["cls_b"], 1, 0)
    return disc.reshape(-1), cls.reshape(X.shape[0], n_classes)


if __name__ == "__main__":
    # Small config consistent with the module: 32x32 input, 3 downsampling convs -> 4x4,
    # then the two 4x4-valid heads.  Channels: 3 -> 16 -> 32 -> 64.
    B, in_dim, H = 2, 3, 32
    n_classes, dim, dim_mults = 4, 16, (1, 2, 4)

    key = jax.random.PRNGKey(0)
    kx, kp = jax.random.split(key)
    X = jax.random.normal(kx, (B, in_dim, H, H), jnp.float32)

    params = init_params(kp, n_classes, in_dim, dim, dim_mults)
    packed = pack_params(params)                           # weight packing hoisted out of forward

    fwd = jax.jit(discriminator_forward)
    disc, cls = fwd(packed, X)
    disc, cls = jax.block_until_ready((disc, cls))
    assert disc.shape == (B,), disc.shape
    assert cls.shape == (B, n_classes), cls.shape

    disc_ref, cls_ref = discriminator_forward_ref(params, X, n_classes)
    disc_ref, cls_ref = jax.block_until_ready((disc_ref, cls_ref))
    max_err = max(float(jnp.max(jnp.abs(disc - disc_ref))),
                  float(jnp.max(jnp.abs(cls - cls_ref))))
    assert max_err < 5e-2, f"max abs error vs JAX reference = {max_err}"

    print("KERNEL_OK")
</pallas_src>

<mosaic_0001>
module attributes {stable_mosaic.version = 11 : i64} {
  func.func @kernel_nostats(%arg0: i32, %arg1: memref<16x48xbf16, #tpu.memory_space<vmem>>, %arg2: memref<48x256xf32, #tpu.memory_space<vmem>>, %arg3: memref<48x1xf32, #tpu.memory_space<vmem>>, %arg4: memref<48x1xf32, #tpu.memory_space<vmem>>, %arg5: memref<16x1xf32, #tpu.memory_space<vmem>>, %arg6: memref<16x256xf32, #tpu.memory_space<vmem>>) attributes {dimension_semantics = [#tpu.dimension_semantics<parallel>], iteration_bounds = array<i64: 2>, scalar_prefetch = 0 : i64, scratch_operands = 0 : i64, tpu.core_type = #tpu.core_type<tc>, window_params = [{pipeline_mode = #tpu.pipeline_mode<synchronous>, transform_indices = @transform_0, window_bounds = array<i64: 16, 48>}, {transform_indices = @transform_1, window_bounds = array<i64: 48, 256>}, {pipeline_mode = #tpu.pipeline_mode<synchronous>, transform_indices = @transform_2, window_bounds = array<i64: 48, 1>}, {pipeline_mode = #tpu.pipeline_mode<synchronous>, transform_indices = @transform_3, window_bounds = array<i64: 48, 1>}, {pipeline_mode = #tpu.pipeline_mode<synchronous>, transform_indices = @transform_4, window_bounds = array<i64: 16, 1>}, {transform_indices = @transform_5, window_bounds = array<i64: 16, 256>}]} {
    %c0 = arith.constant 0 : index
    %c0_0 = arith.constant 0 : index
    %0 = vector.load %arg2[%c0, %c0_0] : memref<48x256xf32, #tpu.memory_space<vmem>>, vector<48x256xf32>
    %c0_1 = arith.constant 0 : index
    %c0_2 = arith.constant 0 : index
    %1 = vector.load %arg3[%c0_1, %c0_2] : memref<48x1xf32, #tpu.memory_space<vmem>>, vector<48x1xf32>
    %2 = vector.broadcast %1 : vector<48x1xf32> to vector<48x256xf32>
    %3 = arith.mulf %0, %2 : vector<48x256xf32>
    %c0_3 = arith.constant 0 : index
    %c0_4 = arith.constant 0 : index
    %4 = vector.load %arg4[%c0_3, %c0_4] : memref<48x1xf32, #tpu.memory_space<vmem>>, vector<48x1xf32>
    %5 = vector.broadcast %4 : vector<48x1xf32> to vector<48x256xf32>
    %6 = arith.addf %3, %5 : vector<48x256xf32>
    %cst = arith.constant 1.000000e+00 : f32
    %7 = vector.broadcast %cst : f32 to vector<48x256xf32>
    %8 = arith.mulf %7, %6 : vector<48x256xf32>
    %9 = arith.maximumf %6, %8 : vector<48x256xf32>
    %c0_5 = arith.constant 0 : index
    %c0_6 = arith.constant 0 : index
    %10 = vector.load %arg1[%c0_5, %c0_6] : memref<16x48xbf16, #tpu.memory_space<vmem>>, vector<16x48xbf16>
    %11 = arith.truncf %9 : vector<48x256xf32> to vector<48x256xbf16>
    %cst_7 = arith.constant dense<0.000000e+00> : vector<16x256xf32>
    %12 = tpu.matmul %10, %11, %cst_7 {dimension_numbers = #tpu.dot_dimension_numbers<[1], [0], [0], [1], [0, 0, 1, 1], [], []>} : vector<16x48xbf16>, vector<48x256xbf16>, vector<16x256xf32> -> vector<16x256xf32>
    %c0_8 = arith.constant 0 : index
    %c0_9 = arith.constant 0 : index
    %13 = vector.load %arg5[%c0_8, %c0_9] : memref<16x1xf32, #tpu.memory_space<vmem>>, vector<16x1xf32>
    %14 = vector.broadcast %13 : vector<16x1xf32> to vector<16x256xf32>
    %15 = arith.addf %12, %14 : vector<16x256xf32>
    %c0_10 = arith.constant 0 : index
    %c0_11 = arith.constant 0 : index
    %16 = vector.load %arg6[%c0_10, %c0_11] : memref<16x256xf32, #tpu.memory_space<vmem>>, vector<16x256xf32>
    tpu.vector_store %arg6[%c0_10, %c0_11], %15 {strides = array<i32>} : memref<16x256xf32, #tpu.memory_space<vmem>>, vector<16x256xf32>,
    return
  }
  func.func @transform_0(%arg0: i32) -> (i32, i32) {
    %c0_i32 = arith.constant 0 : i32
    %c0_i32_0 = arith.constant 0 : i32
    %c0_i32_1 = arith.constant 0 : i32
    return %c0_i32, %c0_i32_0 : i32, i32
  }
  func.func @transform_1(%arg0: i32) -> (i32, i32) {
    %c0_i32 = arith.constant 0 : i32
    %c0_i32_0 = arith.constant 0 : i32
    return %c0_i32, %arg0 : i32, i32
  }
  func.func @transform_2(%arg0: i32) -> (i32, i32) {
    %c0_i32 = arith.constant 0 : i32
    %c0_i32_0 = arith.constant 0 : i32
    %c0_i32_1 = arith.constant 0 : i32
    return %c0_i32, %c0_i32_0 : i32, i32
  }
  func.func @transform_3(%arg0: i32) -> (i32, i32) {
    %c0_i32 = arith.constant 0 : i32
    %c0_i32_0 = arith.constant 0 : i32
    %c0_i32_1 = arith.constant 0 : i32
    return %c0_i32, %c0_i32_0 : i32, i32
  }
  func.func @transform_4(%arg0: i32) -> (i32, i32) {
    %c0_i32 = arith.constant 0 : i32
    %c0_i32_0 = arith.constant 0 : i32
    %c0_i32_1 = arith.constant 0 : i32
    return %c0_i32, %c0_i32_0 : i32, i32
  }
  func.func @transform_5(%arg0: i32) -> (i32, i32) {
    %c0_i32 = arith.constant 0 : i32
    %c0_i32_0 = arith.constant 0 : i32
    return %c0_i32, %arg0 : i32, i32
  }
}

module attributes {stable_mosaic.version = 11 : i64} {
  func.func @kernel_stats(%arg0: i32, %arg1: memref<32x256xbf16, #tpu.memory_space<vmem>>, %arg2: memref<256x128xf32, #tpu.memory_space<vmem>>, %arg3: memref<256x1xf32, #tpu.memory_space<vmem>>, %arg4: memref<256x1xf32, #tpu.memory_space<vmem>>, %arg5: memref<32x1xf32, #tpu.memory_space<vmem>>, %arg6: memref<32x128xf32, #tpu.memory_space<vmem>>, %arg7: memref<1x32x2xf32, #tpu.memory_space<vmem>>) attributes {dimension_semantics = [#tpu.dimension_semantics<parallel>], iteration_bounds = array<i64: 1>, scalar_prefetch = 0 : i64, scratch_operands = 0 : i64, tpu.core_type = #tpu.core_type<tc>, window_params = [{pipeline_mode = #tpu.pipeline_mode<synchronous>, transform_indices = @transform_0, window_bounds = array<i64: 32, 256>}, {transform_indices = @transform_1, window_bounds = array<i64: 256, 128>}, {pipeline_mode = #tpu.pipeline_mode<synchronous>, transform_indices = @transform_2, window_bounds = array<i64: 256, 1>}, {pipeline_mode = #tpu.pipeline_mode<synchronous>, transform_indices = @transform_3, window_bounds = array<i64: 256, 1>}, {pipeline_mode = #tpu.pipeline_mode<synchronous>, transform_indices = @transform_4, window_bounds = array<i64: 32, 1>}, {transform_indices = @transform_5, window_bounds = array<i64: 32, 128>}, {transform_indices = @transform_6, window_bounds = array<i64: 1, 32, 2>}]} {
    %c0 = arith.constant 0 : index
    %c0_0 = arith.constant 0 : index
    %0 = vector.load %arg2[%c0, %c0_0] : memref<256x128xf32, #tpu.memory_space<vmem>>, vector<256x128xf32>
    %c0_1 = arith.constant 0 : index
    %c0_2 = arith.constant 0 : index
    %1 = vector.load %arg3[%c0_1, %c0_2] : memref<256x1xf32, #tpu.memory_space<vmem>>, vector<256x1xf32>
    %2 = vector.broadcast %1 : vector<256x1xf32> to vector<256x128xf32>
    %3 = arith.mulf %0, %2 : vector<256x128xf32>
    %c0_3 = arith.constant 0 : index
    %c0_4 = arith.constant 0 : index
    %4 = vector.load %arg4[%c0_3, %c0_4] : memref<256x1xf32, #tpu.memory_space<vmem>>, vector<256x1xf32>
    %5 = vector.broadcast %4 : vector<256x1xf32> to vector<256x128xf32>
    %6 = arith.addf %3, %5 : vector<256x128xf32>
    %cst = arith.constant 2.000000e-01 : f32
    %7 = vector.broadcast %cst : f32 to vector<256x128xf32>
    %8 = arith.mulf %7, %6 : vector<256x128xf32>
    %9 = arith.maximumf %6, %8 : vector<256x128xf32>
    %c0_5 = arith.constant 0 : index
    %c0_6 = arith.constant 0 : index
    %10 = vector.load %arg1[%c0_5, %c0_6] : memref<32x256xbf16, #tpu.memory_space<vmem>>, vector<32x256xbf16>
    %11 = arith.truncf %9 : vector<256x128xf32> to vector<256x128xbf16>
    %cst_7 = arith.constant dense<0.000000e+00> : vector<32x128xf32>
    %12 = tpu.matmul %10, %11, %cst_7 {dimension_numbers = #tpu.dot_dimension_numbers<[1], [0], [0], [1], [0, 0, 1, 1], [], []>} : vector<32x256xbf16>, vector<256x128xbf16>, vector<32x128xf32> -> vector<32x128xf32>
    %c0_8 = arith.constant 0 : index
    %c0_9 = arith.constant 0 : index
    %13 = vector.load %arg5[%c0_8, %c0_9] : memref<32x1xf32, #tpu.memory_space<vmem>>, vector<32x1xf32>
    %14 = vector.broadcast %13 : vector<32x1xf32> to vector<32x128xf32>
    %15 = arith.addf %12, %14 : vector<32x128xf32>
    %c0_10 = arith.constant 0 : index
    %c0_11 = arith.constant 0 : index
    %16 = vector.load %arg6[%c0_10, %c0_11] : memref<32x128xf32, #tpu.memory_space<vmem>>, vector<32x128xf32>
    tpu.vector_store %arg6[%c0_10, %c0_11], %15 {strides = array<i32>} : memref<32x128xf32, #tpu.memory_space<vmem>>, vector<32x128xf32>,
    %cst_12 = arith.constant dense<0.000000e+00> : vector<32xf32>
    %17 = vector.multi_reduction <add>, %15, %cst_12 [1] : vector<32x128xf32> to vector<32xf32>
    %18 = vector.shape_cast %17 : vector<32xf32> to vector<32x1xf32>
    %19 = arith.mulf %15, %15 : vector<32x128xf32>
    %cst_13 = arith.constant dense<0.000000e+00> : vector<32xf32>
    %20 = vector.multi_reduction <add>, %19, %cst_13 [1] : vector<32x128xf32> to vector<32xf32>
    %21 = vector.shape_cast %20 : vector<32xf32> to vector<32x1xf32>
    %22 = tpu.concatenate %18, %21 in 1 : vector<32x1xf32>, vector<32x1xf32> -> vector<32x2xf32>
    %23 = vector.shape_cast %22 : vector<32x2xf32> to vector<1x32x2xf32>
    %c0_14 = arith.constant 0 : index
    %c0_15 = arith.constant 0 : index
    %c0_16 = arith.constant 0 : index
    %24 = vector.load %arg7[%c0_14, %c0_15, %c0_16] : memref<1x32x2xf32, #tpu.memory_space<vmem>>, vector<1x32x2xf32>
    tpu.vector_store %arg7[%c0_14, %c0_15, %c0_16], %23 {strides = array<i32>} : memref<1x32x2xf32, #tpu.memory_space<vmem>>, vector<1x32x2xf32>,
    return
  }
  func.func @transform_0(%arg0: i32) -> (i32, i32) {
    %c0_i32 = arith.constant 0 : i32
    %c0_i32_0 = arith.constant 0 : i32
    %c0_i32_1 = arith.constant 0 : i32
    return %c0_i32, %c0_i32_0 : i32, i32
  }
  func.func @transform_1(%arg0: i32) -> (i32, i32) {
    %c0_i32 = arith.constant 0 : i32
    %c0_i32_0 = arith.constant 0 : i32
    return %c0_i32, %arg0 : i32, i32
  }
  func.func @transform_2(%arg0: i32) -> (i32, i32) {
    %c0_i32 = arith.constant 0 : i32
    %c0_i32_0 = arith.constant 0 : i32
    %c0_i32_1 = arith.constant 0 : i32
    return %c0_i32, %c0_i32_0 : i32, i32
  }
  func.func @transform_3(%arg0: i32) -> (i32, i32) {
    %c0_i32 = arith.constant 0 : i32
    %c0_i32_0 = arith.constant 0 : i32
    %c0_i32_1 = arith.constant 0 : i32
    return %c0_i32, %c0_i32_0 : i32, i32
  }
  func.func @transform_4(%arg0: i32) -> (i32, i32) {
    %c0_i32 = arith.constant 0 : i32
    %c0_i32_0 = arith.constant 0 : i32
    %c0_i32_1 = arith.constant 0 : i32
    return %c0_i32, %c0_i32_0 : i32, i32
  }
  func.func @transform_5(%arg0: i32) -> (i32, i32) {
    %c0_i32 = arith.constant 0 : i32
    %c0_i32_0 = arith.constant 0 : i32
    return %c0_i32, %arg0 : i32, i32
  }
  func.func @transform_6(%arg0: i32) -> (i32, i32, i32) {
    %c0_i32 = arith.constant 0 : i32
    %c0_i32_0 = arith.constant 0 : i32
    %c0_i32_1 = arith.constant 0 : i32
    return %arg0, %c0_i32, %c0_i32_0 : i32, i32, i32
  }
}

module attributes {stable_mosaic.version = 11 : i64} {
  func.func @kernel_stats(%arg0: i32, %arg1: memref<64x512xbf16, #tpu.memory_space<vmem>>, %arg2: memref<512x32xf32, #tpu.memory_space<vmem>>, %arg3: memref<512x1xf32, #tpu.memory_space<vmem>>, %arg4: memref<512x1xf32, #tpu.memory_space<vmem>>, %arg5: memref<64x1xf32, #tpu.memory_space<vmem>>, %arg6: memref<64x32xf32, #tpu.memory_space<vmem>>, %arg7: memref<1x64x2xf32, #tpu.memory_space<vmem>>) attributes {dimension_semantics = [#tpu.dimension_semantics<parallel>], iteration_bounds = array<i64: 1>, scalar_prefetch = 0 : i64, scratch_operands = 0 : i64, tpu.core_type = #tpu.core_type<tc>, window_params = [{pipeline_mode = #tpu.pipeline_mode<synchronous>, transform_indices = @transform_0, window_bounds = array<i64: 64, 512>}, {transform_indices = @transform_1, window_bounds = array<i64: 512, 32>}, {pipeline_mode = #tpu.pipeline_mode<synchronous>, transform_indices = @transform_2, window_bounds = array<i64: 512, 1>}, {pipeline_mode = #tpu.pipeline_mode<synchronous>, transform_indices = @transform_3, window_bounds = array<i64: 512, 1>}, {pipeline_mode = #tpu.pipeline_mode<synchronous>, transform_indices = @transform_4, window_bounds = array<i64: 64, 1>}, {transform_indices = @transform_5, window_bounds = array<i64: 64, 32>}, {transform_indices = @transform_6, window_bounds = array<i64: 1, 64, 2>}]} {
    %c0 = arith.constant 0 : index
    %c0_0 = arith.constant 0 : index
    %0 = vector.load %arg2[%c0, %c0_0] : memref<512x32xf32, #tpu.memory_space<vmem>>, vector<512x32xf32>
    %c0_1 = arith.constant 0 : index
    %c0_2 = arith.constant 0 : index
    %1 = vector.load %arg3[%c0_1, %c0_2] : memref<512x1xf32, #tpu.memory_space<vmem>>, vector<512x1xf32>
    %2 = vector.broadcast %1 : vector<512x1xf32> to vector<512x32xf32>
    %3 = arith.mulf %0, %2 : vector<512x32xf32>
    %c0_3 = arith.constant 0 : index
    %c0_4 = arith.constant 0 : index
    %4 = vector.load %arg4[%c0_3, %c0_4] : memref<512x1xf32, #tpu.memory_space<vmem>>, vector<512x1xf32>
    %5 = vector.broadcast %4 : vector<512x1xf32> to vector<512x32xf32>
    %6 = arith.addf %3, %5 : vector<512x32xf32>
    %cst = arith.constant 2.000000e-01 : f32
    %7 = vector.broadcast %cst : f32 to vector<512x32xf32>
    %8 = arith.mulf %7, %6 : vector<512x32xf32>
    %9 = arith.maximumf %6, %8 : vector<512x32xf32>
    %c0_5 = arith.constant 0 : index
    %c0_6 = arith.constant 0 : index
    %10 = vector.load %arg1[%c0_5, %c0_6] : memref<64x512xbf16, #tpu.memory_space<vmem>>, vector<64x512xbf16>
    %11 = arith.truncf %9 : vector<512x32xf32> to vector<512x32xbf16>
    %cst_7 = arith.constant dense<0.000000e+00> : vector<64x32xf32>
    %12 = tpu.matmul %10, %11, %cst_7 {dimension_numbers = #tpu.dot_dimension_numbers<[1], [0], [0], [1], [0, 0, 1, 1], [], []>} : vector<64x512xbf16>, vector<512x32xbf16>, vector<64x32xf32> -> vector<64x32xf32>
    %c0_8 = arith.constant 0 : index
    %c0_9 = arith.constant 0 : index
    %13 = vector.load %arg5[%c0_8, %c0_9] : memref<64x1xf32, #tpu.memory_space<vmem>>, vector<64x1xf32>
    %14 = vector.broadcast %13 : vector<64x1xf32> to vector<64x32xf32>
    %15 = arith.addf %12, %14 : vector<64x32xf32>
    %c0_10 = arith.constant 0 : index
    %c0_11 = arith.constant 0 : index
    %16 = vector.load %arg6[%c0_10, %c0_11] : memref<64x32xf32, #tpu.memory_space<vmem>>, vector<64x32xf32>
    tpu.vector_store %arg6[%c0_10, %c0_11], %15 {strides = array<i32>} : memref<64x32xf32, #tpu.memory_space<vmem>>, vector<64x32xf32>,
    %cst_12 = arith.constant dense<0.000000e+00> : vector<64xf32>
    %17 = vector.multi_reduction <add>, %15, %cst_12 [1] : vector<64x32xf32> to vector<64xf32>
    %18 = vector.shape_cast %17 : vector<64xf32> to vector<64x1xf32>
    %19 = arith.mulf %15, %15 : vector<64x32xf32>
    %cst_13 = arith.constant dense<0.000000e+00> : vector<64xf32>
    %20 = vector.multi_reduction <add>, %19, %cst_13 [1] : vector<64x32xf32> to vector<64xf32>
    %21 = vector.shape_cast %20 : vector<64xf32> to vector<64x1xf32>
    %22 = tpu.concatenate %18, %21 in 1 : vector<64x1xf32>, vector<64x1xf32> -> vector<64x2xf32>
    %23 = vector.shape_cast %22 : vector<64x2xf32> to vector<1x64x2xf32>
    %c0_14 = arith.constant 0 : index
    %c0_15 = arith.constant 0 : index
    %c0_16 = arith.constant 0 : index
    %24 = vector.load %arg7[%c0_14, %c0_15, %c0_16] : memref<1x64x2xf32, #tpu.memory_space<vmem>>, vector<1x64x2xf32>
    tpu.vector_store %arg7[%c0_14, %c0_15, %c0_16], %23 {strides = array<i32>} : memref<1x64x2xf32, #tpu.memory_space<vmem>>, vector<1x64x2xf32>,
    return
  }
  func.func @transform_0(%arg0: i32) -> (i32, i32) {
    %c0_i32 = arith.constant 0 : i32
    %c0_i32_0 = arith.constant 0 : i32
    %c0_i32_1 = arith.constant 0 : i32
    return %c0_i32, %c0_i32_0 : i32, i32
  }
  func.func @transform_1(%arg0: i32) -> (i32, i32) {
    %c0_i32 = arith.constant 0 : i32
    %c0_i32_0 = arith.constant 0 : i32
    return %c0_i32, %arg0 : i32, i32
  }
  func.func @transform_2(%arg0: i32) -> (i32, i32) {
    %c0_i32 = arith.constant 0 : i32
    %c0_i32_0 = arith.constant 0 : i32
    %c0_i32_1 = arith.constant 0 : i32
    return %c0_i32, %c0_i32_0 : i32, i32
  }
  func.func @transform_3(%arg0: i32) -> (i32, i32) {
    %c0_i32 = arith.constant 0 : i32
    %c0_i32_0 = arith.constant 0 : i32
    %c0_i32_1 = arith.constant 0 : i32
    return %c0_i32, %c0_i32_0 : i32, i32
  }
  func.func @transform_4(%arg0: i32) -> (i32, i32) {
    %c0_i32 = arith.constant 0 : i32
    %c0_i32_0 = arith.constant 0 : i32
    %c0_i32_1 = arith.constant 0 : i32
    return %c0_i32, %c0_i32_0 : i32, i32
  }
  func.func @transform_5(%arg0: i32) -> (i32, i32) {
    %c0_i32 = arith.constant 0 : i32
    %c0_i32_0 = arith.constant 0 : i32
    return %c0_i32, %arg0 : i32, i32
  }
  func.func @transform_6(%arg0: i32) -> (i32, i32, i32) {
    %c0_i32 = arith.constant 0 : i32
    %c0_i32_0 = arith.constant 0 : i32
    %c0_i32_1 = arith.constant 0 : i32
    return %arg0, %c0_i32, %c0_i32_0 : i32, i32, i32
  }
}

module attributes {stable_mosaic.version = 11 : i64} {
  func.func @kernel_nostats(%arg0: i32, %arg1: memref<5x1024xbf16, #tpu.memory_space<vmem>>, %arg2: memref<1024x2xf32, #tpu.memory_space<vmem>>, %arg3: memref<1024x1xf32, #tpu.memory_space<vmem>>, %arg4: memref<1024x1xf32, #tpu.memory_space<vmem>>, %arg5: memref<5x1xf32, #tpu.memory_space<vmem>>, %arg6: memref<5x2xf32, #tpu.memory_space<vmem>>) attributes {dimension_semantics = [#tpu.dimension_semantics<parallel>], iteration_bounds = array<i64: 1>, scalar_prefetch = 0 : i64, scratch_operands = 0 : i64, tpu.core_type = #tpu.core_type<tc>, window_params = [{pipeline_mode = #tpu.pipeline_mode<synchronous>, transform_indices = @transform_0, window_bounds = array<i64: 5, 1024>}, {transform_indices = @transform_1, window_bounds = array<i64: 1024, 2>}, {pipeline_mode = #tpu.pipeline_mode<synchronous>, transform_indices = @transform_2, window_bounds = array<i64: 1024, 1>}, {pipeline_mode = #tpu.pipeline_mode<synchronous>, transform_indices = @transform_3, window_bounds = array<i64: 1024, 1>}, {pipeline_mode = #tpu.pipeline_mode<synchronous>, transform_indices = @transform_4, window_bounds = array<i64: 5, 1>}, {transform_indices = @transform_5, window_bounds = array<i64: 5, 2>}]} {
    %c0 = arith.constant 0 : index
    %c0_0 = arith.constant 0 : index
    %0 = vector.load %arg2[%c0, %c0_0] : memref<1024x2xf32, #tpu.memory_space<vmem>>, vector<1024x2xf32>
    %c0_1 = arith.constant 0 : index
    %c0_2 = arith.constant 0 : index
    %1 = vector.load %arg3[%c0_1, %c0_2] : memref<1024x1xf32, #tpu.memory_space<vmem>>, vector<1024x1xf32>
    %2 = vector.broadcast %1 : vector<1024x1xf32> to vector<1024x2xf32>
    %3 = arith.mulf %0, %2 : vector<1024x2xf32>
    %c0_3 = arith.constant 0 : index
    %c0_4 = arith.constant 0 : index
    %4 = vector.load %arg4[%c0_3, %c0_4] : memref<1024x1xf32, #tpu.memory_space<vmem>>, vector<1024x1xf32>
    %5 = vector.broadcast %4 : vector<1024x1xf32> to vector<1024x2xf32>
    %6 = arith.addf %3, %5 : vector<1024x2xf32>
    %cst = arith.constant 2.000000e-01 : f32
    %7 = vector.broadcast %cst : f32 to vector<1024x2xf32>
    %8 = arith.mulf %7, %6 : vector<1024x2xf32>
    %9 = arith.maximumf %6, %8 : vector<1024x2xf32>
    %c0_5 = arith.constant 0 : index
    %c0_6 = arith.constant 0 : index
    %10 = vector.load %arg1[%c0_5, %c0_6] : memref<5x1024xbf16, #tpu.memory_space<vmem>>, vector<5x1024xbf16>
    %11 = arith.truncf %9 : vector<1024x2xf32> to vector<1024x2xbf16>
    %cst_7 = arith.constant dense<0.000000e+00> : vector<5x2xf32>
    %12 = tpu.matmul %10, %11, %cst_7 {dimension_numbers = #tpu.dot_dimension_numbers<[1], [0], [0], [1], [0, 0, 1, 1], [], []>} : vector<5x1024xbf16>, vector<1024x2xbf16>, vector<5x2xf32> -> vector<5x2xf32>
    %c0_8 = arith.constant 0 : index
    %c0_9 = arith.constant 0 : index
    %13 = vector.load %arg5[%c0_8, %c0_9] : memref<5x1xf32, #tpu.memory_space<vmem>>, vector<5x1xf32>
    %14 = vector.broadcast %13 : vector<5x1xf32> to vector<5x2xf32>
    %15 = arith.addf %12, %14 : vector<5x2xf32>
    %c0_10 = arith.constant 0 : index
    %c0_11 = arith.constant 0 : index
    %16 = vector.load %arg6[%c0_10, %c0_11] : memref<5x2xf32, #tpu.memory_space<vmem>>, vector<5x2xf32>
    tpu.vector_store %arg6[%c0_10, %c0_11], %15 {strides = array<i32>} : memref<5x2xf32, #tpu.memory_space<vmem>>, vector<5x2xf32>,
    return
  }
  func.func @transform_0(%arg0: i32) -> (i32, i32) {
    %c0_i32 = arith.constant 0 : i32
    %c0_i32_0 = arith.constant 0 : i32
    %c0_i32_1 = arith.constant 0 : i32
    return %c0_i32, %c0_i32_0 : i32, i32
  }
  func.func @transform_1(%arg0: i32) -> (i32, i32) {
    %c0_i32 = arith.constant 0 : i32
    %c0_i32_0 = arith.constant 0 : i32
    return %c0_i32, %arg0 : i32, i32
  }
  func.func @transform_2(%arg0: i32) -> (i32, i32) {
    %c0_i32 = arith.constant 0 : i32
    %c0_i32_0 = arith.constant 0 : i32
    %c0_i32_1 = arith.constant 0 : i32
    return %c0_i32, %c0_i32_0 : i32, i32
  }
  func.func @transform_3(%arg0: i32) -> (i32, i32) {
    %c0_i32 = arith.constant 0 : i32
    %c0_i32_0 = arith.constant 0 : i32
    %c0_i32_1 = arith.constant 0 : i32
    return %c0_i32, %c0_i32_0 : i32, i32
  }
  func.func @transform_4(%arg0: i32) -> (i32, i32) {
    %c0_i32 = arith.constant 0 : i32
    %c0_i32_0 = arith.constant 0 : i32
    %c0_i32_1 = arith.constant 0 : i32
    return %c0_i32, %c0_i32_0 : i32, i32
  }
  func.func @transform_5(%arg0: i32) -> (i32, i32) {
    %c0_i32 = arith.constant 0 : i32
    %c0_i32_0 = arith.constant 0 : i32
    return %c0_i32, %arg0 : i32, i32
  }
}

</mosaic_0001>

<bundles_post_ra>
// kernel: tile.26
= control target key start
LH: loop header
LB: loop body
LE: loop exit
PB: predicated region body
PF: predicated region fallthrough
CT: control target
= control target key end

     0   :  { %s50_s0 = inlined_call_operand.<no memory space> [shape: f32[], index: 0, kind: input, shape index: {}]   ;;  %s51_s1 = inlined_call_operand.vmem [shape: f32[48,1], index: 1, kind: output, shape index: {}]  }
   0x1   :  { %v2_v0 = vstv %s50_s0 }
   0x2   :  { %3 = vst [vmem:[%s51_s1] sm:$0xff] %v2_v0  ;;  %14 = vst [vmem:[%s51_s1 + $0x8] sm:$0xff] %v2_v0 }
   0x3   :  { %15 = vst [vmem:[%s51_s1 + $0x10] sm:$0xff] %v2_v0  ;;  %16 = vst [vmem:[%s51_s1 + $0x18] sm:$0xff] %v2_v0 }
   0x4   :  { %17 = vst [vmem:[%s51_s1 + $0x20] sm:$0xff] %v2_v0  ;;  %18 = vst [vmem:[%s51_s1 + $0x28] sm:$0xff] %v2_v0 }

// kernel: discriminator_forward.4
= control target key start
LH: loop header
LB: loop body
LE: loop exit
PB: predicated region body
PF: predicated region fallthrough
CT: control target
= control target key end

     0   :  { %s639_s18 = smov 0   ;;  %s641_s19 = smov 0   ;;  %s762_s0 = inlined_call_operand.vmem [shape: bf16[16,48], index: 0, kind: input, shape index: {}]   ;;  %s763_s1 = inlined_call_operand.vmem [shape: f32[48,512], index: 1, kind: input, shape index: {}]   ;;  %s764_s2 = inlined_call_operand.vmem [shape: f32[48,1], index: 2, kind: input, shape index: {}]   ;;  %s765_s3 = inlined_call_operand.vmem [shape: f32[48,1], index: 3, kind: input, shape index: {}]   ;;  %s766_s4 = inlined_call_operand.vmem [shape: f32[16,1], index: 4, kind: input, shape index: {}]   ;;  %s767_s5 = inlined_call_operand.vmem [shape: f32[16,512], index: 5, kind: output, shape index: {}]  }
   0x1   :  { %s643_s20 = smov 0  }
   0x2 LB: > { %s537_s21 = sadd.s32 4294967295, %s606_s20   ;;  %s656_s22 = sadd.s32 1, %s606_s20   ;;  %s606_s20 = sphi %s643_s20, %s771_s20   ;;  %s602_s19 = sphi %s641_s19, %s770_s19   ;;  %s598_s18 = sphi %s639_s18, %s769_s18  }
   0x3   : > { %s40_s23 = ssub.s32 %s606_s20, %s656_s22  ;;  %s43_s24 = sadd.s32 1, %s602_s19 }
   0x4   : > { %p41_p0 = scmp.eq.s32.totalorder %s40_s23, 0  ;;  %p50_p1 = scmp.ne.s32.totalorder %s602_s19, %s598_s18 }
   0x5   : > { %p51_p2 = scmp.eq.s32.totalorder %s606_s20, 0  ;;  %p143_p3 = scmp.eq.s32.totalorder %s537_s21, 1 }
   0x6   : > { %s667_s25 = scalar_select %p41_p0, %s602_s19, %s43_s24  }
   0x7   : > { %p52_p4 = por %p51_p2, %p50_p1  ;;  %p669_p5 = por %p143_p3, %p50_p1 }
   0x8   : > { %p540_p6 = scmp.ge.s32.totalorder %s606_s20, 2 }
   0xa   : > { %177 = sbr.rel (%p540_p6) target bundleno = 27 (0x1b), region = 32 }
  0x11   : > { %180 = sbr.rel (!%p52_p4) target bundleno = 27 (0x1b), region = 36  ;;  %s182_s27 = sand.u32 (%p52_p4), 1, %s602_s19  }
  0x12   : > { %s552_s28 = sshll.u32 (%p52_p4), %s606_s20, 4  ;;  %s554_s29 = smul.u32 (%p52_p4), 96, %s182_s27 }
  0x13   : > { %s187_s7 = scalar_lea.vmem (%p52_p4), %s763_s1, %s552_s28 }
  0x14   : > { %v200_v0 = vld [vmem:[%s187_s7] sm:$0xff] (%p52_p4)  ;;  %v202_v1 = vld [vmem:[%s187_s7 + $0x8] sm:$0xff] (%p52_p4)  ;;  %s184_s8 = scalar_lea.vmem (%p52_p4), [#allocation2], %s554_s29 }
  0x15   : > { %v204_v2 = vld [vmem:[%s187_s7 + $0x20] sm:$0xff] (%p52_p4)  ;;  %v206_v3 = vld [vmem:[%s187_s7 + $0x28] sm:$0xff] (%p52_p4)  ;;  %201 = vst [vmem:[%s184_s8] sm:$0xff] (%p52_p4), %v200_v0  ;;  %203 = vst [vmem:[%s184_s8 + $0x8] sm:$0xff] (%p52_p4), %v202_v1 }
  0x16   : > { %v208_v4 = vld [vmem:[%s187_s7 + $0x40] sm:$0xff] (%p52_p4)  ;;  %v210_v5 = vld [vmem:[%s187_s7 + $0x48] sm:$0xff] (%p52_p4)  ;;  %205 = vst [vmem:[%s184_s8 + $0x10] sm:$0xff] (%p52_p4), %v204_v2  ;;  %207 = vst [vmem:[%s184_s8 + $0x18] sm:$0xff] (%p52_p4), %v206_v3 }
  0x17   : > { %209 = vst [vmem:[%s184_s8 + $0x20] sm:$0xff] (%p52_p4), %v208_v4  ;;  %211 = vst [vmem:[%s184_s8 + $0x28] sm:$0xff] (%p52_p4), %v210_v5  ;;  %v212_v6 = vld [vmem:[%s187_s7 + $0x60] sm:$0xff] (%p52_p4)  ;;  %v214_v7 = vld [vmem:[%s187_s7 + $0x68] sm:$0xff] (%p52_p4) }
  0x18   : > { %v216_v8 = vld [vmem:[%s187_s7 + $0x80] sm:$0xff]  ;;  %213 = vst [vmem:[%s184_s8 + $0x30] sm:$0xff] %v212_v6  ;;  %215 = vst [vmem:[%s184_s8 + $0x38] sm:$0xff] %v214_v7  ;;  %v218_v9 = vld [vmem:[%s187_s7 + $0x88] sm:$0xff] }
  0x19   : > { %217 = vst [vmem:[%s184_s8 + $0x40] sm:$0xff] %v216_v8  ;;  %v220_v10 = vld [vmem:[%s187_s7 + $0xa0] sm:$0xff]  ;;  %v222_v11 = vld [vmem:[%s187_s7 + $0xa8] sm:$0xff]  ;;  %219 = vst [vmem:[%s184_s8 + $0x48] sm:$0xff] %v218_v9 }
  0x1a   : > { %221 = vst [vmem:[%s184_s8 + $0x50] sm:$0xff] %v220_v10  ;;  %223 = vst [vmem:[%s184_s8 + $0x58] sm:$0xff] %v222_v11 }
  0x1b PF: > { %p543_p7 = scmp.ge.s32.totalorder %s606_s20, 1  ;;  %p228_p8 = scmp.lt.s32.totalorder %s606_s20, 3 }
  0x1d   : > { %p229_p9 = pnand %p543_p7, %p228_p8 }
  0x1e   : > { %v324_v12 = vld [vmem:[%s765_s3] sm:$0xff] (!%p229_p9)  ;;  %v608_v14 = vmov (!%p229_p9), 0   ;;  %v325_v15 = vld [vmem:[%s765_s3 + $0x8] sm:$0xff] (!%p229_p9)  ;;  %v279_v17 = vld [vmem:[%s764_s2 + $0x18] sm:$0xff] (!%p229_p9)  ;;  %s235_s24 = sand.u32 (!%p229_p9), 1, %s598_s18   ;;  %vm397_vm0 = vcmask (!%p229_p9), 392192  }
  0x1f   : > { %232 = sbr.rel (%p229_p9) target bundleno = 414 (0x19e), region = 59  ;;  %v276_v13 = vld [vmem:[%s764_s2] sm:$0xff] (!%p229_p9)  ;;  %582 = vset.pattern.permute.xlu1 (!%p229_p9), %v608_v14  ;;  %581 = vset.pattern.permute.xlu0 (!%p229_p9), %v608_v14  ;;  %v277_v16 = vld [vmem:[%s764_s2 + $0x8] sm:$0xff] (!%p229_p9)  ;;  %v278_v18 = vld [vmem:[%s764_s2 + $0x10] sm:$0xff] (!%p229_p9)  ;;  %s544_s6 = sshll.u32 (!%p229_p9), %s235_s24, 5 }
  0x20   : > { %332 = vperm.xlu1 (!%p229_p9), %582, %v324_v12   ;;  %284 = vperm.xlu0 (!%p229_p9), %581, %v276_v13   ;;  %v327_v19 = vld [vmem:[%s765_s3 + $0x18] sm:$0xff] (!%p229_p9)  ;;  %v326_v20 = vld [vmem:[%s765_s3 + $0x10] sm:$0xff] (!%p229_p9)  ;;  %v281_v21 = vld [vmem:[%s764_s2 + $0x28] sm:$0xff] (!%p229_p9)  ;;  %s555_s27 = smul.u32 (!%p229_p9), 96, %s235_s24  ;;  %s260_s7 = scalar_lea.vmem (!%p229_p9), [#allocation3], %s544_s6 }
  0x21   : > { %433 = vmatprep.mubr.bf16.mxu0 (!%p229_p9), %v608_v14  ;;  %v280_v22 = vld [vmem:[%s764_s2 + $0x20] sm:$0xff] (!%p229_p9)  ;;  %v329_v23 = vld [vmem:[%s765_s3 + $0x28] sm:$0xff] (!%p229_p9) }
  0x22   : > { %v328_v24 = vld [vmem:[%s765_s3 + $0x20] sm:$0xff] (!%p229_p9)  ;;  %v381_v25 = vld [vmem:[%s766_s4 + $0x8] sm:$0xff] (!%p229_p9)  ;;  %s726_s28 = scalar_lea.vmem (!%p229_p9), [#allocation2], %s555_s27 }
  0x23   : > { %v380_v26 = vld [vmem:[%s766_s4] sm:$0xff] (!%p229_p9)  ;;  %v265_v30 = vld [vmem:[%s726_s28 + $0x8] sm:$0xff] (!%p229_p9)  ;;  %v266_v31 = vld [vmem:[%s726_s28 + $0x10] sm:$0xff] (!%p229_p9) }
  0x24   : > { %337 = vperm.xlu1 (!%p229_p9), %582, %v325_v15   ;;  %289 = vperm.xlu0 (!%p229_p9), %581, %v277_v16   ;;  %v264_v29 = vld [vmem:[%s726_s28] sm:$0xff] (!%p229_p9)  ;;  %v267_v32 = vld [vmem:[%s726_s28 + $0x18] sm:$0xff] (!%p229_p9)  ;;  %v270_v39 = vld [vmem:[%s726_s28 + $0x30] sm:$0xff] (!%p229_p9) }
  0x25   : > { %v271_v43 = vld [vmem:[%s726_s28 + $0x38] sm:$0xff] (!%p229_p9)  ;;  %v268_v45 = vld [vmem:[%s726_s28 + $0x20] sm:$0xff] (!%p229_p9)  ;;  %v269_v46 = vld [vmem:[%s726_s28 + $0x28] sm:$0xff] (!%p229_p9) }
  0x26   : > { %v274_v63 = vld [vmem:[%s726_s28 + $0x50] sm:$0xff]  ;;  %v275_v1 = vld [vmem:[%s726_s28 + $0x58] sm:$0xff]  ;;  %v272_v3 = vld [vmem:[%s726_s28 + $0x40] sm:$0xff]  ;;  %s553_s18 = sshll.u32 (%p669_p5), %s537_s21, 4 }
  0x27   : > { %v273_v4 = vld [vmem:[%s726_s28 + $0x48] sm:$0xff]  ;;  %s457_s10 = scalar_lea.vmem (%p669_p5), %s767_s5, %s553_s18 }
  0x28   : > { %299 = vperm.xlu1 %582, %v279_v17   ;;  %294 = vperm.xlu0 %581, %v278_v18   ;;  %v583_v17 = vld [vmem:[%s762_s0] sm:$0xff]  }
  0x2c   : > { %347 = vperm.xlu1 %582, %v327_v19   ;;  %342 = vperm.xlu0 %581, %v326_v20  }
  0x30   : > { %309 = vperm.xlu1 %582, %v281_v21   ;;  %304 = vperm.xlu0 %581, %v280_v22  }
  0x34   : > { %357 = vperm.xlu1 %582, %v329_v23   ;;  %352 = vperm.xlu0 %581, %v328_v24  }
  0x38   : > { %389 = vperm.xlu1 %582, %v381_v25   ;;  %384 = vperm.xlu0 %581, %v380_v26  }
  0x9f   : > { %v333_v27 = vpop.permute.xlu1 %332  ;;  %v285_v28 = vpop.permute.xlu0 %284 }
  0xa0   : > { %v312_v33 = vmul.f32 %v285_v28, %v264_v29  ;;  %v313_v34 = vmul.f32 %v285_v28, %v265_v30 }
  0xa2   : > { %v361_v47 = vadd.f32 %v333_v27, %v313_v34  ;;  %v360_v48 = vadd.f32 %v333_v27, %v312_v33 }
  0xa3   : > { %v338_v35 = vpop.permute.xlu1 %337  ;;  %v290_v36 = vpop.permute.xlu0 %289 }
  0xa4   : > { %v314_v37 = vmul.f32 %v290_v36, %v266_v31  ;;  %v315_v38 = vmul.f32 %v290_v36, %v267_v32 }
  0xa6   : > { %v363_v40 = vadd.f32 %v338_v35, %v315_v38  ;;  %v362_v41 = vadd.f32 %v338_v35, %v314_v37 }
  0xa7   : > { %v300_v42 = vpop.permute.xlu1 %299  ;;  %v295_v44 = vpop.permute.xlu0 %294 }
  0xa8   : > { %v375_v49 = vpack.c.bf16 %v363_v40, %v361_v47  ;;  %v374_v50 = vpack.c.bf16 %v362_v41, %v360_v48  ;;  %v318_v51 = vmul.f32 %v300_v42, %v270_v39  ;;  %v319_v52 = vmul.f32 %v300_v42, %v271_v43 }
  0xa9   : > { %v316_v53 = vmul.f32 %v295_v44, %v268_v45  ;;  %v317_v54 = vmul.f32 %v295_v44, %v269_v46 }
  0xaa   : > { %401 = vmatprep.subr.bf16.mxu0 %v375_v49 }
  0xab   : > { %v348_v55 = vpop.permute.xlu1 %347  ;;  %v343_v56 = vpop.permute.xlu0 %342  ;;  %402 = vmatpush1.bf16.msra.mxu0 %v374_v50 }
  0xac   : > { %v366_v57 = vadd.f32 %v348_v55, %v318_v51  ;;  %v367_v58 = vadd.f32 %v348_v55, %v319_v52  ;;  %v364_v59 = vadd.f32 %v343_v56, %v316_v53  ;;  %v365_v60 = vadd.f32 %v343_v56, %v317_v54 }
  0xae   : > { %v376_v61 = vpack.c.bf16 %v366_v57, %v364_v59  ;;  %v377_v62 = vpack.c.bf16 %v367_v58, %v365_v60 }
  0xaf   : > { %v310_v0 = vpop.permute.xlu1 %309  ;;  %v305_v2 = vpop.permute.xlu0 %304 }
  0xb0   : > { %403 = vmatprep.subr.bf16.mxu0 %v377_v62  ;;  %v322_v5 = vmul.f32 %v310_v0, %v274_v63  ;;  %v323_v6 = vmul.f32 %v310_v0, %v275_v1  ;;  %v320_v7 = vmul.f32 %v305_v2, %v272_v3  ;;  %v321_v8 = vmul.f32 %v305_v2, %v273_v4 }
  0xb1   : > { %404 = vmatpush1.bf16.msra.mxu0 %v376_v61 }
  0xb3   : > { %v358_v9 = vpop.permute.xlu1 %357  ;;  %v353_v10 = vpop.permute.xlu0 %352 }
  0xb4   : > { %v370_v11 = vadd.f32 %v358_v9, %v322_v5  ;;  %v371_v12 = vadd.f32 %v358_v9, %v323_v6  ;;  %v368_v13 = vadd.f32 %v353_v10, %v320_v7  ;;  %v369_v14 = vadd.f32 %v353_v10, %v321_v8 }
  0xb6   : > { %v378_v15 = vpack.c.bf16 %v370_v11, %v368_v13  ;;  %v379_v16 = vpack.c.bf16 %v371_v12, %v369_v14 }
  0xb7   : > { %v385_v18 = vpop.permute.xlu0 %384  ;;  %v390_v22 = vpop.permute.xlu1 %389 }
  0xb8   : > { %405 = vmatprep.subr.bf16.mxu0 %v379_v16 }
  0xb9   : > { %406 = vmatpush1.bf16.msra.mxu0 %v378_v15 }
  0xbc   : > { %546 = vmatmul.mubr.msk.bf16.vlgmr.msra.gmra.mrb[0].mxu0 %vm397_vm0, %v583_v17 }
 0x18f   : > { %v435_v19 = vpop.f32.mrb[0].mxu0  ;;  %454 = sbr.rel (!%p669_p5) target bundleno = 414 (0x19e), region = 67 }
 0x190   : > { %v436_v20 = vadd.f32 %v435_v19, %v385_v18  ;;  %v437_v21 = vpop.f32.mrb[1].mxu0 }
 0x191   : > { %v438_v23 = vadd.f32 %v437_v21, %v385_v18  ;;  %v439_v24 = vpop.f32.mrb[2].mxu0 }
 0x192   : > { %444 = vst [vmem:[%s260_s7] sm:$0xff] %v436_v20  ;;  %v440_v25 = vadd.f32 %v439_v24, %v390_v22  ;;  %v441_v26 = vpop.f32.mrb[3].mxu0 }
 0x193   : > { %445 = vst [vmem:[%s260_s7 + $0x8] sm:$0xff] %v438_v23  ;;  %v442_v27 = vadd.f32 %v441_v26, %v390_v22 }
 0x194   : > { %446 = vst [vmem:[%s260_s7 + $0x10] sm:$0xff] %v440_v25 }
 0x195   : > { %447 = vst [vmem:[%s260_s7 + $0x18] sm:$0xff] %v442_v27 }
 0x199   : > { %v470_v28 = vld [vmem:[%s260_s7] sm:$0xff] }
 0x19a   : > { %v472_v29 = vld [vmem:[%s260_s7 + $0x8] sm:$0xff]  ;;  %471 = vst [vmem:[%s457_s10] sm:$0xff] %v470_v28 }
 0x19b   : > { %v474_v30 = vld [vmem:[%s260_s7 + $0x10] sm:$0xff]  ;;  %473 = vst [vmem:[%s457_s10 + $0x8] sm:$0xff] %v472_v29 }
 0x19c   : > { %v476_v31 = vld [vmem:[%s260_s7 + $0x18] sm:$0xff]  ;;  %475 = vst [vmem:[%s457_s10 + $0x20] sm:$0xff] %v474_v30 }
 0x19d   : > { %477 = vst [vmem:[%s457_s10 + $0x28] sm:$0xff] %v476_v31 }
 0x19e PF: > { %p12_p10 = scmp.ge.s32.totalorder %s656_s22, 4   ;;  %s769_s18 = smov %s602_s19 }
 0x19f   : > { %s770_s19 = smov %s667_s25  ;;  %s771_s20 = smov %s656_s22 }
 0x1a0   :  { %14 = sbr.rel (!%p12_p10) target bundleno = 2 (0x2), region = 121 }

// kernel: tile.24
= control target key start
LH: loop header
LB: loop body
LE: loop exit
PB: predicated region body
PF: predicated region fallthrough
CT: control target
= control target key end

     0   :  { %s206_s0 = inlined_call_operand.<no memory space> [shape: f32[], index: 0, kind: input, shape index: {}]   ;;  %s207_s1 = inlined_call_operand.vmem [shape: f32[256,1], index: 1, kind: output, shape index: {}]  }
   0x1   :  { %v2_v0 = vstv %s206_s0 }
   0x2   :  { %3 = vst [vmem:[%s207_s1] sm:$0xff] %v2_v0  ;;  %66 = vst [vmem:[%s207_s1 + $0x8] sm:$0xff] %v2_v0 }
   0x3   :  { %67 = vst [vmem:[%s207_s1 + $0x10] sm:$0xff] %v2_v0  ;;  %68 = vst [vmem:[%s207_s1 + $0x18] sm:$0xff] %v2_v0 }
   0x4   :  { %69 = vst [vmem:[%s207_s1 + $0x20] sm:$0xff] %v2_v0  ;;  %70 = vst [vmem:[%s207_s1 + $0x28] sm:$0xff] %v2_v0 }
   0x5   :  { %71 = vst [vmem:[%s207_s1 + $0x30] sm:$0xff] %v2_v0  ;;  %72 = vst [vmem:[%s207_s1 + $0x38] sm:$0xff] %v2_v0 }
   0x6   :  { %73 = vst [vmem:[%s207_s1 + $0x40] sm:$0xff] %v2_v0  ;;  %74 = vst [vmem:[%s207_s1 + $0x48] sm:$0xff] %v2_v0 }
   0x7   :  { %75 = vst [vmem:[%s207_s1 + $0x50] sm:$0xff] %v2_v0  ;;  %76 = vst [vmem:[%s207_s1 + $0x58] sm:$0xff] %v2_v0 }
   0x8   :  { %77 = vst [vmem:[%s207_s1 + $0x60] sm:$0xff] %v2_v0  ;;  %78 = vst [vmem:[%s207_s1 + $0x68] sm:$0xff] %v2_v0 }
   0x9   :  { %79 = vst [vmem:[%s207_s1 + $0x70] sm:$0xff] %v2_v0  ;;  %80 = vst [vmem:[%s207_s1 + $0x78] sm:$0xff] %v2_v0 }
   0xa   :  { %81 = vst [vmem:[%s207_s1 + $0x80] sm:$0xff] %v2_v0  ;;  %82 = vst [vmem:[%s207_s1 + $0x88] sm:$0xff] %v2_v0 }
   0xb   :  { %83 = vst [vmem:[%s207_s1 + $0x90] sm:$0xff] %v2_v0  ;;  %84 = vst [vmem:[%s207_s1 + $0x98] sm:$0xff] %v2_v0 }
   0xc   :  { %85 = vst [vmem:[%s207_s1 + $0xa0] sm:$0xff] %v2_v0  ;;  %86 = vst [vmem:[%s207_s1 + $0xa8] sm:$0xff] %v2_v0 }
   0xd   :  { %87 = vst [vmem:[%s207_s1 + $0xb0] sm:$0xff] %v2_v0  ;;  %88 = vst [vmem:[%s207_s1 + $0xb8] sm:$0xff] %v2_v0 }
   0xe   :  { %89 = vst [vmem:[%s207_s1 + $0xc0] sm:$0xff] %v2_v0  ;;  %90 = vst [vmem:[%s207_s1 + $0xc8] sm:$0xff] %v2_v0 }
   0xf   :  { %91 = vst [vmem:[%s207_s1 + $0xd0] sm:$0xff] %v2_v0  ;;  %92 = vst [vmem:[%s207_s1 + $0xd8] sm:$0xff] %v2_v0 }
  0x10   :  { %93 = vst [vmem:[%s207_s1 + $0xe0] sm:$0xff] %v2_v0  ;;  %94 = vst [vmem:[%s207_s1 + $0xe8] sm:$0xff] %v2_v0 }
  0x11   :  { %95 = vst [vmem:[%s207_s1 + $0xf0] sm:$0xff] %v2_v0  ;;  %96 = vst [vmem:[%s207_s1 + $0xf8] sm:$0xff] %v2_v0 }

// kernel: tile.31
= control target key start
LH: loop header
LB: loop body
LE: loop exit
PB: predicated region body
PF: predicated region fallthrough
CT: control target
= control target key end

     0   :  { %s28_s0 = inlined_call_operand.vmem [shape: f32[32], index: 0, kind: input, shape index: {}]   ;;  %s29_s1 = inlined_call_operand.vmem [shape: f32[16,32], index: 1, kind: output, shape index: {}]  }
   0x1   :  { %v4_v0 = vld [vmem:[%s28_s0] ss:$0 sm:$0xff] }
   0x2   :  { %5 = vst [vmem:[%s29_s1] sm:$0xff] %v4_v0  ;;  %8 = vst [vmem:[%s29_s1 + $0x8] sm:$0xff] %v4_v0 }

// kernel: tile.0
= control target key start
LH: loop header
LB: loop body
LE: loop exit
PB: predicated region body
PF: predicated region fallthrough
CT: control target
= control target key end

     0   :  { %s1883_s8 = smov 126   ;;  %s1884_s9 = smov 127   ;;  %vm3_vm0 = vcmask 7168   ;;  %s4050_s0 = inlined_call_operand.vmem [shape: f32[16,32], index: 0, kind: input, shape index: {}]   ;;  %s4051_s1 = inlined_call_operand.vmem [shape: f32[512,1], index: 1, kind: output, shape index: {}]  }
   0x1   :  { %v1927_v0 = vld [vmem:[%s4050_s0] sm:$0xff]   ;;  %v1934_v1 = vld [vmem:[%s4050_s0 + $0x8] sm:$0xff]   ;;  %s1885_s12 = smov 125   ;;  %s1886_s13 = smov 124  }
   0x2   :  { %80 = vrot.lane.b32.xlu1 %v1927_v0, %s1883_s8  ;;  %39 = vrot.lane.b32.xlu0 %v1927_v0, %s1884_s9  ;;  %s1887_s14 = smov 123   ;;  %s1888_s15 = smov 122   ;;  %v2_v2 = vld [vmem:[%s4050_s0] sm:$0xff]   ;;  %v1316_v3 = vld [vmem:[%s4050_s0 + $0x8] sm:$0xff]  }
   0x3   :  { %s1889_s16 = smov 121   ;;  %s1890_s17 = smov 120   ;;  %4 = vst.msk [vmem:[%s4051_s1] sm:$0x1] %vm3_vm0, %v2_v2   ;;  %1309 = vst.msk [vmem:[%s4051_s1 + $0x1f] sm:$0x2] %vm3_vm0, %v2_v2  }
   0x4   :  { %s1891_s18 = smov 119   ;;  %s1892_s19 = smov 118   ;;  %1310 = vst.msk [vmem:[%s4051_s1 + $0x3e] sm:$0x4] %vm3_vm0, %v2_v2   ;;  %1311 = vst.msk [vmem:[%s4051_s1 + $0x5d] sm:$0x8] %vm3_vm0, %v2_v2  }
   0x5   :  { %s1893_s20 = smov 117   ;;  %s1894_s21 = smov 116   ;;  %1312 = vst.msk [vmem:[%s4051_s1 + $0x7c] sm:$0x10] %vm3_vm0, %v2_v2   ;;  %1313 = vst.msk [vmem:[%s4051_s1 + $0x9b] sm:$0x20] %vm3_vm0, %v2_v2  }
   0x6   :  { %101 = vrot.lane.b32.xlu1 %v1934_v1, %s1883_s8  ;;  %60 = vrot.lane.b32.xlu0 %v1934_v1, %s1884_s9  ;;  %s1895_s22 = smov 115   ;;  %s1896_s23 = smov 114   ;;  %1314 = vst.msk [vmem:[%s4051_s1 + $0xba] sm:$0x40] %vm3_vm0, %v2_v2   ;;  %1315 = vst.msk [vmem:[%s4051_s1 + $0xd9] sm:$0x80] %vm3_vm0, %v2_v2  }
   0x7   :  { %s1897_s24 = smov 113   ;;  %s1898_s25 = smov 112   ;;  %1317 = vst.msk [vmem:[%s4051_s1 + $0x100] sm:$0x1] %vm3_vm0, %v1316_v3   ;;  %1318 = vst.msk [vmem:[%s4051_s1 + $0x11f] sm:$0x2] %vm3_vm0, %v1316_v3  }
   0x8   :  { %s1899_s26 = smov 111   ;;  %s1900_s27 = smov 110   ;;  %1319 = vst.msk [vmem:[%s4051_s1 + $0x13e] sm:$0x4] %vm3_vm0, %v1316_v3   ;;  %1320 = vst.msk [vmem:[%s4051_s1 + $0x15d] sm:$0x8] %vm3_vm0, %v1316_v3  }
   0x9   :  { %s1901_s28 = smov 109   ;;  %s1902_s29 = smov 108   ;;  %1321 = vst.msk [vmem:[%s4051_s1 + $0x17c] sm:$0x10] %vm3_vm0, %v1316_v3   ;;  %1322 = vst.msk [vmem:[%s4051_s1 + $0x19b] sm:$0x20] %vm3_vm0, %v1316_v3  }
   0xa   :  { %142 = vrot.lane.b32.xlu1 %v1934_v1, %s1885_s12  ;;  %121 = vrot.lane.b32.xlu0 %v1927_v0, %s1885_s12  ;;  %s1903_s30 = smov 107   ;;  %s1904_s2 = smov 106   ;;  %1323 = vst.msk [vmem:[%s4051_s1 + $0x1ba] sm:$0x40] %vm3_vm0, %v1316_v3   ;;  %1324 = vst.msk [vmem:[%s4051_s1 + $0x1d9] sm:$0x80] %vm3_vm0, %v1316_v3  }
   0xb   :  { %s1905_s3 = smov 105   ;;  %s1906_s4 = smov 104  }
   0xc   :  { %s1907_s5 = smov 103   ;;  %s1908_s6 = smov 102  }
   0xd   :  { %s1909_s7 = smov 101  }
   0xe   :  { %183 = vrot.lane.b32.xlu1 %v1934_v1, %s1886_s13  ;;  %162 = vrot.lane.b32.xlu0 %v1927_v0, %s1886_s13  ;;  %s1910_s13 = smov 100  }
  0x12   :  { %224 = vrot.lane.b32.xlu1 %v1934_v1, %s1887_s14  ;;  %203 = vrot.lane.b32.xlu0 %v1927_v0, %s1887_s14  ;;  %s1911_s14 = smov 99  }
  0x16   :  { %265 = vrot.lane.b32.xlu1 %v1934_v1, %s1888_s15  ;;  %244 = vrot.lane.b32.xlu0 %v1927_v0, %s1888_s15 }
  0x1a   :  { %306 = vrot.lane.b32.xlu1 %v1934_v1, %s1889_s16  ;;  %285 = vrot.lane.b32.xlu0 %v1927_v0, %s1889_s16 }
  0x1e   :  { %347 = vrot.lane.b32.xlu1 %v1934_v1, %s1890_s17  ;;  %326 = vrot.lane.b32.xlu0 %v1927_v0, %s1890_s17  ;;  %s1912_s17 = smov 98  }
  0x22   :  { %388 = vrot.lane.b32.xlu1 %v1934_v1, %s1891_s18  ;;  %367 = vrot.lane.b32.xlu0 %v1927_v0, %s1891_s18 }
  0x26   :  { %429 = vrot.lane.b32.xlu1 %v1934_v1, %s1892_s19  ;;  %408 = vrot.lane.b32.xlu0 %v1927_v0, %s1892_s19 }
  0x2a   :  { %470 = vrot.lane.b32.xlu1 %v1934_v1, %s1893_s20  ;;  %449 = vrot.lane.b32.xlu0 %v1927_v0, %s1893_s20  ;;  %s1913_s20 = smov 97  }
  0x2e   :  { %511 = vrot.lane.b32.xlu1 %v1934_v1, %s1894_s21  ;;  %490 = vrot.lane.b32.xlu0 %v1927_v0, %s1894_s21 }
  0x32   :  { %552 = vrot.lane.b32.xlu1 %v1934_v1, %s1895_s22  ;;  %531 = vrot.lane.b32.xlu0 %v1927_v0, %s1895_s22 }
  0x36   :  { %593 = vrot.lane.b32.xlu1 %v1934_v1, %s1896_s23  ;;  %572 = vrot.lane.b32.xlu0 %v1927_v0, %s1896_s23 }
  0x3a   :  { %634 = vrot.lane.b32.xlu1 %v1934_v1, %s1897_s24  ;;  %613 = vrot.lane.b32.xlu0 %v1927_v0, %s1897_s24 }
  0x3e   :  { %675 = vrot.lane.b32.xlu1 %v1934_v1, %s1898_s25  ;;  %654 = vrot.lane.b32.xlu0 %v1927_v0, %s1898_s25 }
  0x42   :  { %716 = vrot.lane.b32.xlu1 %v1934_v1, %s1899_s26  ;;  %695 = vrot.lane.b32.xlu0 %v1927_v0, %s1899_s26 }
  0x46   :  { %757 = vrot.lane.b32.xlu1 %v1934_v1, %s1900_s27  ;;  %736 = vrot.lane.b32.xlu0 %v1927_v0, %s1900_s27 }
  0x4a   :  { %798 = vrot.lane.b32.xlu1 %v1934_v1, %s1901_s28  ;;  %777 = vrot.lane.b32.xlu0 %v1927_v0, %s1901_s28 }
  0x4e   :  { %839 = vrot.lane.b32.xlu1 %v1934_v1, %s1902_s29  ;;  %818 = vrot.lane.b32.xlu0 %v1927_v0, %s1902_s29 }
  0x52   :  { %880 = vrot.lane.b32.xlu1 %v1934_v1, %s1903_s30  ;;  %859 = vrot.lane.b32.xlu0 %v1927_v0, %s1903_s30 }
  0x56   :  { %921 = vrot.lane.b32.xlu1 %v1934_v1, %s1904_s2  ;;  %900 = vrot.lane.b32.xlu0 %v1927_v0, %s1904_s2 }
  0x5a   :  { %962 = vrot.lane.b32.xlu1 %v1934_v1, %s1905_s3  ;;  %941 = vrot.lane.b32.xlu0 %v1927_v0, %s1905_s3 }
  0x5e   :  { %1003 = vrot.lane.b32.xlu1 %v1934_v1, %s1906_s4  ;;  %982 = vrot.lane.b32.xlu0 %v1927_v0, %s1906_s4 }
  0x62   :  { %1044 = vrot.lane.b32.xlu1 %v1934_v1, %s1907_s5  ;;  %1023 = vrot.lane.b32.xlu0 %v1927_v0, %s1907_s5 }
  0x66   :  { %1085 = vrot.lane.b32.xlu1 %v1934_v1, %s1908_s6  ;;  %1064 = vrot.lane.b32.xlu0 %v1927_v0, %s1908_s6 }
  0x6a   :  { %1126 = vrot.lane.b32.xlu1 %v1934_v1, %s1909_s7  ;;  %1105 = vrot.lane.b32.xlu0 %v1927_v0, %s1909_s7 }
  0x6e   :  { %1167 = vrot.lane.b32.xlu1 %v1934_v1, %s1910_s13  ;;  %1146 = vrot.lane.b32.xlu0 %v1927_v0, %s1910_s13 }
  0x72   :  { %1208 = vrot.lane.b32.xlu1 %v1934_v1, %s1911_s14  ;;  %1187 = vrot.lane.b32.xlu0 %v1927_v0, %s1911_s14 }
  0x74   :  { %v81_v4 = vpop.permute.xlu1 %80   ;;  %v40_v5 = vpop.permute.xlu0 %39  }
  0x75   :  { %1342 = vst.msk [vmem:[%s4051_s1 + $0x2] sm:$0x1] %vm3_vm0, %v81_v4   ;;  %1343 = vst.msk [vmem:[%s4051_s1 + $0x21] sm:$0x2] %vm3_vm0, %v81_v4  }
  0x76   :  { %1344 = vst.msk [vmem:[%s4051_s1 + $0x40] sm:$0x4] %vm3_vm0, %v81_v4   ;;  %1345 = vst.msk [vmem:[%s4051_s1 + $0x5f] sm:$0x8] %vm3_vm0, %v81_v4   ;;  %1249 = vrot.lane.b32.xlu1 %v1934_v1, %s1912_s17  ;;  %1228 = vrot.lane.b32.xlu0 %v1927_v0, %s1912_s17 }
  0x77   :  { %1346 = vst.msk [vmem:[%s4051_s1 + $0x7e] sm:$0x10] %vm3_vm0, %v81_v4   ;;  %1347 = vst.msk [vmem:[%s4051_s1 + $0x9d] sm:$0x20] %vm3_vm0, %v81_v4  }
  0x78   :  { %1348 = vst.msk [vmem:[%s4051_s1 + $0xbc] sm:$0x40] %vm3_vm0, %v81_v4   ;;  %1349 = vst.msk [vmem:[%s4051_s1 + $0xdb] sm:$0x80] %vm3_vm0, %v81_v4   ;;  %v102_v6 = vpop.permute.xlu1 %101   ;;  %v61_v7 = vpop.permute.xlu0 %60  }
  0x79   :  { %1325 = vst.msk [vmem:[%s4051_s1 + $0x1] sm:$0x1] %vm3_vm0, %v40_v5   ;;  %1326 = vst.msk [vmem:[%s4051_s1 + $0x20] sm:$0x2] %vm3_vm0, %v40_v5  }
  0x7a   :  { %1327 = vst.msk [vmem:[%s4051_s1 + $0x3f] sm:$0x4] %vm3_vm0, %v40_v5   ;;  %1328 = vst.msk [vmem:[%s4051_s1 + $0x5e] sm:$0x8] %vm3_vm0, %v40_v5   ;;  %1290 = vrot.lane.b32.xlu1 %v1934_v1, %s1913_s20  ;;  %1269 = vrot.lane.b32.xlu0 %v1927_v0, %s1913_s20 }
  0x7b   :  { %1329 = vst.msk [vmem:[%s4051_s1 + $0x7d] sm:$0x10] %vm3_vm0, %v40_v5   ;;  %1330 = vst.msk [vmem:[%s4051_s1 + $0x9c] sm:$0x20] %vm3_vm0, %v40_v5  }
  0x7c   :  { %1331 = vst.msk [vmem:[%s4051_s1 + $0xbb] sm:$0x40] %vm3_vm0, %v40_v5   ;;  %1332 = vst.msk [vmem:[%s4051_s1 + $0xda] sm:$0x80] %vm3_vm0, %v40_v5   ;;  %v143_v8 = vpop.permute.xlu1 %142   ;;  %v122_v9 = vpop.permute.xlu0 %121  }
  0x7d   :  { %1351 = vst.msk [vmem:[%s4051_s1 + $0x102] sm:$0x1] %vm3_vm0, %v102_v6   ;;  %1352 = vst.msk [vmem:[%s4051_s1 + $0x121] sm:$0x2] %vm3_vm0, %v102_v6  }
  0x7e   :  { %1353 = vst.msk [vmem:[%s4051_s1 + $0x140] sm:$0x4] %vm3_vm0, %v102_v6   ;;  %1354 = vst.msk [vmem:[%s4051_s1 + $0x15f] sm:$0x8] %vm3_vm0, %v102_v6  }
  0x7f   :  { %1355 = vst.msk [vmem:[%s4051_s1 + $0x17e] sm:$0x10] %vm3_vm0, %v102_v6   ;;  %1356 = vst.msk [vmem:[%s4051_s1 + $0x19d] sm:$0x20] %vm3_vm0, %v102_v6  }
  0x80   :  { %1357 = vst.msk [vmem:[%s4051_s1 + $0x1bc] sm:$0x40] %vm3_vm0, %v102_v6   ;;  %1358 = vst.msk [vmem:[%s4051_s1 + $0x1db] sm:$0x80] %vm3_vm0, %v102_v6   ;;  %v184_v10 = vpop.permute.xlu1 %183   ;;  %v163_v11 = vpop.permute.xlu0 %162  }
  0x81   :  { %1334 = vst.msk [vmem:[%s4051_s1 + $0x101] sm:$0x1] %vm3_vm0, %v61_v7   ;;  %1335 = vst.msk [vmem:[%s4051_s1 + $0x120] sm:$0x2] %vm3_vm0, %v61_v7  }
  0x82   :  { %1336 = vst.msk [vmem:[%s4051_s1 + $0x13f] sm:$0x4] %vm3_vm0, %v61_v7   ;;  %1337 = vst.msk [vmem:[%s4051_s1 + $0x15e] sm:$0x8] %vm3_vm0, %v61_v7  }
  0x83   :  { %1338 = vst.msk [vmem:[%s4051_s1 + $0x17d] sm:$0x10] %vm3_vm0, %v61_v7   ;;  %1339 = vst.msk [vmem:[%s4051_s1 + $0x19c] sm:$0x20] %vm3_vm0, %v61_v7  }
  0x84   :  { %1340 = vst.msk [vmem:[%s4051_s1 + $0x1bb] sm:$0x40] %vm3_vm0, %v61_v7   ;;  %1341 = vst.msk [vmem:[%s4051_s1 + $0x1da] sm:$0x80] %vm3_vm0, %v61_v7   ;;  %v225_v12 = vpop.permute.xlu1 %224   ;;  %v204_v13 = vpop.permute.xlu0 %203  }
  0x85   :  { %1368 = vst.msk [vmem:[%s4051_s1 + $0x103] sm:$0x1] %vm3_vm0, %v143_v8   ;;  %1369 = vst.msk [vmem:[%s4051_s1 + $0x122] sm:$0x2] %vm3_vm0, %v143_v8  }
  0x86   :  { %1370 = vst.msk [vmem:[%s4051_s1 + $0x141] sm:$0x4] %vm3_vm0, %v143_v8   ;;  %1371 = vst.msk [vmem:[%s4051_s1 + $0x160] sm:$0x8] %vm3_vm0, %v143_v8  }
  0x87   :  { %1372 = vst.msk [vmem:[%s4051_s1 + $0x17f] sm:$0x10] %vm3_vm0, %v143_v8   ;;  %1373 = vst.msk [vmem:[%s4051_s1 + $0x19e] sm:$0x20] %vm3_vm0, %v143_v8  }
  0x88   :  { %1374 = vst.msk [vmem:[%s4051_s1 + $0x1bd] sm:$0x40] %vm3_vm0, %v143_v8   ;;  %1375 = vst.msk [vmem:[%s4051_s1 + $0x1dc] sm:$0x80] %vm3_vm0, %v143_v8   ;;  %v266_v14 = vpop.permute.xlu1 %265   ;;  %v245_v15 = vpop.permute.xlu0 %244  }
  0x89   :  { %1359 = vst.msk [vmem:[%s4051_s1 + $0x3] sm:$0x1] %vm3_vm0, %v122_v9   ;;  %1360 = vst.msk [vmem:[%s4051_s1 + $0x22] sm:$0x2] %vm3_vm0, %v122_v9  }
  0x8a   :  { %1361 = vst.msk [vmem:[%s4051_s1 + $0x41] sm:$0x4] %vm3_vm0, %v122_v9   ;;  %1362 = vst.msk [vmem:[%s4051_s1 + $0x60] sm:$0x8] %vm3_vm0, %v122_v9  }
  0x8b   :  { %1363 = vst.msk [vmem:[%s4051_s1 + $0x7f] sm:$0x10] %vm3_vm0, %v122_v9   ;;  %1364 = vst.msk [vmem:[%s4051_s1 + $0x9e] sm:$0x20] %vm3_vm0, %v122_v9  }
  0x8c   :  { %1365 = vst.msk [vmem:[%s4051_s1 + $0xbd] sm:$0x40] %vm3_vm0, %v122_v9   ;;  %1366 = vst.msk [vmem:[%s4051_s1 + $0xdc] sm:$0x80] %vm3_vm0, %v122_v9   ;;  %v307_v16 = vpop.permute.xlu1 %306   ;;  %v286_v17 = vpop.permute.xlu0 %285  }
  0x8d   :  { %1385 = vst.msk [vmem:[%s4051_s1 + $0x104] sm:$0x1] %vm3_vm0, %v184_v10   ;;  %1386 = vst.msk [vmem:[%s4051_s1 + $0x123] sm:$0x2] %vm3_vm0, %v184_v10  }
  0x8e   :  { %1387 = vst.msk [vmem:[%s4051_s1 + $0x142] sm:$0x4] %vm3_vm0, %v184_v10   ;;  %1388 = vst.msk [vmem:[%s4051_s1 + $0x161] sm:$0x8] %vm3_vm0, %v184_v10  }
  0x8f   :  { %1389 = vst.msk [vmem:[%s4051_s1 + $0x180] sm:$0x10] %vm3_vm0, %v184_v10   ;;  %1390 = vst.msk [vmem:[%s4051_s1 + $0x19f] sm:$0x20] %vm3_vm0, %v184_v10  }
  0x90   :  { %1391 = vst.msk [vmem:[%s4051_s1 + $0x1be] sm:$0x40] %vm3_vm0, %v184_v10   ;;  %1392 = vst.msk [vmem:[%s4051_s1 + $0x1dd] sm:$0x80] %vm3_vm0, %v184_v10   ;;  %v348_v18 = vpop.permute.xlu1 %347   ;;  %v327_v19 = vpop.permute.xlu0 %326  }
  0x91   :  { %1376 = vst.msk [vmem:[%s4051_s1 + $0x4] sm:$0x1] %vm3_vm0, %v163_v11   ;;  %1377 = vst.msk [vmem:[%s4051_s1 + $0x23] sm:$0x2] %vm3_vm0, %v163_v11  }
  0x92   :  { %1378 = vst.msk [vmem:[%s4051_s1 + $0x42] sm:$0x4] %vm3_vm0, %v163_v11   ;;  %1379 = vst.msk [vmem:[%s4051_s1 + $0x61] sm:$0x8] %vm3_vm0, %v163_v11  }
  0x93   :  { %1380 = vst.msk [vmem:[%s4051_s1 + $0x80] sm:$0x10] %vm3_vm0, %v163_v11   ;;  %1381 = vst.msk [vmem:[%s4051_s1 + $0x9f] sm:$0x20] %vm3_vm0, %v163_v11  }
  0x94   :  { %1382 = vst.msk [vmem:[%s4051_s1 + $0xbe] sm:$0x40] %vm3_vm0, %v163_v11   ;;  %1383 = vst.msk [vmem:[%s4051_s1 + $0xdd] sm:$0x80] %vm3_vm0, %v163_v11   ;;  %v389_v20 = vpop.permute.xlu1 %388   ;;  %v368_v21 = vpop.permute.xlu0 %367  }
  0x95   :  { %1402 = vst.msk [vmem:[%s4051_s1 + $0x105] sm:$0x1] %vm3_vm0, %v225_v12   ;;  %1403 = vst.msk [vmem:[%s4051_s1 + $0x124] sm:$0x2] %vm3_vm0, %v225_v12  }
  0x96   :  { %1404 = vst.msk [vmem:[%s4051_s1 + $0x143] sm:$0x4] %vm3_vm0, %v225_v12   ;;  %1405 = vst.msk [vmem:[%s4051_s1 + $0x162] sm:$0x8] %vm3_vm0, %v225_v12  }
  0x97   :  { %1406 = vst.msk [vmem:[%s4051_s1 + $0x181] sm:$0x10] %vm3_vm0, %v225_v12   ;;  %1407 = vst.msk [vmem:[%s4051_s1 + $0x1a0] sm:$0x20] %vm3_vm0, %v225_v12  }
  0x98   :  { %1408 = vst.msk [vmem:[%s4051_s1 + $0x1bf] sm:$0x40] %vm3_vm0, %v225_v12   ;;  %1409 = vst.msk [vmem:[%s4051_s1 + $0x1de] sm:$0x80] %vm3_vm0, %v225_v12   ;;  %v430_v22 = vpop.permute.xlu1 %429   ;;  %v409_v23 = vpop.permute.xlu0 %408  }
  0x99   :  { %1393 = vst.msk [vmem:[%s4051_s1 + $0x5] sm:$0x1] %vm3_vm0, %v204_v13   ;;  %1394 = vst.msk [vmem:[%s4051_s1 + $0x24] sm:$0x2] %vm3_vm0, %v204_v13  }
  0x9a   :  { %1395 = vst.msk [vmem:[%s4051_s1 + $0x43] sm:$0x4] %vm3_vm0, %v204_v13   ;;  %1396 = vst.msk [vmem:[%s4051_s1 + $0x62] sm:$0x8] %vm3_vm0, %v204_v13  }
  0x9b   :  { %1397 = vst.msk [vmem:[%s4051_s1 + $0x81] sm:$0x10] %vm3_vm0, %v204_v13   ;;  %1398 = vst.msk [vmem:[%s4051_s1 + $0xa0] sm:$0x20] %vm3_vm0, %v204_v13  }
  0x9c   :  { %1399 = vst.msk [vmem:[%s4051_s1 + $0xbf] sm:$0x40] %vm3_vm0, %v204_v13   ;;  %1400 = vst.msk [vmem:[%s4051_s1 + $0xde] sm:$0x80] %vm3_vm0, %v204_v13   ;;  %v471_v24 = vpop.permute.xlu1 %470   ;;  %v450_v25 = vpop.permute.xlu0 %449  }
  0x9d   :  { %1419 = vst.msk [vmem:[%s4051_s1 + $0x106] sm:$0x1] %vm3_vm0, %v266_v14   ;;  %1420 = vst.msk [vmem:[%s4051_s1 + $0x125] sm:$0x2] %vm3_vm0, %v266_v14  }
  0x9e   :  { %1421 = vst.msk [vmem:[%s4051_s1 + $0x144] sm:$0x4] %vm3_vm0, %v266_v14   ;;  %1422 = vst.msk [vmem:[%s4051_s1 + $0x163] sm:$0x8] %vm3_vm0, %v266_v14  }
  0x9f   :  { %1423 = vst.msk [vmem:[%s4051_s1 + $0x182] sm:$0x10] %vm3_vm0, %v266_v14   ;;  %1424 = vst.msk [vmem:[%s4051_s1 + $0x1a1] sm:$0x20] %vm3_vm0, %v266_v14  }
  0xa0   :  { %1425 = vst.msk [vmem:[%s4051_s1 + $0x1c0] sm:$0x40] %vm3_vm0, %v266_v14   ;;  %1426 = vst.msk [vmem:[%s4051_s1 + $0x1df] sm:$0x80] %vm3_vm0, %v266_v14   ;;  %v512_v26 = vpop.permute.xlu1 %511   ;;  %v491_v27 = vpop.permute.xlu0 %490  }
  0xa1   :  { %1410 = vst.msk [vmem:[%s4051_s1 + $0x6] sm:$0x1] %vm3_vm0, %v245_v15   ;;  %1411 = vst.msk [vmem:[%s4051_s1 + $0x25] sm:$0x2] %vm3_vm0, %v245_v15  }
  0xa2   :  { %1412 = vst.msk [vmem:[%s4051_s1 + $0x44] sm:$0x4] %vm3_vm0, %v245_v15   ;;  %1413 = vst.msk [vmem:[%s4051_s1 + $0x63] sm:$0x8] %vm3_vm0, %v245_v15  }
  0xa3   :  { %1414 = vst.msk [vmem:[%s4051_s1 + $0x82] sm:$0x10] %vm3_vm0, %v245_v15   ;;  %1415 = vst.msk [vmem:[%s4051_s1 + $0xa1] sm:$0x20] %vm3_vm0, %v245_v15  }
  0xa4   :  { %1416 = vst.msk [vmem:[%s4051_s1 + $0xc0] sm:$0x40] %vm3_vm0, %v245_v15   ;;  %1417 = vst.msk [vmem:[%s4051_s1 + $0xdf] sm:$0x80] %vm3_vm0, %v245_v15   ;;  %v553_v28 = vpop.permute.xlu1 %552   ;;  %v532_v29 = vpop.permute.xlu0 %531  }
  0xa5   :  { %1436 = vst.msk [vmem:[%s4051_s1 + $0x107] sm:$0x1] %vm3_vm0, %v307_v16   ;;  %1437 = vst.msk [vmem:[%s4051_s1 + $0x126] sm:$0x2] %vm3_vm0, %v307_v16  }
  0xa6   :  { %1438 = vst.msk [vmem:[%s4051_s1 + $0x145] sm:$0x4] %vm3_vm0, %v307_v16   ;;  %1439 = vst.msk [vmem:[%s4051_s1 + $0x164] sm:$0x8] %vm3_vm0, %v307_v16  }
  0xa7   :  { %1440 = vst.msk [vmem:[%s4051_s1 + $0x183] sm:$0x10] %vm3_vm0, %v307_v16   ;;  %1441 = vst.msk [vmem:[%s4051_s1 + $0x1a2] sm:$0x20] %vm3_vm0, %v307_v16  }
  0xa8   :  { %1442 = vst.msk [vmem:[%s4051_s1 + $0x1c1] sm:$0x40] %vm3_vm0, %v307_v16   ;;  %1443 = vst.msk [vmem:[%s4051_s1 + $0x1e0] sm:$0x80] %vm3_vm0, %v307_v16   ;;  %v594_v30 = vpop.permute.xlu1 %593   ;;  %v573_v31 = vpop.permute.xlu0 %572  }
  0xa9   :  { %1427 = vst.msk [vmem:[%s4051_s1 + $0x7] sm:$0x1] %vm3_vm0, %v286_v17   ;;  %1428 = vst.msk [vmem:[%s4051_s1 + $0x26] sm:$0x2] %vm3_vm0, %v286_v17  }
  0xaa   :  { %1429 = vst.msk [vmem:[%s4051_s1 + $0x45] sm:$0x4] %vm3_vm0, %v286_v17   ;;  %1430 = vst.msk [vmem:[%s4051_s1 + $0x64] sm:$0x8] %vm3_vm0, %v286_v17  }
  0xab   :  { %1431 = vst.msk [vmem:[%s4051_s1 + $0x83] sm:$0x10] %vm3_vm0, %v286_v17   ;;  %1432 = vst.msk [vmem:[%s4051_s1 + $0xa2] sm:$0x20] %vm3_vm0, %v286_v17  }
  0xac   :  { %1433 = vst.msk [vmem:[%s4051_s1 + $0xc1] sm:$0x40] %vm3_vm0, %v286_v17   ;;  %1434 = vst.msk [vmem:[%s4051_s1 + $0xe0] sm:$0x80] %vm3_vm0, %v286_v17   ;;  %v635_v32 = vpop.permute.xlu1 %634   ;;  %v614_v33 = vpop.permute.xlu0 %613  }
  0xad   :  { %1453 = vst.msk [vmem:[%s4051_s1 + $0x108] sm:$0x1] %vm3_vm0, %v348_v18   ;;  %1454 = vst.msk [vmem:[%s4051_s1 + $0x127] sm:$0x2] %vm3_vm0, %v348_v18  }
  0xae   :  { %1455 = vst.msk [vmem:[%s4051_s1 + $0x146] sm:$0x4] %vm3_vm0, %v348_v18   ;;  %1456 = vst.msk [vmem:[%s4051_s1 + $0x165] sm:$0x8] %vm3_vm0, %v348_v18  }
  0xaf   :  { %1457 = vst.msk [vmem:[%s4051_s1 + $0x184] sm:$0x10] %vm3_vm0, %v348_v18   ;;  %1458 = vst.msk [vmem:[%s4051_s1 + $0x1a3] sm:$0x20] %vm3_vm0, %v348_v18  }
  0xb0   :  { %1459 = vst.msk [vmem:[%s4051_s1 + $0x1c2] sm:$0x40] %vm3_vm0, %v348_v18   ;;  %1460 = vst.msk [vmem:[%s4051_s1 + $0x1e1] sm:$0x80] %vm3_vm0, %v348_v18   ;;  %v676_v34 = vpop.permute.xlu1 %675   ;;  %v655_v35 = vpop.permute.xlu0 %654  }
  0xb1   :  { %1444 = vst.msk [vmem:[%s4051_s1 + $0x8] sm:$0x1] %vm3_vm0, %v327_v19   ;;  %1445 = vst.msk [vmem:[%s4051_s1 + $0x27] sm:$0x2] %vm3_vm0, %v327_v19  }
  0xb2   :  { %1446 = vst.msk [vmem:[%s4051_s1 + $0x46] sm:$0x4] %vm3_vm0, %v327_v19   ;;  %1447 = vst.msk [vmem:[%s4051_s1 + $0x65] sm:$0x8] %vm3_vm0, %v327_v19  }
  0xb3   :  { %1448 = vst.msk [vmem:[%s4051_s1 + $0x84] sm:$0x10] %vm3_vm0, %v327_v19   ;;  %1449 = vst.msk [vmem:[%s4051_s1 + $0xa3] sm:$0x20] %vm3_vm0, %v327_v19  }
  0xb4   :  { %1450 = vst.msk [vmem:[%s4051_s1 + $0xc2] sm:$0x40] %vm3_vm0, %v327_v19   ;;  %1451 = vst.msk [vmem:[%s4051_s1 + $0xe1] sm:$0x80] %vm3_vm0, %v327_v19   ;;  %v717_v36 = vpop.permute.xlu1 %716   ;;  %v696_v37 = vpop.permute.xlu0 %695  }
  0xb5   :  { %1470 = vst.msk [vmem:[%s4051_s1 + $0x109] sm:$0x1] %vm3_vm0, %v389_v20   ;;  %1471 = vst.msk [vmem:[%s4051_s1 + $0x128] sm:$0x2] %vm3_vm0, %v389_v20  }
  0xb6   :  { %1472 = vst.msk [vmem:[%s4051_s1 + $0x147] sm:$0x4] %vm3_vm0, %v389_v20   ;;  %1473 = vst.msk [vmem:[%s4051_s1 + $0x166] sm:$0x8] %vm3_vm0, %v389_v20  }
  0xb7   :  { %1474 = vst.msk [vmem:[%s4051_s1 + $0x185] sm:$0x10] %vm3_vm0, %v389_v20   ;;  %1475 = vst.msk [vmem:[%s4051_s1 + $0x1a4] sm:$0x20] %vm3_vm0, %v389_v20  }
  0xb8   :  { %1476 = vst.msk [vmem:[%s4051_s1 + $0x1c3] sm:$0x40] %vm3_vm0, %v389_v20   ;;  %1477 = vst.msk [vmem:[%s4051_s1 + $0x1e2] sm:$0x80] %vm3_vm0, %v389_v20   ;;  %v758_v38 = vpop.permute.xlu1 %757   ;;  %v737_v39 = vpop.permute.xlu0 %736  }
  0xb9   :  { %1461 = vst.msk [vmem:[%s4051_s1 + $0x9] sm:$0x1] %vm3_vm0, %v368_v21   ;;  %1462 = vst.msk [vmem:[%s4051_s1 + $0x28] sm:$0x2] %vm3_vm0, %v368_v21  }
  0xba   :  { %1463 = vst.msk [vmem:[%s4051_s1 + $0x47] sm:$0x4] %vm3_vm0, %v368_v21   ;;  %1464 = vst.msk [vmem:[%s4051_s1 + $0x66] sm:$0x8] %vm3_vm0, %v368_v21  }
  0xbb   :  { %1465 = vst.msk [vmem:[%s4051_s1 + $0x85] sm:$0x10] %vm3_vm0, %v368_v21   ;;  %1466 = vst.msk [vmem:[%s4051_s1 + $0xa4] sm:$0x20] %vm3_vm0, %v368_v21  }
  0xbc   :  { %1467 = vst.msk [vmem:[%s4051_s1 + $0xc3] sm:$0x40] %vm3_vm0, %v368_v21   ;;  %1468 = vst.msk [vmem:[%s4051_s1 + $0xe2] sm:$0x80] %vm3_vm0, %v368_v21   ;;  %v799_v40 = vpop.permute.xlu1 %798   ;;  %v778_v41 = vpop.permute.xlu0 %777  }
  0xbd   :  { %1487 = vst.msk [vmem:[%s4051_s1 + $0x10a] sm:$0x1] %vm3_vm0, %v430_v22   ;;  %1488 = vst.msk [vmem:[%s4051_s1 + $0x129] sm:$0x2] %vm3_vm0, %v430_v22  }
  0xbe   :  { %1489 = vst.msk [vmem:[%s4051_s1 + $0x148] sm:$0x4] %vm3_vm0, %v430_v22   ;;  %1490 = vst.msk [vmem:[%s4051_s1 + $0x167] sm:$0x8] %vm3_vm0, %v430_v22  }
  0xbf   :  { %1491 = vst.msk [vmem:[%s4051_s1 + $0x186] sm:$0x10] %vm3_vm0, %v430_v22   ;;  %1492 = vst.msk [vmem:[%s4051_s1 + $0x1a5] sm:$0x20] %vm3_vm0, %v430_v22  }
  0xc0   :  { %1493 = vst.msk [vmem:[%s4051_s1 + $0x1c4] sm:$0x40] %vm3_vm0, %v430_v22   ;;  %1494 = vst.msk [vmem:[%s4051_s1 + $0x1e3] sm:$0x80] %vm3_vm0, %v430_v22   ;;  %v840_v42 = vpop.permute.xlu1 %839   ;;  %v819_v43 = vpop.permute.xlu0 %818  }
  0xc1   :  { %1478 = vst.msk [vmem:[%s4051_s1 + $0xa] sm:$0x1] %vm3_vm0, %v409_v23   ;;  %1479 = vst.msk [vmem:[%s4051_s1 + $0x29] sm:$0x2] %vm3_vm0, %v409_v23  }
  0xc2   :  { %1480 = vst.msk [vmem:[%s4051_s1 + $0x48] sm:$0x4] %vm3_vm0, %v409_v23   ;;  %1481 = vst.msk [vmem:[%s4051_s1 + $0x67] sm:$0x8] %vm3_vm0, %v409_v23  }
  0xc3   :  { %1482 = vst.msk [vmem:[%s4051_s1 + $0x86] sm:$0x10] %vm3_vm0, %v409_v23   ;;  %1483 = vst.msk [vmem:[%s4051_s1 + $0xa5] sm:$0x20] %vm3_vm0, %v409_v23  }
  0xc4   :  { %1484 = vst.msk [vmem:[%s4051_s1 + $0xc4] sm:$0x40] %vm3_vm0, %v409_v23   ;;  %1485 = vst.msk [vmem:[%s4051_s1 + $0xe3] sm:$0x80] %vm3_vm0, %v409_v23   ;;  %v881_v44 = vpop.permute.xlu1 %880   ;;  %v860_v45 = vpop.permute.xlu0 %859  }
  0xc5   :  { %1504 = vst.msk [vmem:[%s4051_s1 + $0x10b] sm:$0x1] %vm3_vm0, %v471_v24   ;;  %1505 = vst.msk [vmem:[%s4051_s1 + $0x12a] sm:$0x2] %vm3_vm0, %v471_v24  }
  0xc6   :  { %1506 = vst.msk [vmem:[%s4051_s1 + $0x149] sm:$0x4] %vm3_vm0, %v471_v24   ;;  %1507 = vst.msk [vmem:[%s4051_s1 + $0x168] sm:$0x8] %vm3_vm0, %v471_v24  }
  0xc7   :  { %1508 = vst.msk [vmem:[%s4051_s1 + $0x187] sm:$0x10] %vm3_vm0, %v471_v24   ;;  %1509 = vst.msk [vmem:[%s4051_s1 + $0x1a6] sm:$0x20] %vm3_vm0, %v471_v24  }
  0xc8   :  { %1510 = vst.msk [vmem:[%s4051_s1 + $0x1c5] sm:$0x40] %vm3_vm0, %v471_v24   ;;  %1511 = vst.msk [vmem:[%s4051_s1 + $0x1e4] sm:$0x80] %vm3_vm0, %v471_v24   ;;  %v922_v46 = vpop.permute.xlu1 %921   ;;  %v901_v47 = vpop.permute.xlu0 %900  }
  0xc9   :  { %1495 = vst.msk [vmem:[%s4051_s1 + $0xb] sm:$0x1] %vm3_vm0, %v450_v25   ;;  %1496 = vst.msk [vmem:[%s4051_s1 + $0x2a] sm:$0x2] %vm3_vm0, %v450_v25  }
  0xca   :  { %1497 = vst.msk [vmem:[%s4051_s1 + $0x49] sm:$0x4] %vm3_vm0, %v450_v25   ;;  %1498 = vst.msk [vmem:[%s4051_s1 + $0x68] sm:$0x8] %vm3_vm0, %v450_v25  }
  0xcb   :  { %1499 = vst.msk [vmem:[%s4051_s1 + $0x87] sm:$0x10] %vm3_vm0, %v450_v25   ;;  %1500 = vst.msk [vmem:[%s4051_s1 + $0xa6] sm:$0x20] %vm3_vm0, %v450_v25  }
  0xcc   :  { %1501 = vst.msk [vmem:[%s4051_s1 + $0xc5] sm:$0x40] %vm3_vm0, %v450_v25   ;;  %1502 = vst.msk [vmem:[%s4051_s1 + $0xe4] sm:$0x80] %vm3_vm0, %v450_v25   ;;  %v963_v48 = vpop.permute.xlu1 %962   ;;  %v942_v49 = vpop.permute.xlu0 %941  }
  0xcd   :  { %1521 = vst.msk [vmem:[%s4051_s1 + $0x10c] sm:$0x1] %vm3_vm0, %v512_v26   ;;  %1522 = vst.msk [vmem:[%s4051_s1 + $0x12b] sm:$0x2] %vm3_vm0, %v512_v26  }
  0xce   :  { %1523 = vst.msk [vmem:[%s4051_s1 + $0x14a] sm:$0x4] %vm3_vm0, %v512_v26   ;;  %1524 = vst.msk [vmem:[%s4051_s1 + $0x169] sm:$0x8] %vm3_vm0, %v512_v26  }
  0xcf   :  { %1525 = vst.msk [vmem:[%s4051_s1 + $0x188] sm:$0x10] %vm3_vm0, %v512_v26   ;;  %1526 = vst.msk [vmem:[%s4051_s1 + $0x1a7] sm:$0x20] %vm3_vm0, %v512_v26  }
  0xd0   :  { %1527 = vst.msk [vmem:[%s4051_s1 + $0x1c6] sm:$0x40] %vm3_vm0, %v512_v26   ;;  %1528 = vst.msk [vmem:[%s4051_s1 + $0x1e5] sm:$0x80] %vm3_vm0, %v512_v26   ;;  %v1004_v50 = vpop.permute.xlu1 %1003   ;;  %v983_v51 = vpop.permute.xlu0 %982  }
  0xd1   :  { %1512 = vst.msk [vmem:[%s4051_s1 + $0xc] sm:$0x1] %vm3_vm0, %v491_v27   ;;  %1513 = vst.msk [vmem:[%s4051_s1 + $0x2b] sm:$0x2] %vm3_vm0, %v491_v27  }
  0xd2   :  { %1514 = vst.msk [vmem:[%s4051_s1 + $0x4a] sm:$0x4] %vm3_vm0, %v491_v27   ;;  %1515 = vst.msk [vmem:[%s4051_s1 + $0x69] sm:$0x8] %vm3_vm0, %v491_v27  }
  0xd3   :  { %1516 = vst.msk [vmem:[%s4051_s1 + $0x88] sm:$0x10] %vm3_vm0, %v491_v27   ;;  %1517 = vst.msk [vmem:[%s4051_s1 + $0xa7] sm:$0x20] %vm3_vm0, %v491_v27  }
  0xd4   :  { %1518 = vst.msk [vmem:[%s4051_s1 + $0xc6] sm:$0x40] %vm3_vm0, %v491_v27   ;;  %1519 = vst.msk [vmem:[%s4051_s1 + $0xe5] sm:$0x80] %vm3_vm0, %v491_v27   ;;  %v1045_v52 = vpop.permute.xlu1 %1044   ;;  %v1024_v53 = vpop.permute.xlu0 %1023  }
  0xd5   :  { %1538 = vst.msk [vmem:[%s4051_s1 + $0x10d] sm:$0x1] %vm3_vm0, %v553_v28   ;;  %1539 = vst.msk [vmem:[%s4051_s1 + $0x12c] sm:$0x2] %vm3_vm0, %v553_v28  }
  0xd6   :  { %1540 = vst.msk [vmem:[%s4051_s1 + $0x14b] sm:$0x4] %vm3_vm0, %v553_v28   ;;  %1541 = vst.msk [vmem:[%s4051_s1 + $0x16a] sm:$0x8] %vm3_vm0, %v553_v28  }
  0xd7   :  { %1542 = vst.msk [vmem:[%s4051_s1 + $0x189] sm:$0x10] %vm3_vm0, %v553_v28   ;;  %1543 = vst.msk [vmem:[%s4051_s1 + $0x1a8] sm:$0x20] %vm3_vm0, %v553_v28  }
  0xd8   :  { %1544 = vst.msk [vmem:[%s4051_s1 + $0x1c7] sm:$0x40] %vm3_vm0, %v553_v28   ;;  %1545 = vst.msk [vmem:[%s4051_s1 + $0x1e6] sm:$0x80] %vm3_vm0, %v553_v28   ;;  %v1086_v54 = vpop.permute.xlu1 %1085   ;;  %v1065_v55 = vpop.permute.xlu0 %1064  }
  0xd9   :  { %1529 = vst.msk [vmem:[%s4051_s1 + $0xd] sm:$0x1] %vm3_vm0, %v532_v29   ;;  %1530 = vst.msk [vmem:[%s4051_s1 + $0x2c] sm:$0x2] %vm3_vm0, %v532_v29  }
  0xda   :  { %1531 = vst.msk [vmem:[%s4051_s1 + $0x4b] sm:$0x4] %vm3_vm0, %v532_v29   ;;  %1532 = vst.msk [vmem:[%s4051_s1 + $0x6a] sm:$0x8] %vm3_vm0, %v532_v29  }
  0xdb   :  { %1533 = vst.msk [vmem:[%s4051_s1 + $0x89] sm:$0x10] %vm3_vm0, %v532_v29   ;;  %1534 = vst.msk [vmem:[%s4051_s1 + $0xa8] sm:$0x20] %vm3_vm0, %v532_v29  }
  0xdc   :  { %1535 = vst.msk [vmem:[%s4051_s1 + $0xc7] sm:$0x40] %vm3_vm0, %v532_v29   ;;  %1536 = vst.msk [vmem:[%s4051_s1 + $0xe6] sm:$0x80] %vm3_vm0, %v532_v29   ;;  %v1127_v56 = vpop.permute.xlu1 %1126   ;;  %v1106_v57 = vpop.permute.xlu0 %1105  }
  0xdd   :  { %1555 = vst.msk [vmem:[%s4051_s1 + $0x10e] sm:$0x1] %vm3_vm0, %v594_v30   ;;  %1556 = vst.msk [vmem:[%s4051_s1 + $0x12d] sm:$0x2] %vm3_vm0, %v594_v30  }
  0xde   :  { %1557 = vst.msk [vmem:[%s4051_s1 + $0x14c] sm:$0x4] %vm3_vm0, %v594_v30   ;;  %1558 = vst.msk [vmem:[%s4051_s1 + $0x16b] sm:$0x8] %vm3_vm0, %v594_v30  }
  0xdf   :  { %1559 = vst.msk [vmem:[%s4051_s1 + $0x18a] sm:$0x10] %vm3_vm0, %v594_v30   ;;  %1560 = vst.msk [vmem:[%s4051_s1 + $0x1a9] sm:$0x20] %vm3_vm0, %v594_v30  }
  0xe0   :  { %1561 = vst.msk [vmem:[%s4051_s1 + $0x1c8] sm:$0x40] %vm3_vm0, %v594_v30   ;;  %1562 = vst.msk [vmem:[%s4051_s1 + $0x1e7] sm:$0x80] %vm3_vm0, %v594_v30   ;;  %v1168_v58 = vpop.permute.xlu1 %1167   ;;  %v1147_v59 = vpop.permute.xlu0 %1146  }
  0xe1   :  { %1546 = vst.msk [vmem:[%s4051_s1 + $0xe] sm:$0x1] %vm3_vm0, %v573_v31   ;;  %1547 = vst.msk [vmem:[%s4051_s1 + $0x2d] sm:$0x2] %vm3_vm0, %v573_v31  }
  0xe2   :  { %1548 = vst.msk [vmem:[%s4051_s1 + $0x4c] sm:$0x4] %vm3_vm0, %v573_v31   ;;  %1549 = vst.msk [vmem:[%s4051_s1 + $0x6b] sm:$0x8] %vm3_vm0, %v573_v31  }
  0xe3   :  { %1550 = vst.msk [vmem:[%s4051_s1 + $0x8a] sm:$0x10] %vm3_vm0, %v573_v31   ;;  %1551 = vst.msk [vmem:[%s4051_s1 + $0xa9] sm:$0x20] %vm3_vm0, %v573_v31  }
  0xe4   :  { %1552 = vst.msk [vmem:[%s4051_s1 + $0xc8] sm:$0x40] %vm3_vm0, %v573_v31   ;;  %1553 = vst.msk [vmem:[%s4051_s1 + $0xe7] sm:$0x80] %vm3_vm0, %v573_v31   ;;  %v1209_v60 = vpop.permute.xlu1 %1208   ;;  %v1188_v61 = vpop.permute.xlu0 %1187  }
  0xe5   :  { %1572 = vst.msk [vmem:[%s4051_s1 + $0x10f] sm:$0x1] %vm3_vm0, %v635_v32   ;;  %1573 = vst.msk [vmem:[%s4051_s1 + $0x12e] sm:$0x2] %vm3_vm0, %v635_v32  }
  0xe6   :  { %1574 = vst.msk [vmem:[%s4051_s1 + $0x14d] sm:$0x4] %vm3_vm0, %v635_v32   ;;  %1575 = vst.msk [vmem:[%s4051_s1 + $0x16c] sm:$0x8] %vm3_vm0, %v635_v32  }
  0xe7   :  { %1576 = vst.msk [vmem:[%s4051_s1 + $0x18b] sm:$0x10] %vm3_vm0, %v635_v32   ;;  %1577 = vst.msk [vmem:[%s4051_s1 + $0x1aa] sm:$0x20] %vm3_vm0, %v635_v32  }
  0xe8   :  { %1578 = vst.msk [vmem:[%s4051_s1 + $0x1c9] sm:$0x40] %vm3_vm0, %v635_v32   ;;  %1579 = vst.msk [vmem:[%s4051_s1 + $0x1e8] sm:$0x80] %vm3_vm0, %v635_v32   ;;  %v1250_v62 = vpop.permute.xlu1 %1249   ;;  %v1229_v63 = vpop.permute.xlu0 %1228  }
  0xe9   :  { %1563 = vst.msk [vmem:[%s4051_s1 + $0xf] sm:$0x1] %vm3_vm0, %v614_v33   ;;  %1564 = vst.msk [vmem:[%s4051_s1 + $0x2e] sm:$0x2] %vm3_vm0, %v614_v33  }
  0xea   :  { %1565 = vst.msk [vmem:[%s4051_s1 + $0x4d] sm:$0x4] %vm3_vm0, %v614_v33   ;;  %1566 = vst.msk [vmem:[%s4051_s1 + $0x6c] sm:$0x8] %vm3_vm0, %v614_v33  }
  0xeb   :  { %1567 = vst.msk [vmem:[%s4051_s1 + $0x8b] sm:$0x10] %vm3_vm0, %v614_v33   ;;  %1568 = vst.msk [vmem:[%s4051_s1 + $0xaa] sm:$0x20] %vm3_vm0, %v614_v33  }
  0xec   :  { %1569 = vst.msk [vmem:[%s4051_s1 + $0xc9] sm:$0x40] %vm3_vm0, %v614_v33   ;;  %1570 = vst.msk [vmem:[%s4051_s1 + $0xe8] sm:$0x80] %vm3_vm0, %v614_v33   ;;  %v1291_v0 = vpop.permute.xlu1 %1290   ;;  %v1270_v1 = vpop.permute.xlu0 %1269  }
  0xed   :  { %1589 = vst.msk [vmem:[%s4051_s1 + $0x110] sm:$0x1] %vm3_vm0, %v676_v34   ;;  %1590 = vst.msk [vmem:[%s4051_s1 + $0x12f] sm:$0x2] %vm3_vm0, %v676_v34  }
  0xee   :  { %1591 = vst.msk [vmem:[%s4051_s1 + $0x14e] sm:$0x4] %vm3_vm0, %v676_v34   ;;  %1592 = vst.msk [vmem:[%s4051_s1 + $0x16d] sm:$0x8] %vm3_vm0, %v676_v34  }
  0xef   :  { %1593 = vst.msk [vmem:[%s4051_s1 + $0x18c] sm:$0x10] %vm3_vm0, %v676_v34   ;;  %1594 = vst.msk [vmem:[%s4051_s1 + $0x1ab] sm:$0x20] %vm3_vm0, %v676_v34  }
  0xf0   :  { %1595 = vst.msk [vmem:[%s4051_s1 + $0x1ca] sm:$0x40] %vm3_vm0, %v676_v34   ;;  %1596 = vst.msk [vmem:[%s4051_s1 + $0x1e9] sm:$0x80] %vm3_vm0, %v676_v34  }
  0xf1   :  { %1580 = vst.msk [vmem:[%s4051_s1 + $0x10] sm:$0x1] %vm3_vm0, %v655_v35   ;;  %1581 = vst.msk [vmem:[%s4051_s1 + $0x2f] sm:$0x2] %vm3_vm0, %v655_v35  }
  0xf2   :  { %1582 = vst.msk [vmem:[%s4051_s1 + $0x4e] sm:$0x4] %vm3_vm0, %v655_v35   ;;  %1583 = vst.msk [vmem:[%s4051_s1 + $0x6d] sm:$0x8] %vm3_vm0, %v655_v35  }
  0xf3   :  { %1584 = vst.msk [vmem:[%s4051_s1 + $0x8c] sm:$0x10] %vm3_vm0, %v655_v35   ;;  %1585 = vst.msk [vmem:[%s4051_s1 + $0xab] sm:$0x20] %vm3_vm0, %v655_v35  }
  0xf4   :  { %1586 = vst.msk [vmem:[%s4051_s1 + $0xca] sm:$0x40] %vm3_vm0, %v655_v35   ;;  %1587 = vst.msk [vmem:[%s4051_s1 + $0xe9] sm:$0x80] %vm3_vm0, %v655_v35  }
  0xf5   :  { %1606 = vst.msk [vmem:[%s4051_s1 + $0x111] sm:$0x1] %vm3_vm0, %v717_v36   ;;  %1607 = vst.msk [vmem:[%s4051_s1 + $0x130] sm:$0x2] %vm3_vm0, %v717_v36  }
  0xf6   :  { %1608 = vst.msk [vmem:[%s4051_s1 + $0x14f] sm:$0x4] %vm3_vm0, %v717_v36   ;;  %1609 = vst.msk [vmem:[%s4051_s1 + $0x16e] sm:$0x8] %vm3_vm0, %v717_v36  }
  0xf7   :  { %1610 = vst.msk [vmem:[%s4051_s1 + $0x18d] sm:$0x10] %vm3_vm0, %v717_v36   ;;  %1611 = vst.msk [vmem:[%s4051_s1 + $0x1ac] sm:$0x20] %vm3_vm0, %v717_v36  }
  0xf8   :  { %1612 = vst.msk [vmem:[%s4051_s1 + $0x1cb] sm:$0x40] %vm3_vm0, %v717_v36   ;;  %1613 = vst.msk [vmem:[%s4051_s1 + $0x1ea] sm:$0x80] %vm3_vm0, %v717_v36  }
  0xf9   :  { %1597 = vst.msk [vmem:[%s4051_s1 + $0x11] sm:$0x1] %vm3_vm0, %v696_v37   ;;  %1598 = vst.msk [vmem:[%s4051_s1 + $0x30] sm:$0x2] %vm3_vm0, %v696_v37  }
  0xfa   :  { %1599 = vst.msk [vmem:[%s4051_s1 + $0x4f] sm:$0x4] %vm3_vm0, %v696_v37   ;;  %1600 = vst.msk [vmem:[%s4051_s1 + $0x6e] sm:$0x8] %vm3_vm0, %v696_v37  }
  0xfb   :  { %1601 = vst.msk [vmem:[%s4051_s1 + $0x8d] sm:$0x10] %vm3_vm0, %v696_v37   ;;  %1602 = vst.msk [vmem:[%s4051_s1 + $0xac] sm:$0x20] %vm3_vm0, %v696_v37  }
  0xfc   :  { %1603 = vst.msk [vmem:[%s4051_s1 + $0xcb] sm:$0x40] %vm3_vm0, %v696_v37   ;;  %1604 = vst.msk [vmem:[%s4051_s1 + $0xea] sm:$0x80] %vm3_vm0, %v696_v37  }
  0xfd   :  { %1623 = vst.msk [vmem:[%s4051_s1 + $0x112] sm:$0x1] %vm3_vm0, %v758_v38   ;;  %1624 = vst.msk [vmem:[%s4051_s1 + $0x131] sm:$0x2] %vm3_vm0, %v758_v38  }
  0xfe   :  { %1625 = vst.msk [vmem:[%s4051_s1 + $0x150] sm:$0x4] %vm3_vm0, %v758_v38   ;;  %1626 = vst.msk [vmem:[%s4051_s1 + $0x16f] sm:$0x8] %vm3_vm0, %v758_v38  }
  0xff   :  { %1627 = vst.msk [vmem:[%s4051_s1 + $0x18e] sm:$0x10] %vm3_vm0, %v758_v38   ;;  %1628 = vst.msk [vmem:[%s4051_s1 + $0x1ad] sm:$0x20] %vm3_vm0, %v758_v38  }
 0x100   :  { %1629 = vst.msk [vmem:[%s4051_s1 + $0x1cc] sm:$0x40] %vm3_vm0, %v758_v38   ;;  %1630 = vst.msk [vmem:[%s4051_s1 + $0x1eb] sm:$0x80] %vm3_vm0, %v758_v38  }
 0x101   :  { %1614 = vst.msk [vmem:[%s4051_s1 + $0x12] sm:$0x1] %vm3_vm0, %v737_v39   ;;  %1615 = vst.msk [vmem:[%s4051_s1 + $0x31] sm:$0x2] %vm3_vm0, %v737_v39  }
 0x102   :  { %1616 = vst.msk [vmem:[%s4051_s1 + $0x50] sm:$0x4] %vm3_vm0, %v737_v39   ;;  %1617 = vst.msk [vmem:[%s4051_s1 + $0x6f] sm:$0x8] %vm3_vm0, %v737_v39  }
 0x103   :  { %1618 = vst.msk [vmem:[%s4051_s1 + $0x8e] sm:$0x10] %vm3_vm0, %v737_v39   ;;  %1619 = vst.msk [vmem:[%s4051_s1 + $0xad] sm:$0x20] %vm3_vm0, %v737_v39  }
 0x104   :  { %1620 = vst.msk [vmem:[%s4051_s1 + $0xcc] sm:$0x40] %vm3_vm0, %v737_v39   ;;  %1621 = vst.msk [vmem:[%s4051_s1 + $0xeb] sm:$0x80] %vm3_vm0, %v737_v39  }
 0x105   :  { %1640 = vst.msk [vmem:[%s4051_s1 + $0x113] sm:$0x1] %vm3_vm0, %v799_v40   ;;  %1641 = vst.msk [vmem:[%s4051_s1 + $0x132] sm:$0x2] %vm3_vm0, %v799_v40  }
 0x106   :  { %1642 = vst.msk [vmem:[%s4051_s1 + $0x151] sm:$0x4] %vm3_vm0, %v799_v40   ;;  %1643 = vst.msk [vmem:[%s4051_s1 + $0x170] sm:$0x8] %vm3_vm0, %v799_v40  }
 0x107   :  { %1644 = vst.msk [vmem:[%s4051_s1 + $0x18f] sm:$0x10] %vm3_vm0, %v799_v40   ;;  %1645 = vst.msk [vmem:[%s4051_s1 + $0x1ae] sm:$0x20] %vm3_vm0, %v799_v40  }
 0x108   :  { %1646 = vst.msk [vmem:[%s4051_s1 + $0x1cd] sm:$0x40] %vm3_vm0, %v799_v40   ;;  %1647 = vst.msk [vmem:[%s4051_s1 + $0x1ec] sm:$0x80] %vm3_vm0, %v799_v40  }
 0x109   :  { %1631 = vst.msk [vmem:[%s4051_s1 + $0x13] sm:$0x1] %vm3_vm0, %v778_v41   ;;  %1632 = vst.msk [vmem:[%s4051_s1 + $0x32] sm:$0x2] %vm3_vm0, %v778_v41  }
 0x10a   :  { %1633 = vst.msk [vmem:[%s4051_s1 + $0x51] sm:$0x4] %vm3_vm0, %v778_v41   ;;  %1634 = vst.msk [vmem:[%s4051_s1 + $0x70] sm:$0x8] %vm3_vm0, %v778_v41  }
 0x10b   :  { %1635 = vst.msk [vmem:[%s4051_s1 + $0x8f] sm:$0x10] %vm3_vm0, %v778_v41   ;;  %1636 = vst.msk [vmem:[%s4051_s1 + $0xae] sm:$0x20] %vm3_vm0, %v778_v41  }
 0x10c   :  { %1637 = vst.msk [vmem:[%s4051_s1 + $0xcd] sm:$0x40] %vm3_vm0, %v778_v41   ;;  %1638 = vst.msk [vmem:[%s4051_s1 + $0xec] sm:$0x80] %vm3_vm0, %v778_v41  }
 0x10d   :  { %1657 = vst.msk [vmem:[%s4051_s1 + $0x114] sm:$0x1] %vm3_vm0, %v840_v42   ;;  %1658 = vst.msk [vmem:[%s4051_s1 + $0x133] sm:$0x2] %vm3_vm0, %v840_v42  }
 0x10e   :  { %1659 = vst.msk [vmem:[%s4051_s1 + $0x152] sm:$0x4] %vm3_vm0, %v840_v42   ;;  %1660 = vst.msk [vmem:[%s4051_s1 + $0x171] sm:$0x8] %vm3_vm0, %v840_v42  }
 0x10f   :  { %1661 = vst.msk [vmem:[%s4051_s1 + $0x190] sm:$0x10] %vm3_vm0, %v840_v42   ;;  %1662 = vst.msk [vmem:[%s4051_s1 + $0x1af] sm:$0x20] %vm3_vm0, %v840_v42  }
 0x110   :  { %1663 = vst.msk [vmem:[%s4051_s1 + $0x1ce] sm:$0x40] %vm3_vm0, %v840_v42   ;;  %1664 = vst.msk [vmem:[%s4051_s1 + $0x1ed] sm:$0x80] %vm3_vm0, %v840_v42  }
 0x111   :  { %1648 = vst.msk [vmem:[%s4051_s1 + $0x14] sm:$0x1] %vm3_vm0, %v819_v43   ;;  %1649 = vst.msk [vmem:[%s4051_s1 + $0x33] sm:$0x2] %vm3_vm0, %v819_v43  }
 0x112   :  { %1650 = vst.msk [vmem:[%s4051_s1 + $0x52] sm:$0x4] %vm3_vm0, %v819_v43   ;;  %1651 = vst.msk [vmem:[%s4051_s1 + $0x71] sm:$0x8] %vm3_vm0, %v819_v43  }
 0x113   :  { %1652 = vst.msk [vmem:[%s4051_s1 + $0x90] sm:$0x10] %vm3_vm0, %v819_v43   ;;  %1653 = vst.msk [vmem:[%s4051_s1 + $0xaf] sm:$0x20] %vm3_vm0, %v819_v43  }
 0x114   :  { %1654 = vst.msk [vmem:[%s4051_s1 + $0xce] sm:$0x40] %vm3_vm0, %v819_v43   ;;  %1655 = vst.msk [vmem:[%s4051_s1 + $0xed] sm:$0x80] %vm3_vm0, %v819_v43  }
 0x115   :  { %1674 = vst.msk [vmem:[%s4051_s1 + $0x115] sm:$0x1] %vm3_vm0, %v881_v44   ;;  %1675 = vst.msk [vmem:[%s4051_s1 + $0x134] sm:$0x2] %vm3_vm0, %v881_v44  }
 0x116   :  { %1676 = vst.msk [vmem:[%s4051_s1 + $0x153] sm:$0x4] %vm3_vm0, %v881_v44   ;;  %1677 = vst.msk [vmem:[%s4051_s1 + $0x172] sm:$0x8] %vm3_vm0, %v881_v44  }
 0x117   :  { %1678 = vst.msk [vmem:[%s4051_s1 + $0x191] sm:$0x10] %vm3_vm0, %v881_v44   ;;  %1679 = vst.msk [vmem:[%s4051_s1 + $0x1b0] sm:$0x20] %vm3_vm0, %v881_v44  }
 0x118   :  { %1680 = vst.msk [vmem:[%s4051_s1 + $0x1cf] sm:$0x40] %vm3_vm0, %v881_v44   ;;  %1681 = vst.msk [vmem:[%s4051_s1 + $0x1ee] sm:$0x80] %vm3_vm0, %v881_v44  }
 0x119   :  { %1665 = vst.msk [vmem:[%s4051_s1 + $0x15] sm:$0x1] %vm3_vm0, %v860_v45   ;;  %1666 = vst.msk [vmem:[%s4051_s1 + $0x34] sm:$0x2] %vm3_vm0, %v860_v45  }
 0x11a   :  { %1667 = vst.msk [vmem:[%s4051_s1 + $0x53] sm:$0x4] %vm3_vm0, %v860_v45   ;;  %1668 = vst.msk [vmem:[%s4051_s1 + $0x72] sm:$0x8] %vm3_vm0, %v860_v45  }
 0x11b   :  { %1669 = vst.msk [vmem:[%s4051_s1 + $0x91] sm:$0x10] %vm3_vm0, %v860_v45   ;;  %1670 = vst.msk [vmem:[%s4051_s1 + $0xb0] sm:$0x20] %vm3_vm0, %v860_v45  }
 0x11c   :  { %1671 = vst.msk [vmem:[%s4051_s1 + $0xcf] sm:$0x40] %vm3_vm0, %v860_v45   ;;  %1672 = vst.msk [vmem:[%s4051_s1 + $0xee] sm:$0x80] %vm3_vm0, %v860_v45  }
 0x11d   :  { %1691 = vst.msk [vmem:[%s4051_s1 + $0x116] sm:$0x1] %vm3_vm0, %v922_v46   ;;  %1692 = vst.msk [vmem:[%s4051_s1 + $0x135] sm:$0x2] %vm3_vm0, %v922_v46  }
 0x11e   :  { %1693 = vst.msk [vmem:[%s4051_s1 + $0x154] sm:$0x4] %vm3_vm0, %v922_v46   ;;  %1694 = vst.msk [vmem:[%s4051_s1 + $0x173] sm:$0x8] %vm3_vm0, %v922_v46  }
 0x11f   :  { %1695 = vst.msk [vmem:[%s4051_s1 + $0x192] sm:$0x10] %vm3_vm0, %v922_v46   ;;  %1696 = vst.msk [vmem:[%s4051_s1 + $0x1b1] sm:$0x20] %vm3_vm0, %v922_v46  }
 0x120   :  { %1697 = vst.msk [vmem:[%s4051_s1 + $0x1d0] sm:$0x40] %vm3_vm0, %v922_v46   ;;  %1698 = vst.msk [vmem:[%s4051_s1 + $0x1ef] sm:$0x80] %vm3_vm0, %v922_v46  }
 0x121   :  { %1682 = vst.msk [vmem:[%s4051_s1 + $0x16] sm:$0x1] %vm3_vm0, %v901_v47   ;;  %1683 = vst.msk [vmem:[%s4051_s1 + $0x35] sm:$0x2] %vm3_vm0, %v901_v47  }
 0x122   :  { %1684 = vst.msk [vmem:[%s4051_s1 + $0x54] sm:$0x4] %vm3_vm0, %v901_v47   ;;  %1685 = vst.msk [vmem:[%s4051_s1 + $0x73] sm:$0x8] %vm3_vm0, %v901_v47  }
 0x123   :  { %1686 = vst.msk [vmem:[%s4051_s1 + $0x92] sm:$0x10] %vm3_vm0, %v901_v47   ;;  %1687 = vst.msk [vmem:[%s4051_s1 + $0xb1] sm:$0x20] %vm3_vm0, %v901_v47  }
 0x124   :  { %1688 = vst.msk [vmem:[%s4051_s1 + $0xd0] sm:$0x40] %vm3_vm0, %v901_v47   ;;  %1689 = vst.msk [vmem:[%s4051_s1 + $0xef] sm:$0x80] %vm3_vm0, %v901_v47  }
 0x125   :  { %1708 = vst.msk [vmem:[%s4051_s1 + $0x117] sm:$0x1] %vm3_vm0, %v963_v48   ;;  %1709 = vst.msk [vmem:[%s4051_s1 + $0x136] sm:$0x2] %vm3_vm0, %v963_v48  }
 0x126   :  { %1710 = vst.msk [vmem:[%s4051_s1 + $0x155] sm:$0x4] %vm3_vm0, %v963_v48   ;;  %1711 = vst.msk [vmem:[%s4051_s1 + $0x174] sm:$0x8] %vm3_vm0, %v963_v48  }
 0x127   :  { %1712 = vst.msk [vmem:[%s4051_s1 + $0x193] sm:$0x10] %vm3_vm0, %v963_v48   ;;  %1713 = vst.msk [vmem:[%s4051_s1 + $0x1b2] sm:$0x20] %vm3_vm0, %v963_v48  }
 0x128   :  { %1714 = vst.msk [vmem:[%s4051_s1 + $0x1d1] sm:$0x40] %vm3_vm0, %v963_v48   ;;  %1715 = vst.msk [vmem:[%s4051_s1 + $0x1f0] sm:$0x80] %vm3_vm0, %v963_v48  }
 0x129   :  { %1699 = vst.msk [vmem:[%s4051_s1 + $0x17] sm:$0x1] %vm3_vm0, %v942_v49   ;;  %1700 = vst.msk [vmem:[%s4051_s1 + $0x36] sm:$0x2] %vm3_vm0, %v942_v49  }
 0x12a   :  { %1701 = vst.msk [vmem:[%s4051_s1 + $0x55] sm:$0x4] %vm3_vm0, %v942_v49   ;;  %1702 = vst.msk [vmem:[%s4051_s1 + $0x74] sm:$0x8] %vm3_vm0, %v942_v49  }
 0x12b   :  { %1703 = vst.msk [vmem:[%s4051_s1 + $0x93] sm:$0x10] %vm3_vm0, %v942_v49   ;;  %1704 = vst.msk [vmem:[%s4051_s1 + $0xb2] sm:$0x20] %vm3_vm0, %v942_v49  }
 0x12c   :  { %1705 = vst.msk [vmem:[%s4051_s1 + $0xd1] sm:$0x40] %vm3_vm0, %v942_v49   ;;  %1706 = vst.msk [vmem:[%s4051_s1 + $0xf0] sm:$0x80] %vm3_vm0, %v942_v49  }
 0x12d   :  { %1725 = vst.msk [vmem:[%s4051_s1 + $0x118] sm:$0x1] %vm3_vm0, %v1004_v50   ;;  %1726 = vst.msk [vmem:[%s4051_s1 + $0x137] sm:$0x2] %vm3_vm0, %v1004_v50  }
 0x12e   :  { %1727 = vst.msk [vmem:[%s4051_s1 + $0x156] sm:$0x4] %vm3_vm0, %v1004_v50   ;;  %1728 = vst.msk [vmem:[%s4051_s1 + $0x175] sm:$0x8] %vm3_vm0, %v1004_v50  }
 0x12f   :  { %1729 = vst.msk [vmem:[%s4051_s1 + $0x194] sm:$0x10] %vm3_vm0, %v1004_v50   ;;  %1730 = vst.msk [vmem:[%s4051_s1 + $0x1b3] sm:$0x20] %vm3_vm0, %v1004_v50  }
 0x130   :  { %1731 = vst.msk [vmem:[%s4051_s1 + $0x1d2] sm:$0x40] %vm3_vm0, %v1004_v50   ;;  %1732 = vst.msk [vmem:[%s4051_s1 + $0x1f1] sm:$0x80] %vm3_vm0, %v1004_v50  }
 0x131   :  { %1716 = vst.msk [vmem:[%s4051_s1 + $0x18] sm:$0x1] %vm3_vm0, %v983_v51   ;;  %1717 = vst.msk [vmem:[%s4051_s1 + $0x37] sm:$0x2] %vm3_vm0, %v983_v51  }
 0x132   :  { %1718 = vst.msk [vmem:[%s4051_s1 + $0x56] sm:$0x4] %vm3_vm0, %v983_v51   ;;  %1719 = vst.msk [vmem:[%s4051_s1 + $0x75] sm:$0x8] %vm3_vm0, %v983_v51  }
 0x133   :  { %1720 = vst.msk [vmem:[%s4051_s1 + $0x94] sm:$0x10] %vm3_vm0, %v983_v51   ;;  %1721 = vst.msk [vmem:[%s4051_s1 + $0xb3] sm:$0x20] %vm3_vm0, %v983_v51  }
 0x134   :  { %1722 = vst.msk [vmem:[%s4051_s1 + $0xd2] sm:$0x40] %vm3_vm0, %v983_v51   ;;  %1723 = vst.msk [vmem:[%s4051_s1 + $0xf1] sm:$0x80] %vm3_vm0, %v983_v51  }
 0x135   :  { %1742 = vst.msk [vmem:[%s4051_s1 + $0x119] sm:$0x1] %vm3_vm0, %v1045_v52   ;;  %1743 = vst.msk [vmem:[%s4051_s1 + $0x138] sm:$0x2] %vm3_vm0, %v1045_v52  }
 0x136   :  { %1744 = vst.msk [vmem:[%s4051_s1 + $0x157] sm:$0x4] %vm3_vm0, %v1045_v52   ;;  %1745 = vst.msk [vmem:[%s4051_s1 + $0x176] sm:$0x8] %vm3_vm0, %v1045_v52  }
 0x137   :  { %1746 = vst.msk [vmem:[%s4051_s1 + $0x195] sm:$0x10] %vm3_vm0, %v1045_v52   ;;  %1747 = vst.msk [vmem:[%s4051_s1 + $0x1b4] sm:$0x20] %vm3_vm0, %v1045_v52  }
 0x138   :  { %1748 = vst.msk [vmem:[%s4051_s1 + $0x1d3] sm:$0x40] %vm3_vm0, %v1045_v52   ;;  %1749 = vst.msk [vmem:[%s4051_s1 + $0x1f2] sm:$0x80] %vm3_vm0, %v1045_v52  }
 0x139   :  { %1733 = vst.msk [vmem:[%s4051_s1 + $0x19] sm:$0x1] %vm3_vm0, %v1024_v53   ;;  %1734 = vst.msk [vmem:[%s4051_s1 + $0x38] sm:$0x2] %vm3_vm0, %v1024_v53  }
 0x13a   :  { %1735 = vst.msk [vmem:[%s4051_s1 + $0x57] sm:$0x4] %vm3_vm0, %v1024_v53   ;;  %1736 = vst.msk [vmem:[%s4051_s1 + $0x76] sm:$0x8] %vm3_vm0, %v1024_v53  }
 0x13b   :  { %1737 = vst.msk [vmem:[%s4051_s1 + $0x95] sm:$0x10] %vm3_vm0, %v1024_v53   ;;  %1738 = vst.msk [vmem:[%s4051_s1 + $0xb4] sm:$0x20] %vm3_vm0, %v1024_v53  }
 0x13c   :  { %1739 = vst.msk [vmem:[%s4051_s1 + $0xd3] sm:$0x40] %vm3_vm0, %v1024_v53   ;;  %1740 = vst.msk [vmem:[%s4051_s1 + $0xf2] sm:$0x80] %vm3_vm0, %v1024_v53  }
 0x13d   :  { %1759 = vst.msk [vmem:[%s4051_s1 + $0x11a] sm:$0x1] %vm3_vm0, %v1086_v54   ;;  %1760 = vst.msk [vmem:[%s4051_s1 + $0x139] sm:$0x2] %vm3_vm0, %v1086_v54  }
 0x13e   :  { %1761 = vst.msk [vmem:[%s4051_s1 + $0x158] sm:$0x4] %vm3_vm0, %v1086_v54   ;;  %1762 = vst.msk [vmem:[%s4051_s1 + $0x177] sm:$0x8] %vm3_vm0, %v1086_v54  }
 0x13f   :  { %1763 = vst.msk [vmem:[%s4051_s1 + $0x196] sm:$0x10] %vm3_vm0, %v1086_v54   ;;  %1764 = vst.msk [vmem:[%s4051_s1 + $0x1b5] sm:$0x20] %vm3_vm0, %v1086_v54  }
 0x140   :  { %1765 = vst.msk [vmem:[%s4051_s1 + $0x1d4] sm:$0x40] %vm3_vm0, %v1086_v54   ;;  %1766 = vst.msk [vmem:[%s4051_s1 + $0x1f3] sm:$0x80] %vm3_vm0, %v1086_v54  }
 0x141   :  { %1750 = vst.msk [vmem:[%s4051_s1 + $0x1a] sm:$0x1] %vm3_vm0, %v1065_v55   ;;  %1751 = vst.msk [vmem:[%s4051_s1 + $0x39] sm:$0x2] %vm3_vm0, %v1065_v55  }
 0x142   :  { %1752 = vst.msk [vmem:[%s4051_s1 + $0x58] sm:$0x4] %vm3_vm0, %v1065_v55   ;;  %1753 = vst.msk [vmem:[%s4051_s1 + $0x77] sm:$0x8] %vm3_vm0, %v1065_v55  }
 0x143   :  { %1754 = vst.msk [vmem:[%s4051_s1 + $0x96] sm:$0x10] %vm3_vm0, %v1065_v55   ;;  %1755 = vst.msk [vmem:[%s4051_s1 + $0xb5] sm:$0x20] %vm3_vm0, %v1065_v55  }
 0x144   :  { %1756 = vst.msk [vmem:[%s4051_s1 + $0xd4] sm:$0x40] %vm3_vm0, %v1065_v55   ;;  %1757 = vst.msk [vmem:[%s4051_s1 + $0xf3] sm:$0x80] %vm3_vm0, %v1065_v55  }
 0x145   :  { %1776 = vst.msk [vmem:[%s4051_s1 + $0x11b] sm:$0x1] %vm3_vm0, %v1127_v56   ;;  %1777 = vst.msk [vmem:[%s4051_s1 + $0x13a] sm:$0x2] %vm3_vm0, %v1127_v56  }
 0x146   :  { %1778 = vst.msk [vmem:[%s4051_s1 + $0x159] sm:$0x4] %vm3_vm0, %v1127_v56   ;;  %1779 = vst.msk [vmem:[%s4051_s1 + $0x178] sm:$0x8] %vm3_vm0, %v1127_v56  }
 0x147   :  { %1780 = vst.msk [vmem:[%s4051_s1 + $0x197] sm:$0x10] %vm3_vm0, %v1127_v56   ;;  %1781 = vst.msk [vmem:[%s4051_s1 + $0x1b6] sm:$0x20] %vm3_vm0, %v1127_v56  }
 0x148   :  { %1782 = vst.msk [vmem:[%s4051_s1 + $0x1d5] sm:$0x40] %vm3_vm0, %v1127_v56   ;;  %1783 = vst.msk [vmem:[%s4051_s1 + $0x1f4] sm:$0x80] %vm3_vm0, %v1127_v56  }
 0x149   :  { %1767 = vst.msk [vmem:[%s4051_s1 + $0x1b] sm:$0x1] %vm3_vm0, %v1106_v57   ;;  %1768 = vst.msk [vmem:[%s4051_s1 + $0x3a] sm:$0x2] %vm3_vm0, %v1106_v57  }
 0x14a   :  { %1769 = vst.msk [vmem:[%s4051_s1 + $0x59] sm:$0x4] %vm3_vm0, %v1106_v57   ;;  %1770 = vst.msk [vmem:[%s4051_s1 + $0x78] sm:$0x8] %vm3_vm0, %v1106_v57  }
 0x14b   :  { %1771 = vst.msk [vmem:[%s4051_s1 + $0x97] sm:$0x10] %vm3_vm0, %v1106_v57   ;;  %1772 = vst.msk [vmem:[%s4051_s1 + $0xb6] sm:$0x20] %vm3_vm0, %v1106_v57  }
 0x14c   :  { %1773 = vst.msk [vmem:[%s4051_s1 + $0xd5] sm:$0x40] %vm3_vm0, %v1106_v57   ;;  %1774 = vst.msk [vmem:[%s4051_s1 + $0xf4] sm:$0x80] %vm3_vm0, %v1106_v57  }
 0x14d   :  { %1793 = vst.msk [vmem:[%s4051_s1 + $0x11c] sm:$0x1] %vm3_vm0, %v1168_v58   ;;  %1794 = vst.msk [vmem:[%s4051_s1 + $0x13b] sm:$0x2] %vm3_vm0, %v1168_v58  }
 0x14e   :  { %1795 = vst.msk [vmem:[%s4051_s1 + $0x15a] sm:$0x4] %vm3_vm0, %v1168_v58   ;;  %1796 = vst.msk [vmem:[%s4051_s1 + $0x179] sm:$0x8] %vm3_vm0, %v1168_v58  }
 0x14f   :  { %1797 = vst.msk [vmem:[%s4051_s1 + $0x198] sm:$0x10] %vm3_vm0, %v1168_v58   ;;  %1798 = vst.msk [vmem:[%s4051_s1 + $0x1b7] sm:$0x20] %vm3_vm0, %v1168_v58  }
 0x150   :  { %1799 = vst.msk [vmem:[%s4051_s1 + $0x1d6] sm:$0x40] %vm3_vm0, %v1168_v58   ;;  %1800 = vst.msk [vmem:[%s4051_s1 + $0x1f5] sm:$0x80] %vm3_vm0, %v1168_v58  }
 0x151   :  { %1784 = vst.msk [vmem:[%s4051_s1 + $0x1c] sm:$0x1] %vm3_vm0, %v1147_v59   ;;  %1785 = vst.msk [vmem:[%s4051_s1 + $0x3b] sm:$0x2] %vm3_vm0, %v1147_v59  }
 0x152   :  { %1786 = vst.msk [vmem:[%s4051_s1 + $0x5a] sm:$0x4] %vm3_vm0, %v1147_v59   ;;  %1787 = vst.msk [vmem:[%s4051_s1 + $0x79] sm:$0x8] %vm3_vm0, %v1147_v59  }
 0x153   :  { %1788 = vst.msk [vmem:[%s4051_s1 + $0x98] sm:$0x10] %vm3_vm0, %v1147_v59   ;;  %1789 = vst.msk [vmem:[%s4051_s1 + $0xb7] sm:$0x20] %vm3_vm0, %v1147_v59  }
 0x154   :  { %1790 = vst.msk [vmem:[%s4051_s1 + $0xd6] sm:$0x40] %vm3_vm0, %v1147_v59   ;;  %1791 = vst.msk [vmem:[%s4051_s1 + $0xf5] sm:$0x80] %vm3_vm0, %v1147_v59  }
 0x155   :  { %1810 = vst.msk [vmem:[%s4051_s1 + $0x11d] sm:$0x1] %vm3_vm0, %v1209_v60   ;;  %1811 = vst.msk [vmem:[%s4051_s1 + $0x13c] sm:$0x2] %vm3_vm0, %v1209_v60  }
 0x156   :  { %1812 = vst.msk [vmem:[%s4051_s1 + $0x15b] sm:$0x4] %vm3_vm0, %v1209_v60   ;;  %1813 = vst.msk [vmem:[%s4051_s1 + $0x17a] sm:$0x8] %vm3_vm0, %v1209_v60  }
 0x157   :  { %1814 = vst.msk [vmem:[%s4051_s1 + $0x199] sm:$0x10] %vm3_vm0, %v1209_v60   ;;  %1815 = vst.msk [vmem:[%s4051_s1 + $0x1b8] sm:$0x20] %vm3_vm0, %v1209_v60  }
 0x158   :  { %1816 = vst.msk [vmem:[%s4051_s1 + $0x1d7] sm:$0x40] %vm3_vm0, %v1209_v60   ;;  %1817 = vst.msk [vmem:[%s4051_s1 + $0x1f6] sm:$0x80] %vm3_vm0, %v1209_v60  }
 0x159   :  { %1801 = vst.msk [vmem:[%s4051_s1 + $0x1d] sm:$0x1] %vm3_vm0, %v1188_v61   ;;  %1802 = vst.msk [vmem:[%s4051_s1 + $0x3c] sm:$0x2] %vm3_vm0, %v1188_v61  }
 0x15a   :  { %1803 = vst.msk [vmem:[%s4051_s1 + $0x5b] sm:$0x4] %vm3_vm0, %v1188_v61   ;;  %1804 = vst.msk [vmem:[%s4051_s1 + $0x7a] sm:$0x8] %vm3_vm0, %v1188_v61  }
 0x15b   :  { %1805 = vst.msk [vmem:[%s4051_s1 + $0x99] sm:$0x10] %vm3_vm0, %v1188_v61   ;;  %1806 = vst.msk [vmem:[%s4051_s1 + $0xb8] sm:$0x20] %vm3_vm0, %v1188_v61  }
 0x15c   :  { %1807 = vst.msk [vmem:[%s4051_s1 + $0xd7] sm:$0x40] %vm3_vm0, %v1188_v61   ;;  %1808 = vst.msk [vmem:[%s4051_s1 + $0xf6] sm:$0x80] %vm3_vm0, %v1188_v61  }
 0x15d   :  { %1827 = vst.msk [vmem:[%s4051_s1 + $0x11e] sm:$0x1] %vm3_vm0, %v1250_v62   ;;  %1828 = vst.msk [vmem:[%s4051_s1 + $0x13d] sm:$0x2] %vm3_vm0, %v1250_v62  }
 0x15e   :  { %1829 = vst.msk [vmem:[%s4051_s1 + $0x15c] sm:$0x4] %vm3_vm0, %v1250_v62   ;;  %1830 = vst.msk [vmem:[%s4051_s1 + $0x17b] sm:$0x8] %vm3_vm0, %v1250_v62  }
 0x15f   :  { %1831 = vst.msk [vmem:[%s4051_s1 + $0x19a] sm:$0x10] %vm3_vm0, %v1250_v62   ;;  %1832 = vst.msk [vmem:[%s4051_s1 + $0x1b9] sm:$0x20] %vm3_vm0, %v1250_v62  }
 0x160   :  { %1833 = vst.msk [vmem:[%s4051_s1 + $0x1d8] sm:$0x40] %vm3_vm0, %v1250_v62   ;;  %1834 = vst.msk [vmem:[%s4051_s1 + $0x1f7] sm:$0x80] %vm3_vm0, %v1250_v62  }
 0x161   :  { %1818 = vst.msk [vmem:[%s4051_s1 + $0x1e] sm:$0x1] %vm3_vm0, %v1229_v63   ;;  %1819 = vst.msk [vmem:[%s4051_s1 + $0x3d] sm:$0x2] %vm3_vm0, %v1229_v63  }
 0x162   :  { %1820 = vst.msk [vmem:[%s4051_s1 + $0x5c] sm:$0x4] %vm3_vm0, %v1229_v63   ;;  %1821 = vst.msk [vmem:[%s4051_s1 + $0x7b] sm:$0x8] %vm3_vm0, %v1229_v63  }
 0x163   :  { %1822 = vst.msk [vmem:[%s4051_s1 + $0x9a] sm:$0x10] %vm3_vm0, %v1229_v63   ;;  %1823 = vst.msk [vmem:[%s4051_s1 + $0xb9] sm:$0x20] %vm3_vm0, %v1229_v63  }
 0x164   :  { %1824 = vst.msk [vmem:[%s4051_s1 + $0xd8] sm:$0x40] %vm3_vm0, %v1229_v63   ;;  %1825 = vst.msk [vmem:[%s4051_s1 + $0xf7] sm:$0x80] %vm3_vm0, %v1229_v63  }
 0x165   :  { %1844 = vst.msk [vmem:[%s4051_s1 + $0x11f] sm:$0x1] %vm3_vm0, %v1291_v0   ;;  %1845 = vst.msk [vmem:[%s4051_s1 + $0x13e] sm:$0x2] %vm3_vm0, %v1291_v0  }
 0x166   :  { %1846 = vst.msk [vmem:[%s4051_s1 + $0x15d] sm:$0x4] %vm3_vm0, %v1291_v0   ;;  %1847 = vst.msk [vmem:[%s4051_s1 + $0x17c] sm:$0x8] %vm3_vm0, %v1291_v0  }
 0x167   :  { %1848 = vst.msk [vmem:[%s4051_s1 + $0x19b] sm:$0x10] %vm3_vm0, %v1291_v0   ;;  %1849 = vst.msk [vmem:[%s4051_s1 + $0x1ba] sm:$0x20] %vm3_vm0, %v1291_v0  }
 0x168   :  { %1850 = vst.msk [vmem:[%s4051_s1 + $0x1d9] sm:$0x40] %vm3_vm0, %v1291_v0   ;;  %1851 = vst.msk [vmem:[%s4051_s1 + $0x1f8] sm:$0x80] %vm3_vm0, %v1291_v0  }
 0x169   :  { %1835 = vst.msk [vmem:[%s4051_s1 + $0x1f] sm:$0x1] %vm3_vm0, %v1270_v1   ;;  %1836 = vst.msk [vmem:[%s4051_s1 + $0x3e] sm:$0x2] %vm3_vm0, %v1270_v1  }
 0x16a   :  { %1837 = vst.msk [vmem:[%s4051_s1 + $0x5d] sm:$0x4] %vm3_vm0, %v1270_v1   ;;  %1838 = vst.msk [vmem:[%s4051_s1 + $0x7c] sm:$0x8] %vm3_vm0, %v1270_v1  }
 0x16b   :  { %1839 = vst.msk [vmem:[%s4051_s1 + $0x9b] sm:$0x10] %vm3_vm0, %v1270_v1   ;;  %1840 = vst.msk [vmem:[%s4051_s1 + $0xba] sm:$0x20] %vm3_vm0, %v1270_v1  }
 0x16c   :  { %1841 = vst.msk [vmem:[%s4051_s1 + $0xd9] sm:$0x40] %vm3_vm0, %v1270_v1   ;;  %1842 = vst.msk [vmem:[%s4051_s1 + $0xf8] sm:$0x80] %vm3_vm0, %v1270_v1  }

// kernel: discriminator_forward.5
= control target key start
LH: loop header
LB: loop body
LE: loop exit
PB: predicated region body
PF: predicated region fallthrough
CT: control target
= control target key end

     0   :  { %v779_v0 = vmov 0   ;;  %vm704_vm0 = vcmask 7168   ;;  %vm709_vm1 = vcmask 15360   ;;  %s1151_s2 = inlined_call_operand.vmem [shape: f32[256,1], index: 2, kind: input, shape index: {}]   ;;  %s1152_s3 = inlined_call_operand.vmem [shape: f32[256,1], index: 3, kind: input, shape index: {}]   ;;  %s1153_s4 = inlined_call_operand.vmem [shape: f32[32,1], index: 4, kind: input, shape index: {}]   ;;  %s1154_s1 = inlined_call_operand.vmem [shape: f32[256,128], index: 1, kind: input, shape index: {}]   ;;  %s1155_s0 = inlined_call_operand.vmem [shape: bf16[32,256], index: 0, kind: input, shape index: {}]   ;;  %s1156_s5 = inlined_call_operand.vmem [shape: f32[32,128], index: 5, kind: output, shape index: {0}]   ;;  %s1157_s6 = inlined_call_operand.vmem [shape: f32[1,32,2], index: 6, kind: output, shape index: {1}]  }
   0x1   :  { %772 = vset.pattern.permute.xlu1 %v779_v0  ;;  %771 = vset.pattern.permute.xlu0 %v779_v0  ;;  %v71_v1 = vld [vmem:[%s1151_s2 + $0x80] sm:$0xff]  ;;  %v72_v3 = vld [vmem:[%s1151_s2 + $0x88] sm:$0xff]  ;;  %v73_v9 = vld [vmem:[%s1151_s2 + $0x90] sm:$0xff] }
   0x2   :  { %v55_v2 = vld [vmem:[%s1151_s2] sm:$0xff]  ;;  %169 = vperm.xlu0 %771, %v71_v1   ;;  %v56_v4 = vld [vmem:[%s1151_s2 + $0x8] sm:$0xff]  ;;  %v74_v10 = vld [vmem:[%s1151_s2 + $0x98] sm:$0xff] }
   0x3   :  { %89 = vperm.xlu1 %772, %v55_v2   ;;  %v295_v5 = vld [vmem:[%s1152_s3 + $0x80] sm:$0xff]  ;;  %v296_v6 = vld [vmem:[%s1152_s3 + $0x88] sm:$0xff]  ;;  %v57_v11 = vld [vmem:[%s1151_s2 + $0x10] sm:$0xff] }
   0x4   :  { %v279_v7 = vld [vmem:[%s1152_s3] sm:$0xff]  ;;  %v280_v8 = vld [vmem:[%s1152_s3 + $0x8] sm:$0xff]  ;;  %v58_v12 = vld [vmem:[%s1151_s2 + $0x18] sm:$0xff] }
   0x5   :  { %v297_v13 = vld [vmem:[%s1152_s3 + $0x90] sm:$0xff]  ;;  %v298_v14 = vld [vmem:[%s1152_s3 + $0x98] sm:$0xff]  ;;  %v75_v17 = vld [vmem:[%s1151_s2 + $0xa0] sm:$0xff] }
   0x6   :  { %174 = vperm.xlu0 %771, %v72_v3   ;;  %v281_v15 = vld [vmem:[%s1152_s3 + $0x10] sm:$0xff]  ;;  %v282_v16 = vld [vmem:[%s1152_s3 + $0x18] sm:$0xff]  ;;  %v76_v18 = vld [vmem:[%s1151_s2 + $0xa8] sm:$0xff] }
   0x7   :  { %94 = vperm.xlu1 %772, %v56_v4   ;;  %v59_v19 = vld [vmem:[%s1151_s2 + $0x20] sm:$0xff]  ;;  %v60_v20 = vld [vmem:[%s1151_s2 + $0x28] sm:$0xff]  ;;  %v77_v25 = vld [vmem:[%s1151_s2 + $0xb0] sm:$0xff] }
   0x8   :  { %v299_v21 = vld [vmem:[%s1152_s3 + $0xa0] sm:$0xff]  ;;  %v300_v22 = vld [vmem:[%s1152_s3 + $0xa8] sm:$0xff]  ;;  %v78_v26 = vld [vmem:[%s1151_s2 + $0xb8] sm:$0xff] }
   0x9   :  { %v283_v23 = vld [vmem:[%s1152_s3 + $0x20] sm:$0xff]  ;;  %v284_v24 = vld [vmem:[%s1152_s3 + $0x28] sm:$0xff]  ;;  %v61_v27 = vld [vmem:[%s1151_s2 + $0x30] sm:$0xff] }
   0xa   :  { %393 = vperm.xlu0 %771, %v295_v5   ;;  %v62_v28 = vld [vmem:[%s1151_s2 + $0x38] sm:$0xff]  ;;  %v301_v29 = vld [vmem:[%s1152_s3 + $0xb0] sm:$0xff]  ;;  %v79_v33 = vld [vmem:[%s1151_s2 + $0xc0] sm:$0xff] }
   0xb   :  { %398 = vperm.xlu1 %772, %v296_v6   ;;  %v302_v30 = vld [vmem:[%s1152_s3 + $0xb8] sm:$0xff]  ;;  %v285_v31 = vld [vmem:[%s1152_s3 + $0x30] sm:$0xff]  ;;  %v80_v34 = vld [vmem:[%s1151_s2 + $0xc8] sm:$0xff] }
   0xc   :  { %v286_v32 = vld [vmem:[%s1152_s3 + $0x38] sm:$0xff]  ;;  %v63_v35 = vld [vmem:[%s1151_s2 + $0x40] sm:$0xff]  ;;  %v64_v36 = vld [vmem:[%s1151_s2 + $0x48] sm:$0xff] }
   0xd   :  { %v303_v37 = vld [vmem:[%s1152_s3 + $0xc0] sm:$0xff]  ;;  %v304_v38 = vld [vmem:[%s1152_s3 + $0xc8] sm:$0xff]  ;;  %v81_v41 = vld [vmem:[%s1151_s2 + $0xd0] sm:$0xff] }
   0xe   :  { %313 = vperm.xlu0 %771, %v279_v7   ;;  %v287_v39 = vld [vmem:[%s1152_s3 + $0x40] sm:$0xff]  ;;  %v288_v40 = vld [vmem:[%s1152_s3 + $0x48] sm:$0xff]  ;;  %v82_v42 = vld [vmem:[%s1151_s2 + $0xd8] sm:$0xff] }
   0xf   :  { %318 = vperm.xlu1 %772, %v280_v8   ;;  %v65_v43 = vld [vmem:[%s1151_s2 + $0x50] sm:$0xff]  ;;  %v66_v44 = vld [vmem:[%s1151_s2 + $0x58] sm:$0xff]  ;;  %v83_v49 = vld [vmem:[%s1151_s2 + $0xe0] sm:$0xff] }
  0x10   :  { %v305_v45 = vld [vmem:[%s1152_s3 + $0xd0] sm:$0xff]  ;;  %v306_v46 = vld [vmem:[%s1152_s3 + $0xd8] sm:$0xff]  ;;  %v84_v50 = vld [vmem:[%s1151_s2 + $0xe8] sm:$0xff] }
  0x11   :  { %v289_v47 = vld [vmem:[%s1152_s3 + $0x50] sm:$0xff]  ;;  %v290_v48 = vld [vmem:[%s1152_s3 + $0x58] sm:$0xff]  ;;  %v67_v51 = vld [vmem:[%s1151_s2 + $0x60] sm:$0xff] }
  0x12   :  { %179 = vperm.xlu0 %771, %v73_v9   ;;  %v68_v52 = vld [vmem:[%s1151_s2 + $0x68] sm:$0xff]  ;;  %v307_v53 = vld [vmem:[%s1152_s3 + $0xe0] sm:$0xff]  ;;  %v85_v57 = vld [vmem:[%s1151_s2 + $0xf0] sm:$0xff] }
  0x13   :  { %184 = vperm.xlu1 %772, %v74_v10   ;;  %v308_v54 = vld [vmem:[%s1152_s3 + $0xe8] sm:$0xff]  ;;  %v291_v55 = vld [vmem:[%s1152_s3 + $0x60] sm:$0xff]  ;;  %v86_v58 = vld [vmem:[%s1151_s2 + $0xf8] sm:$0xff] }
  0x14   :  { %v292_v56 = vld [vmem:[%s1152_s3 + $0x68] sm:$0xff]  ;;  %v69_v59 = vld [vmem:[%s1151_s2 + $0x70] sm:$0xff]  ;;  %v70_v60 = vld [vmem:[%s1151_s2 + $0x78] sm:$0xff] }
  0x15   :  { %v309_v61 = vld [vmem:[%s1152_s3 + $0xf0] sm:$0xff]  ;;  %v310_v62 = vld [vmem:[%s1152_s3 + $0xf8] sm:$0xff]  ;;  %v587_v1 = vld [vmem:[%s1153_s4] sm:$0xff] }
  0x16   :  { %99 = vperm.xlu0 %771, %v57_v11   ;;  %v293_v63 = vld [vmem:[%s1152_s3 + $0x70] sm:$0xff]  ;;  %v294_v0 = vld [vmem:[%s1152_s3 + $0x78] sm:$0xff]  ;;  %v588_v2 = vld [vmem:[%s1153_s4 + $0x8] sm:$0xff] }
  0x17   :  { %104 = vperm.xlu1 %772, %v58_v12   ;;  %v589_v5 = vld [vmem:[%s1153_s4 + $0x10] sm:$0xff]  ;;  %v590_v6 = vld [vmem:[%s1153_s4 + $0x18] sm:$0xff]  ;;  %v39_v7 = vld [vmem:[%s1154_s1 + $0x80] sm:$0xff] }
  0x18   :  { %v40_v9 = vld [vmem:[%s1154_s1 + $0x88] sm:$0xff] }
  0x1a   :  { %403 = vperm.xlu0 %771, %v297_v13   ;;  %v775_v13 = vld [vmem:[%s1155_s0 + $0x4] ss:$8 sps:$4 sm:$0xff]  }
  0x1b   :  { %408 = vperm.xlu1 %772, %v298_v14   ;;  %v23_v14 = vld [vmem:[%s1154_s1] sm:$0xff]  ;;  %663 = vmatprep.mubr.bf16.mxu0 %v775_v13 }
  0x1e   :  { %323 = vperm.xlu0 %771, %v281_v15   ;;  %v24_v15 = vld [vmem:[%s1154_s1 + $0x8] sm:$0xff] }
  0x1f   :  { %328 = vperm.xlu1 %772, %v282_v16  }
  0x22   :  { %189 = vperm.xlu0 %771, %v75_v17  }
  0x23   :  { %194 = vperm.xlu1 %772, %v76_v18   ;;  %v778_v18 = vld [vmem:[%s1155_s0 + $0x14] ss:$8 sps:$4 sm:$0xff]  }
  0x24   :  { %671 = vmatprep.mubr.bf16.mxu1 %v778_v18 }
  0x26   :  { %109 = vperm.xlu0 %771, %v59_v19  }
  0x27   :  { %114 = vperm.xlu1 %772, %v60_v20  }
  0x2a   :  { %413 = vperm.xlu0 %771, %v299_v21  }
  0x2b   :  { %418 = vperm.xlu1 %772, %v300_v22  }
  0x2e   :  { %333 = vperm.xlu0 %771, %v283_v23  }
  0x2f   :  { %338 = vperm.xlu1 %772, %v284_v24  }
  0x32   :  { %199 = vperm.xlu0 %771, %v77_v25  }
  0x33   :  { %204 = vperm.xlu1 %772, %v78_v26  }
  0x36   :  { %119 = vperm.xlu0 %771, %v61_v27  }
  0x37   :  { %124 = vperm.xlu1 %772, %v62_v28  }
  0x3a   :  { %423 = vperm.xlu0 %771, %v301_v29  }
  0x3b   :  { %428 = vperm.xlu1 %772, %v302_v30  }
  0x3e   :  { %343 = vperm.xlu0 %771, %v285_v31  }
  0x3f   :  { %348 = vperm.xlu1 %772, %v286_v32  }
  0x42   :  { %209 = vperm.xlu0 %771, %v79_v33  }
  0x43   :  { %214 = vperm.xlu1 %772, %v80_v34  }
  0x46   :  { %129 = vperm.xlu0 %771, %v63_v35  }
  0x47   :  { %134 = vperm.xlu1 %772, %v64_v36  }
  0x4a   :  { %433 = vperm.xlu0 %771, %v303_v37  }
  0x4b   :  { %438 = vperm.xlu1 %772, %v304_v38  }
  0x4e   :  { %353 = vperm.xlu0 %771, %v287_v39   ;;  %v41_v39 = vld [vmem:[%s1154_s1 + $0x90] sm:$0xff] }
  0x4f   :  { %358 = vperm.xlu1 %772, %v288_v40   ;;  %v42_v40 = vld [vmem:[%s1154_s1 + $0x98] sm:$0xff] }
  0x52   :  { %219 = vperm.xlu0 %771, %v81_v41  }
  0x53   :  { %224 = vperm.xlu1 %772, %v82_v42  }
  0x56   :  { %139 = vperm.xlu0 %771, %v65_v43  }
  0x57   :  { %144 = vperm.xlu1 %772, %v66_v44  }
  0x5a   :  { %443 = vperm.xlu0 %771, %v305_v45   ;;  %v25_v45 = vld [vmem:[%s1154_s1 + $0x10] sm:$0xff] }
  0x5b   :  { %448 = vperm.xlu1 %772, %v306_v46   ;;  %v26_v46 = vld [vmem:[%s1154_s1 + $0x18] sm:$0xff] }
  0x5e   :  { %363 = vperm.xlu0 %771, %v289_v47  }
  0x5f   :  { %368 = vperm.xlu1 %772, %v290_v48  }
  0x62   :  { %229 = vperm.xlu0 %771, %v83_v49  }
  0x63   :  { %234 = vperm.xlu1 %772, %v84_v50  }
  0x66   :  { %149 = vperm.xlu0 %771, %v67_v51  }
  0x67   :  { %154 = vperm.xlu1 %772, %v68_v52  }
  0x6a   :  { %453 = vperm.xlu0 %771, %v307_v53  }
  0x6b   :  { %458 = vperm.xlu1 %772, %v308_v54  }
  0x6e   :  { %373 = vperm.xlu0 %771, %v291_v55  }
  0x6f   :  { %378 = vperm.xlu1 %772, %v292_v56  }
  0x72   :  { %239 = vperm.xlu0 %771, %v85_v57  }
  0x73   :  { %244 = vperm.xlu1 %772, %v86_v58  }
  0x76   :  { %159 = vperm.xlu0 %771, %v69_v59  }
  0x77   :  { %164 = vperm.xlu1 %772, %v70_v60  }
  0x7a   :  { %463 = vperm.xlu0 %771, %v309_v61  }
  0x7b   :  { %468 = vperm.xlu1 %772, %v310_v62  }
  0x7e   :  { %383 = vperm.xlu0 %771, %v293_v63  }
  0x7f   :  { %388 = vperm.xlu1 %772, %v294_v0  }
  0x81   :  { %v170_v3 = vpop.permute.xlu0 %169 }
  0x82   :  { %v90_v4 = vpop.permute.xlu1 %89  ;;  %593 = vperm.xlu0 %771, %v587_v1   ;;  %v263_v11 = vmul.f32 %v170_v3, %v39_v7 }
  0x83   :  { %598 = vperm.xlu1 %772, %v588_v2   ;;  %v247_v21 = vmul.f32 %v90_v4, %v23_v14 }
  0x85   :  { %v175_v8 = vpop.permute.xlu0 %174 }
  0x86   :  { %v95_v10 = vpop.permute.xlu1 %94  ;;  %603 = vperm.xlu0 %771, %v589_v5   ;;  %v264_v12 = vmul.f32 %v175_v8, %v40_v9  ;;  %v43_v5 = vld [vmem:[%s1154_s1 + $0xa0] sm:$0xff] }
  0x87   :  { %608 = vperm.xlu1 %772, %v590_v6   ;;  %v248_v22 = vmul.f32 %v95_v10, %v24_v15  ;;  %v44_v6 = vld [vmem:[%s1154_s1 + $0xa8] sm:$0xff] }
  0x89   :  { %v394_v16 = vpop.permute.xlu0 %393 }
  0x8a   :  { %v399_v17 = vpop.permute.xlu1 %398  ;;  %v487_v19 = vadd.f32 %v394_v16, %v263_v11  ;;  %v27_v11 = vld [vmem:[%s1154_s1 + $0x20] sm:$0xff] }
  0x8b   :  { %v488_v20 = vadd.f32 %v399_v17, %v264_v12  ;;  %v28_v12 = vld [vmem:[%s1154_s1 + $0x28] sm:$0xff] }
  0x8c   :  { %v519_v23 = vmul.f32 0.2, %v487_v19 }
  0x8d   :  { %v520_v24 = vmul.f32 0.2, %v488_v20  ;;  %v314_v25 = vpop.permute.xlu0 %313 }
  0x8e   :  { %v319_v26 = vpop.permute.xlu1 %318  ;;  %v551_v27 = vmax.f32 %v487_v19, %v519_v23  ;;  %v471_v29 = vadd.f32 %v314_v25, %v247_v21 }
  0x8f   :  { %v552_v28 = vmax.f32 %v488_v20, %v520_v24  ;;  %v472_v30 = vadd.f32 %v319_v26, %v248_v22 }
  0x90   :  { %v503_v31 = vmul.f32 0.2, %v471_v29 }
  0x91   :  { %v504_v32 = vmul.f32 0.2, %v472_v30  ;;  %v579_v33 = vpack.c.bf16 %v552_v28, %v551_v27  ;;  %v180_v34 = vpop.permute.xlu0 %179 }
  0x92   :  { %v185_v35 = vpop.permute.xlu1 %184  ;;  %v535_v36 = vmax.f32 %v471_v29, %v503_v31  ;;  %v265_v43 = vmul.f32 %v180_v34, %v41_v39 }
  0x93   :  { %v536_v37 = vmax.f32 %v472_v30, %v504_v32  ;;  %726 = vmatprep.subr.bf16.mxu0 %v579_v33  ;;  %754 = vmatprep.subr.bf16.mxu1 %v579_v33  ;;  %v266_v44 = vmul.f32 %v185_v35, %v42_v40  ;;  %v45_v35 = vld [vmem:[%s1154_s1 + $0xb0] sm:$0xff] }
  0x95   :  { %v571_v38 = vpack.c.bf16 %v536_v37, %v535_v36  ;;  %v100_v41 = vpop.permute.xlu0 %99  ;;  %v46_v36 = vld [vmem:[%s1154_s1 + $0xb8] sm:$0xff] }
  0x96   :  { %v105_v42 = vpop.permute.xlu1 %104  ;;  %v249_v51 = vmul.f32 %v100_v41, %v25_v45  ;;  %v29_v41 = vld [vmem:[%s1154_s1 + $0x30] sm:$0xff] }
  0x97   :  { %727 = vmatpush3.bf16.msra.mxu0 %v571_v38  ;;  %762 = vmatpush3.bf16.msra.mxu1 %v571_v38  ;;  %v250_v52 = vmul.f32 %v105_v42, %v26_v46  ;;  %v30_v42 = vld [vmem:[%s1154_s1 + $0x38] sm:$0xff] }
  0x99   :  { %v404_v47 = vpop.permute.xlu0 %403 }
  0x9a   :  { %v409_v48 = vpop.permute.xlu1 %408  ;;  %v489_v49 = vadd.f32 %v404_v47, %v265_v43 }
  0x9b   :  { %v490_v50 = vadd.f32 %v409_v48, %v266_v44 }
  0x9c   :  { %v521_v53 = vmul.f32 0.2, %v489_v49 }
  0x9d   :  { %v522_v54 = vmul.f32 0.2, %v490_v50  ;;  %v324_v55 = vpop.permute.xlu0 %323 }
  0x9e   :  { %v329_v56 = vpop.permute.xlu1 %328  ;;  %v553_v57 = vmax.f32 %v489_v49, %v521_v53  ;;  %v473_v59 = vadd.f32 %v324_v55, %v249_v51 }
  0x9f   :  { %v554_v58 = vmax.f32 %v490_v50, %v522_v54  ;;  %v474_v60 = vadd.f32 %v329_v56, %v250_v52 }
  0xa0   :  { %v505_v61 = vmul.f32 0.2, %v473_v59 }
  0xa1   :  { %v506_v62 = vmul.f32 0.2, %v474_v60  ;;  %v580_v63 = vpack.c.bf16 %v554_v58, %v553_v57  ;;  %v190_v0 = vpop.permute.xlu0 %189 }
  0xa2   :  { %v195_v1 = vpop.permute.xlu1 %194  ;;  %v537_v2 = vmax.f32 %v473_v59, %v505_v61  ;;  %v267_v9 = vmul.f32 %v190_v0, %v43_v5 }
  0xa3   :  { %v538_v3 = vmax.f32 %v474_v60, %v506_v62  ;;  %728 = vmatprep.subr.bf16.mxu0 %v580_v63  ;;  %755 = vmatprep.subr.bf16.mxu1 %v580_v63  ;;  %v268_v10 = vmul.f32 %v195_v1, %v44_v6  ;;  %v47_v1 = vld [vmem:[%s1154_s1 + $0xc0] sm:$0xff] }
  0xa5   :  { %v572_v4 = vpack.c.bf16 %v538_v3, %v537_v2  ;;  %v110_v7 = vpop.permute.xlu0 %109  ;;  %v48_v2 = vld [vmem:[%s1154_s1 + $0xc8] sm:$0xff] }
  0xa6   :  { %v115_v8 = vpop.permute.xlu1 %114  ;;  %v251_v17 = vmul.f32 %v110_v7, %v27_v11  ;;  %v31_v7 = vld [vmem:[%s1154_s1 + $0x40] sm:$0xff] }
  0xa7   :  { %729 = vmatpush3.bf16.msra.mxu0 %v572_v4  ;;  %763 = vmatpush3.bf16.msra.mxu1 %v572_v4  ;;  %v252_v18 = vmul.f32 %v115_v8, %v28_v12  ;;  %v32_v8 = vld [vmem:[%s1154_s1 + $0x48] sm:$0xff] }
  0xa9   :  { %v414_v13 = vpop.permute.xlu0 %413 }
  0xaa   :  { %v419_v14 = vpop.permute.xlu1 %418  ;;  %v491_v15 = vadd.f32 %v414_v13, %v267_v9 }
  0xab   :  { %v492_v16 = vadd.f32 %v419_v14, %v268_v10 }
  0xac   :  { %v523_v19 = vmul.f32 0.2, %v491_v15 }
  0xad   :  { %v524_v20 = vmul.f32 0.2, %v492_v16  ;;  %v334_v21 = vpop.permute.xlu0 %333 }
  0xae   :  { %v339_v22 = vpop.permute.xlu1 %338  ;;  %v555_v23 = vmax.f32 %v491_v15, %v523_v19  ;;  %v475_v25 = vadd.f32 %v334_v21, %v251_v17 }
  0xaf   :  { %v556_v24 = vmax.f32 %v492_v16, %v524_v20  ;;  %v476_v26 = vadd.f32 %v339_v22, %v252_v18 }
  0xb0   :  { %v507_v27 = vmul.f32 0.2, %v475_v25 }
  0xb1   :  { %v508_v28 = vmul.f32 0.2, %v476_v26  ;;  %v581_v29 = vpack.c.bf16 %v556_v24, %v555_v23  ;;  %v200_v30 = vpop.permute.xlu0 %199 }
  0xb2   :  { %v205_v31 = vpop.permute.xlu1 %204  ;;  %v539_v32 = vmax.f32 %v475_v25, %v507_v27  ;;  %v269_v39 = vmul.f32 %v200_v30, %v45_v35 }
  0xb3   :  { %v540_v33 = vmax.f32 %v476_v26, %v508_v28  ;;  %730 = vmatprep.subr.bf16.mxu0 %v581_v29  ;;  %756 = vmatprep.subr.bf16.mxu1 %v581_v29  ;;  %v270_v40 = vmul.f32 %v205_v31, %v46_v36  ;;  %v49_v31 = vld [vmem:[%s1154_s1 + $0xd0] sm:$0xff] }
  0xb5   :  { %v573_v34 = vpack.c.bf16 %v540_v33, %v539_v32  ;;  %v120_v37 = vpop.permute.xlu0 %119  ;;  %v50_v32 = vld [vmem:[%s1154_s1 + $0xd8] sm:$0xff] }
  0xb6   :  { %v125_v38 = vpop.permute.xlu1 %124  ;;  %v253_v47 = vmul.f32 %v120_v37, %v29_v41  ;;  %v33_v37 = vld [vmem:[%s1154_s1 + $0x50] sm:$0xff] }
  0xb7   :  { %731 = vmatpush3.bf16.msra.mxu0 %v573_v34  ;;  %764 = vmatpush3.bf16.msra.mxu1 %v573_v34  ;;  %v254_v48 = vmul.f32 %v125_v38, %v30_v42  ;;  %v34_v38 = vld [vmem:[%s1154_s1 + $0x58] sm:$0xff] }
  0xb9   :  { %v424_v43 = vpop.permute.xlu0 %423 }
  0xba   :  { %v429_v44 = vpop.permute.xlu1 %428  ;;  %v493_v45 = vadd.f32 %v424_v43, %v269_v39 }
  0xbb   :  { %v494_v46 = vadd.f32 %v429_v44, %v270_v40 }
  0xbc   :  { %v525_v49 = vmul.f32 0.2, %v493_v45 }
  0xbd   :  { %v526_v50 = vmul.f32 0.2, %v494_v46  ;;  %v344_v51 = vpop.permute.xlu0 %343 }
  0xbe   :  { %v349_v52 = vpop.permute.xlu1 %348  ;;  %v557_v53 = vmax.f32 %v493_v45, %v525_v49  ;;  %v477_v55 = vadd.f32 %v344_v51, %v253_v47 }
  0xbf   :  { %v558_v54 = vmax.f32 %v494_v46, %v526_v50  ;;  %v478_v56 = vadd.f32 %v349_v52, %v254_v48 }
  0xc0   :  { %v509_v57 = vmul.f32 0.2, %v477_v55 }
  0xc1   :  { %v510_v58 = vmul.f32 0.2, %v478_v56  ;;  %v582_v59 = vpack.c.bf16 %v558_v54, %v557_v53  ;;  %v210_v60 = vpop.permute.xlu0 %209 }
  0xc2   :  { %v215_v61 = vpop.permute.xlu1 %214  ;;  %v541_v62 = vmax.f32 %v477_v55, %v509_v57  ;;  %v271_v5 = vmul.f32 %v210_v60, %v47_v1 }
  0xc3   :  { %v542_v63 = vmax.f32 %v478_v56, %v510_v58  ;;  %732 = vmatprep.subr.bf16.mxu0 %v582_v59  ;;  %757 = vmatprep.subr.bf16.mxu1 %v582_v59  ;;  %v272_v6 = vmul.f32 %v215_v61, %v48_v2  ;;  %v51_v61 = vld [vmem:[%s1154_s1 + $0xe0] sm:$0xff] }
  0xc5   :  { %v574_v0 = vpack.c.bf16 %v542_v63, %v541_v62  ;;  %v130_v3 = vpop.permute.xlu0 %129  ;;  %v52_v62 = vld [vmem:[%s1154_s1 + $0xe8] sm:$0xff] }
  0xc6   :  { %v135_v4 = vpop.permute.xlu1 %134  ;;  %v255_v13 = vmul.f32 %v130_v3, %v31_v7  ;;  %v35_v3 = vld [vmem:[%s1154_s1 + $0x60] sm:$0xff] }
  0xc7   :  { %733 = vmatpush3.bf16.msra.mxu0 %v574_v0  ;;  %765 = vmatpush3.bf16.msra.mxu1 %v574_v0  ;;  %v256_v14 = vmul.f32 %v135_v4, %v32_v8  ;;  %v36_v4 = vld [vmem:[%s1154_s1 + $0x68] sm:$0xff] }
  0xc9   :  { %v434_v9 = vpop.permute.xlu0 %433 }
  0xca   :  { %v439_v10 = vpop.permute.xlu1 %438  ;;  %v495_v11 = vadd.f32 %v434_v9, %v271_v5 }
  0xcb   :  { %v496_v12 = vadd.f32 %v439_v10, %v272_v6 }
  0xcc   :  { %v527_v15 = vmul.f32 0.2, %v495_v11 }
  0xcd   :  { %v528_v16 = vmul.f32 0.2, %v496_v12  ;;  %v354_v17 = vpop.permute.xlu0 %353 }
  0xce   :  { %v359_v18 = vpop.permute.xlu1 %358  ;;  %v559_v19 = vmax.f32 %v495_v11, %v527_v15  ;;  %v479_v21 = vadd.f32 %v354_v17, %v255_v13 }
  0xcf   :  { %v560_v20 = vmax.f32 %v496_v12, %v528_v16  ;;  %v480_v22 = vadd.f32 %v359_v18, %v256_v14 }
  0xd0   :  { %v511_v23 = vmul.f32 0.2, %v479_v21 }
  0xd1   :  { %v512_v24 = vmul.f32 0.2, %v480_v22  ;;  %v583_v25 = vpack.c.bf16 %v560_v20, %v559_v19  ;;  %v220_v26 = vpop.permute.xlu0 %219 }
  0xd2   :  { %v225_v27 = vpop.permute.xlu1 %224  ;;  %v543_v28 = vmax.f32 %v479_v21, %v511_v23  ;;  %v273_v35 = vmul.f32 %v220_v26, %v49_v31 }
  0xd3   :  { %v544_v29 = vmax.f32 %v480_v22, %v512_v24  ;;  %734 = vmatprep.subr.bf16.mxu0 %v583_v25  ;;  %758 = vmatprep.subr.bf16.mxu1 %v583_v25  ;;  %v274_v36 = vmul.f32 %v225_v27, %v50_v32  ;;  %v53_v27 = vld [vmem:[%s1154_s1 + $0xf0] sm:$0xff] }
  0xd5   :  { %v575_v30 = vpack.c.bf16 %v544_v29, %v543_v28  ;;  %v140_v33 = vpop.permute.xlu0 %139  ;;  %v54_v28 = vld [vmem:[%s1154_s1 + $0xf8] sm:$0xff] }
  0xd6   :  { %v145_v34 = vpop.permute.xlu1 %144  ;;  %v257_v43 = vmul.f32 %v140_v33, %v33_v37  ;;  %v37_v33 = vld [vmem:[%s1154_s1 + $0x70] sm:$0xff] }
  0xd7   :  { %735 = vmatpush3.bf16.msra.mxu0 %v575_v30  ;;  %766 = vmatpush3.bf16.msra.mxu1 %v575_v30  ;;  %v258_v44 = vmul.f32 %v145_v34, %v34_v38  ;;  %v38_v34 = vld [vmem:[%s1154_s1 + $0x78] sm:$0xff] }
  0xd9   :  { %v444_v39 = vpop.permute.xlu0 %443 }
  0xda   :  { %v449_v40 = vpop.permute.xlu1 %448  ;;  %v497_v41 = vadd.f32 %v444_v39, %v273_v35 }
  0xdb   :  { %v498_v42 = vadd.f32 %v449_v40, %v274_v36 }
  0xdc   :  { %v529_v45 = vmul.f32 0.2, %v497_v41 }
  0xdd   :  { %v530_v46 = vmul.f32 0.2, %v498_v42  ;;  %v364_v47 = vpop.permute.xlu0 %363 }
  0xde   :  { %v369_v48 = vpop.permute.xlu1 %368  ;;  %v561_v49 = vmax.f32 %v497_v41, %v529_v45  ;;  %v481_v51 = vadd.f32 %v364_v47, %v257_v43 }
  0xdf   :  { %v562_v50 = vmax.f32 %v498_v42, %v530_v46  ;;  %v482_v52 = vadd.f32 %v369_v48, %v258_v44 }
  0xe0   :  { %v513_v53 = vmul.f32 0.2, %v481_v51 }
  0xe1   :  { %v514_v54 = vmul.f32 0.2, %v482_v52  ;;  %v584_v55 = vpack.c.bf16 %v562_v50, %v561_v49  ;;  %v230_v56 = vpop.permute.xlu0 %229 }
  0xe2   :  { %v235_v57 = vpop.permute.xlu1 %234  ;;  %v545_v58 = vmax.f32 %v481_v51, %v513_v53  ;;  %v275_v1 = vmul.f32 %v230_v56, %v51_v61  ;;  %v776_v56 = vld [vmem:[%s1155_s0 + $0x10] ss:$8 sps:$4 sm:$0xff]  }
  0xe3   :  { %v546_v59 = vmax.f32 %v482_v52, %v514_v54  ;;  %736 = vmatprep.subr.bf16.mxu0 %v584_v55  ;;  %759 = vmatprep.subr.bf16.mxu1 %v584_v55  ;;  %v276_v2 = vmul.f32 %v235_v57, %v52_v62  ;;  %v773_v55 = vld [vmem:[%s1155_s0] ss:$8 sps:$4 sm:$0xff]  }
  0xe5   :  { %v576_v60 = vpack.c.bf16 %v546_v59, %v545_v58  ;;  %v150_v63 = vpop.permute.xlu0 %149 }
  0xe6   :  { %v155_v0 = vpop.permute.xlu1 %154  ;;  %v259_v9 = vmul.f32 %v150_v63, %v35_v3 }
  0xe7   :  { %737 = vmatpush3.bf16.msra.mxu0 %v576_v60  ;;  %767 = vmatpush3.bf16.msra.mxu1 %v576_v60  ;;  %v260_v10 = vmul.f32 %v155_v0, %v36_v4 }
  0xe9   :  { %v454_v5 = vpop.permute.xlu0 %453 }
  0xea   :  { %v459_v6 = vpop.permute.xlu1 %458  ;;  %v499_v7 = vadd.f32 %v454_v5, %v275_v1 }
  0xeb   :  { %v500_v8 = vadd.f32 %v459_v6, %v276_v2 }
  0xec   :  { %v531_v11 = vmul.f32 0.2, %v499_v7 }
  0xed   :  { %v532_v12 = vmul.f32 0.2, %v500_v8  ;;  %v374_v13 = vpop.permute.xlu0 %373 }
  0xee   :  { %v379_v14 = vpop.permute.xlu1 %378  ;;  %v563_v15 = vmax.f32 %v499_v7, %v531_v11  ;;  %v483_v17 = vadd.f32 %v374_v13, %v259_v9 }
  0xef   :  { %v564_v16 = vmax.f32 %v500_v8, %v532_v12  ;;  %v484_v18 = vadd.f32 %v379_v14, %v260_v10 }
  0xf0   :  { %v515_v19 = vmul.f32 0.2, %v483_v17 }
  0xf1   :  { %v516_v20 = vmul.f32 0.2, %v484_v18  ;;  %v585_v21 = vpack.c.bf16 %v564_v16, %v563_v15  ;;  %v240_v22 = vpop.permute.xlu0 %239 }
  0xf2   :  { %v245_v23 = vpop.permute.xlu1 %244  ;;  %v547_v24 = vmax.f32 %v483_v17, %v515_v19  ;;  %v277_v31 = vmul.f32 %v240_v22, %v53_v27 }
  0xf3   :  { %v548_v25 = vmax.f32 %v484_v18, %v516_v20  ;;  %738 = vmatprep.subr.bf16.mxu0 %v585_v21  ;;  %760 = vmatprep.subr.bf16.mxu1 %v585_v21  ;;  %v278_v32 = vmul.f32 %v245_v23, %v54_v28 }
  0xf5   :  { %v577_v26 = vpack.c.bf16 %v548_v25, %v547_v24  ;;  %v160_v29 = vpop.permute.xlu0 %159 }
  0xf6   :  { %v165_v30 = vpop.permute.xlu1 %164  ;;  %v261_v39 = vmul.f32 %v160_v29, %v37_v33 }
  0xf7   :  { %739 = vmatpush3.bf16.msra.mxu0 %v577_v26  ;;  %768 = vmatpush3.bf16.msra.mxu1 %v577_v26  ;;  %v262_v40 = vmul.f32 %v165_v30, %v38_v34 }
  0xf9   :  { %v464_v35 = vpop.permute.xlu0 %463 }
  0xfa   :  { %v469_v36 = vpop.permute.xlu1 %468  ;;  %v501_v37 = vadd.f32 %v464_v35, %v277_v31 }
  0xfb   :  { %v502_v38 = vadd.f32 %v469_v36, %v278_v32 }
  0xfc   :  { %v533_v41 = vmul.f32 0.2, %v501_v37 }
  0xfd   :  { %v534_v42 = vmul.f32 0.2, %v502_v38  ;;  %v384_v43 = vpop.permute.xlu0 %383 }
  0xfe   :  { %v389_v44 = vpop.permute.xlu1 %388  ;;  %v565_v45 = vmax.f32 %v501_v37, %v533_v41  ;;  %v485_v47 = vadd.f32 %v384_v43, %v261_v39 }
  0xff   :  { %v566_v46 = vmax.f32 %v502_v38, %v534_v42  ;;  %v486_v48 = vadd.f32 %v389_v44, %v262_v40 }
 0x100   :  { %v517_v49 = vmul.f32 0.2, %v485_v47 }
 0x101   :  { %v518_v50 = vmul.f32 0.2, %v486_v48  ;;  %v586_v51 = vpack.c.bf16 %v566_v46, %v565_v45  ;;  %v594_v57 = vpop.permute.xlu0 %593 }
 0x102   :  { %v549_v52 = vmax.f32 %v485_v47, %v517_v49  ;;  %v599_v58 = vpop.permute.xlu1 %598 }
 0x103   :  { %v550_v53 = vmax.f32 %v486_v48, %v518_v50  ;;  %740 = vmatprep.subr.bf16.mxu0 %v586_v51  ;;  %761 = vmatprep.subr.bf16.mxu1 %v586_v51 }
 0x105   :  { %v578_v54 = vpack.c.bf16 %v550_v53, %v549_v52  ;;  %v604_v59 = vpop.permute.xlu0 %603 }
 0x106   :  { %v609_v10 = vpop.permute.xlu1 %608 }
 0x107   :  { %741 = vmatpush3.bf16.msra.mxu0 %v578_v54  ;;  %769 = vmatpush3.bf16.msra.mxu1 %v578_v54 }
 0x10a   :  { %664 = vmatmul.mubr.bf16.vlgmr.msra.gmra.mrb[0].mxu0 %v773_v55  ;;  %672 = vmatmul.mubr.bf16.vlgmr.msra.gmra.mrb[0].mxu1 %v776_v56 }
 0x1dd   :  { %v742_v60 = vpop.f32.mrb[0].mxu0  ;;  %v748_v61 = vpop.f32.mrb[0].mxu1 }
 0x1de   :  { %v743_v62 = vpop.f32.mrb[1].mxu0  ;;  %v749_v63 = vpop.f32.mrb[1].mxu1 }
 0x1df   :  { %v744_v0 = vadd.f32 %v743_v62, %v742_v60  ;;  %v750_v1 = vadd.f32 %v749_v63, %v748_v61  ;;  %v745_v2 = vpop.f32.mrb[2].mxu0  ;;  %v751_v3 = vpop.f32.mrb[2].mxu1 }
 0x1e0   :  { %v746_v4 = vpop.f32.mrb[3].mxu0  ;;  %v752_v5 = vpop.f32.mrb[3].mxu1 }
 0x1e1   :  { %v666_v6 = vadd.f32 %v744_v0, %v594_v57  ;;  %v674_v7 = vadd.f32 %v750_v1, %v604_v59  ;;  %v747_v8 = vadd.f32 %v746_v4, %v745_v2  ;;  %v753_v9 = vadd.f32 %v752_v5, %v751_v3 }
 0x1e3   :  { %680 = vst [vmem:[%s1156_s5] sm:$0xff] %v666_v6  ;;  %682 = vst [vmem:[%s1156_s5 + $0x10] sm:$0xff] %v674_v7  ;;  %v669_v11 = vadd.f32 %v747_v8, %v599_v58  ;;  %v677_v12 = vadd.f32 %v753_v9, %v609_v10  ;;  %684 = vadd.xlane.f32.xlu0 %v666_v6  ;;  %v692_v13 = vmul.f32 %v666_v6, %v666_v6 }
 0x1e4   :  { %v694_v14 = vmul.f32 %v674_v7, %v674_v7 }
 0x1e5   :  { %681 = vst [vmem:[%s1156_s5 + $0x8] sm:$0xff] %v669_v11  ;;  %683 = vst [vmem:[%s1156_s5 + $0x18] sm:$0xff] %v677_v12  ;;  %686 = vadd.xlane.f32.xlu1 %v669_v11  ;;  %v693_v15 = vmul.f32 %v669_v11, %v669_v11  ;;  %v695_v16 = vmul.f32 %v677_v12, %v677_v12 }
 0x1e7   :  { %688 = vadd.xlane.f32.xlu0 %v674_v7 }
 0x1e9   :  { %696 = vadd.xlane.f32.xlu1 %v692_v13 }
 0x1eb   :  { %690 = vadd.xlane.f32.xlu0 %v677_v12 }
 0x1ed   :  { %700 = vadd.xlane.f32.xlu1 %v694_v14 }
 0x1ef   :  { %698 = vadd.xlane.f32.xlu0 %v693_v15 }
 0x1f3   :  { %702 = vadd.xlane.f32.xlu0 %v695_v16 }
 0x270   :  { %v685_v17 = vpop.xlane.xlu0 %684 }
 0x272   :  { %v687_v18 = vpop.xlane.xlu1 %686 }
 0x274   :  { %v689_v19 = vpop.xlane.xlu0 %688 }
 0x276   :  { %v697_v20 = vpop.xlane.xlu1 %696 }
 0x277   :  { %v705_v21 = vsel %vm704_vm0, %v685_v17, %v697_v20 }
 0x278   :  { %710 = vst.msk [vmem:[%s1157_s6] sm:$0xff] %vm709_vm1, %v705_v21  ;;  %v691_v22 = vpop.xlane.xlu0 %690 }
 0x27a   :  { %v701_v23 = vpop.xlane.xlu1 %700 }
 0x27b   :  { %v707_v24 = vsel %vm704_vm0, %v689_v19, %v701_v23 }
 0x27c   :  { %712 = vst.msk [vmem:[%s1157_s6 + $0x10] sm:$0xff] %vm709_vm1, %v707_v24  ;;  %v699_v25 = vpop.xlane.xlu0 %698 }
 0x27d   :  { %v706_v26 = vsel %vm704_vm0, %v687_v18, %v699_v25 }
 0x27e   :  { %711 = vst.msk [vmem:[%s1157_s6 + $0x8] sm:$0xff] %vm709_vm1, %v706_v26 }
 0x280   :  { %v703_v27 = vpop.xlane.xlu0 %702 }
 0x281   :  { %v708_v28 = vsel %vm704_vm0, %v691_v22, %v703_v27 }
 0x282   :  { %713 = vst.msk [vmem:[%s1157_s6 + $0x18] sm:$0xff] %vm709_vm1, %v708_v28 }

// kernel: tile.41
= control target key start
LH: loop header
LB: loop body
LE: loop exit
PB: predicated region body
PF: predicated region fallthrough
CT: control target
= control target key end

     0   :  { %s28_s0 = inlined_call_operand.vmem [shape: f32[64], index: 0, kind: input, shape index: {}]   ;;  %s29_s1 = inlined_call_operand.vmem [shape: f32[16,64], index: 1, kind: output, shape index: {}]  }
   0x1   :  { %v4_v0 = vld [vmem:[%s28_s0] ss:$0 sm:$0xff] }
   0x2   :  { %5 = vst [vmem:[%s29_s1] sm:$0xff] %v4_v0  ;;  %8 = vst [vmem:[%s29_s1 + $0x8] sm:$0xff] %v4_v0 }

// kernel: tile.2
= control target key start
LH: loop header
LB: loop body
LE: loop exit
PB: predicated region body
PF: predicated region fallthrough
CT: control target
= control target key end

     0   :  { %s3771_s8 = smov 126   ;;  %s3772_s9 = smov 127   ;;  %vm3_vm0 = vcmask 7168   ;;  %s8092_s0 = inlined_call_operand.vmem [shape: f32[16,64], index: 0, kind: input, shape index: {}]   ;;  %s8093_s1 = inlined_call_operand.vmem [shape: f32[1024,1], index: 1, kind: output, shape index: {}]  }
   0x1   :  { %v3847_v0 = vld [vmem:[%s8092_s0] sm:$0xff]   ;;  %v3854_v1 = vld [vmem:[%s8092_s0 + $0x8] sm:$0xff]   ;;  %s3773_s12 = smov 125   ;;  %s3774_s13 = smov 124  }
   0x2   :  { %80 = vrot.lane.b32.xlu1 %v3847_v0, %s3771_s8  ;;  %39 = vrot.lane.b32.xlu0 %v3847_v0, %s3772_s9  ;;  %s3775_s14 = smov 123   ;;  %s3776_s15 = smov 122   ;;  %v4905_v32 = vld [vmem:[%s8092_s0] sm:$0xff]   ;;  %v4976_v35 = vld [vmem:[%s8092_s0 + $0x8] sm:$0xff]  }
   0x3   :  { %s3777_s16 = smov 121   ;;  %s3778_s17 = smov 120  }
   0x4   :  { %s3779_s18 = smov 119   ;;  %s3780_s19 = smov 118  }
   0x5   :  { %s3781_s20 = smov 117   ;;  %s3782_s21 = smov 116  }
   0x6   :  { %101 = vrot.lane.b32.xlu1 %v3854_v1, %s3771_s8  ;;  %60 = vrot.lane.b32.xlu0 %v3854_v1, %s3772_s9  ;;  %s3783_s22 = smov 115   ;;  %s3784_s23 = smov 114  }
   0x7   :  { %s3785_s24 = smov 113   ;;  %s3786_s25 = smov 112  }
   0x8   :  { %s3787_s26 = smov 111   ;;  %s3788_s27 = smov 110  }
   0x9   :  { %s3789_s28 = smov 109   ;;  %s3790_s29 = smov 108  }
   0xa   :  { %142 = vrot.lane.b32.xlu1 %v3854_v1, %s3773_s12  ;;  %121 = vrot.lane.b32.xlu0 %v3847_v0, %s3773_s12  ;;  %s3791_s30 = smov 107   ;;  %s3792_s2 = smov 106  }
   0xb   :  { %s3793_s3 = smov 105   ;;  %s3794_s4 = smov 104  }
   0xc   :  { %s3795_s5 = smov 103   ;;  %s3796_s6 = smov 102  }
   0xd   :  { %s3797_s7 = smov 101   ;;  %s3798_s8 = smov 100  }
   0xe   :  { %183 = vrot.lane.b32.xlu1 %v3854_v1, %s3774_s13  ;;  %162 = vrot.lane.b32.xlu0 %v3847_v0, %s3774_s13  ;;  %s3799_s9 = smov 99   ;;  %s3800_s13 = smov 98  }
   0xf   :  { %s3807_s12 = smov 91   ;;  %s3814_s11 = smov 84  }
  0x10   :  { %s3820_s10 = smov 78  }
  0x12   :  { %224 = vrot.lane.b32.xlu1 %v3854_v1, %s3775_s14  ;;  %203 = vrot.lane.b32.xlu0 %v3847_v0, %s3775_s14  ;;  %s3821_s14 = smov 77  }
  0x16   :  { %265 = vrot.lane.b32.xlu1 %v3854_v1, %s3776_s15  ;;  %244 = vrot.lane.b32.xlu0 %v3847_v0, %s3776_s15 }
  0x1a   :  { %306 = vrot.lane.b32.xlu1 %v3854_v1, %s3777_s16  ;;  %285 = vrot.lane.b32.xlu0 %v3847_v0, %s3777_s16  ;;  %s3808_s16 = smov 90  }
  0x1e   :  { %347 = vrot.lane.b32.xlu1 %v3854_v1, %s3778_s17  ;;  %326 = vrot.lane.b32.xlu0 %v3847_v0, %s3778_s17  ;;  %s3801_s17 = smov 97  }
  0x22   :  { %388 = vrot.lane.b32.xlu1 %v3854_v1, %s3779_s18  ;;  %367 = vrot.lane.b32.xlu0 %v3847_v0, %s3779_s18  ;;  %s3822_s18 = smov 76  }
  0x26   :  { %429 = vrot.lane.b32.xlu1 %v3854_v1, %s3780_s19  ;;  %408 = vrot.lane.b32.xlu0 %v3847_v0, %s3780_s19 }
  0x2a   :  { %470 = vrot.lane.b32.xlu1 %v3854_v1, %s3781_s20  ;;  %449 = vrot.lane.b32.xlu0 %v3847_v0, %s3781_s20  ;;  %s3809_s20 = smov 89  }
  0x2e   :  { %511 = vrot.lane.b32.xlu1 %v3854_v1, %s3782_s21  ;;  %490 = vrot.lane.b32.xlu0 %v3847_v0, %s3782_s21  ;;  %s3802_s21 = smov 96  }
  0x32   :  { %552 = vrot.lane.b32.xlu1 %v3854_v1, %s3783_s22  ;;  %531 = vrot.lane.b32.xlu0 %v3847_v0, %s3783_s22  ;;  %s3823_s22 = smov 75  }
  0x36   :  { %593 = vrot.lane.b32.xlu1 %v3854_v1, %s3784_s23  ;;  %572 = vrot.lane.b32.xlu0 %v3847_v0, %s3784_s23  ;;  %s3816_s23 = smov 82  }
  0x3a   :  { %634 = vrot.lane.b32.xlu1 %v3854_v1, %s3785_s24  ;;  %613 = vrot.lane.b32.xlu0 %v3847_v0, %s3785_s24  ;;  %s3810_s24 = smov 88  }
  0x3e   :  { %675 = vrot.lane.b32.xlu1 %v3854_v1, %s3786_s25  ;;  %654 = vrot.lane.b32.xlu0 %v3847_v0, %s3786_s25  ;;  %s3803_s25 = smov 95  }
  0x42   :  { %716 = vrot.lane.b32.xlu1 %v3854_v1, %s3787_s26  ;;  %695 = vrot.lane.b32.xlu0 %v3847_v0, %s3787_s26  ;;  %s3824_s26 = smov 74  }
  0x46   :  { %757 = vrot.lane.b32.xlu1 %v3854_v1, %s3788_s27  ;;  %736 = vrot.lane.b32.xlu0 %v3847_v0, %s3788_s27  ;;  %s3817_s27 = smov 81  }
  0x4a   :  { %798 = vrot.lane.b32.xlu1 %v3854_v1, %s3789_s28  ;;  %777 = vrot.lane.b32.xlu0 %v3847_v0, %s3789_s28  ;;  %s3811_s28 = smov 87  }
  0x4e   :  { %839 = vrot.lane.b32.xlu1 %v3854_v1, %s3790_s29  ;;  %818 = vrot.lane.b32.xlu0 %v3847_v0, %s3790_s29  ;;  %s3804_s29 = smov 94  }
  0x52   :  { %880 = vrot.lane.b32.xlu1 %v3854_v1, %s3791_s30  ;;  %859 = vrot.lane.b32.xlu0 %v3847_v0, %s3791_s30  ;;  %s3825_s30 = smov 73  }
  0x56   :  { %921 = vrot.lane.b32.xlu1 %v3854_v1, %s3792_s2  ;;  %900 = vrot.lane.b32.xlu0 %v3847_v0, %s3792_s2  ;;  %s3818_s2 = smov 80  }
  0x5a   :  { %962 = vrot.lane.b32.xlu1 %v3854_v1, %s3793_s3  ;;  %941 = vrot.lane.b32.xlu0 %v3847_v0, %s3793_s3  ;;  %s3812_s3 = smov 86  }
  0x5e   :  { %1003 = vrot.lane.b32.xlu1 %v3854_v1, %s3794_s4  ;;  %982 = vrot.lane.b32.xlu0 %v3847_v0, %s3794_s4  ;;  %s3805_s4 = smov 93  }
  0x62   :  { %1044 = vrot.lane.b32.xlu1 %v3854_v1, %s3795_s5  ;;  %1023 = vrot.lane.b32.xlu0 %v3847_v0, %s3795_s5  ;;  %s3826_s5 = smov 72  }
  0x66   :  { %1085 = vrot.lane.b32.xlu1 %v3854_v1, %s3796_s6  ;;  %1064 = vrot.lane.b32.xlu0 %v3847_v0, %s3796_s6  ;;  %s3819_s6 = smov 79  }
  0x6a   :  { %1126 = vrot.lane.b32.xlu1 %v3854_v1, %s3797_s7  ;;  %1105 = vrot.lane.b32.xlu0 %v3847_v0, %s3797_s7  ;;  %s3813_s7 = smov 85  }
  0x6e   :  { %1167 = vrot.lane.b32.xlu1 %v3854_v1, %s3798_s8  ;;  %1146 = vrot.lane.b32.xlu0 %v3847_v0, %s3798_s8  ;;  %s3806_s8 = smov 92  }
  0x72   :  { %1208 = vrot.lane.b32.xlu1 %v3854_v1, %s3799_s9  ;;  %1187 = vrot.lane.b32.xlu0 %v3847_v0, %s3799_s9  ;;  %s3827_s9 = smov 71  }
  0x74   :  { %v81_v2 = vpop.permute.xlu1 %80   ;;  %v40_v3 = vpop.permute.xlu0 %39  }
  0x75   :  { %2654 = vst.msk [vmem:[%s8093_s1 + $0x2] sm:$0x1] %vm3_vm0, %v81_v2   ;;  %2655 = vst.msk [vmem:[%s8093_s1 + $0x41] sm:$0x2] %vm3_vm0, %v81_v2  }
  0x76   :  { %2656 = vst.msk [vmem:[%s8093_s1 + $0x80] sm:$0x4] %vm3_vm0, %v81_v2   ;;  %2657 = vst.msk [vmem:[%s8093_s1 + $0xbf] sm:$0x8] %vm3_vm0, %v81_v2   ;;  %1249 = vrot.lane.b32.xlu1 %v3854_v1, %s3800_s13  ;;  %1228 = vrot.lane.b32.xlu0 %v3847_v0, %s3800_s13  ;;  %s3828_s13 = smov 70  }
  0x77   :  { %2658 = vst.msk [vmem:[%s8093_s1 + $0xfe] sm:$0x10] %vm3_vm0, %v81_v2   ;;  %2659 = vst.msk [vmem:[%s8093_s1 + $0x13d] sm:$0x20] %vm3_vm0, %v81_v2  }
  0x78   :  { %2660 = vst.msk [vmem:[%s8093_s1 + $0x17c] sm:$0x40] %vm3_vm0, %v81_v2   ;;  %2661 = vst.msk [vmem:[%s8093_s1 + $0x1bb] sm:$0x80] %vm3_vm0, %v81_v2   ;;  %v102_v4 = vpop.permute.xlu1 %101   ;;  %v61_v5 = vpop.permute.xlu0 %60   ;;  %v2_v2 = vld [vmem:[%s8092_s0] sm:$0xff]  }
  0x79   :  { %2637 = vst.msk [vmem:[%s8093_s1 + $0x1] sm:$0x1] %vm3_vm0, %v40_v3   ;;  %2638 = vst.msk [vmem:[%s8093_s1 + $0x40] sm:$0x2] %vm3_vm0, %v40_v3  }
  0x7a   :  { %2639 = vst.msk [vmem:[%s8093_s1 + $0x7f] sm:$0x4] %vm3_vm0, %v40_v3   ;;  %2640 = vst.msk [vmem:[%s8093_s1 + $0xbe] sm:$0x8] %vm3_vm0, %v40_v3   ;;  %1290 = vrot.lane.b32.xlu1 %v3854_v1, %s3801_s17  ;;  %1269 = vrot.lane.b32.xlu0 %v3847_v0, %s3801_s17  ;;  %s3815_s17 = smov 83  }
  0x7b   :  { %2641 = vst.msk [vmem:[%s8093_s1 + $0xfd] sm:$0x10] %vm3_vm0, %v40_v3   ;;  %2642 = vst.msk [vmem:[%s8093_s1 + $0x13c] sm:$0x20] %vm3_vm0, %v40_v3  }
  0x7c   :  { %2643 = vst.msk [vmem:[%s8093_s1 + $0x17b] sm:$0x40] %vm3_vm0, %v40_v3   ;;  %2644 = vst.msk [vmem:[%s8093_s1 + $0x1ba] sm:$0x80] %vm3_vm0, %v40_v3   ;;  %v143_v6 = vpop.permute.xlu1 %142   ;;  %v122_v7 = vpop.permute.xlu0 %121   ;;  %v2628_v3 = vld [vmem:[%s8092_s0 + $0x8] sm:$0xff]  }
  0x7d   :  { %2663 = vst.msk [vmem:[%s8093_s1 + $0x202] sm:$0x1] %vm3_vm0, %v102_v4   ;;  %2664 = vst.msk [vmem:[%s8093_s1 + $0x241] sm:$0x2] %vm3_vm0, %v102_v4  }
  0x7e   :  { %2665 = vst.msk [vmem:[%s8093_s1 + $0x280] sm:$0x4] %vm3_vm0, %v102_v4   ;;  %2666 = vst.msk [vmem:[%s8093_s1 + $0x2bf] sm:$0x8] %vm3_vm0, %v102_v4   ;;  %1331 = vrot.lane.b32.xlu1 %v3854_v1, %s3802_s21  ;;  %1310 = vrot.lane.b32.xlu0 %v3847_v0, %s3802_s21 }
  0x7f   :  { %2667 = vst.msk [vmem:[%s8093_s1 + $0x2fe] sm:$0x10] %vm3_vm0, %v102_v4   ;;  %2668 = vst.msk [vmem:[%s8093_s1 + $0x33d] sm:$0x20] %vm3_vm0, %v102_v4  }
  0x80   :  { %2669 = vst.msk [vmem:[%s8093_s1 + $0x37c] sm:$0x40] %vm3_vm0, %v102_v4   ;;  %2670 = vst.msk [vmem:[%s8093_s1 + $0x3bb] sm:$0x80] %vm3_vm0, %v102_v4   ;;  %v184_v8 = vpop.permute.xlu1 %183   ;;  %v163_v9 = vpop.permute.xlu0 %162  }
  0x81   :  { %2646 = vst.msk [vmem:[%s8093_s1 + $0x201] sm:$0x1] %vm3_vm0, %v61_v5   ;;  %2647 = vst.msk [vmem:[%s8093_s1 + $0x240] sm:$0x2] %vm3_vm0, %v61_v5  }
  0x82   :  { %2648 = vst.msk [vmem:[%s8093_s1 + $0x27f] sm:$0x4] %vm3_vm0, %v61_v5   ;;  %2649 = vst.msk [vmem:[%s8093_s1 + $0x2be] sm:$0x8] %vm3_vm0, %v61_v5   ;;  %1372 = vrot.lane.b32.xlu1 %v3854_v1, %s3803_s25  ;;  %1351 = vrot.lane.b32.xlu0 %v3847_v0, %s3803_s25  ;;  %s3830_s25 = smov 68  }
  0x83   :  { %2650 = vst.msk [vmem:[%s8093_s1 + $0x2fd] sm:$0x10] %vm3_vm0, %v61_v5   ;;  %2651 = vst.msk [vmem:[%s8093_s1 + $0x33c] sm:$0x20] %vm3_vm0, %v61_v5  }
  0x84   :  { %2652 = vst.msk [vmem:[%s8093_s1 + $0x37b] sm:$0x40] %vm3_vm0, %v61_v5   ;;  %2653 = vst.msk [vmem:[%s8093_s1 + $0x3ba] sm:$0x80] %vm3_vm0, %v61_v5   ;;  %v225_v10 = vpop.permute.xlu1 %224   ;;  %v204_v11 = vpop.permute.xlu0 %203  }
  0x85   :  { %2680 = vst.msk [vmem:[%s8093_s1 + $0x203] sm:$0x1] %vm3_vm0, %v143_v6   ;;  %2681 = vst.msk [vmem:[%s8093_s1 + $0x242] sm:$0x2] %vm3_vm0, %v143_v6  }
  0x86   :  { %2682 = vst.msk [vmem:[%s8093_s1 + $0x281] sm:$0x4] %vm3_vm0, %v143_v6   ;;  %2683 = vst.msk [vmem:[%s8093_s1 + $0x2c0] sm:$0x8] %vm3_vm0, %v143_v6   ;;  %1413 = vrot.lane.b32.xlu1 %v3854_v1, %s3804_s29  ;;  %1392 = vrot.lane.b32.xlu0 %v3847_v0, %s3804_s29 }
  0x87   :  { %2684 = vst.msk [vmem:[%s8093_s1 + $0x2ff] sm:$0x10] %vm3_vm0, %v143_v6   ;;  %2685 = vst.msk [vmem:[%s8093_s1 + $0x33e] sm:$0x20] %vm3_vm0, %v143_v6  }
  0x88   :  { %2686 = vst.msk [vmem:[%s8093_s1 + $0x37d] sm:$0x40] %vm3_vm0, %v143_v6   ;;  %2687 = vst.msk [vmem:[%s8093_s1 + $0x3bc] sm:$0x80] %vm3_vm0, %v143_v6   ;;  %v266_v12 = vpop.permute.xlu1 %265   ;;  %v245_v13 = vpop.permute.xlu0 %244  }
  0x89   :  { %2671 = vst.msk [vmem:[%s8093_s1 + $0x3] sm:$0x1] %vm3_vm0, %v122_v7   ;;  %2672 = vst.msk [vmem:[%s8093_s1 + $0x42] sm:$0x2] %vm3_vm0, %v122_v7  }
  0x8a   :  { %2673 = vst.msk [vmem:[%s8093_s1 + $0x81] sm:$0x4] %vm3_vm0, %v122_v7   ;;  %2674 = vst.msk [vmem:[%s8093_s1 + $0xc0] sm:$0x8] %vm3_vm0, %v122_v7   ;;  %1454 = vrot.lane.b32.xlu1 %v3854_v1, %s3805_s4  ;;  %1433 = vrot.lane.b32.xlu0 %v3847_v0, %s3805_s4 }
  0x8b   :  { %2675 = vst.msk [vmem:[%s8093_s1 + $0xff] sm:$0x10] %vm3_vm0, %v122_v7   ;;  %2676 = vst.msk [vmem:[%s8093_s1 + $0x13e] sm:$0x20] %vm3_vm0, %v122_v7  }
  0x8c   :  { %2677 = vst.msk [vmem:[%s8093_s1 + $0x17d] sm:$0x40] %vm3_vm0, %v122_v7   ;;  %2678 = vst.msk [vmem:[%s8093_s1 + $0x1bc] sm:$0x80] %vm3_vm0, %v122_v7   ;;  %v307_v14 = vpop.permute.xlu1 %306   ;;  %v286_v15 = vpop.permute.xlu0 %285  }
  0x8d   :  { %2697 = vst.msk [vmem:[%s8093_s1 + $0x204] sm:$0x1] %vm3_vm0, %v184_v8   ;;  %2698 = vst.msk [vmem:[%s8093_s1 + $0x243] sm:$0x2] %vm3_vm0, %v184_v8  }
  0x8e   :  { %2699 = vst.msk [vmem:[%s8093_s1 + $0x282] sm:$0x4] %vm3_vm0, %v184_v8   ;;  %2700 = vst.msk [vmem:[%s8093_s1 + $0x2c1] sm:$0x8] %vm3_vm0, %v184_v8   ;;  %1495 = vrot.lane.b32.xlu1 %v3854_v1, %s3806_s8  ;;  %1474 = vrot.lane.b32.xlu0 %v3847_v0, %s3806_s8 }
  0x8f   :  { %2701 = vst.msk [vmem:[%s8093_s1 + $0x300] sm:$0x10] %vm3_vm0, %v184_v8   ;;  %2702 = vst.msk [vmem:[%s8093_s1 + $0x33f] sm:$0x20] %vm3_vm0, %v184_v8  }
  0x90   :  { %2703 = vst.msk [vmem:[%s8093_s1 + $0x37e] sm:$0x40] %vm3_vm0, %v184_v8   ;;  %2704 = vst.msk [vmem:[%s8093_s1 + $0x3bd] sm:$0x80] %vm3_vm0, %v184_v8   ;;  %v348_v16 = vpop.permute.xlu1 %347   ;;  %v327_v17 = vpop.permute.xlu0 %326  }
  0x91   :  { %2688 = vst.msk [vmem:[%s8093_s1 + $0x4] sm:$0x1] %vm3_vm0, %v163_v9   ;;  %2689 = vst.msk [vmem:[%s8093_s1 + $0x43] sm:$0x2] %vm3_vm0, %v163_v9  }
  0x92   :  { %2690 = vst.msk [vmem:[%s8093_s1 + $0x82] sm:$0x4] %vm3_vm0, %v163_v9   ;;  %2691 = vst.msk [vmem:[%s8093_s1 + $0xc1] sm:$0x8] %vm3_vm0, %v163_v9   ;;  %1536 = vrot.lane.b32.xlu1 %v3854_v1, %s3807_s12  ;;  %1515 = vrot.lane.b32.xlu0 %v3847_v0, %s3807_s12 }
  0x93   :  { %2692 = vst.msk [vmem:[%s8093_s1 + $0x100] sm:$0x10] %vm3_vm0, %v163_v9   ;;  %2693 = vst.msk [vmem:[%s8093_s1 + $0x13f] sm:$0x20] %vm3_vm0, %v163_v9  }
  0x94   :  { %2694 = vst.msk [vmem:[%s8093_s1 + $0x17e] sm:$0x40] %vm3_vm0, %v163_v9   ;;  %2695 = vst.msk [vmem:[%s8093_s1 + $0x1bd] sm:$0x80] %vm3_vm0, %v163_v9   ;;  %v389_v18 = vpop.permute.xlu1 %388   ;;  %v368_v19 = vpop.permute.xlu0 %367  }
  0x95   :  { %2714 = vst.msk [vmem:[%s8093_s1 + $0x205] sm:$0x1] %vm3_vm0, %v225_v10   ;;  %2715 = vst.msk [vmem:[%s8093_s1 + $0x244] sm:$0x2] %vm3_vm0, %v225_v10  }
  0x96   :  { %2716 = vst.msk [vmem:[%s8093_s1 + $0x283] sm:$0x4] %vm3_vm0, %v225_v10   ;;  %2717 = vst.msk [vmem:[%s8093_s1 + $0x2c2] sm:$0x8] %vm3_vm0, %v225_v10   ;;  %1577 = vrot.lane.b32.xlu1 %v3854_v1, %s3808_s16  ;;  %1556 = vrot.lane.b32.xlu0 %v3847_v0, %s3808_s16 }
  0x97   :  { %2718 = vst.msk [vmem:[%s8093_s1 + $0x301] sm:$0x10] %vm3_vm0, %v225_v10   ;;  %2719 = vst.msk [vmem:[%s8093_s1 + $0x340] sm:$0x20] %vm3_vm0, %v225_v10  }
  0x98   :  { %2720 = vst.msk [vmem:[%s8093_s1 + $0x37f] sm:$0x40] %vm3_vm0, %v225_v10   ;;  %2721 = vst.msk [vmem:[%s8093_s1 + $0x3be] sm:$0x80] %vm3_vm0, %v225_v10   ;;  %v430_v20 = vpop.permute.xlu1 %429   ;;  %v409_v21 = vpop.permute.xlu0 %408  }
  0x99   :  { %2705 = vst.msk [vmem:[%s8093_s1 + $0x5] sm:$0x1] %vm3_vm0, %v204_v11   ;;  %2706 = vst.msk [vmem:[%s8093_s1 + $0x44] sm:$0x2] %vm3_vm0, %v204_v11  }
  0x9a   :  { %2707 = vst.msk [vmem:[%s8093_s1 + $0x83] sm:$0x4] %vm3_vm0, %v204_v11   ;;  %2708 = vst.msk [vmem:[%s8093_s1 + $0xc2] sm:$0x8] %vm3_vm0, %v204_v11   ;;  %1618 = vrot.lane.b32.xlu1 %v3854_v1, %s3809_s20  ;;  %1597 = vrot.lane.b32.xlu0 %v3847_v0, %s3809_s20 }
  0x9b   :  { %2709 = vst.msk [vmem:[%s8093_s1 + $0x101] sm:$0x10] %vm3_vm0, %v204_v11   ;;  %2710 = vst.msk [vmem:[%s8093_s1 + $0x140] sm:$0x20] %vm3_vm0, %v204_v11  }
  0x9c   :  { %2711 = vst.msk [vmem:[%s8093_s1 + $0x17f] sm:$0x40] %vm3_vm0, %v204_v11   ;;  %2712 = vst.msk [vmem:[%s8093_s1 + $0x1be] sm:$0x80] %vm3_vm0, %v204_v11   ;;  %v471_v22 = vpop.permute.xlu1 %470   ;;  %v450_v23 = vpop.permute.xlu0 %449  }
  0x9d   :  { %2731 = vst.msk [vmem:[%s8093_s1 + $0x206] sm:$0x1] %vm3_vm0, %v266_v12   ;;  %2732 = vst.msk [vmem:[%s8093_s1 + $0x245] sm:$0x2] %vm3_vm0, %v266_v12  }
  0x9e   :  { %2733 = vst.msk [vmem:[%s8093_s1 + $0x284] sm:$0x4] %vm3_vm0, %v266_v12   ;;  %2734 = vst.msk [vmem:[%s8093_s1 + $0x2c3] sm:$0x8] %vm3_vm0, %v266_v12   ;;  %1659 = vrot.lane.b32.xlu1 %v3854_v1, %s3810_s24  ;;  %1638 = vrot.lane.b32.xlu0 %v3847_v0, %s3810_s24 }
  0x9f   :  { %2735 = vst.msk [vmem:[%s8093_s1 + $0x302] sm:$0x10] %vm3_vm0, %v266_v12   ;;  %2736 = vst.msk [vmem:[%s8093_s1 + $0x341] sm:$0x20] %vm3_vm0, %v266_v12  }
  0xa0   :  { %2737 = vst.msk [vmem:[%s8093_s1 + $0x380] sm:$0x40] %vm3_vm0, %v266_v12   ;;  %2738 = vst.msk [vmem:[%s8093_s1 + $0x3bf] sm:$0x80] %vm3_vm0, %v266_v12   ;;  %v512_v24 = vpop.permute.xlu1 %511   ;;  %v491_v25 = vpop.permute.xlu0 %490  }
  0xa1   :  { %2722 = vst.msk [vmem:[%s8093_s1 + $0x6] sm:$0x1] %vm3_vm0, %v245_v13   ;;  %2723 = vst.msk [vmem:[%s8093_s1 + $0x45] sm:$0x2] %vm3_vm0, %v245_v13  }
  0xa2   :  { %2724 = vst.msk [vmem:[%s8093_s1 + $0x84] sm:$0x4] %vm3_vm0, %v245_v13   ;;  %2725 = vst.msk [vmem:[%s8093_s1 + $0xc3] sm:$0x8] %vm3_vm0, %v245_v13   ;;  %1700 = vrot.lane.b32.xlu1 %v3854_v1, %s3811_s28  ;;  %1679 = vrot.lane.b32.xlu0 %v3847_v0, %s3811_s28  ;;  %s3831_s28 = smov 67  }
  0xa3   :  { %2726 = vst.msk [vmem:[%s8093_s1 + $0x102] sm:$0x10] %vm3_vm0, %v245_v13   ;;  %2727 = vst.msk [vmem:[%s8093_s1 + $0x141] sm:$0x20] %vm3_vm0, %v245_v13  }
  0xa4   :  { %2728 = vst.msk [vmem:[%s8093_s1 + $0x180] sm:$0x40] %vm3_vm0, %v245_v13   ;;  %2729 = vst.msk [vmem:[%s8093_s1 + $0x1bf] sm:$0x80] %vm3_vm0, %v245_v13   ;;  %v553_v26 = vpop.permute.xlu1 %552   ;;  %v532_v27 = vpop.permute.xlu0 %531  }
  0xa5   :  { %2748 = vst.msk [vmem:[%s8093_s1 + $0x207] sm:$0x1] %vm3_vm0, %v307_v14   ;;  %2749 = vst.msk [vmem:[%s8093_s1 + $0x246] sm:$0x2] %vm3_vm0, %v307_v14  }
  0xa6   :  { %2750 = vst.msk [vmem:[%s8093_s1 + $0x285] sm:$0x4] %vm3_vm0, %v307_v14   ;;  %2751 = vst.msk [vmem:[%s8093_s1 + $0x2c4] sm:$0x8] %vm3_vm0, %v307_v14   ;;  %1741 = vrot.lane.b32.xlu1 %v3854_v1, %s3812_s3  ;;  %1720 = vrot.lane.b32.xlu0 %v3847_v0, %s3812_s3 }
  0xa7   :  { %2752 = vst.msk [vmem:[%s8093_s1 + $0x303] sm:$0x10] %vm3_vm0, %v307_v14   ;;  %2753 = vst.msk [vmem:[%s8093_s1 + $0x342] sm:$0x20] %vm3_vm0, %v307_v14  }
  0xa8   :  { %2754 = vst.msk [vmem:[%s8093_s1 + $0x381] sm:$0x40] %vm3_vm0, %v307_v14   ;;  %2755 = vst.msk [vmem:[%s8093_s1 + $0x3c0] sm:$0x80] %vm3_vm0, %v307_v14   ;;  %v594_v28 = vpop.permute.xlu1 %593   ;;  %v573_v29 = vpop.permute.xlu0 %572  }
  0xa9   :  { %2739 = vst.msk [vmem:[%s8093_s1 + $0x7] sm:$0x1] %vm3_vm0, %v286_v15   ;;  %2740 = vst.msk [vmem:[%s8093_s1 + $0x46] sm:$0x2] %vm3_vm0, %v286_v15  }
  0xaa   :  { %2741 = vst.msk [vmem:[%s8093_s1 + $0x85] sm:$0x4] %vm3_vm0, %v286_v15   ;;  %2742 = vst.msk [vmem:[%s8093_s1 + $0xc4] sm:$0x8] %vm3_vm0, %v286_v15   ;;  %1782 = vrot.lane.b32.xlu1 %v3854_v1, %s3813_s7  ;;  %1761 = vrot.lane.b32.xlu0 %v3847_v0, %s3813_s7 }
  0xab   :  { %2743 = vst.msk [vmem:[%s8093_s1 + $0x103] sm:$0x10] %vm3_vm0, %v286_v15   ;;  %2744 = vst.msk [vmem:[%s8093_s1 + $0x142] sm:$0x20] %vm3_vm0, %v286_v15  }
  0xac   :  { %2745 = vst.msk [vmem:[%s8093_s1 + $0x181] sm:$0x40] %vm3_vm0, %v286_v15   ;;  %2746 = vst.msk [vmem:[%s8093_s1 + $0x1c0] sm:$0x80] %vm3_vm0, %v286_v15   ;;  %v635_v30 = vpop.permute.xlu1 %634   ;;  %v614_v31 = vpop.permute.xlu0 %613  }
  0xad   :  { %2765 = vst.msk [vmem:[%s8093_s1 + $0x208] sm:$0x1] %vm3_vm0, %v348_v16   ;;  %2766 = vst.msk [vmem:[%s8093_s1 + $0x247] sm:$0x2] %vm3_vm0, %v348_v16  }
  0xae   :  { %2767 = vst.msk [vmem:[%s8093_s1 + $0x286] sm:$0x4] %vm3_vm0, %v348_v16   ;;  %2768 = vst.msk [vmem:[%s8093_s1 + $0x2c5] sm:$0x8] %vm3_vm0, %v348_v16   ;;  %1823 = vrot.lane.b32.xlu1 %v3854_v1, %s3814_s11  ;;  %1802 = vrot.lane.b32.xlu0 %v3847_v0, %s3814_s11 }
  0xaf   :  { %2769 = vst.msk [vmem:[%s8093_s1 + $0x304] sm:$0x10] %vm3_vm0, %v348_v16   ;;  %2770 = vst.msk [vmem:[%s8093_s1 + $0x343] sm:$0x20] %vm3_vm0, %v348_v16  }
  0xb0   :  { %2771 = vst.msk [vmem:[%s8093_s1 + $0x382] sm:$0x40] %vm3_vm0, %v348_v16   ;;  %2772 = vst.msk [vmem:[%s8093_s1 + $0x3c1] sm:$0x80] %vm3_vm0, %v348_v16   ;;  %v676_v33 = vpop.permute.xlu1 %675   ;;  %v655_v34 = vpop.permute.xlu0 %654  }
  0xb1   :  { %2756 = vst.msk [vmem:[%s8093_s1 + $0x8] sm:$0x1] %vm3_vm0, %v327_v17   ;;  %2757 = vst.msk [vmem:[%s8093_s1 + $0x47] sm:$0x2] %vm3_vm0, %v327_v17  }
  0xb2   :  { %2758 = vst.msk [vmem:[%s8093_s1 + $0x86] sm:$0x4] %vm3_vm0, %v327_v17   ;;  %2759 = vst.msk [vmem:[%s8093_s1 + $0xc5] sm:$0x8] %vm3_vm0, %v327_v17   ;;  %1864 = vrot.lane.b32.xlu1 %v3854_v1, %s3815_s17  ;;  %1843 = vrot.lane.b32.xlu0 %v4905_v32, %s3815_s17  ;;  %s3829_s17 = smov 69  }
  0xb3   :  { %2760 = vst.msk [vmem:[%s8093_s1 + $0x104] sm:$0x10] %vm3_vm0, %v327_v17   ;;  %2761 = vst.msk [vmem:[%s8093_s1 + $0x143] sm:$0x20] %vm3_vm0, %v327_v17  }
  0xb4   :  { %2762 = vst.msk [vmem:[%s8093_s1 + $0x182] sm:$0x40] %vm3_vm0, %v327_v17   ;;  %2763 = vst.msk [vmem:[%s8093_s1 + $0x1c1] sm:$0x80] %vm3_vm0, %v327_v17   ;;  %v717_v36 = vpop.permute.xlu1 %716   ;;  %v696_v37 = vpop.permute.xlu0 %695  }
  0xb5   :  { %2782 = vst.msk [vmem:[%s8093_s1 + $0x209] sm:$0x1] %vm3_vm0, %v389_v18   ;;  %2783 = vst.msk [vmem:[%s8093_s1 + $0x248] sm:$0x2] %vm3_vm0, %v389_v18  }
  0xb6   :  { %2784 = vst.msk [vmem:[%s8093_s1 + $0x287] sm:$0x4] %vm3_vm0, %v389_v18   ;;  %2785 = vst.msk [vmem:[%s8093_s1 + $0x2c6] sm:$0x8] %vm3_vm0, %v389_v18   ;;  %1905 = vrot.lane.b32.xlu1 %v4976_v35, %s3816_s23  ;;  %1884 = vrot.lane.b32.xlu0 %v4905_v32, %s3816_s23 }
  0xb7   :  { %2786 = vst.msk [vmem:[%s8093_s1 + $0x305] sm:$0x10] %vm3_vm0, %v389_v18   ;;  %2787 = vst.msk [vmem:[%s8093_s1 + $0x344] sm:$0x20] %vm3_vm0, %v389_v18  }
  0xb8   :  { %2788 = vst.msk [vmem:[%s8093_s1 + $0x383] sm:$0x40] %vm3_vm0, %v389_v18   ;;  %2789 = vst.msk [vmem:[%s8093_s1 + $0x3c2] sm:$0x80] %vm3_vm0, %v389_v18   ;;  %v758_v38 = vpop.permute.xlu1 %757   ;;  %v737_v39 = vpop.permute.xlu0 %736  }
  0xb9   :  { %2773 = vst.msk [vmem:[%s8093_s1 + $0x9] sm:$0x1] %vm3_vm0, %v368_v19   ;;  %2774 = vst.msk [vmem:[%s8093_s1 + $0x48] sm:$0x2] %vm3_vm0, %v368_v19  }
  0xba   :  { %2775 = vst.msk [vmem:[%s8093_s1 + $0x87] sm:$0x4] %vm3_vm0, %v368_v19   ;;  %2776 = vst.msk [vmem:[%s8093_s1 + $0xc6] sm:$0x8] %vm3_vm0, %v368_v19   ;;  %1946 = vrot.lane.b32.xlu1 %v4976_v35, %s3817_s27  ;;  %1925 = vrot.lane.b32.xlu0 %v4905_v32, %s3817_s27 }
  0xbb   :  { %2777 = vst.msk [vmem:[%s8093_s1 + $0x105] sm:$0x10] %vm3_vm0, %v368_v19   ;;  %2778 = vst.msk [vmem:[%s8093_s1 + $0x144] sm:$0x20] %vm3_vm0, %v368_v19  }
  0xbc   :  { %2779 = vst.msk [vmem:[%s8093_s1 + $0x183] sm:$0x40] %vm3_vm0, %v368_v19   ;;  %2780 = vst.msk [vmem:[%s8093_s1 + $0x1c2] sm:$0x80] %vm3_vm0, %v368_v19   ;;  %v799_v40 = vpop.permute.xlu1 %798   ;;  %v778_v41 = vpop.permute.xlu0 %777  }
  0xbd   :  { %2799 = vst.msk [vmem:[%s8093_s1 + $0x20a] sm:$0x1] %vm3_vm0, %v430_v20   ;;  %2800 = vst.msk [vmem:[%s8093_s1 + $0x249] sm:$0x2] %vm3_vm0, %v430_v20  }
  0xbe   :  { %2801 = vst.msk [vmem:[%s8093_s1 + $0x288] sm:$0x4] %vm3_vm0, %v430_v20   ;;  %2802 = vst.msk [vmem:[%s8093_s1 + $0x2c7] sm:$0x8] %vm3_vm0, %v430_v20   ;;  %1987 = vrot.lane.b32.xlu1 %v4976_v35, %s3818_s2  ;;  %1966 = vrot.lane.b32.xlu0 %v4905_v32, %s3818_s2  ;;  %s3832_s2 = smov 66  }
  0xbf   :  { %2803 = vst.msk [vmem:[%s8093_s1 + $0x306] sm:$0x10] %vm3_vm0, %v430_v20   ;;  %2804 = vst.msk [vmem:[%s8093_s1 + $0x345] sm:$0x20] %vm3_vm0, %v430_v20  }
  0xc0   :  { %2805 = vst.msk [vmem:[%s8093_s1 + $0x384] sm:$0x40] %vm3_vm0, %v430_v20   ;;  %2806 = vst.msk [vmem:[%s8093_s1 + $0x3c3] sm:$0x80] %vm3_vm0, %v430_v20   ;;  %v840_v42 = vpop.permute.xlu1 %839   ;;  %v819_v43 = vpop.permute.xlu0 %818  }
  0xc1   :  { %2790 = vst.msk [vmem:[%s8093_s1 + $0xa] sm:$0x1] %vm3_vm0, %v409_v21   ;;  %2791 = vst.msk [vmem:[%s8093_s1 + $0x49] sm:$0x2] %vm3_vm0, %v409_v21  }
  0xc2   :  { %2792 = vst.msk [vmem:[%s8093_s1 + $0x88] sm:$0x4] %vm3_vm0, %v409_v21   ;;  %2793 = vst.msk [vmem:[%s8093_s1 + $0xc7] sm:$0x8] %vm3_vm0, %v409_v21   ;;  %2028 = vrot.lane.b32.xlu1 %v4976_v35, %s3819_s6  ;;  %2007 = vrot.lane.b32.xlu0 %v4905_v32, %s3819_s6 }
  0xc3   :  { %2794 = vst.msk [vmem:[%s8093_s1 + $0x106] sm:$0x10] %vm3_vm0, %v409_v21   ;;  %2795 = vst.msk [vmem:[%s8093_s1 + $0x145] sm:$0x20] %vm3_vm0, %v409_v21  }
  0xc4   :  { %2796 = vst.msk [vmem:[%s8093_s1 + $0x184] sm:$0x40] %vm3_vm0, %v409_v21   ;;  %2797 = vst.msk [vmem:[%s8093_s1 + $0x1c3] sm:$0x80] %vm3_vm0, %v409_v21   ;;  %v881_v44 = vpop.permute.xlu1 %880   ;;  %v860_v45 = vpop.permute.xlu0 %859  }
  0xc5   :  { %2816 = vst.msk [vmem:[%s8093_s1 + $0x20b] sm:$0x1] %vm3_vm0, %v471_v22   ;;  %2817 = vst.msk [vmem:[%s8093_s1 + $0x24a] sm:$0x2] %vm3_vm0, %v471_v22  }
  0xc6   :  { %2818 = vst.msk [vmem:[%s8093_s1 + $0x289] sm:$0x4] %vm3_vm0, %v471_v22   ;;  %2819 = vst.msk [vmem:[%s8093_s1 + $0x2c8] sm:$0x8] %vm3_vm0, %v471_v22   ;;  %2069 = vrot.lane.b32.xlu1 %v4976_v35, %s3820_s10  ;;  %2048 = vrot.lane.b32.xlu0 %v4905_v32, %s3820_s10 }
  0xc7   :  { %2820 = vst.msk [vmem:[%s8093_s1 + $0x307] sm:$0x10] %vm3_vm0, %v471_v22   ;;  %2821 = vst.msk [vmem:[%s8093_s1 + $0x346] sm:$0x20] %vm3_vm0, %v471_v22  }
  0xc8   :  { %2822 = vst.msk [vmem:[%s8093_s1 + $0x385] sm:$0x40] %vm3_vm0, %v471_v22   ;;  %2823 = vst.msk [vmem:[%s8093_s1 + $0x3c4] sm:$0x80] %vm3_vm0, %v471_v22   ;;  %v922_v46 = vpop.permute.xlu1 %921   ;;  %v901_v47 = vpop.permute.xlu0 %900  }
  0xc9   :  { %2807 = vst.msk [vmem:[%s8093_s1 + $0xb] sm:$0x1] %vm3_vm0, %v450_v23   ;;  %2808 = vst.msk [vmem:[%s8093_s1 + $0x4a] sm:$0x2] %vm3_vm0, %v450_v23  }
  0xca   :  { %2809 = vst.msk [vmem:[%s8093_s1 + $0x89] sm:$0x4] %vm3_vm0, %v450_v23   ;;  %2810 = vst.msk [vmem:[%s8093_s1 + $0xc8] sm:$0x8] %vm3_vm0, %v450_v23   ;;  %2110 = vrot.lane.b32.xlu1 %v4976_v35, %s3821_s14  ;;  %2089 = vrot.lane.b32.xlu0 %v4905_v32, %s3821_s14 }
  0xcb   :  { %2811 = vst.msk [vmem:[%s8093_s1 + $0x107] sm:$0x10] %vm3_vm0, %v450_v23   ;;  %2812 = vst.msk [vmem:[%s8093_s1 + $0x146] sm:$0x20] %vm3_vm0, %v450_v23  }
  0xcc   :  { %2813 = vst.msk [vmem:[%s8093_s1 + $0x185] sm:$0x40] %vm3_vm0, %v450_v23   ;;  %2814 = vst.msk [vmem:[%s8093_s1 + $0x1c4] sm:$0x80] %vm3_vm0, %v450_v23   ;;  %v963_v48 = vpop.permute.xlu1 %962   ;;  %v942_v49 = vpop.permute.xlu0 %941  }
  0xcd   :  { %2833 = vst.msk [vmem:[%s8093_s1 + $0x20c] sm:$0x1] %vm3_vm0, %v512_v24   ;;  %2834 = vst.msk [vmem:[%s8093_s1 + $0x24b] sm:$0x2] %vm3_vm0, %v512_v24  }
  0xce   :  { %2835 = vst.msk [vmem:[%s8093_s1 + $0x28a] sm:$0x4] %vm3_vm0, %v512_v24   ;;  %2836 = vst.msk [vmem:[%s8093_s1 + $0x2c9] sm:$0x8] %vm3_vm0, %v512_v24   ;;  %2151 = vrot.lane.b32.xlu1 %v4976_v35, %s3822_s18  ;;  %2130 = vrot.lane.b32.xlu0 %v4905_v32, %s3822_s18 }
  0xcf   :  { %2837 = vst.msk [vmem:[%s8093_s1 + $0x308] sm:$0x10] %vm3_vm0, %v512_v24   ;;  %2838 = vst.msk [vmem:[%s8093_s1 + $0x347] sm:$0x20] %vm3_vm0, %v512_v24  }
  0xd0   :  { %2839 = vst.msk [vmem:[%s8093_s1 + $0x386] sm:$0x40] %vm3_vm0, %v512_v24   ;;  %2840 = vst.msk [vmem:[%s8093_s1 + $0x3c5] sm:$0x80] %vm3_vm0, %v512_v24   ;;  %v1004_v50 = vpop.permute.xlu1 %1003   ;;  %v983_v51 = vpop.permute.xlu0 %982  }
  0xd1   :  { %2824 = vst.msk [vmem:[%s8093_s1 + $0xc] sm:$0x1] %vm3_vm0, %v491_v25   ;;  %2825 = vst.msk [vmem:[%s8093_s1 + $0x4b] sm:$0x2] %vm3_vm0, %v491_v25  }
  0xd2   :  { %2826 = vst.msk [vmem:[%s8093_s1 + $0x8a] sm:$0x4] %vm3_vm0, %v491_v25   ;;  %2827 = vst.msk [vmem:[%s8093_s1 + $0xc9] sm:$0x8] %vm3_vm0, %v491_v25   ;;  %2192 = vrot.lane.b32.xlu1 %v4976_v35, %s3823_s22  ;;  %2171 = vrot.lane.b32.xlu0 %v4905_v32, %s3823_s22 }
  0xd3   :  { %2828 = vst.msk [vmem:[%s8093_s1 + $0x108] sm:$0x10] %vm3_vm0, %v491_v25   ;;  %2829 = vst.msk [vmem:[%s8093_s1 + $0x147] sm:$0x20] %vm3_vm0, %v491_v25  }
  0xd4   :  { %2830 = vst.msk [vmem:[%s8093_s1 + $0x186] sm:$0x40] %vm3_vm0, %v491_v25   ;;  %2831 = vst.msk [vmem:[%s8093_s1 + $0x1c5] sm:$0x80] %vm3_vm0, %v491_v25   ;;  %v1045_v52 = vpop.permute.xlu1 %1044   ;;  %v1024_v53 = vpop.permute.xlu0 %1023  }
  0xd5   :  { %2850 = vst.msk [vmem:[%s8093_s1 + $0x20d] sm:$0x1] %vm3_vm0, %v553_v26   ;;  %2851 = vst.msk [vmem:[%s8093_s1 + $0x24c] sm:$0x2] %vm3_vm0, %v553_v26  }
  0xd6   :  { %2852 = vst.msk [vmem:[%s8093_s1 + $0x28b] sm:$0x4] %vm3_vm0, %v553_v26   ;;  %2853 = vst.msk [vmem:[%s8093_s1 + $0x2ca] sm:$0x8] %vm3_vm0, %v553_v26   ;;  %2233 = vrot.lane.b32.xlu1 %v4976_v35, %s3824_s26  ;;  %2212 = vrot.lane.b32.xlu0 %v4905_v32, %s3824_s26 }
  0xd7   :  { %2854 = vst.msk [vmem:[%s8093_s1 + $0x309] sm:$0x10] %vm3_vm0, %v553_v26   ;;  %2855 = vst.msk [vmem:[%s8093_s1 + $0x348] sm:$0x20] %vm3_vm0, %v553_v26  }
  0xd8   :  { %2856 = vst.msk [vmem:[%s8093_s1 + $0x387] sm:$0x40] %vm3_vm0, %v553_v26   ;;  %2857 = vst.msk [vmem:[%s8093_s1 + $0x3c6] sm:$0x80] %vm3_vm0, %v553_v26   ;;  %v1086_v54 = vpop.permute.xlu1 %1085   ;;  %v1065_v55 = vpop.permute.xlu0 %1064  }
  0xd9   :  { %2841 = vst.msk [vmem:[%s8093_s1 + $0xd] sm:$0x1] %vm3_vm0, %v532_v27   ;;  %2842 = vst.msk [vmem:[%s8093_s1 + $0x4c] sm:$0x2] %vm3_vm0, %v532_v27  }
  0xda   :  { %2843 = vst.msk [vmem:[%s8093_s1 + $0x8b] sm:$0x4] %vm3_vm0, %v532_v27   ;;  %2844 = vst.msk [vmem:[%s8093_s1 + $0xca] sm:$0x8] %vm3_vm0, %v532_v27   ;;  %2274 = vrot.lane.b32.xlu1 %v4976_v35, %s3825_s30  ;;  %2253 = vrot.lane.b32.xlu0 %v4905_v32, %s3825_s30 }
  0xdb   :  { %2845 = vst.msk [vmem:[%s8093_s1 + $0x109] sm:$0x10] %vm3_vm0, %v532_v27   ;;  %2846 = vst.msk [vmem:[%s8093_s1 + $0x148] sm:$0x20] %vm3_vm0, %v532_v27  }
  0xdc   :  { %2847 = vst.msk [vmem:[%s8093_s1 + $0x187] sm:$0x40] %vm3_vm0, %v532_v27   ;;  %2848 = vst.msk [vmem:[%s8093_s1 + $0x1c6] sm:$0x80] %vm3_vm0, %v532_v27   ;;  %v1127_v56 = vpop.permute.xlu1 %1126   ;;  %v1106_v57 = vpop.permute.xlu0 %1105  }
  0xdd   :  { %2867 = vst.msk [vmem:[%s8093_s1 + $0x20e] sm:$0x1] %vm3_vm0, %v594_v28   ;;  %2868 = vst.msk [vmem:[%s8093_s1 + $0x24d] sm:$0x2] %vm3_vm0, %v594_v28  }
  0xde   :  { %2869 = vst.msk [vmem:[%s8093_s1 + $0x28c] sm:$0x4] %vm3_vm0, %v594_v28   ;;  %2870 = vst.msk [vmem:[%s8093_s1 + $0x2cb] sm:$0x8] %vm3_vm0, %v594_v28   ;;  %2315 = vrot.lane.b32.xlu1 %v4976_v35, %s3826_s5  ;;  %2294 = vrot.lane.b32.xlu0 %v4905_v32, %s3826_s5  ;;  %s3833_s5 = smov 65  }
  0xdf   :  { %2871 = vst.msk [vmem:[%s8093_s1 + $0x30a] sm:$0x10] %vm3_vm0, %v594_v28   ;;  %2872 = vst.msk [vmem:[%s8093_s1 + $0x349] sm:$0x20] %vm3_vm0, %v594_v28  }
  0xe0   :  { %2873 = vst.msk [vmem:[%s8093_s1 + $0x388] sm:$0x40] %vm3_vm0, %v594_v28   ;;  %2874 = vst.msk [vmem:[%s8093_s1 + $0x3c7] sm:$0x80] %vm3_vm0, %v594_v28   ;;  %v1168_v58 = vpop.permute.xlu1 %1167   ;;  %v1147_v59 = vpop.permute.xlu0 %1146  }
  0xe1   :  { %2858 = vst.msk [vmem:[%s8093_s1 + $0xe] sm:$0x1] %vm3_vm0, %v573_v29   ;;  %2859 = vst.msk [vmem:[%s8093_s1 + $0x4d] sm:$0x2] %vm3_vm0, %v573_v29  }
  0xe2   :  { %2860 = vst.msk [vmem:[%s8093_s1 + $0x8c] sm:$0x4] %vm3_vm0, %v573_v29   ;;  %2861 = vst.msk [vmem:[%s8093_s1 + $0xcb] sm:$0x8] %vm3_vm0, %v573_v29   ;;  %2356 = vrot.lane.b32.xlu1 %v4976_v35, %s3827_s9  ;;  %2335 = vrot.lane.b32.xlu0 %v4905_v32, %s3827_s9 }
  0xe3   :  { %2862 = vst.msk [vmem:[%s8093_s1 + $0x10a] sm:$0x10] %vm3_vm0, %v573_v29   ;;  %2863 = vst.msk [vmem:[%s8093_s1 + $0x149] sm:$0x20] %vm3_vm0, %v573_v29  }
  0xe4   :  { %2864 = vst.msk [vmem:[%s8093_s1 + $0x188] sm:$0x40] %vm3_vm0, %v573_v29   ;;  %2865 = vst.msk [vmem:[%s8093_s1 + $0x1c7] sm:$0x80] %vm3_vm0, %v573_v29   ;;  %v1209_v60 = vpop.permute.xlu1 %1208   ;;  %v1188_v61 = vpop.permute.xlu0 %1187  }
  0xe5   :  { %2884 = vst.msk [vmem:[%s8093_s1 + $0x20f] sm:$0x1] %vm3_vm0, %v635_v30   ;;  %2885 = vst.msk [vmem:[%s8093_s1 + $0x24e] sm:$0x2] %vm3_vm0, %v635_v30  }
  0xe6   :  { %2886 = vst.msk [vmem:[%s8093_s1 + $0x28d] sm:$0x4] %vm3_vm0, %v635_v30   ;;  %2887 = vst.msk [vmem:[%s8093_s1 + $0x2cc] sm:$0x8] %vm3_vm0, %v635_v30   ;;  %2397 = vrot.lane.b32.xlu1 %v4976_v35, %s3828_s13  ;;  %2376 = vrot.lane.b32.xlu0 %v4905_v32, %s3828_s13 }
  0xe7   :  { %2888 = vst.msk [vmem:[%s8093_s1 + $0x30b] sm:$0x10] %vm3_vm0, %v635_v30   ;;  %2889 = vst.msk [vmem:[%s8093_s1 + $0x34a] sm:$0x20] %vm3_vm0, %v635_v30  }
  0xe8   :  { %2890 = vst.msk [vmem:[%s8093_s1 + $0x389] sm:$0x40] %vm3_vm0, %v635_v30   ;;  %2891 = vst.msk [vmem:[%s8093_s1 + $0x3c8] sm:$0x80] %vm3_vm0, %v635_v30   ;;  %v1250_v62 = vpop.permute.xlu1 %1249   ;;  %v1229_v63 = vpop.permute.xlu0 %1228  }
  0xe9   :  { %2875 = vst.msk [vmem:[%s8093_s1 + $0xf] sm:$0x1] %vm3_vm0, %v614_v31   ;;  %2876 = vst.msk [vmem:[%s8093_s1 + $0x4e] sm:$0x2] %vm3_vm0, %v614_v31  }
  0xea   :  { %2877 = vst.msk [vmem:[%s8093_s1 + $0x8d] sm:$0x4] %vm3_vm0, %v614_v31   ;;  %2878 = vst.msk [vmem:[%s8093_s1 + $0xcc] sm:$0x8] %vm3_vm0, %v614_v31   ;;  %2438 = vrot.lane.b32.xlu1 %v4976_v35, %s3829_s17  ;;  %2417 = vrot.lane.b32.xlu0 %v4905_v32, %s3829_s17 }
  0xeb   :  { %2879 = vst.msk [vmem:[%s8093_s1 + $0x10b] sm:$0x10] %vm3_vm0, %v614_v31   ;;  %2880 = vst.msk [vmem:[%s8093_s1 + $0x14a] sm:$0x20] %vm3_vm0, %v614_v31  }
  0xec   :  { %2881 = vst.msk [vmem:[%s8093_s1 + $0x189] sm:$0x40] %vm3_vm0, %v614_v31   ;;  %2882 = vst.msk [vmem:[%s8093_s1 + $0x1c8] sm:$0x80] %vm3_vm0, %v614_v31   ;;  %v1291_v0 = vpop.permute.xlu1 %1290   ;;  %v1270_v1 = vpop.permute.xlu0 %1269  }
  0xed   :  { %2901 = vst.msk [vmem:[%s8093_s1 + $0x210] sm:$0x1] %vm3_vm0, %v676_v33   ;;  %2902 = vst.msk [vmem:[%s8093_s1 + $0x24f] sm:$0x2] %vm3_vm0, %v676_v33  }
  0xee   :  { %2903 = vst.msk [vmem:[%s8093_s1 + $0x28e] sm:$0x4] %vm3_vm0, %v676_v33   ;;  %2904 = vst.msk [vmem:[%s8093_s1 + $0x2cd] sm:$0x8] %vm3_vm0, %v676_v33   ;;  %2479 = vrot.lane.b32.xlu1 %v4976_v35, %s3830_s25  ;;  %2458 = vrot.lane.b32.xlu0 %v4905_v32, %s3830_s25 }
  0xef   :  { %2905 = vst.msk [vmem:[%s8093_s1 + $0x30c] sm:$0x10] %vm3_vm0, %v676_v33   ;;  %2906 = vst.msk [vmem:[%s8093_s1 + $0x34b] sm:$0x20] %vm3_vm0, %v676_v33  }
  0xf0   :  { %2907 = vst.msk [vmem:[%s8093_s1 + $0x38a] sm:$0x40] %vm3_vm0, %v676_v33   ;;  %2908 = vst.msk [vmem:[%s8093_s1 + $0x3c9] sm:$0x80] %vm3_vm0, %v676_v33   ;;  %v1332_v4 = vpop.permute.xlu1 %1331   ;;  %v1311_v5 = vpop.permute.xlu0 %1310  }
  0xf1   :  { %2892 = vst.msk [vmem:[%s8093_s1 + $0x10] sm:$0x1] %vm3_vm0, %v655_v34   ;;  %2893 = vst.msk [vmem:[%s8093_s1 + $0x4f] sm:$0x2] %vm3_vm0, %v655_v34  }
  0xf2   :  { %2894 = vst.msk [vmem:[%s8093_s1 + $0x8e] sm:$0x4] %vm3_vm0, %v655_v34   ;;  %2895 = vst.msk [vmem:[%s8093_s1 + $0xcd] sm:$0x8] %vm3_vm0, %v655_v34   ;;  %2520 = vrot.lane.b32.xlu1 %v4976_v35, %s3831_s28  ;;  %2499 = vrot.lane.b32.xlu0 %v4905_v32, %s3831_s28 }
  0xf3   :  { %2896 = vst.msk [vmem:[%s8093_s1 + $0x10c] sm:$0x10] %vm3_vm0, %v655_v34   ;;  %2897 = vst.msk [vmem:[%s8093_s1 + $0x14b] sm:$0x20] %vm3_vm0, %v655_v34  }
  0xf4   :  { %2898 = vst.msk [vmem:[%s8093_s1 + $0x18a] sm:$0x40] %vm3_vm0, %v655_v34   ;;  %2899 = vst.msk [vmem:[%s8093_s1 + $0x1c9] sm:$0x80] %vm3_vm0, %v655_v34   ;;  %v1373_v6 = vpop.permute.xlu1 %1372   ;;  %v1352_v7 = vpop.permute.xlu0 %1351  }
  0xf5   :  { %2918 = vst.msk [vmem:[%s8093_s1 + $0x211] sm:$0x1] %vm3_vm0, %v717_v36   ;;  %2919 = vst.msk [vmem:[%s8093_s1 + $0x250] sm:$0x2] %vm3_vm0, %v717_v36  }
  0xf6   :  { %2920 = vst.msk [vmem:[%s8093_s1 + $0x28f] sm:$0x4] %vm3_vm0, %v717_v36   ;;  %2921 = vst.msk [vmem:[%s8093_s1 + $0x2ce] sm:$0x8] %vm3_vm0, %v717_v36   ;;  %2561 = vrot.lane.b32.xlu1 %v4976_v35, %s3832_s2  ;;  %2540 = vrot.lane.b32.xlu0 %v4905_v32, %s3832_s2 }
  0xf7   :  { %2922 = vst.msk [vmem:[%s8093_s1 + $0x30d] sm:$0x10] %vm3_vm0, %v717_v36   ;;  %2923 = vst.msk [vmem:[%s8093_s1 + $0x34c] sm:$0x20] %vm3_vm0, %v717_v36  }
  0xf8   :  { %2924 = vst.msk [vmem:[%s8093_s1 + $0x38b] sm:$0x40] %vm3_vm0, %v717_v36   ;;  %2925 = vst.msk [vmem:[%s8093_s1 + $0x3ca] sm:$0x80] %vm3_vm0, %v717_v36   ;;  %v1414_v8 = vpop.permute.xlu1 %1413   ;;  %v1393_v9 = vpop.permute.xlu0 %1392  }
  0xf9   :  { %2909 = vst.msk [vmem:[%s8093_s1 + $0x11] sm:$0x1] %vm3_vm0, %v696_v37   ;;  %2910 = vst.msk [vmem:[%s8093_s1 + $0x50] sm:$0x2] %vm3_vm0, %v696_v37  }
  0xfa   :  { %2911 = vst.msk [vmem:[%s8093_s1 + $0x8f] sm:$0x4] %vm3_vm0, %v696_v37   ;;  %2912 = vst.msk [vmem:[%s8093_s1 + $0xce] sm:$0x8] %vm3_vm0, %v696_v37   ;;  %2602 = vrot.lane.b32.xlu1 %v4976_v35, %s3833_s5  ;;  %2581 = vrot.lane.b32.xlu0 %v4905_v32, %s3833_s5 }
  0xfb   :  { %2913 = vst.msk [vmem:[%s8093_s1 + $0x10d] sm:$0x10] %vm3_vm0, %v696_v37   ;;  %2914 = vst.msk [vmem:[%s8093_s1 + $0x14c] sm:$0x20] %vm3_vm0, %v696_v37  }
  0xfc   :  { %2915 = vst.msk [vmem:[%s8093_s1 + $0x18b] sm:$0x40] %vm3_vm0, %v696_v37   ;;  %2916 = vst.msk [vmem:[%s8093_s1 + $0x1ca] sm:$0x80] %vm3_vm0, %v696_v37   ;;  %v1455_v10 = vpop.permute.xlu1 %1454   ;;  %v1434_v11 = vpop.permute.xlu0 %1433  }
  0xfd   :  { %2935 = vst.msk [vmem:[%s8093_s1 + $0x212] sm:$0x1] %vm3_vm0, %v758_v38   ;;  %2936 = vst.msk [vmem:[%s8093_s1 + $0x251] sm:$0x2] %vm3_vm0, %v758_v38  }
  0xfe   :  { %2937 = vst.msk [vmem:[%s8093_s1 + $0x290] sm:$0x4] %vm3_vm0, %v758_v38   ;;  %2938 = vst.msk [vmem:[%s8093_s1 + $0x2cf] sm:$0x8] %vm3_vm0, %v758_v38  }
  0xff   :  { %2939 = vst.msk [vmem:[%s8093_s1 + $0x30e] sm:$0x10] %vm3_vm0, %v758_v38   ;;  %2940 = vst.msk [vmem:[%s8093_s1 + $0x34d] sm:$0x20] %vm3_vm0, %v758_v38  }
 0x100   :  { %2941 = vst.msk [vmem:[%s8093_s1 + $0x38c] sm:$0x40] %vm3_vm0, %v758_v38   ;;  %2942 = vst.msk [vmem:[%s8093_s1 + $0x3cb] sm:$0x80] %vm3_vm0, %v758_v38   ;;  %v1496_v12 = vpop.permute.xlu1 %1495   ;;  %v1475_v13 = vpop.permute.xlu0 %1474  }
 0x101   :  { %2926 = vst.msk [vmem:[%s8093_s1 + $0x12] sm:$0x1] %vm3_vm0, %v737_v39   ;;  %2927 = vst.msk [vmem:[%s8093_s1 + $0x51] sm:$0x2] %vm3_vm0, %v737_v39  }
 0x102   :  { %2928 = vst.msk [vmem:[%s8093_s1 + $0x90] sm:$0x4] %vm3_vm0, %v737_v39   ;;  %2929 = vst.msk [vmem:[%s8093_s1 + $0xcf] sm:$0x8] %vm3_vm0, %v737_v39  }
 0x103   :  { %2930 = vst.msk [vmem:[%s8093_s1 + $0x10e] sm:$0x10] %vm3_vm0, %v737_v39   ;;  %2931 = vst.msk [vmem:[%s8093_s1 + $0x14d] sm:$0x20] %vm3_vm0, %v737_v39  }
 0x104   :  { %2932 = vst.msk [vmem:[%s8093_s1 + $0x18c] sm:$0x40] %vm3_vm0, %v737_v39   ;;  %2933 = vst.msk [vmem:[%s8093_s1 + $0x1cb] sm:$0x80] %vm3_vm0, %v737_v39   ;;  %v1537_v14 = vpop.permute.xlu1 %1536   ;;  %v1516_v15 = vpop.permute.xlu0 %1515  }
 0x105   :  { %2952 = vst.msk [vmem:[%s8093_s1 + $0x213] sm:$0x1] %vm3_vm0, %v799_v40   ;;  %2953 = vst.msk [vmem:[%s8093_s1 + $0x252] sm:$0x2] %vm3_vm0, %v799_v40  }
 0x106   :  { %2954 = vst.msk [vmem:[%s8093_s1 + $0x291] sm:$0x4] %vm3_vm0, %v799_v40   ;;  %2955 = vst.msk [vmem:[%s8093_s1 + $0x2d0] sm:$0x8] %vm3_vm0, %v799_v40  }
 0x107   :  { %2956 = vst.msk [vmem:[%s8093_s1 + $0x30f] sm:$0x10] %vm3_vm0, %v799_v40   ;;  %2957 = vst.msk [vmem:[%s8093_s1 + $0x34e] sm:$0x20] %vm3_vm0, %v799_v40  }
 0x108   :  { %2958 = vst.msk [vmem:[%s8093_s1 + $0x38d] sm:$0x40] %vm3_vm0, %v799_v40   ;;  %2959 = vst.msk [vmem:[%s8093_s1 + $0x3cc] sm:$0x80] %vm3_vm0, %v799_v40   ;;  %v1578_v16 = vpop.permute.xlu1 %1577   ;;  %v1557_v17 = vpop.permute.xlu0 %1556  }
 0x109   :  { %2943 = vst.msk [vmem:[%s8093_s1 + $0x13] sm:$0x1] %vm3_vm0, %v778_v41   ;;  %2944 = vst.msk [vmem:[%s8093_s1 + $0x52] sm:$0x2] %vm3_vm0, %v778_v41  }
 0x10a   :  { %2945 = vst.msk [vmem:[%s8093_s1 + $0x91] sm:$0x4] %vm3_vm0, %v778_v41   ;;  %2946 = vst.msk [vmem:[%s8093_s1 + $0xd0] sm:$0x8] %vm3_vm0, %v778_v41  }
 0x10b   :  { %2947 = vst.msk [vmem:[%s8093_s1 + $0x10f] sm:$0x10] %vm3_vm0, %v778_v41   ;;  %2948 = vst.msk [vmem:[%s8093_s1 + $0x14e] sm:$0x20] %vm3_vm0, %v778_v41  }
 0x10c   :  { %2949 = vst.msk [vmem:[%s8093_s1 + $0x18d] sm:$0x40] %vm3_vm0, %v778_v41   ;;  %2950 = vst.msk [vmem:[%s8093_s1 + $0x1cc] sm:$0x80] %vm3_vm0, %v778_v41   ;;  %v1619_v18 = vpop.permute.xlu1 %1618   ;;  %v1598_v19 = vpop.permute.xlu0 %1597  }
 0x10d   :  { %2969 = vst.msk [vmem:[%s8093_s1 + $0x214] sm:$0x1] %vm3_vm0, %v840_v42   ;;  %2970 = vst.msk [vmem:[%s8093_s1 + $0x253] sm:$0x2] %vm3_vm0, %v840_v42  }
 0x10e   :  { %2971 = vst.msk [vmem:[%s8093_s1 + $0x292] sm:$0x4] %vm3_vm0, %v840_v42   ;;  %2972 = vst.msk [vmem:[%s8093_s1 + $0x2d1] sm:$0x8] %vm3_vm0, %v840_v42  }
 0x10f   :  { %2973 = vst.msk [vmem:[%s8093_s1 + $0x310] sm:$0x10] %vm3_vm0, %v840_v42   ;;  %2974 = vst.msk [vmem:[%s8093_s1 + $0x34f] sm:$0x20] %vm3_vm0, %v840_v42  }
 0x110   :  { %2975 = vst.msk [vmem:[%s8093_s1 + $0x38e] sm:$0x40] %vm3_vm0, %v840_v42   ;;  %2976 = vst.msk [vmem:[%s8093_s1 + $0x3cd] sm:$0x80] %vm3_vm0, %v840_v42   ;;  %v1660_v20 = vpop.permute.xlu1 %1659   ;;  %v1639_v21 = vpop.permute.xlu0 %1638  }
 0x111   :  { %2960 = vst.msk [vmem:[%s8093_s1 + $0x14] sm:$0x1] %vm3_vm0, %v819_v43   ;;  %2961 = vst.msk [vmem:[%s8093_s1 + $0x53] sm:$0x2] %vm3_vm0, %v819_v43  }
 0x112   :  { %2962 = vst.msk [vmem:[%s8093_s1 + $0x92] sm:$0x4] %vm3_vm0, %v819_v43   ;;  %2963 = vst.msk [vmem:[%s8093_s1 + $0xd1] sm:$0x8] %vm3_vm0, %v819_v43  }
 0x113   :  { %2964 = vst.msk [vmem:[%s8093_s1 + $0x110] sm:$0x10] %vm3_vm0, %v819_v43   ;;  %2965 = vst.msk [vmem:[%s8093_s1 + $0x14f] sm:$0x20] %vm3_vm0, %v819_v43  }
 0x114   :  { %2966 = vst.msk [vmem:[%s8093_s1 + $0x18e] sm:$0x40] %vm3_vm0, %v819_v43   ;;  %2967 = vst.msk [vmem:[%s8093_s1 + $0x1cd] sm:$0x80] %vm3_vm0, %v819_v43   ;;  %v1701_v22 = vpop.permute.xlu1 %1700   ;;  %v1680_v23 = vpop.permute.xlu0 %1679  }
 0x115   :  { %2986 = vst.msk [vmem:[%s8093_s1 + $0x215] sm:$0x1] %vm3_vm0, %v881_v44   ;;  %2987 = vst.msk [vmem:[%s8093_s1 + $0x254] sm:$0x2] %vm3_vm0, %v881_v44  }
 0x116   :  { %2988 = vst.msk [vmem:[%s8093_s1 + $0x293] sm:$0x4] %vm3_vm0, %v881_v44   ;;  %2989 = vst.msk [vmem:[%s8093_s1 + $0x2d2] sm:$0x8] %vm3_vm0, %v881_v44  }
 0x117   :  { %2990 = vst.msk [vmem:[%s8093_s1 + $0x311] sm:$0x10] %vm3_vm0, %v881_v44   ;;  %2991 = vst.msk [vmem:[%s8093_s1 + $0x350] sm:$0x20] %vm3_vm0, %v881_v44  }
 0x118   :  { %2992 = vst.msk [vmem:[%s8093_s1 + $0x38f] sm:$0x40] %vm3_vm0, %v881_v44   ;;  %2993 = vst.msk [vmem:[%s8093_s1 + $0x3ce] sm:$0x80] %vm3_vm0, %v881_v44   ;;  %v1742_v24 = vpop.permute.xlu1 %1741   ;;  %v1721_v25 = vpop.permute.xlu0 %1720  }
 0x119   :  { %2977 = vst.msk [vmem:[%s8093_s1 + $0x15] sm:$0x1] %vm3_vm0, %v860_v45   ;;  %2978 = vst.msk [vmem:[%s8093_s1 + $0x54] sm:$0x2] %vm3_vm0, %v860_v45  }
 0x11a   :  { %2979 = vst.msk [vmem:[%s8093_s1 + $0x93] sm:$0x4] %vm3_vm0, %v860_v45   ;;  %2980 = vst.msk [vmem:[%s8093_s1 + $0xd2] sm:$0x8] %vm3_vm0, %v860_v45  }
 0x11b   :  { %2981 = vst.msk [vmem:[%s8093_s1 + $0x111] sm:$0x10] %vm3_vm0, %v860_v45   ;;  %2982 = vst.msk [vmem:[%s8093_s1 + $0x150] sm:$0x20] %vm3_vm0, %v860_v45  }
 0x11c   :  { %2983 = vst.msk [vmem:[%s8093_s1 + $0x18f] sm:$0x40] %vm3_vm0, %v860_v45   ;;  %2984 = vst.msk [vmem:[%s8093_s1 + $0x1ce] sm:$0x80] %vm3_vm0, %v860_v45   ;;  %v1783_v26 = vpop.permute.xlu1 %1782   ;;  %v1762_v27 = vpop.permute.xlu0 %1761  }
 0x11d   :  { %3003 = vst.msk [vmem:[%s8093_s1 + $0x216] sm:$0x1] %vm3_vm0, %v922_v46   ;;  %3004 = vst.msk [vmem:[%s8093_s1 + $0x255] sm:$0x2] %vm3_vm0, %v922_v46  }
 0x11e   :  { %3005 = vst.msk [vmem:[%s8093_s1 + $0x294] sm:$0x4] %vm3_vm0, %v922_v46   ;;  %3006 = vst.msk [vmem:[%s8093_s1 + $0x2d3] sm:$0x8] %vm3_vm0, %v922_v46  }
 0x11f   :  { %3007 = vst.msk [vmem:[%s8093_s1 + $0x312] sm:$0x10] %vm3_vm0, %v922_v46   ;;  %3008 = vst.msk [vmem:[%s8093_s1 + $0x351] sm:$0x20] %vm3_vm0, %v922_v46  }
 0x120   :  { %3009 = vst.msk [vmem:[%s8093_s1 + $0x390] sm:$0x40] %vm3_vm0, %v922_v46   ;;  %3010 = vst.msk [vmem:[%s8093_s1 + $0x3cf] sm:$0x80] %vm3_vm0, %v922_v46   ;;  %v1824_v28 = vpop.permute.xlu1 %1823   ;;  %v1803_v29 = vpop.permute.xlu0 %1802  }
 0x121   :  { %2994 = vst.msk [vmem:[%s8093_s1 + $0x16] sm:$0x1] %vm3_vm0, %v901_v47   ;;  %2995 = vst.msk [vmem:[%s8093_s1 + $0x55] sm:$0x2] %vm3_vm0, %v901_v47  }
 0x122   :  { %2996 = vst.msk [vmem:[%s8093_s1 + $0x94] sm:$0x4] %vm3_vm0, %v901_v47   ;;  %2997 = vst.msk [vmem:[%s8093_s1 + $0xd3] sm:$0x8] %vm3_vm0, %v901_v47  }
 0x123   :  { %2998 = vst.msk [vmem:[%s8093_s1 + $0x112] sm:$0x10] %vm3_vm0, %v901_v47   ;;  %2999 = vst.msk [vmem:[%s8093_s1 + $0x151] sm:$0x20] %vm3_vm0, %v901_v47  }
 0x124   :  { %3000 = vst.msk [vmem:[%s8093_s1 + $0x190] sm:$0x40] %vm3_vm0, %v901_v47   ;;  %3001 = vst.msk [vmem:[%s8093_s1 + $0x1cf] sm:$0x80] %vm3_vm0, %v901_v47   ;;  %v1865_v30 = vpop.permute.xlu1 %1864   ;;  %v1844_v31 = vpop.permute.xlu0 %1843  }
 0x125   :  { %3020 = vst.msk [vmem:[%s8093_s1 + $0x217] sm:$0x1] %vm3_vm0, %v963_v48   ;;  %3021 = vst.msk [vmem:[%s8093_s1 + $0x256] sm:$0x2] %vm3_vm0, %v963_v48  }
 0x126   :  { %3022 = vst.msk [vmem:[%s8093_s1 + $0x295] sm:$0x4] %vm3_vm0, %v963_v48   ;;  %3023 = vst.msk [vmem:[%s8093_s1 + $0x2d4] sm:$0x8] %vm3_vm0, %v963_v48  }
 0x127   :  { %3024 = vst.msk [vmem:[%s8093_s1 + $0x313] sm:$0x10] %vm3_vm0, %v963_v48   ;;  %3025 = vst.msk [vmem:[%s8093_s1 + $0x352] sm:$0x20] %vm3_vm0, %v963_v48  }
 0x128   :  { %3026 = vst.msk [vmem:[%s8093_s1 + $0x391] sm:$0x40] %vm3_vm0, %v963_v48   ;;  %3027 = vst.msk [vmem:[%s8093_s1 + $0x3d0] sm:$0x80] %vm3_vm0, %v963_v48   ;;  %v1906_v32 = vpop.permute.xlu1 %1905   ;;  %v1885_v33 = vpop.permute.xlu0 %1884  }
 0x129   :  { %3011 = vst.msk [vmem:[%s8093_s1 + $0x17] sm:$0x1] %vm3_vm0, %v942_v49   ;;  %3012 = vst.msk [vmem:[%s8093_s1 + $0x56] sm:$0x2] %vm3_vm0, %v942_v49  }
 0x12a   :  { %3013 = vst.msk [vmem:[%s8093_s1 + $0x95] sm:$0x4] %vm3_vm0, %v942_v49   ;;  %3014 = vst.msk [vmem:[%s8093_s1 + $0xd4] sm:$0x8] %vm3_vm0, %v942_v49  }
 0x12b   :  { %3015 = vst.msk [vmem:[%s8093_s1 + $0x113] sm:$0x10] %vm3_vm0, %v942_v49   ;;  %3016 = vst.msk [vmem:[%s8093_s1 + $0x152] sm:$0x20] %vm3_vm0, %v942_v49  }
 0x12c   :  { %3017 = vst.msk [vmem:[%s8093_s1 + $0x191] sm:$0x40] %vm3_vm0, %v942_v49   ;;  %3018 = vst.msk [vmem:[%s8093_s1 + $0x1d0] sm:$0x80] %vm3_vm0, %v942_v49   ;;  %v1947_v34 = vpop.permute.xlu1 %1946   ;;  %v1926_v35 = vpop.permute.xlu0 %1925  }
 0x12d   :  { %3037 = vst.msk [vmem:[%s8093_s1 + $0x218] sm:$0x1] %vm3_vm0, %v1004_v50   ;;  %3038 = vst.msk [vmem:[%s8093_s1 + $0x257] sm:$0x2] %vm3_vm0, %v1004_v50  }
 0x12e   :  { %3039 = vst.msk [vmem:[%s8093_s1 + $0x296] sm:$0x4] %vm3_vm0, %v1004_v50   ;;  %3040 = vst.msk [vmem:[%s8093_s1 + $0x2d5] sm:$0x8] %vm3_vm0, %v1004_v50  }
 0x12f   :  { %3041 = vst.msk [vmem:[%s8093_s1 + $0x314] sm:$0x10] %vm3_vm0, %v1004_v50   ;;  %3042 = vst.msk [vmem:[%s8093_s1 + $0x353] sm:$0x20] %vm3_vm0, %v1004_v50  }
 0x130   :  { %3043 = vst.msk [vmem:[%s8093_s1 + $0x392] sm:$0x40] %vm3_vm0, %v1004_v50   ;;  %3044 = vst.msk [vmem:[%s8093_s1 + $0x3d1] sm:$0x80] %vm3_vm0, %v1004_v50   ;;  %v1988_v36 = vpop.permute.xlu1 %1987   ;;  %v1967_v37 = vpop.permute.xlu0 %1966  }
 0x131   :  { %3028 = vst.msk [vmem:[%s8093_s1 + $0x18] sm:$0x1] %vm3_vm0, %v983_v51   ;;  %3029 = vst.msk [vmem:[%s8093_s1 + $0x57] sm:$0x2] %vm3_vm0, %v983_v51  }
 0x132   :  { %3030 = vst.msk [vmem:[%s8093_s1 + $0x96] sm:$0x4] %vm3_vm0, %v983_v51   ;;  %3031 = vst.msk [vmem:[%s8093_s1 + $0xd5] sm:$0x8] %vm3_vm0, %v983_v51  }
 0x133   :  { %3032 = vst.msk [vmem:[%s8093_s1 + $0x114] sm:$0x10] %vm3_vm0, %v983_v51   ;;  %3033 = vst.msk [vmem:[%s8093_s1 + $0x153] sm:$0x20] %vm3_vm0, %v983_v51  }
 0x134   :  { %3034 = vst.msk [vmem:[%s8093_s1 + $0x192] sm:$0x40] %vm3_vm0, %v983_v51   ;;  %3035 = vst.msk [vmem:[%s8093_s1 + $0x1d1] sm:$0x80] %vm3_vm0, %v983_v51   ;;  %v2029_v38 = vpop.permute.xlu1 %2028   ;;  %v2008_v39 = vpop.permute.xlu0 %2007  }
 0x135   :  { %3054 = vst.msk [vmem:[%s8093_s1 + $0x219] sm:$0x1] %vm3_vm0, %v1045_v52   ;;  %3055 = vst.msk [vmem:[%s8093_s1 + $0x258] sm:$0x2] %vm3_vm0, %v1045_v52  }
 0x136   :  { %3056 = vst.msk [vmem:[%s8093_s1 + $0x297] sm:$0x4] %vm3_vm0, %v1045_v52   ;;  %3057 = vst.msk [vmem:[%s8093_s1 + $0x2d6] sm:$0x8] %vm3_vm0, %v1045_v52  }
 0x137   :  { %3058 = vst.msk [vmem:[%s8093_s1 + $0x315] sm:$0x10] %vm3_vm0, %v1045_v52   ;;  %3059 = vst.msk [vmem:[%s8093_s1 + $0x354] sm:$0x20] %vm3_vm0, %v1045_v52  }
 0x138   :  { %3060 = vst.msk [vmem:[%s8093_s1 + $0x393] sm:$0x40] %vm3_vm0, %v1045_v52   ;;  %3061 = vst.msk [vmem:[%s8093_s1 + $0x3d2] sm:$0x80] %vm3_vm0, %v1045_v52   ;;  %v2070_v40 = vpop.permute.xlu1 %2069   ;;  %v2049_v41 = vpop.permute.xlu0 %2048  }
 0x139   :  { %3045 = vst.msk [vmem:[%s8093_s1 + $0x19] sm:$0x1] %vm3_vm0, %v1024_v53   ;;  %3046 = vst.msk [vmem:[%s8093_s1 + $0x58] sm:$0x2] %vm3_vm0, %v1024_v53  }
 0x13a   :  { %3047 = vst.msk [vmem:[%s8093_s1 + $0x97] sm:$0x4] %vm3_vm0, %v1024_v53   ;;  %3048 = vst.msk [vmem:[%s8093_s1 + $0xd6] sm:$0x8] %vm3_vm0, %v1024_v53  }
 0x13b   :  { %3049 = vst.msk [vmem:[%s8093_s1 + $0x115] sm:$0x10] %vm3_vm0, %v1024_v53   ;;  %3050 = vst.msk [vmem:[%s8093_s1 + $0x154] sm:$0x20] %vm3_vm0, %v1024_v53  }
 0x13c   :  { %3051 = vst.msk [vmem:[%s8093_s1 + $0x193] sm:$0x40] %vm3_vm0, %v1024_v53   ;;  %3052 = vst.msk [vmem:[%s8093_s1 + $0x1d2] sm:$0x80] %vm3_vm0, %v1024_v53   ;;  %v2111_v42 = vpop.permute.xlu1 %2110   ;;  %v2090_v43 = vpop.permute.xlu0 %2089  }
 0x13d   :  { %3071 = vst.msk [vmem:[%s8093_s1 + $0x21a] sm:$0x1] %vm3_vm0, %v1086_v54   ;;  %3072 = vst.msk [vmem:[%s8093_s1 + $0x259] sm:$0x2] %vm3_vm0, %v1086_v54  }
 0x13e   :  { %3073 = vst.msk [vmem:[%s8093_s1 + $0x298] sm:$0x4] %vm3_vm0, %v1086_v54   ;;  %3074 = vst.msk [vmem:[%s8093_s1 + $0x2d7] sm:$0x8] %vm3_vm0, %v1086_v54  }
 0x13f   :  { %3075 = vst.msk [vmem:[%s8093_s1 + $0x316] sm:$0x10] %vm3_vm0, %v1086_v54   ;;  %3076 = vst.msk [vmem:[%s8093_s1 + $0x355] sm:$0x20] %vm3_vm0, %v1086_v54  }
 0x140   :  { %3077 = vst.msk [vmem:[%s8093_s1 + $0x394] sm:$0x40] %vm3_vm0, %v1086_v54   ;;  %3078 = vst.msk [vmem:[%s8093_s1 + $0x3d3] sm:$0x80] %vm3_vm0, %v1086_v54   ;;  %v2152_v44 = vpop.permute.xlu1 %2151   ;;  %v2131_v45 = vpop.permute.xlu0 %2130  }
 0x141   :  { %3062 = vst.msk [vmem:[%s8093_s1 + $0x1a] sm:$0x1] %vm3_vm0, %v1065_v55   ;;  %3063 = vst.msk [vmem:[%s8093_s1 + $0x59] sm:$0x2] %vm3_vm0, %v1065_v55  }
 0x142   :  { %3064 = vst.msk [vmem:[%s8093_s1 + $0x98] sm:$0x4] %vm3_vm0, %v1065_v55   ;;  %3065 = vst.msk [vmem:[%s8093_s1 + $0xd7] sm:$0x8] %vm3_vm0, %v1065_v55  }
 0x143   :  { %3066 = vst.msk [vmem:[%s8093_s1 + $0x116] sm:$0x10] %vm3_vm0, %v1065_v55   ;;  %3067 = vst.msk [vmem:[%s8093_s1 + $0x155] sm:$0x20] %vm3_vm0, %v1065_v55  }
 0x144   :  { %3068 = vst.msk [vmem:[%s8093_s1 + $0x194] sm:$0x40] %vm3_vm0, %v1065_v55   ;;  %3069 = vst.msk [vmem:[%s8093_s1 + $0x1d3] sm:$0x80] %vm3_vm0, %v1065_v55   ;;  %v2193_v46 = vpop.permute.xlu1 %2192   ;;  %v2172_v47 = vpop.permute.xlu0 %2171  }
 0x145   :  { %3088 = vst.msk [vmem:[%s8093_s1 + $0x21b] sm:$0x1] %vm3_vm0, %v1127_v56   ;;  %3089 = vst.msk [vmem:[%s8093_s1 + $0x25a] sm:$0x2] %vm3_vm0, %v1127_v56  }
 0x146   :  { %3090 = vst.msk [vmem:[%s8093_s1 + $0x299] sm:$0x4] %vm3_vm0, %v1127_v56   ;;  %3091 = vst.msk [vmem:[%s8093_s1 + $0x2d8] sm:$0x8] %vm3_vm0, %v1127_v56  }
 0x147   :  { %3092 = vst.msk [vmem:[%s8093_s1 + $0x317] sm:$0x10] %vm3_vm0, %v1127_v56   ;;  %3093 = vst.msk [vmem:[%s8093_s1 + $0x356] sm:$0x20] %vm3_vm0, %v1127_v56  }
 0x148   :  { %3094 = vst.msk [vmem:[%s8093_s1 + $0x395] sm:$0x40] %vm3_vm0, %v1127_v56   ;;  %3095 = vst.msk [vmem:[%s8093_s1 + $0x3d4] sm:$0x80] %vm3_vm0, %v1127_v56   ;;  %v2234_v48 = vpop.permute.xlu1 %2233   ;;  %v2213_v49 = vpop.permute.xlu0 %2212  }
 0x149   :  { %3079 = vst.msk [vmem:[%s8093_s1 + $0x1b] sm:$0x1] %vm3_vm0, %v1106_v57   ;;  %3080 = vst.msk [vmem:[%s8093_s1 + $0x5a] sm:$0x2] %vm3_vm0, %v1106_v57  }
 0x14a   :  { %3081 = vst.msk [vmem:[%s8093_s1 + $0x99] sm:$0x4] %vm3_vm0, %v1106_v57   ;;  %3082 = vst.msk [vmem:[%s8093_s1 + $0xd8] sm:$0x8] %vm3_vm0, %v1106_v57  }
 0x14b   :  { %3083 = vst.msk [vmem:[%s8093_s1 + $0x117] sm:$0x10] %vm3_vm0, %v1106_v57   ;;  %3084 = vst.msk [vmem:[%s8093_s1 + $0x156] sm:$0x20] %vm3_vm0, %v1106_v57  }
 0x14c   :  { %3085 = vst.msk [vmem:[%s8093_s1 + $0x195] sm:$0x40] %vm3_vm0, %v1106_v57   ;;  %3086 = vst.msk [vmem:[%s8093_s1 + $0x1d4] sm:$0x80] %vm3_vm0, %v1106_v57   ;;  %v2275_v50 = vpop.permute.xlu1 %2274   ;;  %v2254_v51 = vpop.permute.xlu0 %2253  }
 0x14d   :  { %3105 = vst.msk [vmem:[%s8093_s1 + $0x21c] sm:$0x1] %vm3_vm0, %v1168_v58   ;;  %3106 = vst.msk [vmem:[%s8093_s1 + $0x25b] sm:$0x2] %vm3_vm0, %v1168_v58  }
 0x14e   :  { %3107 = vst.msk [vmem:[%s8093_s1 + $0x29a] sm:$0x4] %vm3_vm0, %v1168_v58   ;;  %3108 = vst.msk [vmem:[%s8093_s1 + $0x2d9] sm:$0x8] %vm3_vm0, %v1168_v58  }
 0x14f   :  { %3109 = vst.msk [vmem:[%s8093_s1 + $0x318] sm:$0x10] %vm3_vm0, %v1168_v58   ;;  %3110 = vst.msk [vmem:[%s8093_s1 + $0x357] sm:$0x20] %vm3_vm0, %v1168_v58  }
 0x150   :  { %3111 = vst.msk [vmem:[%s8093_s1 + $0x396] sm:$0x40] %vm3_vm0, %v1168_v58   ;;  %3112 = vst.msk [vmem:[%s8093_s1 + $0x3d5] sm:$0x80] %vm3_vm0, %v1168_v58   ;;  %v2316_v52 = vpop.permute.xlu1 %2315   ;;  %v2295_v53 = vpop.permute.xlu0 %2294  }
 0x151   :  { %3096 = vst.msk [vmem:[%s8093_s1 + $0x1c] sm:$0x1] %vm3_vm0, %v1147_v59   ;;  %3097 = vst.msk [vmem:[%s8093_s1 + $0x5b] sm:$0x2] %vm3_vm0, %v1147_v59  }
 0x152   :  { %3098 = vst.msk [vmem:[%s8093_s1 + $0x9a] sm:$0x4] %vm3_vm0, %v1147_v59   ;;  %3099 = vst.msk [vmem:[%s8093_s1 + $0xd9] sm:$0x8] %vm3_vm0, %v1147_v59  }
 0x153   :  { %3100 = vst.msk [vmem:[%s8093_s1 + $0x118] sm:$0x10] %vm3_vm0, %v1147_v59   ;;  %3101 = vst.msk [vmem:[%s8093_s1 + $0x157] sm:$0x20] %vm3_vm0, %v1147_v59  }
 0x154   :  { %3102 = vst.msk [vmem:[%s8093_s1 + $0x196] sm:$0x40] %vm3_vm0, %v1147_v59   ;;  %3103 = vst.msk [vmem:[%s8093_s1 + $0x1d5] sm:$0x80] %vm3_vm0, %v1147_v59   ;;  %v2357_v54 = vpop.permute.xlu1 %2356   ;;  %v2336_v55 = vpop.permute.xlu0 %2335  }
 0x155   :  { %3122 = vst.msk [vmem:[%s8093_s1 + $0x21d] sm:$0x1] %vm3_vm0, %v1209_v60   ;;  %3123 = vst.msk [vmem:[%s8093_s1 + $0x25c] sm:$0x2] %vm3_vm0, %v1209_v60  }
 0x156   :  { %3124 = vst.msk [vmem:[%s8093_s1 + $0x29b] sm:$0x4] %vm3_vm0, %v1209_v60   ;;  %3125 = vst.msk [vmem:[%s8093_s1 + $0x2da] sm:$0x8] %vm3_vm0, %v1209_v60  }
 0x157   :  { %3126 = vst.msk [vmem:[%s8093_s1 + $0x319] sm:$0x10] %vm3_vm0, %v1209_v60   ;;  %3127 = vst.msk [vmem:[%s8093_s1 + $0x358] sm:$0x20] %vm3_vm0, %v1209_v60  }
 0x158   :  { %3128 = vst.msk [vmem:[%s8093_s1 + $0x397] sm:$0x40] %vm3_vm0, %v1209_v60   ;;  %3129 = vst.msk [vmem:[%s8093_s1 + $0x3d6] sm:$0x80] %vm3_vm0, %v1209_v60   ;;  %v2398_v56 = vpop.permute.xlu1 %2397   ;;  %v2377_v57 = vpop.permute.xlu0 %2376  }
 0x159   :  { %3113 = vst.msk [vmem:[%s8093_s1 + $0x1d] sm:$0x1] %vm3_vm0, %v1188_v61   ;;  %3114 = vst.msk [vmem:[%s8093_s1 + $0x5c] sm:$0x2] %vm3_vm0, %v1188_v61  }
 0x15a   :  { %3115 = vst.msk [vmem:[%s8093_s1 + $0x9b] sm:$0x4] %vm3_vm0, %v1188_v61   ;;  %3116 = vst.msk [vmem:[%s8093_s1 + $0xda] sm:$0x8] %vm3_vm0, %v1188_v61  }
 0x15b   :  { %3117 = vst.msk [vmem:[%s8093_s1 + $0x119] sm:$0x10] %vm3_vm0, %v1188_v61   ;;  %3118 = vst.msk [vmem:[%s8093_s1 + $0x158] sm:$0x20] %vm3_vm0, %v1188_v61  }
 0x15c   :  { %3119 = vst.msk [vmem:[%s8093_s1 + $0x197] sm:$0x40] %vm3_vm0, %v1188_v61   ;;  %3120 = vst.msk [vmem:[%s8093_s1 + $0x1d6] sm:$0x80] %vm3_vm0, %v1188_v61   ;;  %v2439_v58 = vpop.permute.xlu1 %2438   ;;  %v2418_v59 = vpop.permute.xlu0 %2417  }
 0x15d   :  { %3139 = vst.msk [vmem:[%s8093_s1 + $0x21e] sm:$0x1] %vm3_vm0, %v1250_v62   ;;  %3140 = vst.msk [vmem:[%s8093_s1 + $0x25d] sm:$0x2] %vm3_vm0, %v1250_v62  }
 0x15e   :  { %3141 = vst.msk [vmem:[%s8093_s1 + $0x29c] sm:$0x4] %vm3_vm0, %v1250_v62   ;;  %3142 = vst.msk [vmem:[%s8093_s1 + $0x2db] sm:$0x8] %vm3_vm0, %v1250_v62  }
 0x15f   :  { %3143 = vst.msk [vmem:[%s8093_s1 + $0x31a] sm:$0x10] %vm3_vm0, %v1250_v62   ;;  %3144 = vst.msk [vmem:[%s8093_s1 + $0x359] sm:$0x20] %vm3_vm0, %v1250_v62  }
 0x160   :  { %3145 = vst.msk [vmem:[%s8093_s1 + $0x398] sm:$0x40] %vm3_vm0, %v1250_v62   ;;  %3146 = vst.msk [vmem:[%s8093_s1 + $0x3d7] sm:$0x80] %vm3_vm0, %v1250_v62   ;;  %v2480_v60 = vpop.permute.xlu1 %2479   ;;  %v2459_v61 = vpop.permute.xlu0 %2458  }
 0x161   :  { %3130 = vst.msk [vmem:[%s8093_s1 + $0x1e] sm:$0x1] %vm3_vm0, %v1229_v63   ;;  %3131 = vst.msk [vmem:[%s8093_s1 + $0x5d] sm:$0x2] %vm3_vm0, %v1229_v63  }
 0x162   :  { %3132 = vst.msk [vmem:[%s8093_s1 + $0x9c] sm:$0x4] %vm3_vm0, %v1229_v63   ;;  %3133 = vst.msk [vmem:[%s8093_s1 + $0xdb] sm:$0x8] %vm3_vm0, %v1229_v63  }
 0x163   :  { %3134 = vst.msk [vmem:[%s8093_s1 + $0x11a] sm:$0x10] %vm3_vm0, %v1229_v63   ;;  %3135 = vst.msk [vmem:[%s8093_s1 + $0x159] sm:$0x20] %vm3_vm0, %v1229_v63  }
 0x164   :  { %3136 = vst.msk [vmem:[%s8093_s1 + $0x198] sm:$0x40] %vm3_vm0, %v1229_v63   ;;  %3137 = vst.msk [vmem:[%s8093_s1 + $0x1d7] sm:$0x80] %vm3_vm0, %v1229_v63   ;;  %v2521_v62 = vpop.permute.xlu1 %2520   ;;  %v2500_v63 = vpop.permute.xlu0 %2499  }
 0x165   :  { %3156 = vst.msk [vmem:[%s8093_s1 + $0x21f] sm:$0x1] %vm3_vm0, %v1291_v0   ;;  %3157 = vst.msk [vmem:[%s8093_s1 + $0x25e] sm:$0x2] %vm3_vm0, %v1291_v0  }
 0x166   :  { %3158 = vst.msk [vmem:[%s8093_s1 + $0x29d] sm:$0x4] %vm3_vm0, %v1291_v0   ;;  %3159 = vst.msk [vmem:[%s8093_s1 + $0x2dc] sm:$0x8] %vm3_vm0, %v1291_v0  }
 0x167   :  { %3160 = vst.msk [vmem:[%s8093_s1 + $0x31b] sm:$0x10] %vm3_vm0, %v1291_v0   ;;  %3161 = vst.msk [vmem:[%s8093_s1 + $0x35a] sm:$0x20] %vm3_vm0, %v1291_v0  }
 0x168   :  { %3162 = vst.msk [vmem:[%s8093_s1 + $0x399] sm:$0x40] %vm3_vm0, %v1291_v0   ;;  %3163 = vst.msk [vmem:[%s8093_s1 + $0x3d8] sm:$0x80] %vm3_vm0, %v1291_v0   ;;  %v2562_v0 = vpop.permute.xlu1 %2561  }
 0x169   :  { %3147 = vst.msk [vmem:[%s8093_s1 + $0x1f] sm:$0x1] %vm3_vm0, %v1270_v1   ;;  %3148 = vst.msk [vmem:[%s8093_s1 + $0x5e] sm:$0x2] %vm3_vm0, %v1270_v1  }
 0x16a   :  { %3149 = vst.msk [vmem:[%s8093_s1 + $0x9d] sm:$0x4] %vm3_vm0, %v1270_v1   ;;  %3150 = vst.msk [vmem:[%s8093_s1 + $0xdc] sm:$0x8] %vm3_vm0, %v1270_v1  }
 0x16b   :  { %3151 = vst.msk [vmem:[%s8093_s1 + $0x11b] sm:$0x10] %vm3_vm0, %v1270_v1   ;;  %3152 = vst.msk [vmem:[%s8093_s1 + $0x15a] sm:$0x20] %vm3_vm0, %v1270_v1  }
 0x16c   :  { %3153 = vst.msk [vmem:[%s8093_s1 + $0x199] sm:$0x40] %vm3_vm0, %v1270_v1   ;;  %3154 = vst.msk [vmem:[%s8093_s1 + $0x1d8] sm:$0x80] %vm3_vm0, %v1270_v1   ;;  %v2541_v1 = vpop.permute.xlu0 %2540  }
 0x16d   :  { %4 = vst.msk [vmem:[%s8093_s1] sm:$0x1] %vm3_vm0, %v2_v2   ;;  %2621 = vst.msk [vmem:[%s8093_s1 + $0x3f] sm:$0x2] %vm3_vm0, %v2_v2  }
 0x16e   :  { %2622 = vst.msk [vmem:[%s8093_s1 + $0x7e] sm:$0x4] %vm3_vm0, %v2_v2   ;;  %2623 = vst.msk [vmem:[%s8093_s1 + $0xbd] sm:$0x8] %vm3_vm0, %v2_v2  }
 0x16f   :  { %2624 = vst.msk [vmem:[%s8093_s1 + $0xfc] sm:$0x10] %vm3_vm0, %v2_v2   ;;  %2625 = vst.msk [vmem:[%s8093_s1 + $0x13b] sm:$0x20] %vm3_vm0, %v2_v2  }
 0x170   :  { %2626 = vst.msk [vmem:[%s8093_s1 + $0x17a] sm:$0x40] %vm3_vm0, %v2_v2   ;;  %2627 = vst.msk [vmem:[%s8093_s1 + $0x1b9] sm:$0x80] %vm3_vm0, %v2_v2   ;;  %v2603_v2 = vpop.permute.xlu1 %2602  }
 0x171   :  { %2629 = vst.msk [vmem:[%s8093_s1 + $0x200] sm:$0x1] %vm3_vm0, %v2628_v3   ;;  %2630 = vst.msk [vmem:[%s8093_s1 + $0x23f] sm:$0x2] %vm3_vm0, %v2628_v3  }
 0x172   :  { %2631 = vst.msk [vmem:[%s8093_s1 + $0x27e] sm:$0x4] %vm3_vm0, %v2628_v3   ;;  %2632 = vst.msk [vmem:[%s8093_s1 + $0x2bd] sm:$0x8] %vm3_vm0, %v2628_v3  }
 0x173   :  { %2633 = vst.msk [vmem:[%s8093_s1 + $0x2fc] sm:$0x10] %vm3_vm0, %v2628_v3   ;;  %2634 = vst.msk [vmem:[%s8093_s1 + $0x33b] sm:$0x20] %vm3_vm0, %v2628_v3  }
 0x174   :  { %2635 = vst.msk [vmem:[%s8093_s1 + $0x37a] sm:$0x40] %vm3_vm0, %v2628_v3   ;;  %2636 = vst.msk [vmem:[%s8093_s1 + $0x3b9] sm:$0x80] %vm3_vm0, %v2628_v3   ;;  %v2582_v3 = vpop.permute.xlu0 %2581  }
 0x175   :  { %3173 = vst.msk [vmem:[%s8093_s1 + $0x220] sm:$0x1] %vm3_vm0, %v1332_v4   ;;  %3174 = vst.msk [vmem:[%s8093_s1 + $0x25f] sm:$0x2] %vm3_vm0, %v1332_v4  }
 0x176   :  { %3175 = vst.msk [vmem:[%s8093_s1 + $0x29e] sm:$0x4] %vm3_vm0, %v1332_v4   ;;  %3176 = vst.msk [vmem:[%s8093_s1 + $0x2dd] sm:$0x8] %vm3_vm0, %v1332_v4  }
 0x177   :  { %3177 = vst.msk [vmem:[%s8093_s1 + $0x31c] sm:$0x10] %vm3_vm0, %v1332_v4   ;;  %3178 = vst.msk [vmem:[%s8093_s1 + $0x35b] sm:$0x20] %vm3_vm0, %v1332_v4  }
 0x178   :  { %3179 = vst.msk [vmem:[%s8093_s1 + $0x39a] sm:$0x40] %vm3_vm0, %v1332_v4   ;;  %3180 = vst.msk [vmem:[%s8093_s1 + $0x3d9] sm:$0x80] %vm3_vm0, %v1332_v4  }
 0x179   :  { %3164 = vst.msk [vmem:[%s8093_s1 + $0x20] sm:$0x1] %vm3_vm0, %v1311_v5   ;;  %3165 = vst.msk [vmem:[%s8093_s1 + $0x5f] sm:$0x2] %vm3_vm0, %v1311_v5  }
 0x17a   :  { %3166 = vst.msk [vmem:[%s8093_s1 + $0x9e] sm:$0x4] %vm3_vm0, %v1311_v5   ;;  %3167 = vst.msk [vmem:[%s8093_s1 + $0xdd] sm:$0x8] %vm3_vm0, %v1311_v5  }
 0x17b   :  { %3168 = vst.msk [vmem:[%s8093_s1 + $0x11c] sm:$0x10] %vm3_vm0, %v1311_v5   ;;  %3169 = vst.msk [vmem:[%s8093_s1 + $0x15b] sm:$0x20] %vm3_vm0, %v1311_v5  }
 0x17c   :  { %3170 = vst.msk [vmem:[%s8093_s1 + $0x19a] sm:$0x40] %vm3_vm0, %v1311_v5   ;;  %3171 = vst.msk [vmem:[%s8093_s1 + $0x1d9] sm:$0x80] %vm3_vm0, %v1311_v5  }
 0x17d   :  { %3190 = vst.msk [vmem:[%s8093_s1 + $0x221] sm:$0x1] %vm3_vm0, %v1373_v6   ;;  %3191 = vst.msk [vmem:[%s8093_s1 + $0x260] sm:$0x2] %vm3_vm0, %v1373_v6  }
 0x17e   :  { %3192 = vst.msk [vmem:[%s8093_s1 + $0x29f] sm:$0x4] %vm3_vm0, %v1373_v6   ;;  %3193 = vst.msk [vmem:[%s8093_s1 + $0x2de] sm:$0x8] %vm3_vm0, %v1373_v6  }
 0x17f   :  { %3194 = vst.msk [vmem:[%s8093_s1 + $0x31d] sm:$0x10] %vm3_vm0, %v1373_v6   ;;  %3195 = vst.msk [vmem:[%s8093_s1 + $0x35c] sm:$0x20] %vm3_vm0, %v1373_v6  }
 0x180   :  { %3196 = vst.msk [vmem:[%s8093_s1 + $0x39b] sm:$0x40] %vm3_vm0, %v1373_v6   ;;  %3197 = vst.msk [vmem:[%s8093_s1 + $0x3da] sm:$0x80] %vm3_vm0, %v1373_v6  }
 0x181   :  { %3181 = vst.msk [vmem:[%s8093_s1 + $0x21] sm:$0x1] %vm3_vm0, %v1352_v7   ;;  %3182 = vst.msk [vmem:[%s8093_s1 + $0x60] sm:$0x2] %vm3_vm0, %v1352_v7  }
 0x182   :  { %3183 = vst.msk [vmem:[%s8093_s1 + $0x9f] sm:$0x4] %vm3_vm0, %v1352_v7   ;;  %3184 = vst.msk [vmem:[%s8093_s1 + $0xde] sm:$0x8] %vm3_vm0, %v1352_v7  }
 0x183   :  { %3185 = vst.msk [vmem:[%s8093_s1 + $0x11d] sm:$0x10] %vm3_vm0, %v1352_v7   ;;  %3186 = vst.msk [vmem:[%s8093_s1 + $0x15c] sm:$0x20] %vm3_vm0, %v1352_v7  }
 0x184   :  { %3187 = vst.msk [vmem:[%s8093_s1 + $0x19b] sm:$0x40] %vm3_vm0, %v1352_v7   ;;  %3188 = vst.msk [vmem:[%s8093_s1 + $0x1da] sm:$0x80] %vm3_vm0, %v1352_v7  }
 0x185   :  { %3207 = vst.msk [vmem:[%s8093_s1 + $0x222] sm:$0x1] %vm3_vm0, %v1414_v8   ;;  %3208 = vst.msk [vmem:[%s8093_s1 + $0x261] sm:$0x2] %vm3_vm0, %v1414_v8  }
 0x186   :  { %3209 = vst.msk [vmem:[%s8093_s1 + $0x2a0] sm:$0x4] %vm3_vm0, %v1414_v8   ;;  %3210 = vst.msk [vmem:[%s8093_s1 + $0x2df] sm:$0x8] %vm3_vm0, %v1414_v8  }
 0x187   :  { %3211 = vst.msk [vmem:[%s8093_s1 + $0x31e] sm:$0x10] %vm3_vm0, %v1414_v8   ;;  %3212 = vst.msk [vmem:[%s8093_s1 + $0x35d] sm:$0x20] %vm3_vm0, %v1414_v8  }
 0x188   :  { %3213 = vst.msk [vmem:[%s8093_s1 + $0x39c] sm:$0x40] %vm3_vm0, %v1414_v8   ;;  %3214 = vst.msk [vmem:[%s8093_s1 + $0x3db] sm:$0x80] %vm3_vm0, %v1414_v8  }
 0x189   :  { %3198 = vst.msk [vmem:[%s8093_s1 + $0x22] sm:$0x1] %vm3_vm0, %v1393_v9   ;;  %3199 = vst.msk [vmem:[%s8093_s1 + $0x61] sm:$0x2] %vm3_vm0, %v1393_v9  }
 0x18a   :  { %3200 = vst.msk [vmem:[%s8093_s1 + $0xa0] sm:$0x4] %vm3_vm0, %v1393_v9   ;;  %3201 = vst.msk [vmem:[%s8093_s1 + $0xdf] sm:$0x8] %vm3_vm0, %v1393_v9  }
 0x18b   :  { %3202 = vst.msk [vmem:[%s8093_s1 + $0x11e] sm:$0x10] %vm3_vm0, %v1393_v9   ;;  %3203 = vst.msk [vmem:[%s8093_s1 + $0x15d] sm:$0x20] %vm3_vm0, %v1393_v9  }
 0x18c   :  { %3204 = vst.msk [vmem:[%s8093_s1 + $0x19c] sm:$0x40] %vm3_vm0, %v1393_v9   ;;  %3205 = vst.msk [vmem:[%s8093_s1 + $0x1db] sm:$0x80] %vm3_vm0, %v1393_v9  }
 0x18d   :  { %3224 = vst.msk [vmem:[%s8093_s1 + $0x223] sm:$0x1] %vm3_vm0, %v1455_v10   ;;  %3225 = vst.msk [vmem:[%s8093_s1 + $0x262] sm:$0x2] %vm3_vm0, %v1455_v10  }
 0x18e   :  { %3226 = vst.msk [vmem:[%s8093_s1 + $0x2a1] sm:$0x4] %vm3_vm0, %v1455_v10   ;;  %3227 = vst.msk [vmem:[%s8093_s1 + $0x2e0] sm:$0x8] %vm3_vm0, %v1455_v10  }
 0x18f   :  { %3228 = vst.msk [vmem:[%s8093_s1 + $0x31f] sm:$0x10] %vm3_vm0, %v1455_v10   ;;  %3229 = vst.msk [vmem:[%s8093_s1 + $0x35e] sm:$0x20] %vm3_vm0, %v1455_v10  }
 0x190   :  { %3230 = vst.msk [vmem:[%s8093_s1 + $0x39d] sm:$0x40] %vm3_vm0, %v1455_v10   ;;  %3231 = vst.msk [vmem:[%s8093_s1 + $0x3dc] sm:$0x80] %vm3_vm0, %v1455_v10  }
 0x191   :  { %3215 = vst.msk [vmem:[%s8093_s1 + $0x23] sm:$0x1] %vm3_vm0, %v1434_v11   ;;  %3216 = vst.msk [vmem:[%s8093_s1 + $0x62] sm:$0x2] %vm3_vm0, %v1434_v11  }
 0x192   :  { %3217 = vst.msk [vmem:[%s8093_s1 + $0xa1] sm:$0x4] %vm3_vm0, %v1434_v11   ;;  %3218 = vst.msk [vmem:[%s8093_s1 + $0xe0] sm:$0x8] %vm3_vm0, %v1434_v11  }
 0x193   :  { %3219 = vst.msk [vmem:[%s8093_s1 + $0x11f] sm:$0x10] %vm3_vm0, %v1434_v11   ;;  %3220 = vst.msk [vmem:[%s8093_s1 + $0x15e] sm:$0x20] %vm3_vm0, %v1434_v11  }
 0x194   :  { %3221 = vst.msk [vmem:[%s8093_s1 + $0x19d] sm:$0x40] %vm3_vm0, %v1434_v11   ;;  %3222 = vst.msk [vmem:[%s8093_s1 + $0x1dc] sm:$0x80] %vm3_vm0, %v1434_v11  }
 0x195   :  { %3241 = vst.msk [vmem:[%s8093_s1 + $0x224] sm:$0x1] %vm3_vm0, %v1496_v12   ;;  %3242 = vst.msk [vmem:[%s8093_s1 + $0x263] sm:$0x2] %vm3_vm0, %v1496_v12  }
 0x196   :  { %3243 = vst.msk [vmem:[%s8093_s1 + $0x2a2] sm:$0x4] %vm3_vm0, %v1496_v12   ;;  %3244 = vst.msk [vmem:[%s8093_s1 + $0x2e1] sm:$0x8] %vm3_vm0, %v1496_v12  }
 0x197   :  { %3245 = vst.msk [vmem:[%s8093_s1 + $0x320] sm:$0x10] %vm3_vm0, %v1496_v12   ;;  %3246 = vst.msk [vmem:[%s8093_s1 + $0x35f] sm:$0x20] %vm3_vm0, %v1496_v12  }
 0x198   :  { %3247 = vst.msk [vmem:[%s8093_s1 + $0x39e] sm:$0x40] %vm3_vm0, %v1496_v12   ;;  %3248 = vst.msk [vmem:[%s8093_s1 + $0x3dd] sm:$0x80] %vm3_vm0, %v1496_v12  }
 0x199   :  { %3232 = vst.msk [vmem:[%s8093_s1 + $0x24] sm:$0x1] %vm3_vm0, %v1475_v13   ;;  %3233 = vst.msk [vmem:[%s8093_s1 + $0x63] sm:$0x2] %vm3_vm0, %v1475_v13  }
 0x19a   :  { %3234 = vst.msk [vmem:[%s8093_s1 + $0xa2] sm:$0x4] %vm3_vm0, %v1475_v13   ;;  %3235 = vst.msk [vmem:[%s8093_s1 + $0xe1] sm:$0x8] %vm3_vm0, %v1475_v13  }
 0x19b   :  { %3236 = vst.msk [vmem:[%s8093_s1 + $0x120] sm:$0x10] %vm3_vm0, %v1475_v13   ;;  %3237 = vst.msk [vmem:[%s8093_s1 + $0x15f] sm:$0x20] %vm3_vm0, %v1475_v13  }
 0x19c   :  { %3238 = vst.msk [vmem:[%s8093_s1 + $0x19e] sm:$0x40] %vm3_vm0, %v1475_v13   ;;  %3239 = vst.msk [vmem:[%s8093_s1 + $0x1dd] sm:$0x80] %vm3_vm0, %v1475_v13  }
 0x19d   :  { %3258 = vst.msk [vmem:[%s8093_s1 + $0x225] sm:$0x1] %vm3_vm0, %v1537_v14   ;;  %3259 = vst.msk [vmem:[%s8093_s1 + $0x264] sm:$0x2] %vm3_vm0, %v1537_v14  }
 0x19e   :  { %3260 = vst.msk [vmem:[%s8093_s1 + $0x2a3] sm:$0x4] %vm3_vm0, %v1537_v14   ;;  %3261 = vst.msk [vmem:[%s8093_s1 + $0x2e2] sm:$0x8] %vm3_vm0, %v1537_v14  }
 0x19f   :  { %3262 = vst.msk [vmem:[%s8093_s1 + $0x321] sm:$0x10] %vm3_vm0, %v1537_v14   ;;  %3263 = vst.msk [vmem:[%s8093_s1 + $0x360] sm:$0x20] %vm3_vm0, %v1537_v14  }
 0x1a0   :  { %3264 = vst.msk [vmem:[%s8093_s1 + $0x39f] sm:$0x40] %vm3_vm0, %v1537_v14   ;;  %3265 = vst.msk [vmem:[%s8093_s1 + $0x3de] sm:$0x80] %vm3_vm0, %v1537_v14  }
 0x1a1   :  { %3249 = vst.msk [vmem:[%s8093_s1 + $0x25] sm:$0x1] %vm3_vm0, %v1516_v15   ;;  %3250 = vst.msk [vmem:[%s8093_s1 + $0x64] sm:$0x2] %vm3_vm0, %v1516_v15  }
 0x1a2   :  { %3251 = vst.msk [vmem:[%s8093_s1 + $0xa3] sm:$0x4] %vm3_vm0, %v1516_v15   ;;  %3252 = vst.msk [vmem:[%s8093_s1 + $0xe2] sm:$0x8] %vm3_vm0, %v1516_v15  }
 0x1a3   :  { %3253 = vst.msk [vmem:[%s8093_s1 + $0x121] sm:$0x10] %vm3_vm0, %v1516_v15   ;;  %3254 = vst.msk [vmem:[%s8093_s1 + $0x160] sm:$0x20] %vm3_vm0, %v1516_v15  }
 0x1a4   :  { %3255 = vst.msk [vmem:[%s8093_s1 + $0x19f] sm:$0x40] %vm3_vm0, %v1516_v15   ;;  %3256 = vst.msk [vmem:[%s8093_s1 + $0x1de] sm:$0x80] %vm3_vm0, %v1516_v15  }
 0x1a5   :  { %3275 = vst.msk [vmem:[%s8093_s1 + $0x226] sm:$0x1] %vm3_vm0, %v1578_v16   ;;  %3276 = vst.msk [vmem:[%s8093_s1 + $0x265] sm:$0x2] %vm3_vm0, %v1578_v16  }
 0x1a6   :  { %3277 = vst.msk [vmem:[%s8093_s1 + $0x2a4] sm:$0x4] %vm3_vm0, %v1578_v16   ;;  %3278 = vst.msk [vmem:[%s8093_s1 + $0x2e3] sm:$0x8] %vm3_vm0, %v1578_v16  }
 0x1a7   :  { %3279 = vst.msk [vmem:[%s8093_s1 + $0x322] sm:$0x10] %vm3_vm0, %v1578_v16   ;;  %3280 = vst.msk [vmem:[%s8093_s1 + $0x361] sm:$0x20] %vm3_vm0, %v1578_v16  }
 0x1a8   :  { %3281 = vst.msk [vmem:[%s8093_s1 + $0x3a0] sm:$0x40] %vm3_vm0, %v1578_v16   ;;  %3282 = vst.msk [vmem:[%s8093_s1 + $0x3df] sm:$0x80] %vm3_vm0, %v1578_v16  }
 0x1a9   :  { %3266 = vst.msk [vmem:[%s8093_s1 + $0x26] sm:$0x1] %vm3_vm0, %v1557_v17   ;;  %3267 = vst.msk [vmem:[%s8093_s1 + $0x65] sm:$0x2] %vm3_vm0, %v1557_v17  }
 0x1aa   :  { %3268 = vst.msk [vmem:[%s8093_s1 + $0xa4] sm:$0x4] %vm3_vm0, %v1557_v17   ;;  %3269 = vst.msk [vmem:[%s8093_s1 + $0xe3] sm:$0x8] %vm3_vm0, %v1557_v17  }
 0x1ab   :  { %3270 = vst.msk [vmem:[%s8093_s1 + $0x122] sm:$0x10] %vm3_vm0, %v1557_v17   ;;  %3271 = vst.msk [vmem:[%s8093_s1 + $0x161] sm:$0x20] %vm3_vm0, %v1557_v17  }
 0x1ac   :  { %3272 = vst.msk [vmem:[%s8093_s1 + $0x1a0] sm:$0x40] %vm3_vm0, %v1557_v17   ;;  %3273 = vst.msk [vmem:[%s8093_s1 + $0x1df] sm:$0x80] %vm3_vm0, %v1557_v17  }
 0x1ad   :  { %3292 = vst.msk [vmem:[%s8093_s1 + $0x227] sm:$0x1] %vm3_vm0, %v1619_v18   ;;  %3293 = vst.msk [vmem:[%s8093_s1 + $0x266] sm:$0x2] %vm3_vm0, %v1619_v18  }
 0x1ae   :  { %3294 = vst.msk [vmem:[%s8093_s1 + $0x2a5] sm:$0x4] %vm3_vm0, %v1619_v18   ;;  %3295 = vst.msk [vmem:[%s8093_s1 + $0x2e4] sm:$0x8] %vm3_vm0, %v1619_v18  }
 0x1af   :  { %3296 = vst.msk [vmem:[%s8093_s1 + $0x323] sm:$0x10] %vm3_vm0, %v1619_v18   ;;  %3297 = vst.msk [vmem:[%s8093_s1 + $0x362] sm:$0x20] %vm3_vm0, %v1619_v18  }
 0x1b0   :  { %3298 = vst.msk [vmem:[%s8093_s1 + $0x3a1] sm:$0x40] %vm3_vm0, %v1619_v18   ;;  %3299 = vst.msk [vmem:[%s8093_s1 + $0x3e0] sm:$0x80] %vm3_vm0, %v1619_v18  }
 0x1b1   :  { %3283 = vst.msk [vmem:[%s8093_s1 + $0x27] sm:$0x1] %vm3_vm0, %v1598_v19   ;;  %3284 = vst.msk [vmem:[%s8093_s1 + $0x66] sm:$0x2] %vm3_vm0, %v1598_v19  }
 0x1b2   :  { %3285 = vst.msk [vmem:[%s8093_s1 + $0xa5] sm:$0x4] %vm3_vm0, %v1598_v19   ;;  %3286 = vst.msk [vmem:[%s8093_s1 + $0xe4] sm:$0x8] %vm3_vm0, %v1598_v19  }
 0x1b3   :  { %3287 = vst.msk [vmem:[%s8093_s1 + $0x123] sm:$0x10] %vm3_vm0, %v1598_v19   ;;  %3288 = vst.msk [vmem:[%s8093_s1 + $0x162] sm:$0x20] %vm3_vm0, %v1598_v19  }
 0x1b4   :  { %3289 = vst.msk [vmem:[%s8093_s1 + $0x1a1] sm:$0x40] %vm3_vm0, %v1598_v19   ;;  %3290 = vst.msk [vmem:[%s8093_s1 + $0x1e0] sm:$0x80] %vm3_vm0, %v1598_v19  }
 0x1b5   :  { %3309 = vst.msk [vmem:[%s8093_s1 + $0x228] sm:$0x1] %vm3_vm0, %v1660_v20   ;;  %3310 = vst.msk [vmem:[%s8093_s1 + $0x267] sm:$0x2] %vm3_vm0, %v1660_v20  }
 0x1b6   :  { %3311 = vst.msk [vmem:[%s8093_s1 + $0x2a6] sm:$0x4] %vm3_vm0, %v1660_v20   ;;  %3312 = vst.msk [vmem:[%s8093_s1 + $0x2e5] sm:$0x8] %vm3_vm0, %v1660_v20  }
 0x1b7   :  { %3313 = vst.msk [vmem:[%s8093_s1 + $0x324] sm:$0x10] %vm3_vm0, %v1660_v20   ;;  %3314 = vst.msk [vmem:[%s8093_s1 + $0x363] sm:$0x20] %vm3_vm0, %v1660_v20  }
 0x1b8   :  { %3315 = vst.msk [vmem:[%s8093_s1 + $0x3a2] sm:$0x40] %vm3_vm0, %v1660_v20   ;;  %3316 = vst.msk [vmem:[%s8093_s1 + $0x3e1] sm:$0x80] %vm3_vm0, %v1660_v20  }
 0x1b9   :  { %3300 = vst.msk [vmem:[%s8093_s1 + $0x28] sm:$0x1] %vm3_vm0, %v1639_v21   ;;  %3301 = vst.msk [vmem:[%s8093_s1 + $0x67] sm:$0x2] %vm3_vm0, %v1639_v21  }
 0x1ba   :  { %3302 = vst.msk [vmem:[%s8093_s1 + $0xa6] sm:$0x4] %vm3_vm0, %v1639_v21   ;;  %3303 = vst.msk [vmem:[%s8093_s1 + $0xe5] sm:$0x8] %vm3_vm0, %v1639_v21  }
 0x1bb   :  { %3304 = vst.msk [vmem:[%s8093_s1 + $0x124] sm:$0x10] %vm3_vm0, %v1639_v21   ;;  %3305 = vst.msk [vmem:[%s8093_s1 + $0x163] sm:$0x20] %vm3_vm0, %v1639_v21  }
 0x1bc   :  { %3306 = vst.msk [vmem:[%s8093_s1 + $0x1a2] sm:$0x40] %vm3_vm0, %v1639_v21   ;;  %3307 = vst.msk [vmem:[%s8093_s1 + $0x1e1] sm:$0x80] %vm3_vm0, %v1639_v21  }
 0x1bd   :  { %3326 = vst.msk [vmem:[%s8093_s1 + $0x229] sm:$0x1] %vm3_vm0, %v1701_v22   ;;  %3327 = vst.msk [vmem:[%s8093_s1 + $0x268] sm:$0x2] %vm3_vm0, %v1701_v22  }
 0x1be   :  { %3328 = vst.msk [vmem:[%s8093_s1 + $0x2a7] sm:$0x4] %vm3_vm0, %v1701_v22   ;;  %3329 = vst.msk [vmem:[%s8093_s1 + $0x2e6] sm:$0x8] %vm3_vm0, %v1701_v22  }
 0x1bf   :  { %3330 = vst.msk [vmem:[%s8093_s1 + $0x325] sm:$0x10] %vm3_vm0, %v1701_v22   ;;  %3331 = vst.msk [vmem:[%s8093_s1 + $0x364] sm:$0x20] %vm3_vm0, %v1701_v22  }
 0x1c0   :  { %3332 = vst.msk [vmem:[%s8093_s1 + $0x3a3] sm:$0x40] %vm3_vm0, %v1701_v22   ;;  %3333 = vst.msk [vmem:[%s8093_s1 + $0x3e2] sm:$0x80] %vm3_vm0, %v1701_v22  }
 0x1c1   :  { %3317 = vst.msk [vmem:[%s8093_s1 + $0x29] sm:$0x1] %vm3_vm0, %v1680_v23   ;;  %3318 = vst.msk [vmem:[%s8093_s1 + $0x68] sm:$0x2] %vm3_vm0, %v1680_v23  }
 0x1c2   :  { %3319 = vst.msk [vmem:[%s8093_s1 + $0xa7] sm:$0x4] %vm3_vm0, %v1680_v23   ;;  %3320 = vst.msk [vmem:[%s8093_s1 + $0xe6] sm:$0x8] %vm3_vm0, %v1680_v23  }
 0x1c3   :  { %3321 = vst.msk [vmem:[%s8093_s1 + $0x125] sm:$0x10] %vm3_vm0, %v1680_v23   ;;  %3322 = vst.msk [vmem:[%s8093_s1 + $0x164] sm:$0x20] %vm3_vm0, %v1680_v23  }
 0x1c4   :  { %3323 = vst.msk [vmem:[%s8093_s1 + $0x1a3] sm:$0x40] %vm3_vm0, %v1680_v23   ;;  %3324 = vst.msk [vmem:[%s8093_s1 + $0x1e2] sm:$0x80] %vm3_vm0, %v1680_v23  }
 0x1c5   :  { %3343 = vst.msk [vmem:[%s8093_s1 + $0x22a] sm:$0x1] %vm3_vm0, %v1742_v24   ;;  %3344 = vst.msk [vmem:[%s8093_s1 + $0x269] sm:$0x2] %vm3_vm0, %v1742_v24  }
 0x1c6   :  { %3345 = vst.msk [vmem:[%s8093_s1 + $0x2a8] sm:$0x4] %vm3_vm0, %v1742_v24   ;;  %3346 = vst.msk [vmem:[%s8093_s1 + $0x2e7] sm:$0x8] %vm3_vm0, %v1742_v24  }
 0x1c7   :  { %3347 = vst.msk [vmem:[%s8093_s1 + $0x326] sm:$0x10] %vm3_vm0, %v1742_v24   ;;  %3348 = vst.msk [vmem:[%s8093_s1 + $0x365] sm:$0x20] %vm3_vm0, %v1742_v24  }
 0x1c8   :  { %3349 = vst.msk [vmem:[%s8093_s1 + $0x3a4] sm:$0x40] %vm3_vm0, %v1742_v24   ;;  %3350 = vst.msk [vmem:[%s8093_s1 + $0x3e3] sm:$0x80] %vm3_vm0, %v1742_v24  }
 0x1c9   :  { %3334 = vst.msk [vmem:[%s8093_s1 + $0x2a] sm:$0x1] %vm3_vm0, %v1721_v25   ;;  %3335 = vst.msk [vmem:[%s8093_s1 + $0x69] sm:$0x2] %vm3_vm0, %v1721_v25  }
 0x1ca   :  { %3336 = vst.msk [vmem:[%s8093_s1 + $0xa8] sm:$0x4] %vm3_vm0, %v1721_v25   ;;  %3337 = vst.msk [vmem:[%s8093_s1 + $0xe7] sm:$0x8] %vm3_vm0, %v1721_v25  }
 0x1cb   :  { %3338 = vst.msk [vmem:[%s8093_s1 + $0x126] sm:$0x10] %vm3_vm0, %v1721_v25   ;;  %3339 = vst.msk [vmem:[%s8093_s1 + $0x165] sm:$0x20] %vm3_vm0, %v1721_v25  }
 0x1cc   :  { %3340 = vst.msk [vmem:[%s8093_s1 + $0x1a4] sm:$0x40] %vm3_vm0, %v1721_v25   ;;  %3341 = vst.msk [vmem:[%s8093_s1 + $0x1e3] sm:$0x80] %vm3_vm0, %v1721_v25  }
 0x1cd   :  { %3360 = vst.msk [vmem:[%s8093_s1 + $0x22b] sm:$0x1] %vm3_vm0, %v1783_v26   ;;  %3361 = vst.msk [vmem:[%s8093_s1 + $0x26a] sm:$0x2] %vm3_vm0, %v1783_v26  }
 0x1ce   :  { %3362 = vst.msk [vmem:[%s8093_s1 + $0x2a9] sm:$0x4] %vm3_vm0, %v1783_v26   ;;  %3363 = vst.msk [vmem:[%s8093_s1 + $0x2e8] sm:$0x8] %vm3_vm0, %v1783_v26  }
 0x1cf   :  { %3364 = vst.msk [vmem:[%s8093_s1 + $0x327] sm:$0x10] %vm3_vm0, %v1783_v26   ;;  %3365 = vst.msk [vmem:[%s8093_s1 + $0x366] sm:$0x20] %vm3_vm0, %v1783_v26  }
 0x1d0   :  { %3366 = vst.msk [vmem:[%s8093_s1 + $0x3a5] sm:$0x40] %vm3_vm0, %v1783_v26   ;;  %3367 = vst.msk [vmem:[%s8093_s1 + $0x3e4] sm:$0x80] %vm3_vm0, %v1783_v26  }
 0x1d1   :  { %3351 = vst.msk [vmem:[%s8093_s1 + $0x2b] sm:$0x1] %vm3_vm0, %v1762_v27   ;;  %3352 = vst.msk [vmem:[%s8093_s1 + $0x6a] sm:$0x2] %vm3_vm0, %v1762_v27  }
 0x1d2   :  { %3353 = vst.msk [vmem:[%s8093_s1 + $0xa9] sm:$0x4] %vm3_vm0, %v1762_v27   ;;  %3354 = vst.msk [vmem:[%s8093_s1 + $0xe8] sm:$0x8] %vm3_vm0, %v1762_v27  }
 0x1d3   :  { %3355 = vst.msk [vmem:[%s8093_s1 + $0x127] sm:$0x10] %vm3_vm0, %v1762_v27   ;;  %3356 = vst.msk [vmem:[%s8093_s1 + $0x166] sm:$0x20] %vm3_vm0, %v1762_v27  }
 0x1d4   :  { %3357 = vst.msk [vmem:[%s8093_s1 + $0x1a5] sm:$0x40] %vm3_vm0, %v1762_v27   ;;  %3358 = vst.msk [vmem:[%s8093_s1 + $0x1e4] sm:$0x80] %vm3_vm0, %v1762_v27  }
 0x1d5   :  { %3377 = vst.msk [vmem:[%s8093_s1 + $0x22c] sm:$0x1] %vm3_vm0, %v1824_v28   ;;  %3378 = vst.msk [vmem:[%s8093_s1 + $0x26b] sm:$0x2] %vm3_vm0, %v1824_v28  }
 0x1d6   :  { %3379 = vst.msk [vmem:[%s8093_s1 + $0x2aa] sm:$0x4] %vm3_vm0, %v1824_v28   ;;  %3380 = vst.msk [vmem:[%s8093_s1 + $0x2e9] sm:$0x8] %vm3_vm0, %v1824_v28  }
 0x1d7   :  { %3381 = vst.msk [vmem:[%s8093_s1 + $0x328] sm:$0x10] %vm3_vm0, %v1824_v28   ;;  %3382 = vst.msk [vmem:[%s8093_s1 + $0x367] sm:$0x20] %vm3_vm0, %v1824_v28  }
 0x1d8   :  { %3383 = vst.msk [vmem:[%s8093_s1 + $0x3a6] sm:$0x40] %vm3_vm0, %v1824_v28   ;;  %3384 = vst.msk [vmem:[%s8093_s1 + $0x3e5] sm:$0x80] %vm3_vm0, %v1824_v28  }
 0x1d9   :  { %3368 = vst.msk [vmem:[%s8093_s1 + $0x2c] sm:$0x1] %vm3_vm0, %v1803_v29   ;;  %3369 = vst.msk [vmem:[%s8093_s1 + $0x6b] sm:$0x2] %vm3_vm0, %v1803_v29  }
 0x1da   :  { %3370 = vst.msk [vmem:[%s8093_s1 + $0xaa] sm:$0x4] %vm3_vm0, %v1803_v29   ;;  %3371 = vst.msk [vmem:[%s8093_s1 + $0xe9] sm:$0x8] %vm3_vm0, %v1803_v29  }
 0x1db   :  { %3372 = vst.msk [vmem:[%s8093_s1 + $0x128] sm:$0x10] %vm3_vm0, %v1803_v29   ;;  %3373 = vst.msk [vmem:[%s8093_s1 + $0x167] sm:$0x20] %vm3_vm0, %v1803_v29  }
 0x1dc   :  { %3374 = vst.msk [vmem:[%s8093_s1 + $0x1a6] sm:$0x40] %vm3_vm0, %v1803_v29   ;;  %3375 = vst.msk [vmem:[%s8093_s1 + $0x1e5] sm:$0x80] %vm3_vm0, %v1803_v29  }
 0x1dd   :  { %3394 = vst.msk [vmem:[%s8093_s1 + $0x22d] sm:$0x1] %vm3_vm0, %v1865_v30   ;;  %3395 = vst.msk [vmem:[%s8093_s1 + $0x26c] sm:$0x2] %vm3_vm0, %v1865_v30  }
 0x1de   :  { %3396 = vst.msk [vmem:[%s8093_s1 + $0x2ab] sm:$0x4] %vm3_vm0, %v1865_v30   ;;  %3397 = vst.msk [vmem:[%s8093_s1 + $0x2ea] sm:$0x8] %vm3_vm0, %v1865_v30  }
 0x1df   :  { %3398 = vst.msk [vmem:[%s8093_s1 + $0x329] sm:$0x10] %vm3_vm0, %v1865_v30   ;;  %3399 = vst.msk [vmem:[%s8093_s1 + $0x368] sm:$0x20] %vm3_vm0, %v1865_v30  }
 0x1e0   :  { %3400 = vst.msk [vmem:[%s8093_s1 + $0x3a7] sm:$0x40] %vm3_vm0, %v1865_v30   ;;  %3401 = vst.msk [vmem:[%s8093_s1 + $0x3e6] sm:$0x80] %vm3_vm0, %v1865_v30  }
 0x1e1   :  { %3385 = vst.msk [vmem:[%s8093_s1 + $0x2d] sm:$0x1] %vm3_vm0, %v1844_v31   ;;  %3386 = vst.msk [vmem:[%s8093_s1 + $0x6c] sm:$0x2] %vm3_vm0, %v1844_v31  }
 0x1e2   :  { %3387 = vst.msk [vmem:[%s8093_s1 + $0xab] sm:$0x4] %vm3_vm0, %v1844_v31   ;;  %3388 = vst.msk [vmem:[%s8093_s1 + $0xea] sm:$0x8] %vm3_vm0, %v1844_v31  }
 0x1e3   :  { %3389 = vst.msk [vmem:[%s8093_s1 + $0x129] sm:$0x10] %vm3_vm0, %v1844_v31   ;;  %3390 = vst.msk [vmem:[%s8093_s1 + $0x168] sm:$0x20] %vm3_vm0, %v1844_v31  }
 0x1e4   :  { %3391 = vst.msk [vmem:[%s8093_s1 + $0x1a7] sm:$0x40] %vm3_vm0, %v1844_v31   ;;  %3392 = vst.msk [vmem:[%s8093_s1 + $0x1e6] sm:$0x80] %vm3_vm0, %v1844_v31  }
 0x1e5   :  { %3411 = vst.msk [vmem:[%s8093_s1 + $0x22e] sm:$0x1] %vm3_vm0, %v1906_v32   ;;  %3412 = vst.msk [vmem:[%s8093_s1 + $0x26d] sm:$0x2] %vm3_vm0, %v1906_v32  }
 0x1e6   :  { %3413 = vst.msk [vmem:[%s8093_s1 + $0x2ac] sm:$0x4] %vm3_vm0, %v1906_v32   ;;  %3414 = vst.msk [vmem:[%s8093_s1 + $0x2eb] sm:$0x8] %vm3_vm0, %v1906_v32  }
 0x1e7   :  { %3415 = vst.msk [vmem:[%s8093_s1 + $0x32a] sm:$0x10] %vm3_vm0, %v1906_v32   ;;  %3416 = vst.msk [vmem:[%s8093_s1 + $0x369] sm:$0x20] %vm3_vm0, %v1906_v32  }
 0x1e8   :  { %3417 = vst.msk [vmem:[%s8093_s1 + $0x3a8] sm:$0x40] %vm3_vm0, %v1906_v32   ;;  %3418 = vst.msk [vmem:[%s8093_s1 + $0x3e7] sm:$0x80] %vm3_vm0, %v1906_v32  }
 0x1e9   :  { %3402 = vst.msk [vmem:[%s8093_s1 + $0x2e] sm:$0x1] %vm3_vm0, %v1885_v33   ;;  %3403 = vst.msk [vmem:[%s8093_s1 + $0x6d] sm:$0x2] %vm3_vm0, %v1885_v33  }
 0x1ea   :  { %3404 = vst.msk [vmem:[%s8093_s1 + $0xac] sm:$0x4] %vm3_vm0, %v1885_v33   ;;  %3405 = vst.msk [vmem:[%s8093_s1 + $0xeb] sm:$0x8] %vm3_vm0, %v1885_v33  }
 0x1eb   :  { %3406 = vst.msk [vmem:[%s8093_s1 + $0x12a] sm:$0x10] %vm3_vm0, %v1885_v33   ;;  %3407 = vst.msk [vmem:[%s8093_s1 + $0x169] sm:$0x20] %vm3_vm0, %v1885_v33  }
 0x1ec   :  { %3408 = vst.msk [vmem:[%s8093_s1 + $0x1a8] sm:$0x40] %vm3_vm0, %v1885_v33   ;;  %3409 = vst.msk [vmem:[%s8093_s1 + $0x1e7] sm:$0x80] %vm3_vm0, %v1885_v33  }
 0x1ed   :  { %3428 = vst.msk [vmem:[%s8093_s1 + $0x22f] sm:$0x1] %vm3_vm0, %v1947_v34   ;;  %3429 = vst.msk [vmem:[%s8093_s1 + $0x26e] sm:$0x2] %vm3_vm0, %v1947_v34  }
 0x1ee   :  { %3430 = vst.msk [vmem:[%s8093_s1 + $0x2ad] sm:$0x4] %vm3_vm0, %v1947_v34   ;;  %3431 = vst.msk [vmem:[%s8093_s1 + $0x2ec] sm:$0x8] %vm3_vm0, %v1947_v34  }
 0x1ef   :  { %3432 = vst.msk [vmem:[%s8093_s1 + $0x32b] sm:$0x10] %vm3_vm0, %v1947_v34   ;;  %3433 = vst.msk [vmem:[%s8093_s1 + $0x36a] sm:$0x20] %vm3_vm0, %v1947_v34  }
 0x1f0   :  { %3434 = vst.msk [vmem:[%s8093_s1 + $0x3a9] sm:$0x40] %vm3_vm0, %v1947_v34   ;;  %3435 = vst.msk [vmem:[%s8093_s1 + $0x3e8] sm:$0x80] %vm3_vm0, %v1947_v34  }
 0x1f1   :  { %3419 = vst.msk [vmem:[%s8093_s1 + $0x2f] sm:$0x1] %vm3_vm0, %v1926_v35   ;;  %3420 = vst.msk [vmem:[%s8093_s1 + $0x6e] sm:$0x2] %vm3_vm0, %v1926_v35  }
 0x1f2   :  { %3421 = vst.msk [vmem:[%s8093_s1 + $0xad] sm:$0x4] %vm3_vm0, %v1926_v35   ;;  %3422 = vst.msk [vmem:[%s8093_s1 + $0xec] sm:$0x8] %vm3_vm0, %v1926_v35  }
 0x1f3   :  { %3423 = vst.msk [vmem:[%s8093_s1 + $0x12b] sm:$0x10] %vm3_vm0, %v1926_v35   ;;  %3424 = vst.msk [vmem:[%s8093_s1 + $0x16a] sm:$0x20] %vm3_vm0, %v1926_v35  }
 0x1f4   :  { %3425 = vst.msk [vmem:[%s8093_s1 + $0x1a9] sm:$0x40] %vm3_vm0, %v1926_v35   ;;  %3426 = vst.msk [vmem:[%s8093_s1 + $0x1e8] sm:$0x80] %vm3_vm0, %v1926_v35  }
 0x1f5   :  { %3445 = vst.msk [vmem:[%s8093_s1 + $0x230] sm:$0x1] %vm3_vm0, %v1988_v36   ;;  %3446 = vst.msk [vmem:[%s8093_s1 + $0x26f] sm:$0x2] %vm3_vm0, %v1988_v36  }
 0x1f6   :  { %3447 = vst.msk [vmem:[%s8093_s1 + $0x2ae] sm:$0x4] %vm3_vm0, %v1988_v36   ;;  %3448 = vst.msk [vmem:[%s8093_s1 + $0x2ed] sm:$0x8] %vm3_vm0, %v1988_v36  }
 0x1f7   :  { %3449 = vst.msk [vmem:[%s8093_s1 + $0x32c] sm:$0x10] %vm3_vm0, %v1988_v36   ;;  %3450 = vst.msk [vmem:[%s8093_s1 + $0x36b] sm:$0x20] %vm3_vm0, %v1988_v36  }
 0x1f8   :  { %3451 = vst.msk [vmem:[%s8093_s1 + $0x3aa] sm:$0x40] %vm3_vm0, %v1988_v36   ;;  %3452 = vst.msk [vmem:[%s8093_s1 + $0x3e9] sm:$0x80] %vm3_vm0, %v1988_v36  }
 0x1f9   :  { %3436 = vst.msk [vmem:[%s8093_s1 + $0x30] sm:$0x1] %vm3_vm0, %v1967_v37   ;;  %3437 = vst.msk [vmem:[%s8093_s1 + $0x6f] sm:$0x2] %vm3_vm0, %v1967_v37  }
 0x1fa   :  { %3438 = vst.msk [vmem:[%s8093_s1 + $0xae] sm:$0x4] %vm3_vm0, %v1967_v37   ;;  %3439 = vst.msk [vmem:[%s8093_s1 + $0xed] sm:$0x8] %vm3_vm0, %v1967_v37  }
 0x1fb   :  { %3440 = vst.msk [vmem:[%s8093_s1 + $0x12c] sm:$0x10] %vm3_vm0, %v1967_v37   ;;  %3441 = vst.msk [vmem:[%s8093_s1 + $0x16b] sm:$0x20] %vm3_vm0, %v1967_v37  }
 0x1fc   :  { %3442 = vst.msk [vmem:[%s8093_s1 + $0x1aa] sm:$0x40] %vm3_vm0, %v1967_v37   ;;  %3443 = vst.msk [vmem:[%s8093_s1 + $0x1e9] sm:$0x80] %vm3_vm0, %v1967_v37  }
 0x1fd   :  { %3462 = vst.msk [vmem:[%s8093_s1 + $0x231] sm:$0x1] %vm3_vm0, %v2029_v38   ;;  %3463 = vst.msk [vmem:[%s8093_s1 + $0x270] sm:$0x2] %vm3_vm0, %v2029_v38  }
 0x1fe   :  { %3464 = vst.msk [vmem:[%s8093_s1 + $0x2af] sm:$0x4] %vm3_vm0, %v2029_v38   ;;  %3465 = vst.msk [vmem:[%s8093_s1 + $0x2ee] sm:$0x8] %vm3_vm0, %v2029_v38  }
 0x1ff   :  { %3466 = vst.msk [vmem:[%s8093_s1 + $0x32d] sm:$0x10] %vm3_vm0, %v2029_v38   ;;  %3467 = vst.msk [vmem:[%s8093_s1 + $0x36c] sm:$0x20] %vm3_vm0, %v2029_v38  }
 0x200   :  { %3468 = vst.msk [vmem:[%s8093_s1 + $0x3ab] sm:$0x40] %vm3_vm0, %v2029_v38   ;;  %3469 = vst.msk [vmem:[%s8093_s1 + $0x3ea] sm:$0x80] %vm3_vm0, %v2029_v38  }
 0x201   :  { %3453 = vst.msk [vmem:[%s8093_s1 + $0x31] sm:$0x1] %vm3_vm0, %v2008_v39   ;;  %3454 = vst.msk [vmem:[%s8093_s1 + $0x70] sm:$0x2] %vm3_vm0, %v2008_v39  }
 0x202   :  { %3455 = vst.msk [vmem:[%s8093_s1 + $0xaf] sm:$0x4] %vm3_vm0, %v2008_v39   ;;  %3456 = vst.msk [vmem:[%s8093_s1 + $0xee] sm:$0x8] %vm3_vm0, %v2008_v39  }
 0x203   :  { %3457 = vst.msk [vmem:[%s8093_s1 + $0x12d] sm:$0x10] %vm3_vm0, %v2008_v39   ;;  %3458 = vst.msk [vmem:[%s8093_s1 + $0x16c] sm:$0x20] %vm3_vm0, %v2008_v39  }
 0x204   :  { %3459 = vst.msk [vmem:[%s8093_s1 + $0x1ab] sm:$0x40] %vm3_vm0, %v2008_v39   ;;  %3460 = vst.msk [vmem:[%s8093_s1 + $0x1ea] sm:$0x80] %vm3_vm0, %v2008_v39  }
 0x205   :  { %3479 = vst.msk [vmem:[%s8093_s1 + $0x232] sm:$0x1] %vm3_vm0, %v2070_v40   ;;  %3480 = vst.msk [vmem:[%s8093_s1 + $0x271] sm:$0x2] %vm3_vm0, %v2070_v40  }
 0x206   :  { %3481 = vst.msk [vmem:[%s8093_s1 + $0x2b0] sm:$0x4] %vm3_vm0, %v2070_v40   ;;  %3482 = vst.msk [vmem:[%s8093_s1 + $0x2ef] sm:$0x8] %vm3_vm0, %v2070_v40  }
 0x207   :  { %3483 = vst.msk [vmem:[%s8093_s1 + $0x32e] sm:$0x10] %vm3_vm0, %v2070_v40   ;;  %3484 = vst.msk [vmem:[%s8093_s1 + $0x36d] sm:$0x20] %vm3_vm0, %v2070_v40  }
 0x208   :  { %3485 = vst.msk [vmem:[%s8093_s1 + $0x3ac] sm:$0x40] %vm3_vm0, %v2070_v40   ;;  %3486 = vst.msk [vmem:[%s8093_s1 + $0x3eb] sm:$0x80] %vm3_vm0, %v2070_v40  }
 0x209   :  { %3470 = vst.msk [vmem:[%s8093_s1 + $0x32] sm:$0x1] %vm3_vm0, %v2049_v41   ;;  %3471 = vst.msk [vmem:[%s8093_s1 + $0x71] sm:$0x2] %vm3_vm0, %v2049_v41  }
 0x20a   :  { %3472 = vst.msk [vmem:[%s8093_s1 + $0xb0] sm:$0x4] %vm3_vm0, %v2049_v41   ;;  %3473 = vst.msk [vmem:[%s8093_s1 + $0xef] sm:$0x8] %vm3_vm0, %v2049_v41  }
 0x20b   :  { %3474 = vst.msk [vmem:[%s8093_s1 + $0x12e] sm:$0x10] %vm3_vm0, %v2049_v41   ;;  %3475 = vst.msk [vmem:[%s8093_s1 + $0x16d] sm:$0x20] %vm3_vm0, %v2049_v41  }
 0x20c   :  { %3476 = vst.msk [vmem:[%s8093_s1 + $0x1ac] sm:$0x40] %vm3_vm0, %v2049_v41   ;;  %3477 = vst.msk [vmem:[%s8093_s1 + $0x1eb] sm:$0x80] %vm3_vm0, %v2049_v41  }
 0x20d   :  { %3496 = vst.msk [vmem:[%s8093_s1 + $0x233] sm:$0x1] %vm3_vm0, %v2111_v42   ;;  %3497 = vst.msk [vmem:[%s8093_s1 + $0x272] sm:$0x2] %vm3_vm0, %v2111_v42  }
 0x20e   :  { %3498 = vst.msk [vmem:[%s8093_s1 + $0x2b1] sm:$0x4] %vm3_vm0, %v2111_v42   ;;  %3499 = vst.msk [vmem:[%s8093_s1 + $0x2f0] sm:$0x8] %vm3_vm0, %v2111_v42  }
 0x20f   :  { %3500 = vst.msk [vmem:[%s8093_s1 + $0x32f] sm:$0x10] %vm3_vm0, %v2111_v42   ;;  %3501 = vst.msk [vmem:[%s8093_s1 + $0x36e] sm:$0x20] %vm3_vm0, %v2111_v42  }
 0x210   :  { %3502 = vst.msk [vmem:[%s8093_s1 + $0x3ad] sm:$0x40] %vm3_vm0, %v2111_v42   ;;  %3503 = vst.msk [vmem:[%s8093_s1 + $0x3ec] sm:$0x80] %vm3_vm0, %v2111_v42  }
 0x211   :  { %3487 = vst.msk [vmem:[%s8093_s1 + $0x33] sm:$0x1] %vm3_vm0, %v2090_v43   ;;  %3488 = vst.msk [vmem:[%s8093_s1 + $0x72] sm:$0x2] %vm3_vm0, %v2090_v43  }
 0x212   :  { %3489 = vst.msk [vmem:[%s8093_s1 + $0xb1] sm:$0x4] %vm3_vm0, %v2090_v43   ;;  %3490 = vst.msk [vmem:[%s8093_s1 + $0xf0] sm:$0x8] %vm3_vm0, %v2090_v43  }
 0x213   :  { %3491 = vst.msk [vmem:[%s8093_s1 + $0x12f] sm:$0x10] %vm3_vm0, %v2090_v43   ;;  %3492 = vst.msk [vmem:[%s8093_s1 + $0x16e] sm:$0x20] %vm3_vm0, %v2090_v43  }
 0x214   :  { %3493 = vst.msk [vmem:[%s8093_s1 + $0x1ad] sm:$0x40] %vm3_vm0, %v2090_v43   ;;  %3494 = vst.msk [vmem:[%s8093_s1 + $0x1ec] sm:$0x80] %vm3_vm0, %v2090_v43  }
 0x215   :  { %3513 = vst.msk [vmem:[%s8093_s1 + $0x234] sm:$0x1] %vm3_vm0, %v2152_v44   ;;  %3514 = vst.msk [vmem:[%s8093_s1 + $0x273] sm:$0x2] %vm3_vm0, %v2152_v44  }
 0x216   :  { %3515 = vst.msk [vmem:[%s8093_s1 + $0x2b2] sm:$0x4] %vm3_vm0, %v2152_v44   ;;  %3516 = vst.msk [vmem:[%s8093_s1 + $0x2f1] sm:$0x8] %vm3_vm0, %v2152_v44  }
 0x217   :  { %3517 = vst.msk [vmem:[%s8093_s1 + $0x330] sm:$0x10] %vm3_vm0, %v2152_v44   ;;  %3518 = vst.msk [vmem:[%s8093_s1 + $0x36f] sm:$0x20] %vm3_vm0, %v2152_v44  }
 0x218   :  { %3519 = vst.msk [vmem:[%s8093_s1 + $0x3ae] sm:$0x40] %vm3_vm0, %v2152_v44   ;;  %3520 = vst.msk [vmem:[%s8093_s1 + $0x3ed] sm:$0x80] %vm3_vm0, %v2152_v44  }
 0x219   :  { %3504 = vst.msk [vmem:[%s8093_s1 + $0x34] sm:$0x1] %vm3_vm0, %v2131_v45   ;;  %3505 = vst.msk [vmem:[%s8093_s1 + $0x73] sm:$0x2] %vm3_vm0, %v2131_v45  }
 0x21a   :  { %3506 = vst.msk [vmem:[%s8093_s1 + $0xb2] sm:$0x4] %vm3_vm0, %v2131_v45   ;;  %3507 = vst.msk [vmem:[%s8093_s1 + $0xf1] sm:$0x8] %vm3_vm0, %v2131_v45  }
 0x21b   :  { %3508 = vst.msk [vmem:[%s8093_s1 + $0x130] sm:$0x10] %vm3_vm0, %v2131_v45   ;;  %3509 = vst.msk [vmem:[%s8093_s1 + $0x16f] sm:$0x20] %vm3_vm0, %v2131_v45  }
 0x21c   :  { %3510 = vst.msk [vmem:[%s8093_s1 + $0x1ae] sm:$0x40] %vm3_vm0, %v2131_v45   ;;  %3511 = vst.msk [vmem:[%s8093_s1 + $0x1ed] sm:$0x80] %vm3_vm0, %v2131_v45  }
 0x21d   :  { %3530 = vst.msk [vmem:[%s8093_s1 + $0x235] sm:$0x1] %vm3_vm0, %v2193_v46   ;;  %3531 = vst.msk [vmem:[%s8093_s1 + $0x274] sm:$0x2] %vm3_vm0, %v2193_v46  }
 0x21e   :  { %3532 = vst.msk [vmem:[%s8093_s1 + $0x2b3] sm:$0x4] %vm3_vm0, %v2193_v46   ;;  %3533 = vst.msk [vmem:[%s8093_s1 + $0x2f2] sm:$0x8] %vm3_vm0, %v2193_v46  }
 0x21f   :  { %3534 = vst.msk [vmem:[%s8093_s1 + $0x331] sm:$0x10] %vm3_vm0, %v2193_v46   ;;  %3535 = vst.msk [vmem:[%s8093_s1 + $0x370] sm:$0x20] %vm3_vm0, %v2193_v46  }
 0x220   :  { %3536 = vst.msk [vmem:[%s8093_s1 + $0x3af] sm:$0x40] %vm3_vm0, %v2193_v46   ;;  %3537 = vst.msk [vmem:[%s8093_s1 + $0x3ee] sm:$0x80] %vm3_vm0, %v2193_v46  }
 0x221   :  { %3521 = vst.msk [vmem:[%s8093_s1 + $0x35] sm:$0x1] %vm3_vm0, %v2172_v47   ;;  %3522 = vst.msk [vmem:[%s8093_s1 + $0x74] sm:$0x2] %vm3_vm0, %v2172_v47  }
 0x222   :  { %3523 = vst.msk [vmem:[%s8093_s1 + $0xb3] sm:$0x4] %vm3_vm0, %v2172_v47   ;;  %3524 = vst.msk [vmem:[%s8093_s1 + $0xf2] sm:$0x8] %vm3_vm0, %v2172_v47  }
 0x223   :  { %3525 = vst.msk [vmem:[%s8093_s1 + $0x131] sm:$0x10] %vm3_vm0, %v2172_v47   ;;  %3526 = vst.msk [vmem:[%s8093_s1 + $0x170] sm:$0x20] %vm3_vm0, %v2172_v47  }
 0x224   :  { %3527 = vst.msk [vmem:[%s8093_s1 + $0x1af] sm:$0x40] %vm3_vm0, %v2172_v47   ;;  %3528 = vst.msk [vmem:[%s8093_s1 + $0x1ee] sm:$0x80] %vm3_vm0, %v2172_v47  }
 0x225   :  { %3547 = vst.msk [vmem:[%s8093_s1 + $0x236] sm:$0x1] %vm3_vm0, %v2234_v48   ;;  %3548 = vst.msk [vmem:[%s8093_s1 + $0x275] sm:$0x2] %vm3_vm0, %v2234_v48  }
 0x226   :  { %3549 = vst.msk [vmem:[%s8093_s1 + $0x2b4] sm:$0x4] %vm3_vm0, %v2234_v48   ;;  %3550 = vst.msk [vmem:[%s8093_s1 + $0x2f3] sm:$0x8] %vm3_vm0, %v2234_v48  }
 0x227   :  { %3551 = vst.msk [vmem:[%s8093_s1 + $0x332] sm:$0x10] %vm3_vm0, %v2234_v48   ;;  %3552 = vst.msk [vmem:[%s8093_s1 + $0x371] sm:$0x20] %vm3_vm0, %v2234_v48  }
 0x228   :  { %3553 = vst.msk [vmem:[%s8093_s1 + $0x3b0] sm:$0x40] %vm3_vm0, %v2234_v48   ;;  %3554 = vst.msk [vmem:[%s8093_s1 + $0x3ef] sm:$0x80] %vm3_vm0, %v2234_v48  }
 0x229   :  { %3538 = vst.msk [vmem:[%s8093_s1 + $0x36] sm:$0x1] %vm3_vm0, %v2213_v49   ;;  %3539 = vst.msk [vmem:[%s8093_s1 + $0x75] sm:$0x2] %vm3_vm0, %v2213_v49  }
 0x22a   :  { %3540 = vst.msk [vmem:[%s8093_s1 + $0xb4] sm:$0x4] %vm3_vm0, %v2213_v49   ;;  %3541 = vst.msk [vmem:[%s8093_s1 + $0xf3] sm:$0x8] %vm3_vm0, %v2213_v49  }
 0x22b   :  { %3542 = vst.msk [vmem:[%s8093_s1 + $0x132] sm:$0x10] %vm3_vm0, %v2213_v49   ;;  %3543 = vst.msk [vmem:[%s8093_s1 + $0x171] sm:$0x20] %vm3_vm0, %v2213_v49  }
 0x22c   :  { %3544 = vst.msk [vmem:[%s8093_s1 + $0x1b0] sm:$0x40] %vm3_vm0, %v2213_v49   ;;  %3545 = vst.msk [vmem:[%s8093_s1 + $0x1ef] sm:$0x80] %vm3_vm0, %v2213_v49  }
 0x22d   :  { %3564 = vst.msk [vmem:[%s8093_s1 + $0x237] sm:$0x1] %vm3_vm0, %v2275_v50   ;;  %3565 = vst.msk [vmem:[%s8093_s1 + $0x276] sm:$0x2] %vm3_vm0, %v2275_v50  }
 0x22e   :  { %3566 = vst.msk [vmem:[%s8093_s1 + $0x2b5] sm:$0x4] %vm3_vm0, %v2275_v50   ;;  %3567 = vst.msk [vmem:[%s8093_s1 + $0x2f4] sm:$0x8] %vm3_vm0, %v2275_v50  }
 0x22f   :  { %3568 = vst.msk [vmem:[%s8093_s1 + $0x333] sm:$0x10] %vm3_vm0, %v2275_v50   ;;  %3569 = vst.msk [vmem:[%s8093_s1 + $0x372] sm:$0x20] %vm3_vm0, %v2275_v50  }
 0x230   :  { %3570 = vst.msk [vmem:[%s8093_s1 + $0x3b1] sm:$0x40] %vm3_vm0, %v2275_v50   ;;  %3571 = vst.msk [vmem:[%s8093_s1 + $0x3f0] sm:$0x80] %vm3_vm0, %v2275_v50  }
 0x231   :  { %3555 = vst.msk [vmem:[%s8093_s1 + $0x37] sm:$0x1] %vm3_vm0, %v2254_v51   ;;  %3556 = vst.msk [vmem:[%s8093_s1 + $0x76] sm:$0x2] %vm3_vm0, %v2254_v51  }
 0x232   :  { %3557 = vst.msk [vmem:[%s8093_s1 + $0xb5] sm:$0x4] %vm3_vm0, %v2254_v51   ;;  %3558 = vst.msk [vmem:[%s8093_s1 + $0xf4] sm:$0x8] %vm3_vm0, %v2254_v51  }
 0x233   :  { %3559 = vst.msk [vmem:[%s8093_s1 + $0x133] sm:$0x10] %vm3_vm0, %v2254_v51   ;;  %3560 = vst.msk [vmem:[%s8093_s1 + $0x172] sm:$0x20] %vm3_vm0, %v2254_v51  }
 0x234   :  { %3561 = vst.msk [vmem:[%s8093_s1 + $0x1b1] sm:$0x40] %vm3_vm0, %v2254_v51   ;;  %3562 = vst.msk [vmem:[%s8093_s1 + $0x1f0] sm:$0x80] %vm3_vm0, %v2254_v51  }
 0x235   :  { %3581 = vst.msk [vmem:[%s8093_s1 + $0x238] sm:$0x1] %vm3_vm0, %v2316_v52   ;;  %3582 = vst.msk [vmem:[%s8093_s1 + $0x277] sm:$0x2] %vm3_vm0, %v2316_v52  }
 0x236   :  { %3583 = vst.msk [vmem:[%s8093_s1 + $0x2b6] sm:$0x4] %vm3_vm0, %v2316_v52   ;;  %3584 = vst.msk [vmem:[%s8093_s1 + $0x2f5] sm:$0x8] %vm3_vm0, %v2316_v52  }
 0x237   :  { %3585 = vst.msk [vmem:[%s8093_s1 + $0x334] sm:$0x10] %vm3_vm0, %v2316_v52   ;;  %3586 = vst.msk [vmem:[%s8093_s1 + $0x373] sm:$0x20] %vm3_vm0, %v2316_v52  }
 0x238   :  { %3587 = vst.msk [vmem:[%s8093_s1 + $0x3b2] sm:$0x40] %vm3_vm0, %v2316_v52   ;;  %3588 = vst.msk [vmem:[%s8093_s1 + $0x3f1] sm:$0x80] %vm3_vm0, %v2316_v52  }
 0x239   :  { %3572 = vst.msk [vmem:[%s8093_s1 + $0x38] sm:$0x1] %vm3_vm0, %v2295_v53   ;;  %3573 = vst.msk [vmem:[%s8093_s1 + $0x77] sm:$0x2] %vm3_vm0, %v2295_v53  }
 0x23a   :  { %3574 = vst.msk [vmem:[%s8093_s1 + $0xb6] sm:$0x4] %vm3_vm0, %v2295_v53   ;;  %3575 = vst.msk [vmem:[%s8093_s1 + $0xf5] sm:$0x8] %vm3_vm0, %v2295_v53  }
 0x23b   :  { %3576 = vst.msk [vmem:[%s8093_s1 + $0x134] sm:$0x10] %vm3_vm0, %v2295_v53   ;;  %3577 = vst.msk [vmem:[%s8093_s1 + $0x173] sm:$0x20] %vm3_vm0, %v2295_v53  }
 0x23c   :  { %3578 = vst.msk [vmem:[%s8093_s1 + $0x1b2] sm:$0x40] %vm3_vm0, %v2295_v53   ;;  %3579 = vst.msk [vmem:[%s8093_s1 + $0x1f1] sm:$0x80] %vm3_vm0, %v2295_v53  }
 0x23d   :  { %3598 = vst.msk [vmem:[%s8093_s1 + $0x239] sm:$0x1] %vm3_vm0, %v2357_v54   ;;  %3599 = vst.msk [vmem:[%s8093_s1 + $0x278] sm:$0x2] %vm3_vm0, %v2357_v54  }
 0x23e   :  { %3600 = vst.msk [vmem:[%s8093_s1 + $0x2b7] sm:$0x4] %vm3_vm0, %v2357_v54   ;;  %3601 = vst.msk [vmem:[%s8093_s1 + $0x2f6] sm:$0x8] %vm3_vm0, %v2357_v54  }
 0x23f   :  { %3602 = vst.msk [vmem:[%s8093_s1 + $0x335] sm:$0x10] %vm3_vm0, %v2357_v54   ;;  %3603 = vst.msk [vmem:[%s8093_s1 + $0x374] sm:$0x20] %vm3_vm0, %v2357_v54  }
 0x240   :  { %3604 = vst.msk [vmem:[%s8093_s1 + $0x3b3] sm:$0x40] %vm3_vm0, %v2357_v54   ;;  %3605 = vst.msk [vmem:[%s8093_s1 + $0x3f2] sm:$0x80] %vm3_vm0, %v2357_v54  }
 0x241   :  { %3589 = vst.msk [vmem:[%s8093_s1 + $0x39] sm:$0x1] %vm3_vm0, %v2336_v55   ;;  %3590 = vst.msk [vmem:[%s8093_s1 + $0x78] sm:$0x2] %vm3_vm0, %v2336_v55  }
 0x242   :  { %3591 = vst.msk [vmem:[%s8093_s1 + $0xb7] sm:$0x4] %vm3_vm0, %v2336_v55   ;;  %3592 = vst.msk [vmem:[%s8093_s1 + $0xf6] sm:$0x8] %vm3_vm0, %v2336_v55  }
 0x243   :  { %3593 = vst.msk [vmem:[%s8093_s1 + $0x135] sm:$0x10] %vm3_vm0, %v2336_v55   ;;  %3594 = vst.msk [vmem:[%s8093_s1 + $0x174] sm:$0x20] %vm3_vm0, %v2336_v55  }
 0x244   :  { %3595 = vst.msk [vmem:[%s8093_s1 + $0x1b3] sm:$0x40] %vm3_vm0, %v2336_v55   ;;  %3596 = vst.msk [vmem:[%s8093_s1 + $0x1f2] sm:$0x80] %vm3_vm0, %v2336_v55  }
 0x245   :  { %3615 = vst.msk [vmem:[%s8093_s1 + $0x23a] sm:$0x1] %vm3_vm0, %v2398_v56   ;;  %3616 = vst.msk [vmem:[%s8093_s1 + $0x279] sm:$0x2] %vm3_vm0, %v2398_v56  }
 0x246   :  { %3617 = vst.msk [vmem:[%s8093_s1 + $0x2b8] sm:$0x4] %vm3_vm0, %v2398_v56   ;;  %3618 = vst.msk [vmem:[%s8093_s1 + $0x2f7] sm:$0x8] %vm3_vm0, %v2398_v56  }
 0x247   :  { %3619 = vst.msk [vmem:[%s8093_s1 + $0x336] sm:$0x10] %vm3_vm0, %v2398_v56   ;;  %3620 = vst.msk [vmem:[%s8093_s1 + $0x375] sm:$0x20] %vm3_vm0, %v2398_v56  }
 0x248   :  { %3621 = vst.msk [vmem:[%s8093_s1 + $0x3b4] sm:$0x40] %vm3_vm0, %v2398_v56   ;;  %3622 = vst.msk [vmem:[%s8093_s1 + $0x3f3] sm:$0x80] %vm3_vm0, %v2398_v56  }
 0x249   :  { %3606 = vst.msk [vmem:[%s8093_s1 + $0x3a] sm:$0x1] %vm3_vm0, %v2377_v57   ;;  %3607 = vst.msk [vmem:[%s8093_s1 + $0x79] sm:$0x2] %vm3_vm0, %v2377_v57  }
 0x24a   :  { %3608 = vst.msk [vmem:[%s8093_s1 + $0xb8] sm:$0x4] %vm3_vm0, %v2377_v57   ;;  %3609 = vst.msk [vmem:[%s8093_s1 + $0xf7] sm:$0x8] %vm3_vm0, %v2377_v57  }
 0x24b   :  { %3610 = vst.msk [vmem:[%s8093_s1 + $0x136] sm:$0x10] %vm3_vm0, %v2377_v57   ;;  %3611 = vst.msk [vmem:[%s8093_s1 + $0x175] sm:$0x20] %vm3_vm0, %v2377_v57  }
 0x24c   :  { %3612 = vst.msk [vmem:[%s8093_s1 + $0x1b4] sm:$0x40] %vm3_vm0, %v2377_v57   ;;  %3613 = vst.msk [vmem:[%s8093_s1 + $0x1f3] sm:$0x80] %vm3_vm0, %v2377_v57  }
 0x24d   :  { %3632 = vst.msk [vmem:[%s8093_s1 + $0x23b] sm:$0x1] %vm3_vm0, %v2439_v58   ;;  %3633 = vst.msk [vmem:[%s8093_s1 + $0x27a] sm:$0x2] %vm3_vm0, %v2439_v58  }
 0x24e   :  { %3634 = vst.msk [vmem:[%s8093_s1 + $0x2b9] sm:$0x4] %vm3_vm0, %v2439_v58   ;;  %3635 = vst.msk [vmem:[%s8093_s1 + $0x2f8] sm:$0x8] %vm3_vm0, %v2439_v58  }
 0x24f   :  { %3636 = vst.msk [vmem:[%s8093_s1 + $0x337] sm:$0x10] %vm3_vm0, %v2439_v58   ;;  %3637 = vst.msk [vmem:[%s8093_s1 + $0x376] sm:$0x20] %vm3_vm0, %v2439_v58  }
 0x250   :  { %3638 = vst.msk [vmem:[%s8093_s1 + $0x3b5] sm:$0x40] %vm3_vm0, %v2439_v58   ;;  %3639 = vst.msk [vmem:[%s8093_s1 + $0x3f4] sm:$0x80] %vm3_vm0, %v2439_v58  }
 0x251   :  { %3623 = vst.msk [vmem:[%s8093_s1 + $0x3b] sm:$0x1] %vm3_vm0, %v2418_v59   ;;  %3624 = vst.msk [vmem:[%s8093_s1 + $0x7a] sm:$0x2] %vm3_vm0, %v2418_v59  }
 0x252   :  { %3625 = vst.msk [vmem:[%s8093_s1 + $0xb9] sm:$0x4] %vm3_vm0, %v2418_v59   ;;  %3626 = vst.msk [vmem:[%s8093_s1 + $0xf8] sm:$0x8] %vm3_vm0, %v2418_v59  }
 0x253   :  { %3627 = vst.msk [vmem:[%s8093_s1 + $0x137] sm:$0x10] %vm3_vm0, %v2418_v59   ;;  %3628 = vst.msk [vmem:[%s8093_s1 + $0x176] sm:$0x20] %vm3_vm0, %v2418_v59  }
 0x254   :  { %3629 = vst.msk [vmem:[%s8093_s1 + $0x1b5] sm:$0x40] %vm3_vm0, %v2418_v59   ;;  %3630 = vst.msk [vmem:[%s8093_s1 + $0x1f4] sm:$0x80] %vm3_vm0, %v2418_v59  }
 0x255   :  { %3649 = vst.msk [vmem:[%s8093_s1 + $0x23c] sm:$0x1] %vm3_vm0, %v2480_v60   ;;  %3650 = vst.msk [vmem:[%s8093_s1 + $0x27b] sm:$0x2] %vm3_vm0, %v2480_v60  }
 0x256   :  { %3651 = vst.msk [vmem:[%s8093_s1 + $0x2ba] sm:$0x4] %vm3_vm0, %v2480_v60   ;;  %3652 = vst.msk [vmem:[%s8093_s1 + $0x2f9] sm:$0x8] %vm3_vm0, %v2480_v60  }
 0x257   :  { %3653 = vst.msk [vmem:[%s8093_s1 + $0x338] sm:$0x10] %vm3_vm0, %v2480_v60   ;;  %3654 = vst.msk [vmem:[%s8093_s1 + $0x377] sm:$0x20] %vm3_vm0, %v2480_v60  }
 0x258   :  { %3655 = vst.msk [vmem:[%s8093_s1 + $0x3b6] sm:$0x40] %vm3_vm0, %v2480_v60   ;;  %3656 = vst.msk [vmem:[%s8093_s1 + $0x3f5] sm:$0x80] %vm3_vm0, %v2480_v60  }
 0x259   :  { %3640 = vst.msk [vmem:[%s8093_s1 + $0x3c] sm:$0x1] %vm3_vm0, %v2459_v61   ;;  %3641 = vst.msk [vmem:[%s8093_s1 + $0x7b] sm:$0x2] %vm3_vm0, %v2459_v61  }
 0x25a   :  { %3642 = vst.msk [vmem:[%s8093_s1 + $0xba] sm:$0x4] %vm3_vm0, %v2459_v61   ;;  %3643 = vst.msk [vmem:[%s8093_s1 + $0xf9] sm:$0x8] %vm3_vm0, %v2459_v61  }
 0x25b   :  { %3644 = vst.msk [vmem:[%s8093_s1 + $0x138] sm:$0x10] %vm3_vm0, %v2459_v61   ;;  %3645 = vst.msk [vmem:[%s8093_s1 + $0x177] sm:$0x20] %vm3_vm0, %v2459_v61  }
 0x25c   :  { %3646 = vst.msk [vmem:[%s8093_s1 + $0x1b6] sm:$0x40] %vm3_vm0, %v2459_v61   ;;  %3647 = vst.msk [vmem:[%s8093_s1 + $0x1f5] sm:$0x80] %vm3_vm0, %v2459_v61  }
 0x25d   :  { %3666 = vst.msk [vmem:[%s8093_s1 + $0x23d] sm:$0x1] %vm3_vm0, %v2521_v62   ;;  %3667 = vst.msk [vmem:[%s8093_s1 + $0x27c] sm:$0x2] %vm3_vm0, %v2521_v62  }
 0x25e   :  { %3668 = vst.msk [vmem:[%s8093_s1 + $0x2bb] sm:$0x4] %vm3_vm0, %v2521_v62   ;;  %3669 = vst.msk [vmem:[%s8093_s1 + $0x2fa] sm:$0x8] %vm3_vm0, %v2521_v62  }
 0x25f   :  { %3670 = vst.msk [vmem:[%s8093_s1 + $0x339] sm:$0x10] %vm3_vm0, %v2521_v62   ;;  %3671 = vst.msk [vmem:[%s8093_s1 + $0x378] sm:$0x20] %vm3_vm0, %v2521_v62  }
 0x260   :  { %3672 = vst.msk [vmem:[%s8093_s1 + $0x3b7] sm:$0x40] %vm3_vm0, %v2521_v62   ;;  %3673 = vst.msk [vmem:[%s8093_s1 + $0x3f6] sm:$0x80] %vm3_vm0, %v2521_v62  }
 0x261   :  { %3657 = vst.msk [vmem:[%s8093_s1 + $0x3d] sm:$0x1] %vm3_vm0, %v2500_v63   ;;  %3658 = vst.msk [vmem:[%s8093_s1 + $0x7c] sm:$0x2] %vm3_vm0, %v2500_v63  }
 0x262   :  { %3659 = vst.msk [vmem:[%s8093_s1 + $0xbb] sm:$0x4] %vm3_vm0, %v2500_v63   ;;  %3660 = vst.msk [vmem:[%s8093_s1 + $0xfa] sm:$0x8] %vm3_vm0, %v2500_v63  }
 0x263   :  { %3661 = vst.msk [vmem:[%s8093_s1 + $0x139] sm:$0x10] %vm3_vm0, %v2500_v63   ;;  %3662 = vst.msk [vmem:[%s8093_s1 + $0x178] sm:$0x20] %vm3_vm0, %v2500_v63  }
 0x264   :  { %3663 = vst.msk [vmem:[%s8093_s1 + $0x1b7] sm:$0x40] %vm3_vm0, %v2500_v63   ;;  %3664 = vst.msk [vmem:[%s8093_s1 + $0x1f6] sm:$0x80] %vm3_vm0, %v2500_v63  }
 0x265   :  { %3683 = vst.msk [vmem:[%s8093_s1 + $0x23e] sm:$0x1] %vm3_vm0, %v2562_v0   ;;  %3684 = vst.msk [vmem:[%s8093_s1 + $0x27d] sm:$0x2] %vm3_vm0, %v2562_v0  }
 0x266   :  { %3685 = vst.msk [vmem:[%s8093_s1 + $0x2bc] sm:$0x4] %vm3_vm0, %v2562_v0   ;;  %3686 = vst.msk [vmem:[%s8093_s1 + $0x2fb] sm:$0x8] %vm3_vm0, %v2562_v0  }
 0x267   :  { %3687 = vst.msk [vmem:[%s8093_s1 + $0x33a] sm:$0x10] %vm3_vm0, %v2562_v0   ;;  %3688 = vst.msk [vmem:[%s8093_s1 + $0x379] sm:$0x20] %vm3_vm0, %v2562_v0  }
 0x268   :  { %3689 = vst.msk [vmem:[%s8093_s1 + $0x3b8] sm:$0x40] %vm3_vm0, %v2562_v0   ;;  %3690 = vst.msk [vmem:[%s8093_s1 + $0x3f7] sm:$0x80] %vm3_vm0, %v2562_v0  }
 0x269   :  { %3674 = vst.msk [vmem:[%s8093_s1 + $0x3e] sm:$0x1] %vm3_vm0, %v2541_v1   ;;  %3675 = vst.msk [vmem:[%s8093_s1 + $0x7d] sm:$0x2] %vm3_vm0, %v2541_v1  }
 0x26a   :  { %3676 = vst.msk [vmem:[%s8093_s1 + $0xbc] sm:$0x4] %vm3_vm0, %v2541_v1   ;;  %3677 = vst.msk [vmem:[%s8093_s1 + $0xfb] sm:$0x8] %vm3_vm0, %v2541_v1  }
 0x26b   :  { %3678 = vst.msk [vmem:[%s8093_s1 + $0x13a] sm:$0x10] %vm3_vm0, %v2541_v1   ;;  %3679 = vst.msk [vmem:[%s8093_s1 + $0x179] sm:$0x20] %vm3_vm0, %v2541_v1  }
 0x26c   :  { %3680 = vst.msk [vmem:[%s8093_s1 + $0x1b8] sm:$0x40] %vm3_vm0, %v2541_v1   ;;  %3681 = vst.msk [vmem:[%s8093_s1 + $0x1f7] sm:$0x80] %vm3_vm0, %v2541_v1  }
 0x26d   :  { %3700 = vst.msk [vmem:[%s8093_s1 + $0x23f] sm:$0x1] %vm3_vm0, %v2603_v2   ;;  %3701 = vst.msk [vmem:[%s8093_s1 + $0x27e] sm:$0x2] %vm3_vm0, %v2603_v2  }
 0x26e   :  { %3702 = vst.msk [vmem:[%s8093_s1 + $0x2bd] sm:$0x4] %vm3_vm0, %v2603_v2   ;;  %3703 = vst.msk [vmem:[%s8093_s1 + $0x2fc] sm:$0x8] %vm3_vm0, %v2603_v2  }
 0x26f   :  { %3704 = vst.msk [vmem:[%s8093_s1 + $0x33b] sm:$0x10] %vm3_vm0, %v2603_v2   ;;  %3705 = vst.msk [vmem:[%s8093_s1 + $0x37a] sm:$0x20] %vm3_vm0, %v2603_v2  }
 0x270   :  { %3706 = vst.msk [vmem:[%s8093_s1 + $0x3b9] sm:$0x40] %vm3_vm0, %v2603_v2   ;;  %3707 = vst.msk [vmem:[%s8093_s1 + $0x3f8] sm:$0x80] %vm3_vm0, %v2603_v2  }
 0x271   :  { %3691 = vst.msk [vmem:[%s8093_s1 + $0x3f] sm:$0x1] %vm3_vm0, %v2582_v3   ;;  %3692 = vst.msk [vmem:[%s8093_s1 + $0x7e] sm:$0x2] %vm3_vm0, %v2582_v3  }
 0x272   :  { %3693 = vst.msk [vmem:[%s8093_s1 + $0xbd] sm:$0x4] %vm3_vm0, %v2582_v3   ;;  %3694 = vst.msk [vmem:[%s8093_s1 + $0xfc] sm:$0x8] %vm3_vm0, %v2582_v3  }
 0x273   :  { %3695 = vst.msk [vmem:[%s8093_s1 + $0x13b] sm:$0x10] %vm3_vm0, %v2582_v3   ;;  %3696 = vst.msk [vmem:[%s8093_s1 + $0x17a] sm:$0x20] %vm3_vm0, %v2582_v3  }
 0x274   :  { %3697 = vst.msk [vmem:[%s8093_s1 + $0x1b9] sm:$0x40] %vm3_vm0, %v2582_v3   ;;  %3698 = vst.msk [vmem:[%s8093_s1 + $0x1f8] sm:$0x80] %vm3_vm0, %v2582_v3  }

// kernel: discriminator_forward.6
= control target key start
LH: loop header
LB: loop body
LE: loop exit
PB: predicated region body
PF: predicated region fallthrough
CT: control target
= control target key end

     0   :  { %v1631_v0 = vmov 0   ;;  %vm1417_vm0 = vcmask 261120   ;;  %vm1482_vm1 = vcmask 7168   ;;  %vm1491_vm2 = vcmask 15360   ;;  %s2526_s2 = inlined_call_operand.vmem [shape: f32[512,1], index: 2, kind: input, shape index: {}]   ;;  %s2527_s3 = inlined_call_operand.vmem [shape: f32[512,1], index: 3, kind: input, shape index: {}]   ;;  %s2528_s1 = inlined_call_operand.vmem [shape: f32[512,32], index: 1, kind: input, shape index: {}]   ;;  %s2529_s4 = inlined_call_operand.vmem [shape: f32[64,1], index: 4, kind: input, shape index: {}]   ;;  %s2530_s0 = inlined_call_operand.vmem [shape: bf16[64,512], index: 0, kind: input, shape index: {}]   ;;  %s2531_s5 = inlined_call_operand.vmem [shape: f32[64,32], index: 5, kind: output, shape index: {0}]   ;;  %s2532_s6 = inlined_call_operand.vmem [shape: f32[1,64,2], index: 6, kind: output, shape index: {1}]  }
   0x1   :  { %1606 = vset.pattern.permute.xlu1 %v1631_v0  ;;  %1605 = vset.pattern.permute.xlu0 %v1631_v0  ;;  %v89_v1 = vld [vmem:[%s2526_s2 + $0x10] sm:$0xff]  ;;  %v87_v2 = vld [vmem:[%s2526_s2] sm:$0xff]  ;;  %v90_v3 = vld [vmem:[%s2526_s2 + $0x18] sm:$0xff] }
   0x2   :  { %163 = vperm.xlu1 %1606, %v89_v1   ;;  %153 = vperm.xlu0 %1605, %v87_v2   ;;  %v88_v4 = vld [vmem:[%s2526_s2 + $0x8] sm:$0xff]  ;;  %v91_v6 = vld [vmem:[%s2526_s2 + $0x20] sm:$0xff]  ;;  %v94_v7 = vld [vmem:[%s2526_s2 + $0x38] sm:$0xff] }
   0x3   :  { %v92_v5 = vld [vmem:[%s2526_s2 + $0x28] sm:$0xff]  ;;  %v93_v8 = vld [vmem:[%s2526_s2 + $0x30] sm:$0xff]  ;;  %v95_v10 = vld [vmem:[%s2526_s2 + $0x40] sm:$0xff] }
   0x4   :  { %v96_v9 = vld [vmem:[%s2526_s2 + $0x48] sm:$0xff]  ;;  %v98_v11 = vld [vmem:[%s2526_s2 + $0x58] sm:$0xff]  ;;  %v97_v12 = vld [vmem:[%s2526_s2 + $0x50] sm:$0xff] }
   0x5   :  { %v100_v13 = vld [vmem:[%s2526_s2 + $0x68] sm:$0xff]  ;;  %v99_v14 = vld [vmem:[%s2526_s2 + $0x60] sm:$0xff]  ;;  %v102_v15 = vld [vmem:[%s2526_s2 + $0x78] sm:$0xff] }
   0x6   :  { %168 = vperm.xlu1 %1606, %v90_v3   ;;  %158 = vperm.xlu0 %1605, %v88_v4   ;;  %v101_v16 = vld [vmem:[%s2526_s2 + $0x70] sm:$0xff]  ;;  %v104_v17 = vld [vmem:[%s2526_s2 + $0x88] sm:$0xff]  ;;  %v103_v18 = vld [vmem:[%s2526_s2 + $0x80] sm:$0xff] }
   0x7   :  { %v106_v19 = vld [vmem:[%s2526_s2 + $0x98] sm:$0xff]  ;;  %v105_v20 = vld [vmem:[%s2526_s2 + $0x90] sm:$0xff]  ;;  %v108_v21 = vld [vmem:[%s2526_s2 + $0xa8] sm:$0xff] }
   0x8   :  { %v107_v22 = vld [vmem:[%s2526_s2 + $0xa0] sm:$0xff]  ;;  %v110_v23 = vld [vmem:[%s2526_s2 + $0xb8] sm:$0xff]  ;;  %v109_v24 = vld [vmem:[%s2526_s2 + $0xb0] sm:$0xff] }
   0x9   :  { %v112_v25 = vld [vmem:[%s2526_s2 + $0xc8] sm:$0xff]  ;;  %v111_v26 = vld [vmem:[%s2526_s2 + $0xc0] sm:$0xff]  ;;  %v114_v27 = vld [vmem:[%s2526_s2 + $0xd8] sm:$0xff] }
   0xa   :  { %178 = vperm.xlu1 %1606, %v92_v5   ;;  %173 = vperm.xlu0 %1605, %v91_v6   ;;  %v113_v28 = vld [vmem:[%s2526_s2 + $0xd0] sm:$0xff]  ;;  %v116_v29 = vld [vmem:[%s2526_s2 + $0xe8] sm:$0xff]  ;;  %v115_v30 = vld [vmem:[%s2526_s2 + $0xe0] sm:$0xff] }
   0xb   :  { %v118_v31 = vld [vmem:[%s2526_s2 + $0xf8] sm:$0xff]  ;;  %v117_v32 = vld [vmem:[%s2526_s2 + $0xf0] sm:$0xff]  ;;  %v120_v33 = vld [vmem:[%s2526_s2 + $0x108] sm:$0xff] }
   0xc   :  { %v119_v34 = vld [vmem:[%s2526_s2 + $0x100] sm:$0xff]  ;;  %v122_v35 = vld [vmem:[%s2526_s2 + $0x118] sm:$0xff]  ;;  %v121_v36 = vld [vmem:[%s2526_s2 + $0x110] sm:$0xff] }
   0xd   :  { %v124_v37 = vld [vmem:[%s2526_s2 + $0x128] sm:$0xff]  ;;  %v123_v38 = vld [vmem:[%s2526_s2 + $0x120] sm:$0xff]  ;;  %v126_v39 = vld [vmem:[%s2526_s2 + $0x138] sm:$0xff] }
   0xe   :  { %188 = vperm.xlu1 %1606, %v94_v7   ;;  %183 = vperm.xlu0 %1605, %v93_v8   ;;  %v125_v40 = vld [vmem:[%s2526_s2 + $0x130] sm:$0xff]  ;;  %v135_v41 = vld [vmem:[%s2526_s2 + $0x180] sm:$0xff]  ;;  %v136_v44 = vld [vmem:[%s2526_s2 + $0x188] sm:$0xff] }
   0xf   :  { %v127_v42 = vld [vmem:[%s2526_s2 + $0x140] sm:$0xff]  ;;  %v552_v46 = vld [vmem:[%s2527_s3 + $0x88] sm:$0xff]  ;;  %v137_v51 = vld [vmem:[%s2526_s2 + $0x190] sm:$0xff] }
  0x10   :  { %v551_v43 = vld [vmem:[%s2527_s3 + $0x80] sm:$0xff]  ;;  %v536_v48 = vld [vmem:[%s2527_s3 + $0x8] sm:$0xff]  ;;  %v553_v53 = vld [vmem:[%s2527_s3 + $0x90] sm:$0xff] }
  0x11   :  { %v535_v45 = vld [vmem:[%s2527_s3] sm:$0xff]  ;;  %v584_v50 = vld [vmem:[%s2527_s3 + $0x188] sm:$0xff]  ;;  %v138_v54 = vld [vmem:[%s2526_s2 + $0x198] sm:$0xff] }
  0x12   :  { %198 = vperm.xlu1 %1606, %v96_v9   ;;  %193 = vperm.xlu0 %1605, %v95_v10   ;;  %v583_v47 = vld [vmem:[%s2527_s3 + $0x180] sm:$0xff]  ;;  %v568_v52 = vld [vmem:[%s2527_s3 + $0x108] sm:$0xff]  ;;  %v537_v55 = vld [vmem:[%s2527_s3 + $0x10] sm:$0xff] }
  0x13   :  { %v567_v49 = vld [vmem:[%s2527_s3 + $0x100] sm:$0xff]  ;;  %v554_v56 = vld [vmem:[%s2527_s3 + $0x98] sm:$0xff]  ;;  %v585_v57 = vld [vmem:[%s2527_s3 + $0x190] sm:$0xff] }
  0x14   :  { %v538_v58 = vld [vmem:[%s2527_s3 + $0x18] sm:$0xff]  ;;  %v569_v59 = vld [vmem:[%s2527_s3 + $0x110] sm:$0xff]  ;;  %v139_v61 = vld [vmem:[%s2526_s2 + $0x1a0] sm:$0xff] }
  0x15   :  { %v586_v60 = vld [vmem:[%s2527_s3 + $0x198] sm:$0xff]  ;;  %v555_v63 = vld [vmem:[%s2527_s3 + $0xa0] sm:$0xff]  ;;  %v140_v0 = vld [vmem:[%s2526_s2 + $0x1a8] sm:$0xff] }
  0x16   :  { %208 = vperm.xlu1 %1606, %v98_v11   ;;  %203 = vperm.xlu0 %1605, %v97_v12   ;;  %v570_v62 = vld [vmem:[%s2527_s3 + $0x118] sm:$0xff]  ;;  %v539_v1 = vld [vmem:[%s2527_s3 + $0x20] sm:$0xff]  ;;  %v556_v2 = vld [vmem:[%s2527_s3 + $0xa8] sm:$0xff] }
  0x17   :  { %v587_v5 = vld [vmem:[%s2527_s3 + $0x1a0] sm:$0xff]  ;;  %v540_v6 = vld [vmem:[%s2527_s3 + $0x28] sm:$0xff] }
  0x18   :  { %v571_v9 = vld [vmem:[%s2527_s3 + $0x120] sm:$0xff]  ;;  %v588_v10 = vld [vmem:[%s2527_s3 + $0x1a8] sm:$0xff] }
  0x1a   :  { %218 = vperm.xlu1 %1606, %v100_v13   ;;  %213 = vperm.xlu0 %1605, %v99_v14   ;;  %v141_v13 = vld [vmem:[%s2526_s2 + $0x1b0] sm:$0xff]  ;;  %v572_v14 = vld [vmem:[%s2527_s3 + $0x128] sm:$0xff] }
  0x1e   :  { %228 = vperm.xlu1 %1606, %v102_v15   ;;  %223 = vperm.xlu0 %1605, %v101_v16  }
  0x22   :  { %238 = vperm.xlu1 %1606, %v104_v17   ;;  %233 = vperm.xlu0 %1605, %v103_v18   ;;  %v557_v17 = vld [vmem:[%s2527_s3 + $0xb0] sm:$0xff]  ;;  %v142_v18 = vld [vmem:[%s2526_s2 + $0x1b8] sm:$0xff] }
  0x26   :  { %248 = vperm.xlu1 %1606, %v106_v19   ;;  %243 = vperm.xlu0 %1605, %v105_v20  }
  0x2a   :  { %258 = vperm.xlu1 %1606, %v108_v21   ;;  %253 = vperm.xlu0 %1605, %v107_v22   ;;  %v541_v21 = vld [vmem:[%s2527_s3 + $0x30] sm:$0xff]  ;;  %v558_v22 = vld [vmem:[%s2527_s3 + $0xb8] sm:$0xff] }
  0x2e   :  { %268 = vperm.xlu1 %1606, %v110_v23   ;;  %263 = vperm.xlu0 %1605, %v109_v24  }
  0x32   :  { %278 = vperm.xlu1 %1606, %v112_v25   ;;  %273 = vperm.xlu0 %1605, %v111_v26   ;;  %v589_v25 = vld [vmem:[%s2527_s3 + $0x1b0] sm:$0xff]  ;;  %v542_v26 = vld [vmem:[%s2527_s3 + $0x38] sm:$0xff] }
  0x36   :  { %288 = vperm.xlu1 %1606, %v114_v27   ;;  %283 = vperm.xlu0 %1605, %v113_v28  }
  0x3a   :  { %298 = vperm.xlu1 %1606, %v116_v29   ;;  %293 = vperm.xlu0 %1605, %v115_v30   ;;  %v573_v29 = vld [vmem:[%s2527_s3 + $0x130] sm:$0xff]  ;;  %v590_v30 = vld [vmem:[%s2527_s3 + $0x1b8] sm:$0xff] }
  0x3e   :  { %308 = vperm.xlu1 %1606, %v118_v31   ;;  %303 = vperm.xlu0 %1605, %v117_v32  }
  0x42   :  { %318 = vperm.xlu1 %1606, %v120_v33   ;;  %313 = vperm.xlu0 %1605, %v119_v34   ;;  %v143_v33 = vld [vmem:[%s2526_s2 + $0x1c0] sm:$0xff]  ;;  %v574_v34 = vld [vmem:[%s2527_s3 + $0x138] sm:$0xff] }
  0x46   :  { %328 = vperm.xlu1 %1606, %v122_v35   ;;  %323 = vperm.xlu0 %1605, %v121_v36  }
  0x4a   :  { %338 = vperm.xlu1 %1606, %v124_v37   ;;  %333 = vperm.xlu0 %1605, %v123_v38   ;;  %v559_v37 = vld [vmem:[%s2527_s3 + $0xc0] sm:$0xff]  ;;  %v144_v38 = vld [vmem:[%s2526_s2 + $0x1c8] sm:$0xff] }
  0x4e   :  { %348 = vperm.xlu1 %1606, %v126_v39   ;;  %343 = vperm.xlu0 %1605, %v125_v40  }
  0x52   :  { %393 = vperm.xlu1 %1606, %v135_v41   ;;  %353 = vperm.xlu0 %1605, %v127_v42   ;;  %v128_v41 = vld [vmem:[%s2526_s2 + $0x148] sm:$0xff] }
  0x53   :  { %v560_v42 = vld [vmem:[%s2527_s3 + $0xc8] sm:$0xff] }
  0x56   :  { %681 = vperm.xlu1 %1606, %v551_v43   ;;  %398 = vperm.xlu0 %1605, %v136_v44  }
  0x5a   :  { %601 = vperm.xlu1 %1606, %v535_v45   ;;  %686 = vperm.xlu0 %1605, %v552_v46   ;;  %v544_v45 = vld [vmem:[%s2527_s3 + $0x48] sm:$0xff]  ;;  %v543_v46 = vld [vmem:[%s2527_s3 + $0x40] sm:$0xff] }
  0x5e   :  { %841 = vperm.xlu1 %1606, %v583_v47   ;;  %606 = vperm.xlu0 %1605, %v536_v48  }
  0x62   :  { %761 = vperm.xlu1 %1606, %v567_v49   ;;  %846 = vperm.xlu0 %1605, %v584_v50   ;;  %v592_v49 = vld [vmem:[%s2527_s3 + $0x1c8] sm:$0xff]  ;;  %v591_v50 = vld [vmem:[%s2527_s3 + $0x1c0] sm:$0xff] }
  0x66   :  { %403 = vperm.xlu1 %1606, %v137_v51   ;;  %766 = vperm.xlu0 %1605, %v568_v52  }
  0x6a   :  { %691 = vperm.xlu1 %1606, %v553_v53   ;;  %408 = vperm.xlu0 %1605, %v138_v54   ;;  %v576_v53 = vld [vmem:[%s2527_s3 + $0x148] sm:$0xff]  ;;  %v575_v54 = vld [vmem:[%s2527_s3 + $0x140] sm:$0xff] }
  0x6e   :  { %611 = vperm.xlu1 %1606, %v537_v55   ;;  %696 = vperm.xlu0 %1605, %v554_v56  }
  0x72   :  { %851 = vperm.xlu1 %1606, %v585_v57   ;;  %616 = vperm.xlu0 %1605, %v538_v58   ;;  %v146_v57 = vld [vmem:[%s2526_s2 + $0x1d8] sm:$0xff]  ;;  %v145_v58 = vld [vmem:[%s2526_s2 + $0x1d0] sm:$0xff] }
  0x76   :  { %771 = vperm.xlu1 %1606, %v569_v59   ;;  %856 = vperm.xlu0 %1605, %v586_v60  }
  0x7a   :  { %413 = vperm.xlu1 %1606, %v139_v61   ;;  %776 = vperm.xlu0 %1605, %v570_v62   ;;  %v562_v61 = vld [vmem:[%s2527_s3 + $0xd8] sm:$0xff]  ;;  %v561_v62 = vld [vmem:[%s2527_s3 + $0xd0] sm:$0xff] }
  0x7e   :  { %701 = vperm.xlu1 %1606, %v555_v63   ;;  %418 = vperm.xlu0 %1605, %v140_v0  }
  0x81   :  { %v1865_v3 = vpop.permute.xlu1 %163  ;;  %v1867_v4 = vpop.permute.xlu0 %153 }
  0x82   :  { %621 = vperm.xlu1 %1606, %v539_v1   ;;  %706 = vperm.xlu0 %1605, %v556_v2   ;;  %v130_v1 = vld [vmem:[%s2526_s2 + $0x158] sm:$0xff]  ;;  %v129_v2 = vld [vmem:[%s2526_s2 + $0x150] sm:$0xff] }
  0x85   :  { %v1875_v7 = vpop.permute.xlu1 %168  ;;  %v1877_v8 = vpop.permute.xlu0 %158 }
  0x86   :  { %861 = vperm.xlu1 %1606, %v587_v5   ;;  %626 = vperm.xlu0 %1605, %v540_v6  }
  0x89   :  { %v1885_v11 = vpop.permute.xlu1 %178  ;;  %v1887_v12 = vpop.permute.xlu0 %173 }
  0x8a   :  { %781 = vperm.xlu1 %1606, %v571_v9   ;;  %866 = vperm.xlu0 %1605, %v588_v10   ;;  %v546_v9 = vld [vmem:[%s2527_s3 + $0x58] sm:$0xff]  ;;  %v545_v10 = vld [vmem:[%s2527_s3 + $0x50] sm:$0xff] }
  0x8d   :  { %v1895_v15 = vpop.permute.xlu1 %188  ;;  %v1897_v16 = vpop.permute.xlu0 %183 }
  0x8e   :  { %423 = vperm.xlu1 %1606, %v141_v13   ;;  %786 = vperm.xlu0 %1605, %v572_v14  }
  0x91   :  { %v1905_v19 = vpop.permute.xlu1 %198  ;;  %v1907_v20 = vpop.permute.xlu0 %193 }
  0x92   :  { %711 = vperm.xlu1 %1606, %v557_v17   ;;  %428 = vperm.xlu0 %1605, %v142_v18   ;;  %v594_v17 = vld [vmem:[%s2527_s3 + $0x1d8] sm:$0xff]  ;;  %v593_v18 = vld [vmem:[%s2527_s3 + $0x1d0] sm:$0xff] }
  0x95   :  { %v1915_v23 = vpop.permute.xlu1 %208  ;;  %v1917_v24 = vpop.permute.xlu0 %203 }
  0x96   :  { %631 = vperm.xlu1 %1606, %v541_v21   ;;  %716 = vperm.xlu0 %1605, %v558_v22  }
  0x99   :  { %v1925_v27 = vpop.permute.xlu1 %218  ;;  %v1927_v28 = vpop.permute.xlu0 %213 }
  0x9a   :  { %871 = vperm.xlu1 %1606, %v589_v25   ;;  %636 = vperm.xlu0 %1605, %v542_v26   ;;  %v578_v25 = vld [vmem:[%s2527_s3 + $0x158] sm:$0xff]  ;;  %v577_v26 = vld [vmem:[%s2527_s3 + $0x150] sm:$0xff] }
  0x9d   :  { %v1935_v31 = vpop.permute.xlu1 %228  ;;  %v1937_v32 = vpop.permute.xlu0 %223 }
  0x9e   :  { %791 = vperm.xlu1 %1606, %v573_v29   ;;  %876 = vperm.xlu0 %1605, %v590_v30  }
  0xa1   :  { %v1945_v35 = vpop.permute.xlu1 %238  ;;  %v1947_v36 = vpop.permute.xlu0 %233 }
  0xa2   :  { %433 = vperm.xlu1 %1606, %v143_v33   ;;  %796 = vperm.xlu0 %1605, %v574_v34   ;;  %v148_v33 = vld [vmem:[%s2526_s2 + $0x1e8] sm:$0xff]  ;;  %v147_v34 = vld [vmem:[%s2526_s2 + $0x1e0] sm:$0xff] }
  0xa5   :  { %v1955_v39 = vpop.permute.xlu1 %248  ;;  %v1957_v40 = vpop.permute.xlu0 %243 }
  0xa6   :  { %721 = vperm.xlu1 %1606, %v559_v37   ;;  %438 = vperm.xlu0 %1605, %v144_v38   ;;  %v39_v37 = vld [vmem:[%s2528_s1 + $0x80] sm:$0xff] }
  0xa9   :  { %v1965_v43 = vpop.permute.xlu1 %258  ;;  %v1967_v44 = vpop.permute.xlu0 %253 }
  0xaa   :  { %358 = vperm.xlu1 %1606, %v128_v41   ;;  %726 = vperm.xlu0 %1605, %v560_v42   ;;  %v564_v42 = vld [vmem:[%s2527_s3 + $0xe8] sm:$0xff] }
  0xad   :  { %v1975_v47 = vpop.permute.xlu1 %268  ;;  %v1977_v48 = vpop.permute.xlu0 %263 }
  0xae   :  { %646 = vperm.xlu1 %1606, %v544_v45   ;;  %641 = vperm.xlu0 %1605, %v543_v46   ;;  %v563_v45 = vld [vmem:[%s2527_s3 + $0xe0] sm:$0xff]  ;;  %v487_v46 = vmul.f32 %v1947_v36, %v39_v37 }
  0xaf   :  { %v131_v36 = vld [vmem:[%s2526_s2 + $0x160] sm:$0xff] }
  0xb0   :  { %v55_v37 = vld [vmem:[%s2528_s1 + $0x100] sm:$0xff] }
  0xb1   :  { %v1985_v51 = vpop.permute.xlu1 %278  ;;  %v1987_v52 = vpop.permute.xlu0 %273 }
  0xb2   :  { %886 = vperm.xlu1 %1606, %v592_v49   ;;  %881 = vperm.xlu0 %1605, %v591_v50   ;;  %v23_v49 = vld [vmem:[%s2528_s1] sm:$0xff]  ;;  %v40_v50 = vld [vmem:[%s2528_s1 + $0x88] sm:$0xff] }
  0xb5   :  { %v1995_v55 = vpop.permute.xlu1 %288  ;;  %v1997_v56 = vpop.permute.xlu0 %283 }
  0xb6   :  { %806 = vperm.xlu1 %1606, %v576_v53   ;;  %801 = vperm.xlu0 %1605, %v575_v54  }
  0xb9   :  { %v2005_v59 = vpop.permute.xlu1 %298  ;;  %v2007_v60 = vpop.permute.xlu0 %293 }
  0xba   :  { %448 = vperm.xlu1 %1606, %v146_v57   ;;  %443 = vperm.xlu0 %1605, %v145_v58   ;;  %v132_v58 = vld [vmem:[%s2526_s2 + $0x168] sm:$0xff] }
  0xbd   :  { %v2015_v63 = vpop.permute.xlu1 %308  ;;  %v2017_v0 = vpop.permute.xlu0 %303 }
  0xbe   :  { %736 = vperm.xlu1 %1606, %v562_v61   ;;  %731 = vperm.xlu0 %1605, %v561_v62   ;;  %v471_v61 = vmul.f32 %v1867_v4, %v23_v49  ;;  %v488_v62 = vmul.f32 %v1945_v35, %v40_v50  ;;  %v548_v4 = vld [vmem:[%s2527_s3 + $0x68] sm:$0xff]  ;;  %v547_v35 = vld [vmem:[%s2527_s3 + $0x60] sm:$0xff] }
  0xc1   :  { %v2025_v5 = vpop.permute.xlu1 %318  ;;  %v2027_v6 = vpop.permute.xlu0 %313 }
  0xc2   :  { %368 = vperm.xlu1 %1606, %v130_v1   ;;  %363 = vperm.xlu0 %1605, %v129_v2   ;;  %v24_v1 = vld [vmem:[%s2528_s1 + $0x8] sm:$0xff]  ;;  %v71_v2 = vld [vmem:[%s2528_s1 + $0x180] sm:$0xff] }
  0xc5   :  { %v2035_v13 = vpop.permute.xlu1 %328  ;;  %v2037_v14 = vpop.permute.xlu0 %323 }
  0xc6   :  { %656 = vperm.xlu1 %1606, %v546_v9   ;;  %651 = vperm.xlu0 %1605, %v545_v10  }
  0xc9   :  { %v2045_v21 = vpop.permute.xlu1 %338  ;;  %v2047_v22 = vpop.permute.xlu0 %333 }
  0xca   :  { %896 = vperm.xlu1 %1606, %v594_v17   ;;  %891 = vperm.xlu0 %1605, %v593_v18  }
  0xcd   :  { %v2055_v29 = vpop.permute.xlu1 %348  ;;  %v2057_v30 = vpop.permute.xlu0 %343 }
  0xce   :  { %816 = vperm.xlu1 %1606, %v578_v25   ;;  %811 = vperm.xlu0 %1605, %v577_v26   ;;  %v472_v26 = vmul.f32 %v1877_v8, %v24_v1  ;;  %v596_v8 = vld [vmem:[%s2527_s3 + $0x1e8] sm:$0xff] }
  0xd1   :  { %v394_v38 = vpop.permute.xlu1 %393  ;;  %v2068_v41 = vpop.permute.xlu0 %353 }
  0xd2   :  { %458 = vperm.xlu1 %1606, %v148_v33   ;;  %453 = vperm.xlu0 %1605, %v147_v34   ;;  %v519_v33 = vmul.f32 %v394_v38, %v71_v2  ;;  %v595_v38 = vld [vmem:[%s2527_s3 + $0x1e0] sm:$0xff] }
  0xd5   :  { %v682_v53 = vpop.permute.xlu1 %681  ;;  %v399_v54 = vpop.permute.xlu0 %398 }
  0xd6   :  { %v935_v57 = vadd.f32 %v682_v53, %v487_v46  ;;  %746 = vperm.xlu1 %1606, %v564_v42   ;;  %741 = vperm.xlu0 %1605, %v563_v45   ;;  %v72_v42 = vld [vmem:[%s2528_s1 + $0x188] sm:$0xff] }
  0xd8   :  { %v999_v9 = vmul.f32 0.2, %v935_v57 }
  0xd9   :  { %v602_v10 = vpop.permute.xlu1 %601  ;;  %v687_v17 = vpop.permute.xlu0 %686 }
  0xda   :  { %v919_v18 = vadd.f32 %v602_v10, %v471_v61  ;;  %v936_v25 = vadd.f32 %v687_v17, %v488_v62  ;;  %378 = vperm.xlu1 %1606, %v132_v58   ;;  %373 = vperm.xlu0 %1605, %v131_v36   ;;  %v1063_v50 = vmax.f32 %v935_v57, %v999_v9  ;;  %v56_v57 = vld [vmem:[%s2528_s1 + $0x108] sm:$0xff] }
  0xdb   :  { %v503_v61 = vmul.f32 %v2027_v6, %v55_v37  ;;  %v520_v62 = vmul.f32 %v399_v54, %v72_v42  ;;  %v580_v6 = vld [vmem:[%s2527_s3 + $0x168] sm:$0xff]  ;;  %v579_v54 = vld [vmem:[%s2527_s3 + $0x160] sm:$0xff] }
  0xdc   :  { %v1000_v34 = vmul.f32 0.2, %v936_v25  ;;  %v983_v45 = vmul.f32 0.2, %v919_v18 }
  0xdd   :  { %v842_v46 = vpop.permute.xlu1 %841  ;;  %v607_v49 = vpop.permute.xlu0 %606 }
  0xde   :  { %v967_v53 = vadd.f32 %v842_v46, %v519_v33  ;;  %v920_v58 = vadd.f32 %v607_v49, %v472_v26  ;;  %666 = vperm.xlu1 %1606, %v548_v4   ;;  %661 = vperm.xlu0 %1605, %v547_v35   ;;  %v1064_v36 = vmax.f32 %v936_v25, %v1000_v34 }
  0xdf   :  { %v1047_v17 = vmax.f32 %v919_v18, %v983_v45  ;;  %v504_v33 = vmul.f32 %v2025_v5, %v56_v57  ;;  %v41_v18 = vld [vmem:[%s2528_s1 + $0x90] sm:$0xff] }
  0xe0   :  { %v984_v1 = vmul.f32 0.2, %v920_v58  ;;  %v1135_v2 = vpack.c.bf16 %v1064_v36, %v1063_v50  ;;  %v1031_v25 = vmul.f32 0.2, %v967_v53  ;;  %v150_v36 = vld [vmem:[%s2526_s2 + $0x1f8] sm:$0xff]  ;;  %v149_v5 = vld [vmem:[%s2526_s2 + $0x1f0] sm:$0xff] }
  0xe1   :  { %v762_v9 = vpop.permute.xlu1 %761  ;;  %v847_v10 = vpop.permute.xlu0 %846 }
  0xe2   :  { %v951_v4 = vadd.f32 %v762_v9, %v503_v61  ;;  %v968_v35 = vadd.f32 %v847_v10, %v520_v62  ;;  %906 = vperm.xlu1 %1606, %v596_v8   ;;  %901 = vperm.xlu0 %1605, %v595_v38   ;;  %v1048_v26 = vmax.f32 %v920_v58, %v984_v1  ;;  %v25_v62 = vld [vmem:[%s2528_s1 + $0x10] sm:$0xff] }
  0xe3   :  { %1524 = vmatprep.subr.bf16.mxu0 %v1135_v2  ;;  %v1095_v50 = vmax.f32 %v967_v53, %v1031_v25  ;;  %v489_v8 = vmul.f32 %v1957_v40, %v41_v18  ;;  %v42_v53 = vld [vmem:[%s2528_s1 + $0x98] sm:$0xff]  ;;  %v473_v25 = vmul.f32 %v1865_v3, %v25_v62 }
  0xe4   :  { %v1032_v34 = vmul.f32 0.2, %v968_v35  ;;  %v1127_v37 = vpack.c.bf16 %v1048_v26, %v1047_v17  ;;  %v1015_v46 = vmul.f32 0.2, %v951_v4  ;;  %v566_v40 = vld [vmem:[%s2527_s3 + $0xf8] sm:$0xff]  ;;  %v565_v17 = vld [vmem:[%s2527_s3 + $0xf0] sm:$0xff] }
  0xe5   :  { %v404_v42 = vpop.permute.xlu1 %403  ;;  %v767_v45 = vpop.permute.xlu0 %766  ;;  %v134_v3 = vld [vmem:[%s2526_s2 + $0x178] sm:$0xff] }
  0xe6   :  { %v952_v49 = vadd.f32 %v767_v45, %v504_v33  ;;  %826 = vperm.xlu1 %1606, %v580_v6   ;;  %821 = vperm.xlu0 %1605, %v579_v54   ;;  %v1096_v58 = vmax.f32 %v968_v35, %v1032_v34  ;;  %v1079_v9 = vmax.f32 %v951_v4, %v1015_v46  ;;  %v26_v6 = vld [vmem:[%s2528_s1 + $0x18] sm:$0xff]  ;;  %v73_v4 = vld [vmem:[%s2528_s1 + $0x190] sm:$0xff] }
  0xe7   :  { %1525 = vmatpush3.bf16.msra.mxu0 %v1127_v37  ;;  %v490_v35 = vmul.f32 %v1955_v39, %v42_v53  ;;  %v474_v39 = vmul.f32 %v1875_v7, %v26_v6  ;;  %v521_v45 = vmul.f32 %v404_v42, %v73_v4  ;;  %v550_v62 = vld [vmem:[%s2527_s3 + $0x78] sm:$0xff] }
  0xe8   :  { %v1016_v38 = vmul.f32 0.2, %v952_v49  ;;  %v1151_v61 = vpack.c.bf16 %v1096_v58, %v1095_v50  ;;  %v57_v50 = vld [vmem:[%s2528_s1 + $0x110] sm:$0xff]  ;;  %v74_v58 = vld [vmem:[%s2528_s1 + $0x198] sm:$0xff] }
  0xe9   :  { %v692_v1 = vpop.permute.xlu1 %691  ;;  %v409_v2 = vpop.permute.xlu0 %408  ;;  %v505_v53 = vmul.f32 %v2037_v14, %v57_v50  ;;  %v598_v14 = vld [vmem:[%s2527_s3 + $0x1f8] sm:$0xff] }
  0xea   :  { %v937_v57 = vadd.f32 %v692_v1, %v489_v8  ;;  %468 = vperm.xlu1 %1606, %v150_v36   ;;  %463 = vperm.xlu0 %1605, %v149_v5   ;;  %v1080_v10 = vmax.f32 %v952_v49, %v1016_v38  ;;  %v133_v49 = vld [vmem:[%s2526_s2 + $0x170] sm:$0xff]  ;;  %v522_v1 = vmul.f32 %v409_v2, %v74_v58 }
  0xeb   :  { %1564 = vmatprep.subr.bf16.mxu1 %v1151_v61 }
  0xec   :  { %v1143_v26 = vpack.c.bf16 %v1080_v10, %v1079_v9  ;;  %v1001_v34 = vmul.f32 0.2, %v937_v57  ;;  %v549_v10 = vld [vmem:[%s2527_s3 + $0x70] sm:$0xff] }
  0xed   :  { %v612_v54 = vpop.permute.xlu1 %611  ;;  %v697_v33 = vpop.permute.xlu0 %696 }
  0xee   :  { %v921_v37 = vadd.f32 %v612_v54, %v473_v25  ;;  %v938_v18 = vadd.f32 %v697_v33, %v490_v35  ;;  %756 = vperm.xlu1 %1606, %v566_v40   ;;  %751 = vperm.xlu0 %1605, %v565_v17   ;;  %v1065_v38 = vmax.f32 %v937_v57, %v1001_v34  ;;  %v58_v57 = vld [vmem:[%s2528_s1 + $0x118] sm:$0xff]  ;;  %v597_v34 = vld [vmem:[%s2527_s3 + $0x1f0] sm:$0xff] }
  0xef   :  { %1565 = vmatpush3.bf16.msra.mxu1 %v1143_v26  ;;  %v506_v2 = vmul.f32 %v2035_v13, %v58_v57  ;;  %v582_v13 = vld [vmem:[%s2527_s3 + $0x178] sm:$0xff] }
  0xf0   :  { %v1002_v46 = vmul.f32 0.2, %v938_v18  ;;  %v985_v36 = vmul.f32 0.2, %v921_v37 }
  0xf1   :  { %v852_v5 = vpop.permute.xlu1 %851  ;;  %v617_v8 = vpop.permute.xlu0 %616 }
  0xf2   :  { %v1066_v61 = vmax.f32 %v938_v18, %v1002_v46  ;;  %v969_v7 = vadd.f32 %v852_v5, %v521_v45  ;;  %v922_v42 = vadd.f32 %v617_v8, %v474_v39  ;;  %388 = vperm.xlu1 %1606, %v134_v3   ;;  %383 = vperm.xlu0 %1605, %v133_v49   ;;  %v43_v18 = vld [vmem:[%s2528_s1 + $0xa0] sm:$0xff]  ;;  %v581_v5 = vld [vmem:[%s2527_s3 + $0x170] sm:$0xff] }
  0xf3   :  { %v1049_v17 = vmax.f32 %v921_v37, %v985_v36  ;;  %v491_v58 = vmul.f32 %v1967_v44, %v43_v18  ;;  %v1160_v44 = vld [vmem:[%s2529_s4 + $0x8] sm:$0xff] }
  0xf4   :  { %v986_v9 = vmul.f32 0.2, %v922_v42  ;;  %v1136_v40 = vpack.c.bf16 %v1066_v61, %v1065_v38  ;;  %v1033_v26 = vmul.f32 0.2, %v969_v7  ;;  %v27_v38 = vld [vmem:[%s2528_s1 + $0x20] sm:$0xff]  ;;  %v44_v61 = vld [vmem:[%s2528_s1 + $0xa8] sm:$0xff] }
  0xf5   :  { %v772_v25 = vpop.permute.xlu1 %771  ;;  %v857_v35 = vpop.permute.xlu0 %856  ;;  %v475_v57 = vmul.f32 %v1887_v12, %v27_v38  ;;  %v76_v18 = vld [vmem:[%s2528_s1 + $0x1a8] sm:$0xff]  ;;  %v1163_v38 = vld [vmem:[%s2529_s4 + $0x20] sm:$0xff] }
  0xf6   :  { %v1050_v6 = vmax.f32 %v922_v42, %v986_v9  ;;  %v953_v4 = vadd.f32 %v772_v25, %v505_v53  ;;  %v970_v54 = vadd.f32 %v857_v35, %v522_v1  ;;  %676 = vperm.xlu1 %1606, %v550_v62   ;;  %671 = vperm.xlu0 %1605, %v549_v10   ;;  %v28_v9 = vld [vmem:[%s2528_s1 + $0x28] sm:$0xff]  ;;  %v75_v10 = vld [vmem:[%s2528_s1 + $0x1a0] sm:$0xff] }
  0xf7   :  { %1526 = vmatprep.subr.bf16.mxu0 %v1136_v40  ;;  %v1097_v45 = vmax.f32 %v969_v7, %v1033_v26  ;;  %v1609_v40 = vld [vmem:[%s2530_s0 + $0x4] ss:$16 sps:$4 sm:$0xff]   ;;  %v476_v12 = vmul.f32 %v1885_v11, %v28_v9 }
  0xf8   :  { %v1034_v33 = vmul.f32 0.2, %v970_v54  ;;  %v1128_v37 = vpack.c.bf16 %v1050_v6, %v1049_v17  ;;  %v1017_v46 = vmul.f32 0.2, %v953_v4  ;;  %v492_v17 = vmul.f32 %v1965_v43, %v44_v61  ;;  %v1159_v25 = vld [vmem:[%s2529_s4] sm:$0xff]  ;;  %1319 = vmatprep.mubr.bf16.mxu0 %v1609_v40 }
  0xf9   :  { %v414_v3 = vpop.permute.xlu1 %413  ;;  %v777_v39 = vpop.permute.xlu0 %776 }
  0xfa   :  { %v1098_v49 = vmax.f32 %v970_v54, %v1034_v33  ;;  %v954_v50 = vadd.f32 %v777_v39, %v506_v2  ;;  %916 = vperm.xlu1 %1606, %v598_v14   ;;  %911 = vperm.xlu0 %1605, %v597_v34   ;;  %v1081_v62 = vmax.f32 %v953_v4, %v1017_v46  ;;  %v1162_v4 = vld [vmem:[%s2529_s4 + $0x18] sm:$0xff]  ;;  %v1161_v34 = vld [vmem:[%s2529_s4 + $0x10] sm:$0xff] }
  0xfb   :  { %1527 = vmatpush3.bf16.msra.mxu0 %v1128_v37  ;;  %v523_v43 = vmul.f32 %v414_v3, %v75_v10  ;;  %v59_v37 = vld [vmem:[%s2528_s1 + $0x120] sm:$0xff] }
  0xfc   :  { %v1018_v36 = vmul.f32 0.2, %v954_v50  ;;  %v1152_v8 = vpack.c.bf16 %v1098_v49, %v1097_v45 }
  0xfd   :  { %v702_v7 = vpop.permute.xlu1 %701  ;;  %v419_v42 = vpop.permute.xlu0 %418 }
  0xfe   :  { %v1082_v53 = vmax.f32 %v954_v50, %v1018_v36  ;;  %v939_v1 = vadd.f32 %v702_v7, %v491_v58  ;;  %836 = vperm.xlu1 %1606, %v582_v13   ;;  %1566 = vmatprep.subr.bf16.mxu1 %v1152_v8  ;;  %v1164_v13 = vld [vmem:[%s2529_s4 + $0x28] sm:$0xff]  ;;  %v507_v36 = vmul.f32 %v2047_v22, %v59_v37  ;;  %v1166_v22 = vld [vmem:[%s2529_s4 + $0x38] sm:$0xff] }
  0xff   :  { %831 = vperm.xlu0 %1605, %v581_v5   ;;  %v1614_v58 = vld [vmem:[%s2530_s0 + $0xc] ss:$16 sps:$4 sm:$0xff]   ;;  %v524_v5 = vmul.f32 %v419_v42, %v76_v18 }
 0x100   :  { %v1144_v35 = vpack.c.bf16 %v1082_v53, %v1081_v62  ;;  %v1003_v54 = vmul.f32 0.2, %v939_v1  ;;  %v60_v7 = vld [vmem:[%s2528_s1 + $0x128] sm:$0xff]  ;;  %1384 = vmatprep.mubr.bf16.mxu1 %v1614_v58 }
 0x101   :  { %v622_v26 = vpop.permute.xlu1 %621  ;;  %v707_v6 = vpop.permute.xlu0 %706  ;;  %v508_v42 = vmul.f32 %v2045_v21, %v60_v7  ;;  %v78_v7 = vld [vmem:[%s2528_s1 + $0x1b8] sm:$0xff] }
 0x102   :  { %v923_v14 = vadd.f32 %v622_v26, %v475_v57  ;;  %v940_v2 = vadd.f32 %v707_v6, %v492_v17  ;;  %1174 = vperm.xlu1 %1606, %v1160_v44   ;;  %1567 = vmatpush3.bf16.msra.mxu1 %v1144_v35  ;;  %v1067_v49 = vmax.f32 %v939_v1, %v1003_v54  ;;  %v1165_v17 = vld [vmem:[%s2529_s4 + $0x30] sm:$0xff] }
 0x103   :  { %1169 = vperm.xlu0 %1605, %v1159_v25   ;;  %v45_v35 = vld [vmem:[%s2528_s1 + $0xb0] sm:$0xff] }
 0x104   :  { %v1004_v33 = vmul.f32 0.2, %v940_v2  ;;  %v987_v39 = vmul.f32 0.2, %v923_v14  ;;  %v493_v21 = vmul.f32 %v1977_v48, %v45_v35 }
 0x105   :  { %v862_v45 = vpop.permute.xlu1 %861  ;;  %v627_v46 = vpop.permute.xlu0 %626 }
 0x106   :  { %v1068_v50 = vmax.f32 %v940_v2, %v1004_v33  ;;  %v971_v11 = vadd.f32 %v862_v45, %v523_v43  ;;  %v924_v3 = vadd.f32 %v627_v46, %v476_v12  ;;  %1184 = vperm.xlu1 %1606, %v1162_v4   ;;  %v1051_v62 = vmax.f32 %v923_v14, %v987_v39  ;;  %v29_v33 = vld [vmem:[%s2528_s1 + $0x30] sm:$0xff] }
 0x107   :  { %1179 = vperm.xlu0 %1605, %v1161_v34   ;;  %v46_v34 = vld [vmem:[%s2528_s1 + $0xb8] sm:$0xff] }
 0x108   :  { %v988_v8 = vmul.f32 0.2, %v924_v3  ;;  %v1137_v61 = vpack.c.bf16 %v1068_v50, %v1067_v49  ;;  %v1035_v44 = vmul.f32 0.2, %v971_v11  ;;  %v477_v49 = vmul.f32 %v1897_v16, %v29_v33 }
 0x109   :  { %v782_v53 = vpop.permute.xlu1 %781  ;;  %v867_v1 = vpop.permute.xlu0 %866  ;;  %v494_v48 = vmul.f32 %v1975_v47, %v46_v34  ;;  %v61_v47 = vld [vmem:[%s2528_s1 + $0x130] sm:$0xff] }
 0x10a   :  { %v1052_v9 = vmax.f32 %v924_v3, %v988_v8  ;;  %v955_v10 = vadd.f32 %v782_v53, %v507_v36  ;;  %v972_v40 = vadd.f32 %v867_v1, %v524_v5  ;;  %1194 = vperm.xlu1 %1606, %v1164_v13   ;;  %1528 = vmatprep.subr.bf16.mxu0 %v1137_v61  ;;  %v77_v3 = vld [vmem:[%s2528_s1 + $0x1b0] sm:$0xff] }
 0x10b   :  { %1189 = vperm.xlu0 %1605, %v1163_v38   ;;  %v1099_v4 = vmax.f32 %v971_v11, %v1035_v44  ;;  %v30_v11 = vld [vmem:[%s2528_s1 + $0x38] sm:$0xff] }
 0x10c   :  { %v1036_v57 = vmul.f32 0.2, %v972_v40  ;;  %v1129_v25 = vpack.c.bf16 %v1052_v9, %v1051_v62  ;;  %v1019_v54 = vmul.f32 0.2, %v955_v10  ;;  %v478_v38 = vmul.f32 %v1895_v15, %v30_v11 }
 0x10d   :  { %v424_v26 = vpop.permute.xlu1 %423  ;;  %v787_v6 = vpop.permute.xlu0 %786 }
 0x10e   :  { %v1100_v14 = vmax.f32 %v972_v40, %v1036_v57  ;;  %v956_v2 = vadd.f32 %v787_v6, %v508_v42  ;;  %1204 = vperm.xlu1 %1606, %v1166_v22   ;;  %1529 = vmatpush3.bf16.msra.mxu0 %v1129_v25  ;;  %v1083_v39 = vmax.f32 %v955_v10, %v1019_v54 }
 0x10f   :  { %1199 = vperm.xlu0 %1605, %v1165_v17   ;;  %v525_v16 = vmul.f32 %v424_v26, %v77_v3  ;;  %v509_v22 = vmul.f32 %v2057_v30, %v61_v47  ;;  %v62_v17 = vld [vmem:[%s2528_s1 + $0x138] sm:$0xff]  ;;  %v47_v30 = vld [vmem:[%s2528_s1 + $0xc0] sm:$0xff] }
 0x110   :  { %v1020_v12 = vmul.f32 0.2, %v956_v2  ;;  %v1153_v43 = vpack.c.bf16 %v1100_v14, %v1099_v4 }
 0x111   :  { %v712_v37 = vpop.permute.xlu1 %711  ;;  %v429_v18 = vpop.permute.xlu0 %428 }
 0x112   :  { %v1084_v45 = vmax.f32 %v956_v2, %v1020_v12  ;;  %v941_v46 = vadd.f32 %v712_v37, %v493_v21  ;;  %1568 = vmatprep.subr.bf16.mxu1 %v1153_v43  ;;  %v526_v15 = vmul.f32 %v429_v18, %v78_v7  ;;  %v510_v2 = vmul.f32 %v2055_v29, %v62_v17  ;;  %v48_v29 = vld [vmem:[%s2528_s1 + $0xc8] sm:$0xff] }
 0x114   :  { %v1145_v50 = vpack.c.bf16 %v1084_v45, %v1083_v39  ;;  %v1005_v36 = vmul.f32 0.2, %v941_v46  ;;  %v495_v45 = vmul.f32 %v1987_v52, %v47_v30  ;;  %v31_v52 = vld [vmem:[%s2528_s1 + $0x40] sm:$0xff] }
 0x115   :  { %v632_v13 = vpop.permute.xlu1 %631  ;;  %v717_v58 = vpop.permute.xlu0 %716  ;;  %v479_v7 = vmul.f32 %v1907_v20, %v31_v52 }
 0x116   :  { %v925_v5 = vadd.f32 %v632_v13, %v477_v49  ;;  %v942_v8 = vadd.f32 %v717_v58, %v494_v48  ;;  %1569 = vmatpush3.bf16.msra.mxu1 %v1145_v50  ;;  %v1069_v44 = vmax.f32 %v941_v46, %v1005_v36  ;;  %v496_v58 = vmul.f32 %v1985_v51, %v48_v29  ;;  %v79_v51 = vld [vmem:[%s2528_s1 + $0x1c0] sm:$0xff] }
 0x118   :  { %v1006_v61 = vmul.f32 0.2, %v942_v8  ;;  %v989_v62 = vmul.f32 0.2, %v925_v5 }
 0x119   :  { %v872_v53 = vpop.permute.xlu1 %871  ;;  %v637_v1 = vpop.permute.xlu0 %636 }
 0x11a   :  { %v1070_v9 = vmax.f32 %v942_v8, %v1006_v61  ;;  %v973_v10 = vadd.f32 %v872_v53, %v525_v16  ;;  %v926_v40 = vadd.f32 %v637_v1, %v478_v38  ;;  %v1053_v25 = vmax.f32 %v925_v5, %v989_v62  ;;  %v32_v5 = vld [vmem:[%s2528_s1 + $0x48] sm:$0xff] }
 0x11b   :  { %v480_v47 = vmul.f32 %v1905_v19, %v32_v5  ;;  %v80_v53 = vld [vmem:[%s2528_s1 + $0x1c8] sm:$0xff]  ;;  %v63_v19 = vld [vmem:[%s2528_s1 + $0x140] sm:$0xff] }
 0x11c   :  { %v990_v42 = vmul.f32 0.2, %v926_v40  ;;  %v1138_v57 = vpack.c.bf16 %v1070_v9, %v1069_v44  ;;  %v1037_v6 = vmul.f32 0.2, %v973_v10 }
 0x11d   :  { %v792_v35 = vpop.permute.xlu1 %791  ;;  %v877_v26 = vpop.permute.xlu0 %876 }
 0x11e   :  { %v1054_v4 = vmax.f32 %v926_v40, %v990_v42  ;;  %v957_v54 = vadd.f32 %v792_v35, %v509_v22  ;;  %v974_v14 = vadd.f32 %v877_v26, %v526_v15  ;;  %1530 = vmatprep.subr.bf16.mxu0 %v1138_v57  ;;  %v1101_v34 = vmax.f32 %v973_v10, %v1037_v6 }
 0x120   :  { %v1038_v21 = vmul.f32 0.2, %v974_v14  ;;  %v1130_v12 = vpack.c.bf16 %v1054_v4, %v1053_v25  ;;  %v1021_v37 = vmul.f32 0.2, %v957_v54  ;;  %v64_v25 = vld [vmem:[%s2528_s1 + $0x148] sm:$0xff] }
 0x121   :  { %v434_v43 = vpop.permute.xlu1 %433  ;;  %v797_v33 = vpop.permute.xlu0 %796 }
 0x122   :  { %v1102_v18 = vmax.f32 %v974_v14, %v1038_v21  ;;  %v958_v39 = vadd.f32 %v797_v33, %v510_v2  ;;  %1531 = vmatpush3.bf16.msra.mxu0 %v1130_v12  ;;  %v1085_v11 = vmax.f32 %v957_v54, %v1021_v37  ;;  %v527_v15 = vmul.f32 %v434_v43, %v79_v51  ;;  %v33_v51 = vld [vmem:[%s2528_s1 + $0x50] sm:$0xff] }
 0x123   :  { %v511_v2 = vmul.f32 %v2068_v41, %v63_v19  ;;  %v49_v41 = vld [vmem:[%s2528_s1 + $0xd0] sm:$0xff] }
 0x124   :  { %v1022_v46 = vmul.f32 0.2, %v958_v39  ;;  %v1154_v49 = vpack.c.bf16 %v1102_v18, %v1101_v34 }
 0x125   :  { %v722_v48 = vpop.permute.xlu1 %721  ;;  %v439_v50 = vpop.permute.xlu0 %438 }
 0x126   :  { %v1086_v3 = vmax.f32 %v958_v39, %v1022_v46  ;;  %v943_v13 = vadd.f32 %v722_v48, %v495_v45  ;;  %1570 = vmatprep.subr.bf16.mxu1 %v1154_v49  ;;  %v528_v20 = vmul.f32 %v439_v50, %v80_v53  ;;  %v50_v48 = vld [vmem:[%s2528_s1 + $0xd8] sm:$0xff] }
 0x128   :  { %v1146_v36 = vpack.c.bf16 %v1086_v3, %v1085_v11  ;;  %v1007_v16 = vmul.f32 0.2, %v943_v13 }
 0x129   :  { %v359_v8 = vpop.permute.xlu1 %358  ;;  %v727_v38 = vpop.permute.xlu0 %726 }
 0x12a   :  { %v944_v61 = vadd.f32 %v727_v38, %v496_v58  ;;  %1571 = vmatpush3.bf16.msra.mxu1 %v1146_v36  ;;  %v1071_v9 = vmax.f32 %v943_v13, %v1007_v16  ;;  %v512_v21 = vmul.f32 %v359_v8, %v64_v25  ;;  %v498_v58 = vmul.f32 %v1995_v55, %v50_v48  ;;  %v65_v25 = vld [vmem:[%s2528_s1 + $0x150] sm:$0xff]  ;;  %v52_v48 = vld [vmem:[%s2528_s1 + $0xe8] sm:$0xff] }
 0x12b   :  { %v497_v36 = vmul.f32 %v1997_v56, %v49_v41  ;;  %v51_v41 = vld [vmem:[%s2528_s1 + $0xe0] sm:$0xff] }
 0x12c   :  { %v1008_v62 = vmul.f32 0.2, %v944_v61 }
 0x12d   :  { %v647_v1 = vpop.permute.xlu1 %646  ;;  %v642_v44 = vpop.permute.xlu0 %641 }
 0x12e   :  { %v1072_v10 = vmax.f32 %v944_v61, %v1008_v62  ;;  %v928_v40 = vadd.f32 %v647_v1, %v480_v47  ;;  %v927_v22 = vadd.f32 %v642_v44, %v479_v7  ;;  %v34_v7 = vld [vmem:[%s2528_s1 + $0x58] sm:$0xff]  ;;  %v481_v44 = vmul.f32 %v1917_v24, %v33_v51  ;;  %v35_v51 = vld [vmem:[%s2528_s1 + $0x60] sm:$0xff] }
 0x12f   :  { %v482_v1 = vmul.f32 %v1915_v23, %v34_v7  ;;  %v66_v23 = vld [vmem:[%s2528_s1 + $0x158] sm:$0xff]  ;;  %v36_v7 = vld [vmem:[%s2528_s1 + $0x68] sm:$0xff] }
 0x130   :  { %v992_v42 = vmul.f32 0.2, %v928_v40  ;;  %v991_v57 = vmul.f32 0.2, %v927_v22  ;;  %v1139_v17 = vpack.c.bf16 %v1072_v10, %v1071_v9  ;;  %v82_v10 = vld [vmem:[%s2528_s1 + $0x1d8] sm:$0xff] }
 0x131   :  { %v887_v35 = vpop.permute.xlu1 %886  ;;  %v882_v26 = vpop.permute.xlu0 %881 }
 0x132   :  { %v1056_v6 = vmax.f32 %v928_v40, %v992_v42  ;;  %v1055_v4 = vmax.f32 %v927_v22, %v991_v57  ;;  %v976_v54 = vadd.f32 %v887_v35, %v528_v20  ;;  %v975_v14 = vadd.f32 %v882_v26, %v527_v15  ;;  %1532 = vmatprep.subr.bf16.mxu0 %v1139_v17  ;;  %v81_v40 = vld [vmem:[%s2528_s1 + $0x1d0] sm:$0xff] }
 0x134   :  { %v1040_v12 = vmul.f32 0.2, %v976_v54  ;;  %v1039_v30 = vmul.f32 0.2, %v975_v14  ;;  %v1131_v43 = vpack.c.bf16 %v1056_v6, %v1055_v4 }
 0x135   :  { %v807_v33 = vpop.permute.xlu1 %806  ;;  %v802_v34 = vpop.permute.xlu0 %801 }
 0x136   :  { %v1104_v37 = vmax.f32 %v976_v54, %v1040_v12  ;;  %v1103_v18 = vmax.f32 %v975_v14, %v1039_v30  ;;  %v960_v39 = vadd.f32 %v807_v33, %v512_v21  ;;  %v959_v45 = vadd.f32 %v802_v34, %v511_v2  ;;  %1533 = vmatpush3.bf16.msra.mxu0 %v1131_v43 }
 0x138   :  { %v1024_v46 = vmul.f32 0.2, %v960_v39  ;;  %v1023_v49 = vmul.f32 0.2, %v959_v45  ;;  %v1155_v29 = vpack.c.bf16 %v1104_v37, %v1103_v18 }
 0x139   :  { %v449_v50 = vpop.permute.xlu1 %448  ;;  %v444_v11 = vpop.permute.xlu0 %443 }
 0x13a   :  { %v1088_v3 = vmax.f32 %v960_v39, %v1024_v46  ;;  %v1087_v13 = vmax.f32 %v959_v45, %v1023_v49  ;;  %1572 = vmatprep.subr.bf16.mxu1 %v1155_v29  ;;  %v530_v42 = vmul.f32 %v449_v50, %v82_v10  ;;  %v529_v57 = vmul.f32 %v444_v11, %v81_v40 }
 0x13c   :  { %v1147_v5 = vpack.c.bf16 %v1088_v3, %v1087_v13 }
 0x13d   :  { %v737_v52 = vpop.permute.xlu1 %736  ;;  %v732_v8 = vpop.permute.xlu0 %731 }
 0x13e   :  { %v946_v38 = vadd.f32 %v737_v52, %v498_v58  ;;  %v945_v16 = vadd.f32 %v732_v8, %v497_v36  ;;  %1573 = vmatpush3.bf16.msra.mxu1 %v1147_v5  ;;  %v500_v58 = vmul.f32 %v2005_v59, %v52_v48  ;;  %v499_v36 = vmul.f32 %v2007_v60, %v51_v41 }
 0x140   :  { %v1010_v61 = vmul.f32 0.2, %v946_v38  ;;  %v1009_v47 = vmul.f32 0.2, %v945_v16 }
 0x141   :  { %v369_v62 = vpop.permute.xlu1 %368  ;;  %v364_v55 = vpop.permute.xlu0 %363 }
 0x142   :  { %v1074_v53 = vmax.f32 %v946_v38, %v1010_v61  ;;  %v1073_v56 = vmax.f32 %v945_v16, %v1009_v47  ;;  %v514_v2 = vmul.f32 %v369_v62, %v66_v23  ;;  %v513_v21 = vmul.f32 %v364_v55, %v65_v25 }
 0x144   :  { %v1140_v9 = vpack.c.bf16 %v1074_v53, %v1073_v56  ;;  %v484_v53 = vmul.f32 %v1925_v27, %v36_v7  ;;  %v483_v56 = vmul.f32 %v1927_v28, %v35_v51  ;;  %v68_v27 = vld [vmem:[%s2528_s1 + $0x168] sm:$0xff] }
 0x145   :  { %v657_v22 = vpop.permute.xlu1 %656  ;;  %v652_v15 = vpop.permute.xlu0 %651 }
 0x146   :  { %v930_v19 = vadd.f32 %v657_v22, %v482_v1  ;;  %v929_v20 = vadd.f32 %v652_v15, %v481_v44  ;;  %1534 = vmatprep.subr.bf16.mxu0 %v1140_v9  ;;  %v84_v44 = vld [vmem:[%s2528_s1 + $0x1e8] sm:$0xff]  ;;  %v83_v9 = vld [vmem:[%s2528_s1 + $0x1e0] sm:$0xff] }
 0x148   :  { %v994_v24 = vmul.f32 0.2, %v930_v19  ;;  %v993_v17 = vmul.f32 0.2, %v929_v20 }
 0x149   :  { %v897_v35 = vpop.permute.xlu1 %896  ;;  %v892_v26 = vpop.permute.xlu0 %891 }
 0x14a   :  { %v1058_v6 = vmax.f32 %v930_v19, %v994_v24  ;;  %v1057_v4 = vmax.f32 %v929_v20, %v993_v17  ;;  %v978_v54 = vadd.f32 %v897_v35, %v530_v42  ;;  %v977_v14 = vadd.f32 %v892_v26, %v529_v57  ;;  %v67_v57 = vld [vmem:[%s2528_s1 + $0x160] sm:$0xff] }
 0x14c   :  { %v1042_v12 = vmul.f32 0.2, %v978_v54  ;;  %v1041_v30 = vmul.f32 0.2, %v977_v14  ;;  %v1132_v43 = vpack.c.bf16 %v1058_v6, %v1057_v4 }
 0x14d   :  { %v817_v33 = vpop.permute.xlu1 %816  ;;  %v812_v34 = vpop.permute.xlu0 %811 }
 0x14e   :  { %v1106_v37 = vmax.f32 %v978_v54, %v1042_v12  ;;  %v1105_v18 = vmax.f32 %v977_v14, %v1041_v30  ;;  %v962_v39 = vadd.f32 %v817_v33, %v514_v2  ;;  %v961_v45 = vadd.f32 %v812_v34, %v513_v21  ;;  %1535 = vmatpush3.bf16.msra.mxu0 %v1132_v43 }
 0x150   :  { %v1026_v46 = vmul.f32 0.2, %v962_v39  ;;  %v1025_v49 = vmul.f32 0.2, %v961_v45  ;;  %v1156_v29 = vpack.c.bf16 %v1106_v37, %v1105_v18 }
 0x151   :  { %v459_v50 = vpop.permute.xlu1 %458  ;;  %v454_v11 = vpop.permute.xlu0 %453 }
 0x152   :  { %v1090_v3 = vmax.f32 %v962_v39, %v1026_v46  ;;  %v1089_v13 = vmax.f32 %v961_v45, %v1025_v49  ;;  %1574 = vmatprep.subr.bf16.mxu1 %v1156_v29  ;;  %v532_v19 = vmul.f32 %v459_v50, %v84_v44  ;;  %v531_v20 = vmul.f32 %v454_v11, %v83_v9  ;;  %v54_v45 = vld [vmem:[%s2528_s1 + $0xf8] sm:$0xff]  ;;  %v53_v46 = vld [vmem:[%s2528_s1 + $0xf0] sm:$0xff] }
 0x153   :  { %v502_v50 = vmul.f32 %v2015_v63, %v54_v45  ;;  %v501_v11 = vmul.f32 %v2017_v0, %v53_v46  ;;  %v1618_v45 = vld [vmem:[%s2530_s0 + $0x2c] ss:$16 sps:$4 sm:$0xff]   ;;  %v1620_v46 = vld [vmem:[%s2530_s0 + $0x40] ss:$16 sps:$4 sm:$0xff]  }
 0x154   :  { %v1148_v5 = vpack.c.bf16 %v1090_v3, %v1089_v13 }
 0x155   :  { %v747_v52 = vpop.permute.xlu1 %746  ;;  %v742_v8 = vpop.permute.xlu0 %741 }
 0x156   :  { %v948_v38 = vadd.f32 %v747_v52, %v500_v58  ;;  %v947_v16 = vadd.f32 %v742_v8, %v499_v36  ;;  %1575 = vmatpush3.bf16.msra.mxu1 %v1148_v5 }
 0x158   :  { %v1012_v61 = vmul.f32 0.2, %v948_v38  ;;  %v1011_v47 = vmul.f32 0.2, %v947_v16 }
 0x159   :  { %v379_v62 = vpop.permute.xlu1 %378  ;;  %v374_v59 = vpop.permute.xlu0 %373 }
 0x15a   :  { %v1076_v55 = vmax.f32 %v948_v38, %v1012_v61  ;;  %v1075_v60 = vmax.f32 %v947_v16, %v1011_v47  ;;  %v516_v6 = vmul.f32 %v379_v62, %v68_v27  ;;  %v515_v4 = vmul.f32 %v374_v59, %v67_v57  ;;  %v38_v38 = vld [vmem:[%s2528_s1 + $0x78] sm:$0xff]  ;;  %v37_v61 = vld [vmem:[%s2528_s1 + $0x70] sm:$0xff] }
 0x15b   :  { %v486_v7 = vmul.f32 %v1935_v31, %v38_v38  ;;  %v485_v62 = vmul.f32 %v1937_v32, %v37_v61  ;;  %v86_v59 = vld [vmem:[%s2528_s1 + $0x1f8] sm:$0xff] }
 0x15c   :  { %v1141_v1 = vpack.c.bf16 %v1076_v55, %v1075_v60  ;;  %v85_v60 = vld [vmem:[%s2528_s1 + $0x1f0] sm:$0xff]  ;;  %v70_v31 = vld [vmem:[%s2528_s1 + $0x178] sm:$0xff] }
 0x15d   :  { %v667_v10 = vpop.permute.xlu1 %666  ;;  %v662_v40 = vpop.permute.xlu0 %661 }
 0x15e   :  { %v932_v22 = vadd.f32 %v667_v10, %v484_v53  ;;  %v931_v15 = vadd.f32 %v662_v40, %v483_v56  ;;  %1536 = vmatprep.subr.bf16.mxu0 %v1141_v1 }
 0x160   :  { %v996_v28 = vmul.f32 0.2, %v932_v22  ;;  %v995_v42 = vmul.f32 0.2, %v931_v15 }
 0x161   :  { %v907_v23 = vpop.permute.xlu1 %906  ;;  %v902_v24 = vpop.permute.xlu0 %901 }
 0x162   :  { %v1060_v17 = vmax.f32 %v932_v22, %v996_v28  ;;  %v1059_v25 = vmax.f32 %v931_v15, %v995_v42  ;;  %v980_v35 = vadd.f32 %v907_v23, %v532_v19  ;;  %v979_v26 = vadd.f32 %v902_v24, %v531_v20  ;;  %v69_v22 = vld [vmem:[%s2528_s1 + $0x170] sm:$0xff] }
 0x164   :  { %v1044_v54 = vmul.f32 0.2, %v980_v35  ;;  %v1043_v14 = vmul.f32 0.2, %v979_v26  ;;  %v1133_v2 = vpack.c.bf16 %v1060_v17, %v1059_v25 }
 0x165   :  { %v827_v21 = vpop.permute.xlu1 %826  ;;  %v822_v12 = vpop.permute.xlu0 %821 }
 0x166   :  { %v1108_v30 = vmax.f32 %v980_v35, %v1044_v54  ;;  %v1107_v43 = vmax.f32 %v979_v26, %v1043_v14  ;;  %v964_v33 = vadd.f32 %v827_v21, %v516_v6  ;;  %v963_v34 = vadd.f32 %v822_v12, %v515_v4  ;;  %1537 = vmatpush3.bf16.msra.mxu0 %v1133_v2  ;;  %v1607_v4 = vld [vmem:[%s2530_s0] ss:$16 sps:$4 sm:$0xff]   ;;  %v1610_v2 = vld [vmem:[%s2530_s0 + $0x24] ss:$16 sps:$4 sm:$0xff]  }
 0x168   :  { %v1028_v37 = vmul.f32 0.2, %v964_v33  ;;  %v1027_v18 = vmul.f32 0.2, %v963_v34  ;;  %v1157_v39 = vpack.c.bf16 %v1108_v30, %v1107_v43 }
 0x169   :  { %v469_v49 = vpop.permute.xlu1 %468  ;;  %v464_v29 = vpop.permute.xlu0 %463 }
 0x16a   :  { %v1092_v48 = vmax.f32 %v964_v33, %v1028_v37  ;;  %v1091_v41 = vmax.f32 %v963_v34, %v1027_v18  ;;  %1576 = vmatprep.subr.bf16.mxu1 %v1157_v39  ;;  %v534_v44 = vmul.f32 %v469_v49, %v86_v59  ;;  %v533_v10 = vmul.f32 %v464_v29, %v85_v60  ;;  %v1612_v37 = vld [vmem:[%s2530_s0 + $0x8] ss:$16 sps:$4 sm:$0xff]   ;;  %v1615_v18 = vld [vmem:[%s2530_s0 + $0x20] ss:$16 sps:$4 sm:$0xff]   ;;  %v1616_v39 = vld [vmem:[%s2530_s0 + $0x44] ss:$16 sps:$4 sm:$0xff]  }
 0x16b   :  { %v1621_v49 = vld [vmem:[%s2530_s0 + $0x28] ss:$16 sps:$4 sm:$0xff]   ;;  %v1622_v29 = vld [vmem:[%s2530_s0 + $0x64] ss:$16 sps:$4 sm:$0xff]  }
 0x16c   :  { %v1149_v3 = vpack.c.bf16 %v1092_v48, %v1091_v41  ;;  %v1624_v48 = vld [vmem:[%s2530_s0 + $0x4c] ss:$16 sps:$4 sm:$0xff]   ;;  %v1626_v41 = vld [vmem:[%s2530_s0 + $0x60] ss:$16 sps:$4 sm:$0xff]  }
 0x16d   :  { %v757_v13 = vpop.permute.xlu1 %756  ;;  %v752_v58 = vpop.permute.xlu0 %751 }
 0x16e   :  { %v950_v36 = vadd.f32 %v757_v13, %v502_v50  ;;  %v949_v5 = vadd.f32 %v752_v58, %v501_v11  ;;  %1577 = vmatpush3.bf16.msra.mxu1 %v1149_v3  ;;  %v1627_v50 = vld [vmem:[%s2530_s0 + $0x48] ss:$16 sps:$4 sm:$0xff]   ;;  %v1628_v11 = vld [vmem:[%s2530_s0 + $0x6c] ss:$16 sps:$4 sm:$0xff]  }
 0x16f   :  { %v1630_v3 = vld [vmem:[%s2530_s0 + $0x68] ss:$16 sps:$4 sm:$0xff]  }
 0x170   :  { %v1014_v52 = vmul.f32 0.2, %v950_v36  ;;  %v1013_v8 = vmul.f32 0.2, %v949_v5 }
 0x171   :  { %v389_v16 = vpop.permute.xlu1 %388  ;;  %v384_v0 = vpop.permute.xlu0 %383 }
 0x172   :  { %v1078_v63 = vmax.f32 %v950_v36, %v1014_v52  ;;  %v1077_v47 = vmax.f32 %v949_v5, %v1013_v8  ;;  %v518_v42 = vmul.f32 %v389_v16, %v70_v31  ;;  %v517_v23 = vmul.f32 %v384_v0, %v69_v22 }
 0x174   :  { %v1142_v51 = vpack.c.bf16 %v1078_v63, %v1077_v47 }
 0x175   :  { %v677_v55 = vpop.permute.xlu1 %676  ;;  %v672_v56 = vpop.permute.xlu0 %671 }
 0x176   :  { %v934_v53 = vadd.f32 %v677_v55, %v486_v7  ;;  %1538 = vmatprep.subr.bf16.mxu0 %v1142_v51  ;;  %v933_v1 = vadd.f32 %v672_v56, %v485_v62 }
 0x178   :  { %v998_v9 = vmul.f32 0.2, %v934_v53  ;;  %v997_v32 = vmul.f32 0.2, %v933_v1 }
 0x179   :  { %v917_v40 = vpop.permute.xlu1 %916  ;;  %v912_v20 = vpop.permute.xlu0 %911 }
 0x17a   :  { %v1062_v15 = vmax.f32 %v934_v53, %v998_v9  ;;  %v982_v19 = vadd.f32 %v917_v40, %v534_v44  ;;  %v1061_v27 = vmax.f32 %v933_v1, %v997_v32  ;;  %v981_v28 = vadd.f32 %v912_v20, %v533_v10 }
 0x17c   :  { %v1046_v57 = vmul.f32 0.2, %v982_v19  ;;  %v1045_v24 = vmul.f32 0.2, %v981_v28  ;;  %v1134_v25 = vpack.c.bf16 %v1062_v15, %v1061_v27 }
 0x17d   :  { %v837_v17 = vpop.permute.xlu1 %836 }
 0x17e   :  { %v1110_v35 = vmax.f32 %v982_v19, %v1046_v57  ;;  %v966_v26 = vadd.f32 %v837_v17, %v518_v42  ;;  %v832_v6 = vpop.permute.xlu0 %831  ;;  %v1109_v54 = vmax.f32 %v981_v28, %v1045_v24  ;;  %1539 = vmatpush3.bf16.msra.mxu0 %v1134_v25 }
 0x17f   :  { %v965_v14 = vadd.f32 %v832_v6, %v517_v23 }
 0x180   :  { %v1030_v21 = vmul.f32 0.2, %v966_v26  ;;  %v1158_v30 = vpack.c.bf16 %v1110_v35, %v1109_v54 }
 0x181   :  { %v1029_v12 = vmul.f32 0.2, %v965_v14  ;;  %1320 = vmatmul.mubr.bf16.vlgmr.msra.gmra.mrb[0].mxu0 %v1607_v4  ;;  %v1175_v38 = vpop.permute.xlu1 %1174 }
 0x182   :  { %v1094_v43 = vmax.f32 %v966_v26, %v1030_v21  ;;  %1578 = vmatprep.subr.bf16.mxu1 %v1158_v30  ;;  %1327 = vmatprep.mubr.bf16.mxu0 %v1610_v2  ;;  %v1170_v16 = vpop.permute.xlu0 %1169 }
 0x183   :  { %v1093_v33 = vmax.f32 %v965_v14, %v1029_v12 }
 0x185   :  { %v1150_v34 = vpack.c.bf16 %v1094_v43, %v1093_v33  ;;  %v1185_v32 = vpop.permute.xlu1 %1184 }
 0x186   :  { %v1180_v40 = vpop.permute.xlu0 %1179 }
 0x187   :  { %1579 = vmatpush3.bf16.msra.mxu1 %v1150_v34 }
 0x189   :  { %1328 = vmatmul.mubr.bf16.gmra.mrb[4].mxu0 %v1615_v18  ;;  %v1195_v33 = vpop.permute.xlu1 %1194 }
 0x18a   :  { %1385 = vmatmul.mubr.bf16.vlgmr.msra.gmra.mrb[0].mxu1 %v1612_v37  ;;  %1335 = vmatprep.mubr.bf16.mxu0 %v1616_v39  ;;  %v1190_v34 = vpop.permute.xlu0 %1189 }
 0x18b   :  { %1392 = vmatprep.mubr.bf16.mxu1 %v1618_v45 }
 0x191   :  { %1336 = vmatmul.mubr.bf16.gmra.mrb[8].mxu0 %v1620_v46 }
 0x192   :  { %1393 = vmatmul.mubr.bf16.gmra.mrb[4].mxu1 %v1621_v49  ;;  %1343 = vmatprep.mubr.bf16.mxu0 %v1622_v29 }
 0x193   :  { %1400 = vmatprep.mubr.bf16.mxu1 %v1624_v48 }
 0x199   :  { %1344 = vmatmul.mubr.bf16.gmra.mrb[12].mxu0 %v1626_v41 }
 0x19a   :  { %1401 = vmatmul.mubr.bf16.gmra.mrb[8].mxu1 %v1627_v50 }
 0x19b   :  { %1408 = vmatprep.mubr.bf16.mxu1 %v1628_v11 }
 0x1a2   :  { %1409 = vmatmul.mubr.bf16.gmra.mrb[12].mxu1 %v1630_v3 }
 0x254   :  { %v1540_v13 = vpop.f32.mrb[0].mxu0 }
 0x255   :  { %v1541_v58 = vpop.f32.mrb[1].mxu0 }
 0x256   :  { %v1542_v36 = vadd.f32 %v1541_v58, %v1540_v13  ;;  %v1543_v5 = vpop.f32.mrb[2].mxu0 }
 0x257   :  { %v1544_v52 = vpop.f32.mrb[3].mxu0 }
 0x258   :  { %v1545_v8 = vadd.f32 %v1544_v52, %v1543_v5  ;;  %v1322_v7 = vadd.f32 %v1542_v36, %v1170_v16 }
 0x25a   :  { %v1325_v56 = vadd.f32 %v1545_v8, %v1175_v38 }
 0x25c   :  { %v1546_v61 = vpop.f32.mrb[4].mxu0 }
 0x25d   :  { %v1580_v63 = vpop.f32.mrb[0].mxu1  ;;  %v1547_v47 = vpop.f32.mrb[5].mxu0 }
 0x25e   :  { %v1581_v0 = vpop.f32.mrb[1].mxu1  ;;  %v1548_v51 = vadd.f32 %v1547_v47, %v1546_v61  ;;  %v1549_v59 = vpop.f32.mrb[6].mxu0 }
 0x25f   :  { %v1582_v62 = vadd.f32 %v1581_v0, %v1580_v63  ;;  %v1583_v55 = vpop.f32.mrb[2].mxu1  ;;  %v1550_v60 = vpop.f32.mrb[7].mxu0 }
 0x260   :  { %v1584_v53 = vpop.f32.mrb[3].mxu1  ;;  %v1551_v44 = vadd.f32 %v1550_v60, %v1549_v59  ;;  %v1330_v57 = vadd.f32 %v1548_v51, %v1180_v40  ;;  %v1200_v47 = vpop.permute.xlu0 %1199 }
 0x261   :  { %v1387_v1 = vadd.f32 %v1582_v62, %v1322_v7  ;;  %v1585_v9 = vadd.f32 %v1584_v53, %v1583_v55 }
 0x262   :  { %v1333_v26 = vadd.f32 %v1551_v44, %v1185_v32 }
 0x263   :  { %1418 = vst.msk [vmem:[%s2531_s5] sm:$0xff] %vm1417_vm0, %v1387_v1  ;;  %v1390_v10 = vadd.f32 %v1585_v9, %v1325_v56  ;;  %v1426_v31 = vsel %vm1417_vm0, %v1387_v1, 0.0  ;;  %v1450_v27 = vmul.f32 %v1387_v1, %v1387_v1  ;;  %v1205_v56 = vpop.permute.xlu1 %1204 }
 0x264   :  { %1427 = vadd.xlane.f32.xlu0 %v1426_v31  ;;  %v1552_v22 = vpop.f32.mrb[8].mxu0 }
 0x265   :  { %1419 = vst.msk [vmem:[%s2531_s5 + $0x8] sm:$0xff] %vm1417_vm0, %v1390_v10  ;;  %v1586_v15 = vpop.f32.mrb[4].mxu1  ;;  %v1429_v19 = vsel %vm1417_vm0, %v1390_v10, 0.0  ;;  %v1451_v20 = vmul.f32 %v1390_v10, %v1390_v10  ;;  %v1553_v28 = vpop.f32.mrb[9].mxu0  ;;  %v1458_v21 = vsel %vm1417_vm0, %v1450_v27, 0.0 }
 0x266   :  { %v1587_v42 = vpop.f32.mrb[5].mxu1  ;;  %1430 = vadd.xlane.f32.xlu1 %v1429_v19  ;;  %v1554_v23 = vadd.f32 %v1553_v28, %v1552_v22  ;;  %v1555_v17 = vpop.f32.mrb[10].mxu0 }
 0x267   :  { %v1588_v24 = vadd.f32 %v1587_v42, %v1586_v15  ;;  %v1589_v25 = vpop.f32.mrb[6].mxu1  ;;  %v1461_v35 = vsel %vm1417_vm0, %v1451_v20, 0.0  ;;  %v1556_v6 = vpop.f32.mrb[11].mxu0 }
 0x268   :  { %v1590_v4 = vpop.f32.mrb[7].mxu1  ;;  %1462 = vadd.xlane.f32.xlu0 %v1461_v35  ;;  %v1557_v14 = vadd.f32 %v1556_v6, %v1555_v17  ;;  %v1338_v45 = vadd.f32 %v1554_v23, %v1190_v34 }
 0x269   :  { %v1395_v54 = vadd.f32 %v1588_v24, %v1330_v57  ;;  %v1591_v2 = vadd.f32 %v1590_v4, %v1589_v25 }
 0x26a   :  { %1459 = vadd.xlane.f32.xlu1 %v1458_v21  ;;  %v1341_v36 = vadd.f32 %v1557_v14, %v1195_v33 }
 0x26b   :  { %1420 = vst.msk [vmem:[%s2531_s5 + $0x10] sm:$0xff] %vm1417_vm0, %v1395_v54  ;;  %v1398_v12 = vadd.f32 %v1591_v2, %v1333_v26  ;;  %v1432_v30 = vsel %vm1417_vm0, %v1395_v54, 0.0  ;;  %v1452_v43 = vmul.f32 %v1395_v54, %v1395_v54 }
 0x26c   :  { %1433 = vadd.xlane.f32.xlu0 %v1432_v30  ;;  %v1558_v37 = vpop.f32.mrb[12].mxu0 }
 0x26d   :  { %1421 = vst.msk [vmem:[%s2531_s5 + $0x18] sm:$0xff] %vm1417_vm0, %v1398_v12  ;;  %v1592_v18 = vpop.f32.mrb[8].mxu1  ;;  %v1464_v39 = vsel %vm1417_vm0, %v1452_v43, 0.0  ;;  %v1559_v46 = vpop.f32.mrb[13].mxu0  ;;  %v1435_v11 = vsel %vm1417_vm0, %v1398_v12, 0.0  ;;  %v1453_v3 = vmul.f32 %v1398_v12, %v1398_v12 }
 0x26e   :  { %v1593_v49 = vpop.f32.mrb[9].mxu1  ;;  %1465 = vadd.xlane.f32.xlu1 %v1464_v39  ;;  %v1560_v29 = vadd.f32 %v1559_v46, %v1558_v37  ;;  %v1561_v41 = vpop.f32.mrb[14].mxu0 }
 0x26f   :  { %v1594_v48 = vadd.f32 %v1593_v49, %v1592_v18  ;;  %v1595_v50 = vpop.f32.mrb[10].mxu1  ;;  %v1562_v13 = vpop.f32.mrb[15].mxu0  ;;  %v1467_v61 = vsel %vm1417_vm0, %v1453_v3, 0.0 }
 0x270   :  { %v1596_v58 = vpop.f32.mrb[11].mxu1  ;;  %1436 = vadd.xlane.f32.xlu0 %v1435_v11  ;;  %v1563_v52 = vadd.f32 %v1562_v13, %v1561_v41  ;;  %v1346_v7 = vadd.f32 %v1560_v29, %v1200_v47 }
 0x271   :  { %v1403_v5 = vadd.f32 %v1594_v48, %v1338_v45  ;;  %v1597_v8 = vadd.f32 %v1596_v58, %v1595_v50 }
 0x272   :  { %v1349_v44 = vadd.f32 %v1563_v52, %v1205_v56 }
 0x273   :  { %1422 = vst.msk [vmem:[%s2531_s5 + $0x20] sm:$0xff] %vm1417_vm0, %v1403_v5  ;;  %v1406_v38 = vadd.f32 %v1597_v8, %v1341_v36  ;;  %v1438_v16 = vsel %vm1417_vm0, %v1403_v5, 0.0  ;;  %v1454_v63 = vmul.f32 %v1403_v5, %v1403_v5 }
 0x274   :  { %1439 = vadd.xlane.f32.xlu1 %v1438_v16  ;;  %1468 = vadd.xlane.f32.xlu0 %v1467_v61 }
 0x275   :  { %1423 = vst.msk [vmem:[%s2531_s5 + $0x28] sm:$0xff] %vm1417_vm0, %v1406_v38  ;;  %v1598_v0 = vpop.f32.mrb[12].mxu1  ;;  %v1470_v55 = vsel %vm1417_vm0, %v1454_v63, 0.0  ;;  %v1441_v60 = vsel %vm1417_vm0, %v1406_v38, 0.0  ;;  %v1455_v53 = vmul.f32 %v1406_v38, %v1406_v38 }
 0x276   :  { %v1599_v51 = vpop.f32.mrb[13].mxu1 }
 0x277   :  { %v1600_v62 = vadd.f32 %v1599_v51, %v1598_v0  ;;  %v1601_v59 = vpop.f32.mrb[14].mxu1  ;;  %v1473_v40 = vsel %vm1417_vm0, %v1455_v53, 0.0 }
 0x278   :  { %v1602_v1 = vpop.f32.mrb[15].mxu1  ;;  %1471 = vadd.xlane.f32.xlu1 %v1470_v55  ;;  %1442 = vadd.xlane.f32.xlu0 %v1441_v60 }
 0x279   :  { %v1411_v9 = vadd.f32 %v1600_v62, %v1346_v7  ;;  %v1603_v10 = vadd.f32 %v1602_v1, %v1601_v59 }
 0x27b   :  { %1424 = vst.msk [vmem:[%s2531_s5 + $0x30] sm:$0xff] %vm1417_vm0, %v1411_v9  ;;  %v1414_v31 = vadd.f32 %v1603_v10, %v1349_v44  ;;  %v1444_v32 = vsel %vm1417_vm0, %v1411_v9, 0.0  ;;  %v1456_v22 = vmul.f32 %v1411_v9, %v1411_v9 }
 0x27c   :  { %1445 = vadd.xlane.f32.xlu1 %v1444_v32  ;;  %1474 = vadd.xlane.f32.xlu0 %v1473_v40 }
 0x27d   :  { %1425 = vst.msk [vmem:[%s2531_s5 + $0x38] sm:$0xff] %vm1417_vm0, %v1414_v31  ;;  %v1476_v15 = vsel %vm1417_vm0, %v1456_v22, 0.0  ;;  %v1447_v19 = vsel %vm1417_vm0, %v1414_v31, 0.0  ;;  %v1457_v20 = vmul.f32 %v1414_v31, %v1414_v31 }
 0x27f   :  { %v1479_v27 = vsel %vm1417_vm0, %v1457_v20, 0.0 }
 0x280   :  { %1477 = vadd.xlane.f32.xlu1 %v1476_v15  ;;  %1448 = vadd.xlane.f32.xlu0 %v1447_v19 }
 0x284   :  { %1480 = vadd.xlane.f32.xlu0 %v1479_v27 }
 0x2f1   :  { %v1428_v28 = vpop.xlane.xlu0 %1427 }
 0x2f3   :  { %v1431_v42 = vpop.xlane.xlu1 %1430 }
 0x2f5   :  { %v1463_v57 = vpop.xlane.xlu0 %1462 }
 0x2f6   :  { %v1484_v23 = vsel %vm1482_vm1, %v1431_v42, %v1463_v57 }
 0x2f7   :  { %1493 = vst.msk [vmem:[%s2532_s6 + $0x8] sm:$0xff] %vm1491_vm2, %v1484_v23  ;;  %v1460_v24 = vpop.xlane.xlu1 %1459 }
 0x2f8   :  { %v1483_v17 = vsel %vm1482_vm1, %v1428_v28, %v1460_v24 }
 0x2f9   :  { %1492 = vst.msk [vmem:[%s2532_s6] sm:$0xff] %vm1491_vm2, %v1483_v17  ;;  %v1434_v25 = vpop.xlane.xlu0 %1433 }
 0x2fb   :  { %v1466_v35 = vpop.xlane.xlu1 %1465 }
 0x2fc   :  { %v1485_v26 = vsel %vm1482_vm1, %v1434_v25, %v1466_v35 }
 0x2fd   :  { %1494 = vst.msk [vmem:[%s2532_s6 + $0x10] sm:$0xff] %vm1491_vm2, %v1485_v26  ;;  %v1437_v6 = vpop.xlane.xlu0 %1436 }
 0x301   :  { %v1440_v4 = vpop.xlane.xlu1 %1439  ;;  %v1469_v54 = vpop.xlane.xlu0 %1468 }
 0x302   :  { %v1486_v14 = vsel %vm1482_vm1, %v1437_v6, %v1469_v54 }
 0x303   :  { %1495 = vst.msk [vmem:[%s2532_s6 + $0x18] sm:$0xff] %vm1491_vm2, %v1486_v14 }
 0x305   :  { %v1472_v2 = vpop.xlane.xlu1 %1471  ;;  %v1443_v21 = vpop.xlane.xlu0 %1442 }
 0x306   :  { %v1487_v12 = vsel %vm1482_vm1, %v1440_v4, %v1472_v2 }
 0x307   :  { %1496 = vst.msk [vmem:[%s2532_s6 + $0x20] sm:$0xff] %vm1491_vm2, %v1487_v12 }
 0x309   :  { %v1446_v30 = vpop.xlane.xlu1 %1445  ;;  %v1475_v43 = vpop.xlane.xlu0 %1474 }
 0x30a   :  { %v1488_v33 = vsel %vm1482_vm1, %v1443_v21, %v1475_v43 }
 0x30b   :  { %1497 = vst.msk [vmem:[%s2532_s6 + $0x28] sm:$0xff] %vm1491_vm2, %v1488_v33 }
 0x30d   :  { %v1478_v34 = vpop.xlane.xlu1 %1477  ;;  %v1449_v37 = vpop.xlane.xlu0 %1448 }
 0x30e   :  { %v1489_v18 = vsel %vm1482_vm1, %v1446_v30, %v1478_v34 }
 0x30f   :  { %1498 = vst.msk [vmem:[%s2532_s6 + $0x30] sm:$0xff] %vm1491_vm2, %v1489_v18 }
 0x311   :  { %v1481_v39 = vpop.xlane.xlu0 %1480 }
 0x312   :  { %v1490_v45 = vsel %vm1482_vm1, %v1449_v37, %v1481_v39 }
 0x313   :  { %1499 = vst.msk [vmem:[%s2532_s6 + $0x38] sm:$0xff] %vm1491_vm2, %v1490_v45 }

// kernel: discriminator_forward.7
= control target key start
LH: loop header
LB: loop body
LE: loop exit
PB: predicated region body
PF: predicated region fallthrough
CT: control target
= control target key end

     0   :  { %v2573_v0 = vmov 0   ;;  %vm2459_vm0 = vcmask 12288   ;;  %s4366_s2 = inlined_call_operand.vmem [shape: f32[1024,1], index: 2, kind: input, shape index: {}]   ;;  %s4367_s3 = inlined_call_operand.vmem [shape: f32[1024,1], index: 3, kind: input, shape index: {}]   ;;  %s4368_s0 = inlined_call_operand.vmem [shape: bf16[5,1024], index: 0, kind: input, shape index: {}]   ;;  %s4369_s1 = inlined_call_operand.vmem [shape: f32[1024,2], index: 1, kind: input, shape index: {}]   ;;  %s4370_s4 = inlined_call_operand.vmem [shape: f32[5,1], index: 4, kind: input, shape index: {}]   ;;  %s4371_s5 = inlined_call_operand.vmem [shape: f32[5,2], index: 5, kind: output, shape index: {}]  }
   0x1   :  { %2563 = vset.pattern.permute.xlu1 %v2573_v0  ;;  %2562 = vset.pattern.permute.xlu0 %v2573_v0  ;;  %v151_v1 = vld [vmem:[%s4366_s2 + $0x10] sm:$0xff]  ;;  %v149_v2 = vld [vmem:[%s4366_s2] sm:$0xff]  ;;  %v152_v3 = vld [vmem:[%s4366_s2 + $0x18] sm:$0xff] }
   0x2   :  { %289 = vperm.xlu1 %2563, %v151_v1   ;;  %279 = vperm.xlu0 %2562, %v149_v2   ;;  %v150_v4 = vld [vmem:[%s4366_s2 + $0x8] sm:$0xff]  ;;  %v153_v6 = vld [vmem:[%s4366_s2 + $0x20] sm:$0xff]  ;;  %v156_v7 = vld [vmem:[%s4366_s2 + $0x38] sm:$0xff] }
   0x3   :  { %v154_v5 = vld [vmem:[%s4366_s2 + $0x28] sm:$0xff]  ;;  %v155_v8 = vld [vmem:[%s4366_s2 + $0x30] sm:$0xff]  ;;  %v157_v10 = vld [vmem:[%s4366_s2 + $0x40] sm:$0xff] }
   0x4   :  { %v158_v9 = vld [vmem:[%s4366_s2 + $0x48] sm:$0xff]  ;;  %v160_v11 = vld [vmem:[%s4366_s2 + $0x58] sm:$0xff]  ;;  %v159_v12 = vld [vmem:[%s4366_s2 + $0x50] sm:$0xff] }
   0x5   :  { %v162_v13 = vld [vmem:[%s4366_s2 + $0x68] sm:$0xff]  ;;  %v161_v14 = vld [vmem:[%s4366_s2 + $0x60] sm:$0xff]  ;;  %v164_v15 = vld [vmem:[%s4366_s2 + $0x78] sm:$0xff] }
   0x6   :  { %294 = vperm.xlu1 %2563, %v152_v3   ;;  %284 = vperm.xlu0 %2562, %v150_v4   ;;  %v163_v16 = vld [vmem:[%s4366_s2 + $0x70] sm:$0xff]  ;;  %v166_v17 = vld [vmem:[%s4366_s2 + $0x88] sm:$0xff]  ;;  %v165_v18 = vld [vmem:[%s4366_s2 + $0x80] sm:$0xff] }
   0x7   :  { %v168_v19 = vld [vmem:[%s4366_s2 + $0x98] sm:$0xff]  ;;  %v167_v20 = vld [vmem:[%s4366_s2 + $0x90] sm:$0xff]  ;;  %v170_v21 = vld [vmem:[%s4366_s2 + $0xa8] sm:$0xff] }
   0x8   :  { %v169_v22 = vld [vmem:[%s4366_s2 + $0xa0] sm:$0xff]  ;;  %v172_v23 = vld [vmem:[%s4366_s2 + $0xb8] sm:$0xff]  ;;  %v171_v24 = vld [vmem:[%s4366_s2 + $0xb0] sm:$0xff] }
   0x9   :  { %v174_v25 = vld [vmem:[%s4366_s2 + $0xc8] sm:$0xff]  ;;  %v173_v26 = vld [vmem:[%s4366_s2 + $0xc0] sm:$0xff]  ;;  %v176_v27 = vld [vmem:[%s4366_s2 + $0xd8] sm:$0xff] }
   0xa   :  { %304 = vperm.xlu1 %2563, %v154_v5   ;;  %299 = vperm.xlu0 %2562, %v153_v6   ;;  %v175_v28 = vld [vmem:[%s4366_s2 + $0xd0] sm:$0xff]  ;;  %v178_v29 = vld [vmem:[%s4366_s2 + $0xe8] sm:$0xff]  ;;  %v177_v30 = vld [vmem:[%s4366_s2 + $0xe0] sm:$0xff] }
   0xb   :  { %v180_v31 = vld [vmem:[%s4366_s2 + $0xf8] sm:$0xff]  ;;  %v179_v32 = vld [vmem:[%s4366_s2 + $0xf0] sm:$0xff]  ;;  %v182_v33 = vld [vmem:[%s4366_s2 + $0x108] sm:$0xff] }
   0xc   :  { %v181_v34 = vld [vmem:[%s4366_s2 + $0x100] sm:$0xff]  ;;  %v184_v35 = vld [vmem:[%s4366_s2 + $0x118] sm:$0xff]  ;;  %v183_v36 = vld [vmem:[%s4366_s2 + $0x110] sm:$0xff] }
   0xd   :  { %v186_v37 = vld [vmem:[%s4366_s2 + $0x128] sm:$0xff]  ;;  %v185_v38 = vld [vmem:[%s4366_s2 + $0x120] sm:$0xff]  ;;  %v188_v39 = vld [vmem:[%s4366_s2 + $0x138] sm:$0xff] }
   0xe   :  { %314 = vperm.xlu1 %2563, %v156_v7   ;;  %309 = vperm.xlu0 %2562, %v155_v8   ;;  %v187_v40 = vld [vmem:[%s4366_s2 + $0x130] sm:$0xff]  ;;  %v190_v41 = vld [vmem:[%s4366_s2 + $0x148] sm:$0xff]  ;;  %v189_v42 = vld [vmem:[%s4366_s2 + $0x140] sm:$0xff] }
   0xf   :  { %v192_v43 = vld [vmem:[%s4366_s2 + $0x158] sm:$0xff]  ;;  %v191_v44 = vld [vmem:[%s4366_s2 + $0x150] sm:$0xff]  ;;  %v194_v45 = vld [vmem:[%s4366_s2 + $0x168] sm:$0xff] }
  0x10   :  { %v193_v46 = vld [vmem:[%s4366_s2 + $0x160] sm:$0xff]  ;;  %v196_v47 = vld [vmem:[%s4366_s2 + $0x178] sm:$0xff]  ;;  %v195_v48 = vld [vmem:[%s4366_s2 + $0x170] sm:$0xff] }
  0x11   :  { %v198_v49 = vld [vmem:[%s4366_s2 + $0x188] sm:$0xff]  ;;  %v197_v50 = vld [vmem:[%s4366_s2 + $0x180] sm:$0xff]  ;;  %v200_v51 = vld [vmem:[%s4366_s2 + $0x198] sm:$0xff] }
  0x12   :  { %324 = vperm.xlu1 %2563, %v158_v9   ;;  %319 = vperm.xlu0 %2562, %v157_v10   ;;  %v199_v52 = vld [vmem:[%s4366_s2 + $0x190] sm:$0xff]  ;;  %v202_v53 = vld [vmem:[%s4366_s2 + $0x1a8] sm:$0xff]  ;;  %v201_v54 = vld [vmem:[%s4366_s2 + $0x1a0] sm:$0xff] }
  0x13   :  { %v204_v55 = vld [vmem:[%s4366_s2 + $0x1b8] sm:$0xff]  ;;  %v203_v56 = vld [vmem:[%s4366_s2 + $0x1b0] sm:$0xff]  ;;  %v206_v57 = vld [vmem:[%s4366_s2 + $0x1c8] sm:$0xff] }
  0x14   :  { %v205_v58 = vld [vmem:[%s4366_s2 + $0x1c0] sm:$0xff]  ;;  %v208_v59 = vld [vmem:[%s4366_s2 + $0x1d8] sm:$0xff]  ;;  %v207_v60 = vld [vmem:[%s4366_s2 + $0x1d0] sm:$0xff] }
  0x15   :  { %v210_v61 = vld [vmem:[%s4366_s2 + $0x1e8] sm:$0xff]  ;;  %v209_v62 = vld [vmem:[%s4366_s2 + $0x1e0] sm:$0xff]  ;;  %v212_v63 = vld [vmem:[%s4366_s2 + $0x1f8] sm:$0xff] }
  0x16   :  { %334 = vperm.xlu1 %2563, %v160_v11   ;;  %329 = vperm.xlu0 %2562, %v159_v12   ;;  %v211_v0 = vld [vmem:[%s4366_s2 + $0x1f0] sm:$0xff]  ;;  %v214_v1 = vld [vmem:[%s4366_s2 + $0x208] sm:$0xff]  ;;  %v213_v2 = vld [vmem:[%s4366_s2 + $0x200] sm:$0xff] }
  0x17   :  { %v216_v5 = vld [vmem:[%s4366_s2 + $0x218] sm:$0xff]  ;;  %v215_v6 = vld [vmem:[%s4366_s2 + $0x210] sm:$0xff]  ;;  %v218_v9 = vld [vmem:[%s4366_s2 + $0x228] sm:$0xff] }
  0x18   :  { %v217_v10 = vld [vmem:[%s4366_s2 + $0x220] sm:$0xff] }
  0x1a   :  { %344 = vperm.xlu1 %2563, %v162_v13   ;;  %339 = vperm.xlu0 %2562, %v161_v14   ;;  %v220_v13 = vld [vmem:[%s4366_s2 + $0x238] sm:$0xff]  ;;  %v219_v14 = vld [vmem:[%s4366_s2 + $0x230] sm:$0xff] }
  0x1e   :  { %354 = vperm.xlu1 %2563, %v164_v15   ;;  %349 = vperm.xlu0 %2562, %v163_v16  }
  0x22   :  { %364 = vperm.xlu1 %2563, %v166_v17   ;;  %359 = vperm.xlu0 %2562, %v165_v18   ;;  %v222_v17 = vld [vmem:[%s4366_s2 + $0x248] sm:$0xff]  ;;  %v221_v18 = vld [vmem:[%s4366_s2 + $0x240] sm:$0xff] }
  0x26   :  { %374 = vperm.xlu1 %2563, %v168_v19   ;;  %369 = vperm.xlu0 %2562, %v167_v20  }
  0x2a   :  { %384 = vperm.xlu1 %2563, %v170_v21   ;;  %379 = vperm.xlu0 %2562, %v169_v22   ;;  %v224_v21 = vld [vmem:[%s4366_s2 + $0x258] sm:$0xff]  ;;  %v223_v22 = vld [vmem:[%s4366_s2 + $0x250] sm:$0xff] }
  0x2e   :  { %394 = vperm.xlu1 %2563, %v172_v23   ;;  %389 = vperm.xlu0 %2562, %v171_v24  }
  0x32   :  { %404 = vperm.xlu1 %2563, %v174_v25   ;;  %399 = vperm.xlu0 %2562, %v173_v26   ;;  %v226_v25 = vld [vmem:[%s4366_s2 + $0x268] sm:$0xff]  ;;  %v225_v26 = vld [vmem:[%s4366_s2 + $0x260] sm:$0xff] }
  0x36   :  { %414 = vperm.xlu1 %2563, %v176_v27   ;;  %409 = vperm.xlu0 %2562, %v175_v28  }
  0x3a   :  { %424 = vperm.xlu1 %2563, %v178_v29   ;;  %419 = vperm.xlu0 %2562, %v177_v30   ;;  %v228_v29 = vld [vmem:[%s4366_s2 + $0x278] sm:$0xff]  ;;  %v227_v30 = vld [vmem:[%s4366_s2 + $0x270] sm:$0xff] }
  0x3e   :  { %434 = vperm.xlu1 %2563, %v180_v31   ;;  %429 = vperm.xlu0 %2562, %v179_v32  }
  0x42   :  { %444 = vperm.xlu1 %2563, %v182_v33   ;;  %439 = vperm.xlu0 %2562, %v181_v34   ;;  %v230_v33 = vld [vmem:[%s4366_s2 + $0x288] sm:$0xff]  ;;  %v229_v34 = vld [vmem:[%s4366_s2 + $0x280] sm:$0xff] }
  0x46   :  { %454 = vperm.xlu1 %2563, %v184_v35   ;;  %449 = vperm.xlu0 %2562, %v183_v36  }
  0x4a   :  { %464 = vperm.xlu1 %2563, %v186_v37   ;;  %459 = vperm.xlu0 %2562, %v185_v38   ;;  %v232_v37 = vld [vmem:[%s4366_s2 + $0x298] sm:$0xff]  ;;  %v231_v38 = vld [vmem:[%s4366_s2 + $0x290] sm:$0xff] }
  0x4e   :  { %474 = vperm.xlu1 %2563, %v188_v39   ;;  %469 = vperm.xlu0 %2562, %v187_v40  }
  0x52   :  { %484 = vperm.xlu1 %2563, %v190_v41   ;;  %479 = vperm.xlu0 %2562, %v189_v42   ;;  %v234_v41 = vld [vmem:[%s4366_s2 + $0x2a8] sm:$0xff]  ;;  %v233_v42 = vld [vmem:[%s4366_s2 + $0x2a0] sm:$0xff] }
  0x56   :  { %494 = vperm.xlu1 %2563, %v192_v43   ;;  %489 = vperm.xlu0 %2562, %v191_v44  }
  0x5a   :  { %504 = vperm.xlu1 %2563, %v194_v45   ;;  %499 = vperm.xlu0 %2562, %v193_v46   ;;  %v236_v45 = vld [vmem:[%s4366_s2 + $0x2b8] sm:$0xff]  ;;  %v235_v46 = vld [vmem:[%s4366_s2 + $0x2b0] sm:$0xff] }
  0x5e   :  { %514 = vperm.xlu1 %2563, %v196_v47   ;;  %509 = vperm.xlu0 %2562, %v195_v48  }
  0x62   :  { %524 = vperm.xlu1 %2563, %v198_v49   ;;  %519 = vperm.xlu0 %2562, %v197_v50   ;;  %v238_v49 = vld [vmem:[%s4366_s2 + $0x2c8] sm:$0xff]  ;;  %v237_v50 = vld [vmem:[%s4366_s2 + $0x2c0] sm:$0xff] }
  0x66   :  { %534 = vperm.xlu1 %2563, %v200_v51   ;;  %529 = vperm.xlu0 %2562, %v199_v52  }
  0x6a   :  { %544 = vperm.xlu1 %2563, %v202_v53   ;;  %539 = vperm.xlu0 %2562, %v201_v54   ;;  %v240_v53 = vld [vmem:[%s4366_s2 + $0x2d8] sm:$0xff]  ;;  %v239_v54 = vld [vmem:[%s4366_s2 + $0x2d0] sm:$0xff] }
  0x6e   :  { %554 = vperm.xlu1 %2563, %v204_v55   ;;  %549 = vperm.xlu0 %2562, %v203_v56  }
  0x72   :  { %564 = vperm.xlu1 %2563, %v206_v57   ;;  %559 = vperm.xlu0 %2562, %v205_v58   ;;  %v242_v57 = vld [vmem:[%s4366_s2 + $0x2e8] sm:$0xff]  ;;  %v241_v58 = vld [vmem:[%s4366_s2 + $0x2e0] sm:$0xff] }
  0x76   :  { %574 = vperm.xlu1 %2563, %v208_v59   ;;  %569 = vperm.xlu0 %2562, %v207_v60  }
  0x7a   :  { %584 = vperm.xlu1 %2563, %v210_v61   ;;  %579 = vperm.xlu0 %2562, %v209_v62   ;;  %v244_v61 = vld [vmem:[%s4366_s2 + $0x2f8] sm:$0xff]  ;;  %v243_v62 = vld [vmem:[%s4366_s2 + $0x2f0] sm:$0xff] }
  0x7e   :  { %594 = vperm.xlu1 %2563, %v212_v63   ;;  %589 = vperm.xlu0 %2562, %v211_v0  }
  0x81   :  { %v2802_v3 = vpop.permute.xlu1 %289  ;;  %v2804_v4 = vpop.permute.xlu0 %279 }
  0x82   :  { %604 = vperm.xlu1 %2563, %v214_v1   ;;  %599 = vperm.xlu0 %2562, %v213_v2   ;;  %v246_v1 = vld [vmem:[%s4366_s2 + $0x308] sm:$0xff]  ;;  %v245_v2 = vld [vmem:[%s4366_s2 + $0x300] sm:$0xff] }
  0x85   :  { %v2812_v7 = vpop.permute.xlu1 %294  ;;  %v2814_v8 = vpop.permute.xlu0 %284 }
  0x86   :  { %614 = vperm.xlu1 %2563, %v216_v5   ;;  %609 = vperm.xlu0 %2562, %v215_v6  }
  0x89   :  { %v2822_v11 = vpop.permute.xlu1 %304  ;;  %v2824_v12 = vpop.permute.xlu0 %299 }
  0x8a   :  { %624 = vperm.xlu1 %2563, %v218_v9   ;;  %619 = vperm.xlu0 %2562, %v217_v10   ;;  %v248_v9 = vld [vmem:[%s4366_s2 + $0x318] sm:$0xff]  ;;  %v247_v10 = vld [vmem:[%s4366_s2 + $0x310] sm:$0xff] }
  0x8d   :  { %v2832_v15 = vpop.permute.xlu1 %314  ;;  %v2834_v16 = vpop.permute.xlu0 %309 }
  0x8e   :  { %634 = vperm.xlu1 %2563, %v220_v13   ;;  %629 = vperm.xlu0 %2562, %v219_v14  }
  0x91   :  { %v2842_v19 = vpop.permute.xlu1 %324  ;;  %v2844_v20 = vpop.permute.xlu0 %319 }
  0x92   :  { %644 = vperm.xlu1 %2563, %v222_v17   ;;  %639 = vperm.xlu0 %2562, %v221_v18   ;;  %v250_v17 = vld [vmem:[%s4366_s2 + $0x328] sm:$0xff]  ;;  %v249_v18 = vld [vmem:[%s4366_s2 + $0x320] sm:$0xff] }
  0x95   :  { %v2852_v23 = vpop.permute.xlu1 %334  ;;  %v2854_v24 = vpop.permute.xlu0 %329 }
  0x96   :  { %654 = vperm.xlu1 %2563, %v224_v21   ;;  %649 = vperm.xlu0 %2562, %v223_v22  }
  0x99   :  { %v2862_v27 = vpop.permute.xlu1 %344  ;;  %v2864_v28 = vpop.permute.xlu0 %339 }
  0x9a   :  { %664 = vperm.xlu1 %2563, %v226_v25   ;;  %659 = vperm.xlu0 %2562, %v225_v26   ;;  %v252_v25 = vld [vmem:[%s4366_s2 + $0x338] sm:$0xff]  ;;  %v251_v26 = vld [vmem:[%s4366_s2 + $0x330] sm:$0xff] }
  0x9d   :  { %v2872_v31 = vpop.permute.xlu1 %354  ;;  %v2874_v32 = vpop.permute.xlu0 %349 }
  0x9e   :  { %674 = vperm.xlu1 %2563, %v228_v29   ;;  %669 = vperm.xlu0 %2562, %v227_v30  }
  0xa1   :  { %v2882_v35 = vpop.permute.xlu1 %364  ;;  %v2884_v36 = vpop.permute.xlu0 %359 }
  0xa2   :  { %684 = vperm.xlu1 %2563, %v230_v33   ;;  %679 = vperm.xlu0 %2562, %v229_v34   ;;  %v254_v33 = vld [vmem:[%s4366_s2 + $0x348] sm:$0xff]  ;;  %v253_v34 = vld [vmem:[%s4366_s2 + $0x340] sm:$0xff] }
  0xa5   :  { %v2892_v39 = vpop.permute.xlu1 %374  ;;  %v2894_v40 = vpop.permute.xlu0 %369 }
  0xa6   :  { %694 = vperm.xlu1 %2563, %v232_v37   ;;  %689 = vperm.xlu0 %2562, %v231_v38  }
  0xa9   :  { %v2902_v43 = vpop.permute.xlu1 %384  ;;  %v2904_v44 = vpop.permute.xlu0 %379 }
  0xaa   :  { %704 = vperm.xlu1 %2563, %v234_v41   ;;  %699 = vperm.xlu0 %2562, %v233_v42   ;;  %v256_v41 = vld [vmem:[%s4366_s2 + $0x358] sm:$0xff]  ;;  %v255_v42 = vld [vmem:[%s4366_s2 + $0x350] sm:$0xff] }
  0xad   :  { %v2912_v47 = vpop.permute.xlu1 %394  ;;  %v2914_v48 = vpop.permute.xlu0 %389 }
  0xae   :  { %714 = vperm.xlu1 %2563, %v236_v45   ;;  %709 = vperm.xlu0 %2562, %v235_v46  }
  0xb1   :  { %v2922_v51 = vpop.permute.xlu1 %404  ;;  %v2924_v52 = vpop.permute.xlu0 %399 }
  0xb2   :  { %724 = vperm.xlu1 %2563, %v238_v49   ;;  %719 = vperm.xlu0 %2562, %v237_v50   ;;  %v258_v49 = vld [vmem:[%s4366_s2 + $0x368] sm:$0xff]  ;;  %v257_v50 = vld [vmem:[%s4366_s2 + $0x360] sm:$0xff] }
  0xb5   :  { %v2932_v55 = vpop.permute.xlu1 %414  ;;  %v2934_v56 = vpop.permute.xlu0 %409 }
  0xb6   :  { %734 = vperm.xlu1 %2563, %v240_v53   ;;  %729 = vperm.xlu0 %2562, %v239_v54  }
  0xb9   :  { %v2942_v59 = vpop.permute.xlu1 %424  ;;  %v2944_v60 = vpop.permute.xlu0 %419 }
  0xba   :  { %744 = vperm.xlu1 %2563, %v242_v57   ;;  %739 = vperm.xlu0 %2562, %v241_v58   ;;  %v260_v57 = vld [vmem:[%s4366_s2 + $0x378] sm:$0xff]  ;;  %v259_v58 = vld [vmem:[%s4366_s2 + $0x370] sm:$0xff] }
  0xbd   :  { %v2952_v63 = vpop.permute.xlu1 %434  ;;  %v2954_v0 = vpop.permute.xlu0 %429 }
  0xbe   :  { %4373 = vst [vmem:[#allocation2_spill] sm:$0xff] %v2952_v63  ;;  %4374 = vst [vmem:[#allocation3_spill] sm:$0xff] %v2954_v0  ;;  %754 = vperm.xlu1 %2563, %v244_v61   ;;  %749 = vperm.xlu0 %2562, %v243_v62  }
  0xc1   :  { %v2962_v5 = vpop.permute.xlu1 %444  ;;  %v2964_v6 = vpop.permute.xlu0 %439 }
  0xc2   :  { %4375 = vst [vmem:[#allocation4_spill] sm:$0xff] %v2962_v5  ;;  %4376 = vst [vmem:[#allocation5_spill] sm:$0xff] %v2964_v6  ;;  %764 = vperm.xlu1 %2563, %v246_v1   ;;  %759 = vperm.xlu0 %2562, %v245_v2   ;;  %v262_v1 = vld [vmem:[%s4366_s2 + $0x388] sm:$0xff]  ;;  %v261_v2 = vld [vmem:[%s4366_s2 + $0x380] sm:$0xff] }
  0xc3   :  { %v34_v5 = vld [vmem:[%s4369_s1 + $0x68] sm:$0xff] }
  0xc5   :  { %v2972_v13 = vpop.permute.xlu1 %454  ;;  %v2974_v14 = vpop.permute.xlu0 %449 }
  0xc6   :  { %4377 = vst [vmem:[#allocation6_spill] sm:$0xff] %v2972_v13  ;;  %4378 = vst [vmem:[#allocation7_spill] sm:$0xff] %v2974_v14  ;;  %774 = vperm.xlu1 %2563, %v248_v9   ;;  %769 = vperm.xlu0 %2562, %v247_v10   ;;  %v32_v14 = vld [vmem:[%s4369_s1 + $0x58] sm:$0xff]  ;;  %v37_v13 = vld [vmem:[%s4369_s1 + $0x80] sm:$0xff] }
  0xc9   :  { %v2982_v21 = vpop.permute.xlu1 %464  ;;  %v2984_v22 = vpop.permute.xlu0 %459 }
  0xca   :  { %4379 = vst [vmem:[#allocation8_spill] sm:$0xff] %v2982_v21  ;;  %4380 = vst [vmem:[#allocation9_spill] sm:$0xff] %v2984_v22  ;;  %784 = vperm.xlu1 %2563, %v250_v17   ;;  %779 = vperm.xlu0 %2562, %v249_v18   ;;  %v264_v17 = vld [vmem:[%s4366_s2 + $0x398] sm:$0xff]  ;;  %v263_v18 = vld [vmem:[%s4366_s2 + $0x390] sm:$0xff] }
  0xcb   :  { %v26_v22 = vld [vmem:[%s4369_s1 + $0x28] sm:$0xff]  ;;  %v25_v21 = vld [vmem:[%s4369_s1 + $0x20] sm:$0xff] }
  0xcd   :  { %v2992_v29 = vpop.permute.xlu1 %474  ;;  %v2994_v30 = vpop.permute.xlu0 %469 }
  0xce   :  { %4381 = vst [vmem:[#allocation10_spill] sm:$0xff] %v2992_v29  ;;  %4382 = vst [vmem:[#allocation11_spill] sm:$0xff] %v2994_v30  ;;  %794 = vperm.xlu1 %2563, %v252_v25   ;;  %789 = vperm.xlu0 %2562, %v251_v26   ;;  %v24_v30 = vld [vmem:[%s4369_s1 + $0x18] sm:$0xff] }
  0xd1   :  { %v3002_v37 = vpop.permute.xlu1 %484  ;;  %v3004_v38 = vpop.permute.xlu0 %479 }
  0xd2   :  { %4383 = vst [vmem:[#allocation12_spill] sm:$0xff] %v3002_v37  ;;  %4384 = vst [vmem:[#allocation13_spill] sm:$0xff] %v3004_v38  ;;  %804 = vperm.xlu1 %2563, %v254_v33   ;;  %799 = vperm.xlu0 %2562, %v253_v34   ;;  %v266_v33 = vld [vmem:[%s4366_s2 + $0x3a8] sm:$0xff]  ;;  %v265_v34 = vld [vmem:[%s4366_s2 + $0x3a0] sm:$0xff] }
  0xd3   :  { %v1159_v38 = vld [vmem:[%s4367_s3 + $0x390] sm:$0xff] }
  0xd5   :  { %v3012_v45 = vpop.permute.xlu1 %494  ;;  %v3014_v46 = vpop.permute.xlu0 %489 }
  0xd6   :  { %4385 = vst [vmem:[#allocation14_spill] sm:$0xff] %v3012_v45  ;;  %4386 = vst [vmem:[#allocation15_spill] sm:$0xff] %v3014_v46  ;;  %814 = vperm.xlu1 %2563, %v256_v41   ;;  %809 = vperm.xlu0 %2562, %v255_v42  }
  0xd9   :  { %v3022_v53 = vpop.permute.xlu1 %504  ;;  %v3024_v54 = vpop.permute.xlu0 %499 }
  0xda   :  { %4387 = vst [vmem:[#allocation16_spill] sm:$0xff] %v3022_v53  ;;  %4388 = vst [vmem:[#allocation17_spill] sm:$0xff] %v3024_v54  ;;  %824 = vperm.xlu1 %2563, %v258_v49   ;;  %819 = vperm.xlu0 %2562, %v257_v50   ;;  %v268_v49 = vld [vmem:[%s4366_s2 + $0x3b8] sm:$0xff]  ;;  %v267_v50 = vld [vmem:[%s4366_s2 + $0x3b0] sm:$0xff] }
  0xdb   :  { %v276_v54 = vld [vmem:[%s4366_s2 + $0x3f8] sm:$0xff] }
  0xdd   :  { %v3032_v61 = vpop.permute.xlu1 %514  ;;  %v3034_v62 = vpop.permute.xlu0 %509 }
  0xde   :  { %4389 = vst [vmem:[#allocation18_spill] sm:$0xff] %v3032_v61  ;;  %4390 = vst [vmem:[#allocation19_spill] sm:$0xff] %v3034_v62  ;;  %834 = vperm.xlu1 %2563, %v260_v57   ;;  %829 = vperm.xlu0 %2562, %v259_v58   ;;  %v274_v62 = vld [vmem:[%s4366_s2 + $0x3e8] sm:$0xff] }
  0xe1   :  { %v3042_v9 = vpop.permute.xlu1 %524  ;;  %v3044_v10 = vpop.permute.xlu0 %519 }
  0xe2   :  { %4391 = vst [vmem:[#allocation20_spill] sm:$0xff] %v3042_v9  ;;  %4392 = vst [vmem:[#allocation21_spill] sm:$0xff] %v3044_v10  ;;  %844 = vperm.xlu1 %2563, %v262_v1   ;;  %839 = vperm.xlu0 %2562, %v261_v2   ;;  %v270_v1 = vld [vmem:[%s4366_s2 + $0x3c8] sm:$0xff]  ;;  %v269_v2 = vld [vmem:[%s4366_s2 + $0x3c0] sm:$0xff] }
  0xe3   :  { %v1144_v9 = vld [vmem:[%s4367_s3 + $0x318] sm:$0xff] }
  0xe5   :  { %v3052_v25 = vpop.permute.xlu1 %534  ;;  %v3054_v26 = vpop.permute.xlu0 %529 }
  0xe6   :  { %4393 = vst [vmem:[#allocation22_spill] sm:$0xff] %v3052_v25  ;;  %4394 = vst [vmem:[#allocation23_spill] sm:$0xff] %v3054_v26  ;;  %854 = vperm.xlu1 %2563, %v264_v17   ;;  %849 = vperm.xlu0 %2562, %v263_v18  }
  0xe9   :  { %v3062_v41 = vpop.permute.xlu1 %544  ;;  %v3064_v42 = vpop.permute.xlu0 %539 }
  0xea   :  { %4395 = vst [vmem:[#allocation24_spill] sm:$0xff] %v3062_v41  ;;  %4396 = vst [vmem:[#allocation25_spill] sm:$0xff] %v3064_v42  ;;  %864 = vperm.xlu1 %2563, %v266_v33   ;;  %859 = vperm.xlu0 %2562, %v265_v34   ;;  %v272_v33 = vld [vmem:[%s4366_s2 + $0x3d8] sm:$0xff]  ;;  %v271_v34 = vld [vmem:[%s4366_s2 + $0x3d0] sm:$0xff] }
  0xeb   :  { %v21_v41 = vld [vmem:[%s4369_s1] sm:$0xff]  ;;  %v23_v42 = vld [vmem:[%s4369_s1 + $0x10] sm:$0xff] }
  0xec   :  { %v917_v25 = vmul.f32 %v2804_v4, %v21_v41  ;;  %v28_v4 = vld [vmem:[%s4369_s1 + $0x38] sm:$0xff]  ;;  %v30_v41 = vld [vmem:[%s4369_s1 + $0x48] sm:$0xff] }
  0xed   :  { %v3072_v57 = vpop.permute.xlu1 %554  ;;  %v3074_v58 = vpop.permute.xlu0 %549 }
  0xee   :  { %4397 = vst [vmem:[#allocation26_spill] sm:$0xff] %v3072_v57  ;;  %4398 = vst [vmem:[#allocation27_spill] sm:$0xff] %v3074_v58  ;;  %874 = vperm.xlu1 %2563, %v268_v49   ;;  %869 = vperm.xlu0 %2562, %v267_v50   ;;  %v1112_v57 = vld [vmem:[%s4367_s3 + $0x218] sm:$0xff] }
  0xf1   :  { %v3082_v17 = vpop.permute.xlu1 %564  ;;  %v3084_v18 = vpop.permute.xlu0 %559 }
  0xf2   :  { %4399 = vst [vmem:[#allocation28_spill] sm:$0xff] %v3082_v17  ;;  %4400 = vst [vmem:[#allocation29_spill] sm:$0xff] %v3084_v18  ;;  %884 = vperm.xlu1 %2563, %v270_v1   ;;  %879 = vperm.xlu0 %2562, %v269_v2   ;;  %v273_v1 = vld [vmem:[%s4366_s2 + $0x3e0] sm:$0xff] }
  0xf5   :  { %v3092_v49 = vpop.permute.xlu1 %574  ;;  %v3094_v50 = vpop.permute.xlu0 %569 }
  0xf6   :  { %4401 = vst [vmem:[#allocation30_spill] sm:$0xff] %v3092_v49  ;;  %4402 = vst [vmem:[#allocation31_spill] sm:$0xff] %v3094_v50  ;;  %894 = vperm.xlu1 %2563, %v272_v33   ;;  %889 = vperm.xlu0 %2562, %v271_v34   ;;  %v275_v33 = vld [vmem:[%s4366_s2 + $0x3f0] sm:$0xff]  ;;  %v1157_v50 = vld [vmem:[%s4367_s3 + $0x380] sm:$0xff] }
  0xf9   :  { %v3102_v2 = vpop.permute.xlu1 %584  ;;  %v3104_v61 = vpop.permute.xlu0 %579 }
  0xfa   :  { %4403 = vst [vmem:[#allocation32_spill] sm:$0xff] %v3102_v2  ;;  %4404 = vst [vmem:[#allocation33_spill] sm:$0xff] %v3104_v61  ;;  %904 = vperm.xlu1 %2563, %v274_v62   ;;  %899 = vperm.xlu0 %2562, %v273_v1   ;;  %v1046_v61 = vld [vmem:[%s4367_s3 + $0x8] sm:$0xff]  ;;  %v1045_v62 = vld [vmem:[%s4367_s3] sm:$0xff] }
  0xfd   :  { %v3112_v34 = vpop.permute.xlu1 %594  ;;  %v3114_v53 = vpop.permute.xlu0 %589 }
  0xfe   :  { %4405 = vst [vmem:[#allocation34_spill] sm:$0xff] %v3112_v34  ;;  %4406 = vst [vmem:[#allocation35_spill] sm:$0xff] %v3114_v53  ;;  %914 = vperm.xlu1 %2563, %v276_v54   ;;  %909 = vperm.xlu0 %2562, %v275_v33   ;;  %v1048_v53 = vld [vmem:[%s4367_s3 + $0x18] sm:$0xff]  ;;  %v1047_v54 = vld [vmem:[%s4367_s3 + $0x10] sm:$0xff] }
 0x101   :  { %v3122_v1 = vpop.permute.xlu1 %604  ;;  %v3124_v2 = vpop.permute.xlu0 %599 }
 0x102   :  { %4407 = vst [vmem:[#allocation36_spill] sm:$0xff] %v3122_v1  ;;  %4408 = vst [vmem:[#allocation37_spill] sm:$0xff] %v3124_v2  ;;  %1180 = vperm.xlu1 %2563, %v1046_v61   ;;  %1175 = vperm.xlu0 %2562, %v1045_v62   ;;  %v1050_v2 = vld [vmem:[%s4367_s3 + $0x28] sm:$0xff]  ;;  %v1049_v61 = vld [vmem:[%s4367_s3 + $0x20] sm:$0xff] }
 0x105   :  { %v3132_v33 = vpop.permute.xlu1 %614  ;;  %v3134_v34 = vpop.permute.xlu0 %609 }
 0x106   :  { %4409 = vst [vmem:[#allocation38_spill] sm:$0xff] %v3132_v33  ;;  %4410 = vst [vmem:[#allocation39_spill] sm:$0xff] %v3134_v34  ;;  %1190 = vperm.xlu1 %2563, %v1048_v53   ;;  %1185 = vperm.xlu0 %2562, %v1047_v54   ;;  %v1052_v34 = vld [vmem:[%s4367_s3 + $0x38] sm:$0xff]  ;;  %v1051_v53 = vld [vmem:[%s4367_s3 + $0x30] sm:$0xff] }
 0x109   :  { %v3142_v62 = vpop.permute.xlu1 %624  ;;  %v3144_v1 = vpop.permute.xlu0 %619 }
 0x10a   :  { %4411 = vst [vmem:[#allocation40_spill] sm:$0xff] %v3142_v62  ;;  %4412 = vst [vmem:[#allocation41_spill] sm:$0xff] %v3144_v1  ;;  %1200 = vperm.xlu1 %2563, %v1050_v2   ;;  %1195 = vperm.xlu0 %2562, %v1049_v61   ;;  %v1054_v1 = vld [vmem:[%s4367_s3 + $0x48] sm:$0xff]  ;;  %v1053_v2 = vld [vmem:[%s4367_s3 + $0x40] sm:$0xff] }
 0x10d   :  { %v3152_v54 = vpop.permute.xlu1 %634  ;;  %v3154_v33 = vpop.permute.xlu0 %629 }
 0x10e   :  { %4413 = vst [vmem:[#allocation42_spill] sm:$0xff] %v3152_v54  ;;  %4414 = vst [vmem:[#allocation43_spill] sm:$0xff] %v3154_v33  ;;  %1210 = vperm.xlu1 %2563, %v1052_v34   ;;  %1205 = vperm.xlu0 %2562, %v1051_v53   ;;  %v1056_v33 = vld [vmem:[%s4367_s3 + $0x58] sm:$0xff]  ;;  %v1055_v34 = vld [vmem:[%s4367_s3 + $0x50] sm:$0xff] }
 0x111   :  { %v3162_v61 = vpop.permute.xlu1 %644  ;;  %v3164_v62 = vpop.permute.xlu0 %639 }
 0x112   :  { %4415 = vst [vmem:[#allocation44_spill] sm:$0xff] %v3162_v61  ;;  %4416 = vst [vmem:[#allocation45_spill] sm:$0xff] %v3164_v62  ;;  %1220 = vperm.xlu1 %2563, %v1054_v1   ;;  %1215 = vperm.xlu0 %2562, %v1053_v2   ;;  %v1058_v62 = vld [vmem:[%s4367_s3 + $0x68] sm:$0xff]  ;;  %v1057_v1 = vld [vmem:[%s4367_s3 + $0x60] sm:$0xff] }
 0x115   :  { %v3172_v53 = vpop.permute.xlu1 %654  ;;  %v3174_v54 = vpop.permute.xlu0 %649 }
 0x116   :  { %4417 = vst [vmem:[#allocation46_spill] sm:$0xff] %v3172_v53  ;;  %4418 = vst [vmem:[#allocation47_spill] sm:$0xff] %v3174_v54  ;;  %1230 = vperm.xlu1 %2563, %v1056_v33   ;;  %1225 = vperm.xlu0 %2562, %v1055_v34   ;;  %v1060_v54 = vld [vmem:[%s4367_s3 + $0x78] sm:$0xff]  ;;  %v1059_v33 = vld [vmem:[%s4367_s3 + $0x70] sm:$0xff] }
 0x119   :  { %v3182_v2 = vpop.permute.xlu1 %664  ;;  %v3184_v61 = vpop.permute.xlu0 %659 }
 0x11a   :  { %4419 = vst [vmem:[#allocation48_spill] sm:$0xff] %v3182_v2  ;;  %4420 = vst [vmem:[#allocation49_spill] sm:$0xff] %v3184_v61  ;;  %1240 = vperm.xlu1 %2563, %v1058_v62   ;;  %1235 = vperm.xlu0 %2562, %v1057_v1   ;;  %v1062_v61 = vld [vmem:[%s4367_s3 + $0x88] sm:$0xff]  ;;  %v1061_v62 = vld [vmem:[%s4367_s3 + $0x80] sm:$0xff] }
 0x11d   :  { %v3192_v34 = vpop.permute.xlu1 %674  ;;  %v3194_v53 = vpop.permute.xlu0 %669 }
 0x11e   :  { %4421 = vst [vmem:[#allocation50_spill] sm:$0xff] %v3192_v34  ;;  %4422 = vst [vmem:[#allocation51_spill] sm:$0xff] %v3194_v53  ;;  %1250 = vperm.xlu1 %2563, %v1060_v54   ;;  %1245 = vperm.xlu0 %2562, %v1059_v33   ;;  %v1064_v53 = vld [vmem:[%s4367_s3 + $0x98] sm:$0xff]  ;;  %v1063_v54 = vld [vmem:[%s4367_s3 + $0x90] sm:$0xff] }
 0x121   :  { %v3202_v1 = vpop.permute.xlu1 %684  ;;  %v3204_v2 = vpop.permute.xlu0 %679 }
 0x122   :  { %4423 = vst [vmem:[#allocation52_spill] sm:$0xff] %v3202_v1  ;;  %4424 = vst [vmem:[#allocation53_spill] sm:$0xff] %v3204_v2  ;;  %1260 = vperm.xlu1 %2563, %v1062_v61   ;;  %1255 = vperm.xlu0 %2562, %v1061_v62   ;;  %v1066_v2 = vld [vmem:[%s4367_s3 + $0xa8] sm:$0xff]  ;;  %v1065_v61 = vld [vmem:[%s4367_s3 + $0xa0] sm:$0xff] }
 0x125   :  { %v3212_v33 = vpop.permute.xlu1 %694  ;;  %v3214_v34 = vpop.permute.xlu0 %689 }
 0x126   :  { %4425 = vst [vmem:[#allocation54_spill] sm:$0xff] %v3212_v33  ;;  %4426 = vst [vmem:[#allocation55_spill] sm:$0xff] %v3214_v34  ;;  %1270 = vperm.xlu1 %2563, %v1064_v53   ;;  %1265 = vperm.xlu0 %2562, %v1063_v54   ;;  %v1068_v34 = vld [vmem:[%s4367_s3 + $0xb8] sm:$0xff]  ;;  %v1067_v53 = vld [vmem:[%s4367_s3 + $0xb0] sm:$0xff] }
 0x129   :  { %v3222_v62 = vpop.permute.xlu1 %704  ;;  %v3224_v1 = vpop.permute.xlu0 %699 }
 0x12a   :  { %4427 = vst [vmem:[#allocation56_spill] sm:$0xff] %v3222_v62  ;;  %4428 = vst [vmem:[#allocation57_spill] sm:$0xff] %v3224_v1  ;;  %1280 = vperm.xlu1 %2563, %v1066_v2   ;;  %1275 = vperm.xlu0 %2562, %v1065_v61   ;;  %v1070_v1 = vld [vmem:[%s4367_s3 + $0xc8] sm:$0xff]  ;;  %v1069_v2 = vld [vmem:[%s4367_s3 + $0xc0] sm:$0xff] }
 0x12d   :  { %v3232_v54 = vpop.permute.xlu1 %714  ;;  %v3234_v33 = vpop.permute.xlu0 %709 }
 0x12e   :  { %4429 = vst [vmem:[#allocation58_spill] sm:$0xff] %v3232_v54  ;;  %4430 = vst [vmem:[#allocation59_spill] sm:$0xff] %v3234_v33  ;;  %1290 = vperm.xlu1 %2563, %v1068_v34   ;;  %1285 = vperm.xlu0 %2562, %v1067_v53   ;;  %v1072_v33 = vld [vmem:[%s4367_s3 + $0xd8] sm:$0xff]  ;;  %v1071_v34 = vld [vmem:[%s4367_s3 + $0xd0] sm:$0xff] }
 0x131   :  { %v3242_v61 = vpop.permute.xlu1 %724  ;;  %v3244_v62 = vpop.permute.xlu0 %719 }
 0x132   :  { %4431 = vst [vmem:[#allocation60_spill] sm:$0xff] %v3242_v61  ;;  %4432 = vst [vmem:[#allocation61_spill] sm:$0xff] %v3244_v62  ;;  %1300 = vperm.xlu1 %2563, %v1070_v1   ;;  %1295 = vperm.xlu0 %2562, %v1069_v2   ;;  %v1074_v62 = vld [vmem:[%s4367_s3 + $0xe8] sm:$0xff]  ;;  %v1073_v1 = vld [vmem:[%s4367_s3 + $0xe0] sm:$0xff] }
 0x135   :  { %v3252_v53 = vpop.permute.xlu1 %734  ;;  %v3254_v54 = vpop.permute.xlu0 %729 }
 0x136   :  { %4433 = vst [vmem:[#allocation62_spill] sm:$0xff] %v3252_v53  ;;  %4434 = vst [vmem:[#allocation63_spill] sm:$0xff] %v3254_v54  ;;  %1310 = vperm.xlu1 %2563, %v1072_v33   ;;  %1305 = vperm.xlu0 %2562, %v1071_v34   ;;  %v1076_v54 = vld [vmem:[%s4367_s3 + $0xf8] sm:$0xff]  ;;  %v1075_v33 = vld [vmem:[%s4367_s3 + $0xf0] sm:$0xff] }
 0x139   :  { %v3262_v2 = vpop.permute.xlu1 %744  ;;  %v3264_v61 = vpop.permute.xlu0 %739 }
 0x13a   :  { %4435 = vst [vmem:[#allocation64_spill] sm:$0xff] %v3262_v2  ;;  %4436 = vst [vmem:[#allocation65_spill] sm:$0xff] %v3264_v61  ;;  %1320 = vperm.xlu1 %2563, %v1074_v62   ;;  %1315 = vperm.xlu0 %2562, %v1073_v1   ;;  %v1078_v61 = vld [vmem:[%s4367_s3 + $0x108] sm:$0xff]  ;;  %v1077_v62 = vld [vmem:[%s4367_s3 + $0x100] sm:$0xff] }
 0x13d   :  { %v3272_v34 = vpop.permute.xlu1 %754  ;;  %v3274_v53 = vpop.permute.xlu0 %749 }
 0x13e   :  { %4437 = vst [vmem:[#allocation66_spill] sm:$0xff] %v3272_v34  ;;  %4438 = vst [vmem:[#allocation67_spill] sm:$0xff] %v3274_v53  ;;  %1330 = vperm.xlu1 %2563, %v1076_v54   ;;  %1325 = vperm.xlu0 %2562, %v1075_v33   ;;  %v1080_v53 = vld [vmem:[%s4367_s3 + $0x118] sm:$0xff]  ;;  %v1079_v54 = vld [vmem:[%s4367_s3 + $0x110] sm:$0xff] }
 0x141   :  { %v3282_v1 = vpop.permute.xlu1 %764  ;;  %v3284_v2 = vpop.permute.xlu0 %759 }
 0x142   :  { %4439 = vst [vmem:[#allocation68_spill] sm:$0xff] %v3282_v1  ;;  %4440 = vst [vmem:[#allocation69_spill] sm:$0xff] %v3284_v2  ;;  %1340 = vperm.xlu1 %2563, %v1078_v61   ;;  %1335 = vperm.xlu0 %2562, %v1077_v62   ;;  %v1082_v2 = vld [vmem:[%s4367_s3 + $0x128] sm:$0xff]  ;;  %v1081_v61 = vld [vmem:[%s4367_s3 + $0x120] sm:$0xff] }
 0x143   :  { %v3305_v62 = vld [vmem:[%s4368_s0] sm:$0x77] }
 0x144   :  { %4443 = vst [vmem:[#allocation72_spill] sm:$0xff] %v3305_v62 }
 0x145   :  { %v3292_v33 = vpop.permute.xlu1 %774  ;;  %v3294_v34 = vpop.permute.xlu0 %769 }
 0x146   :  { %4441 = vst [vmem:[#allocation70_spill] sm:$0xff] %v3292_v33  ;;  %4442 = vst [vmem:[#allocation71_spill] sm:$0xff] %v3294_v34  ;;  %1350 = vperm.xlu1 %2563, %v1080_v53   ;;  %1345 = vperm.xlu0 %2562, %v1079_v54   ;;  %v2466_v33 = vcombine.high %v3305_v62, %v3305_v62  ;;  %v1084_v54 = vld [vmem:[%s4367_s3 + $0x138] sm:$0xff]  ;;  %v1083_v34 = vld [vmem:[%s4367_s3 + $0x130] sm:$0xff] }
 0x147   :  { %v33_v62 = vld [vmem:[%s4369_s1 + $0x60] sm:$0xff] }
 0x148   :  { %2331 = vmatprep.mubr.bf16.mxu0 %v2466_v33  ;;  %v1095_v33 = vld [vmem:[%s4367_s3 + $0x190] sm:$0xff] }
 0x149   :  { %v3309_v1 = vpop.permute.xlu1 %784  ;;  %v3311_v53 = vpop.permute.xlu0 %779 }
 0x14a   :  { %4444 = vst [vmem:[#allocation73_spill] sm:$0xff] %v3309_v1  ;;  %4445 = vst [vmem:[#allocation74_spill] sm:$0xff] %v3311_v53  ;;  %1360 = vperm.xlu1 %2563, %v1082_v2   ;;  %1355 = vperm.xlu0 %2562, %v1081_v61   ;;  %v1093_v2 = vld [vmem:[%s4367_s3 + $0x180] sm:$0xff] }
 0x14b   :  { %v1085_v61 = vld [vmem:[%s4367_s3 + $0x140] sm:$0xff] }
 0x14d   :  { %v3319_v46 = vpop.permute.xlu1 %794  ;;  %v3321_v45 = vpop.permute.xlu0 %789 }
 0x14e   :  { %4446 = vst [vmem:[#allocation75_spill] sm:$0xff] %v3319_v46  ;;  %4447 = vst [vmem:[#allocation76_spill] sm:$0xff] %v3321_v45  ;;  %1370 = vperm.xlu1 %2563, %v1084_v54   ;;  %1365 = vperm.xlu0 %2562, %v1083_v34   ;;  %v1094_v34 = vld [vmem:[%s4367_s3 + $0x188] sm:$0xff]  ;;  %v1104_v46 = vld [vmem:[%s4367_s3 + $0x1d8] sm:$0xff] }
 0x151   :  { %v3329_v53 = vpop.permute.xlu1 %804  ;;  %v3331_v1 = vpop.permute.xlu0 %799 }
 0x152   :  { %4448 = vst [vmem:[#allocation77_spill] sm:$0xff] %v3329_v53  ;;  %4449 = vst [vmem:[#allocation78_spill] sm:$0xff] %v3331_v1  ;;  %1415 = vperm.xlu1 %2563, %v1093_v2   ;;  %1375 = vperm.xlu0 %2562, %v1085_v61   ;;  %v1097_v1 = vld [vmem:[%s4367_s3 + $0x1a0] sm:$0xff]  ;;  %v1096_v2 = vld [vmem:[%s4367_s3 + $0x198] sm:$0xff] }
 0x155   :  { %v3339_v54 = vpop.permute.xlu1 %814  ;;  %v3341_v45 = vpop.permute.xlu0 %809 }
 0x156   :  { %4450 = vst [vmem:[#allocation79_spill] sm:$0xff] %v3339_v54  ;;  %4451 = vst [vmem:[#allocation80_spill] sm:$0xff] %v3341_v45  ;;  %1425 = vperm.xlu1 %2563, %v1095_v33   ;;  %1420 = vperm.xlu0 %2562, %v1094_v34   ;;  %v1099_v45 = vld [vmem:[%s4367_s3 + $0x1b0] sm:$0xff]  ;;  %v1098_v33 = vld [vmem:[%s4367_s3 + $0x1a8] sm:$0xff] }
 0x159   :  { %v3349_v61 = vpop.permute.xlu1 %824  ;;  %v3351_v53 = vpop.permute.xlu0 %819 }
 0x15a   :  { %4452 = vst [vmem:[#allocation81_spill] sm:$0xff] %v3349_v61  ;;  %4453 = vst [vmem:[#allocation82_spill] sm:$0xff] %v3351_v53  ;;  %1435 = vperm.xlu1 %2563, %v1097_v1   ;;  %1430 = vperm.xlu0 %2562, %v1096_v2   ;;  %v1101_v53 = vld [vmem:[%s4367_s3 + $0x1c0] sm:$0xff]  ;;  %v1100_v1 = vld [vmem:[%s4367_s3 + $0x1b8] sm:$0xff] }
 0x15d   :  { %v3359_v34 = vpop.permute.xlu1 %834  ;;  %v3361_v54 = vpop.permute.xlu0 %829 }
 0x15e   :  { %4454 = vst [vmem:[#allocation83_spill] sm:$0xff] %v3359_v34  ;;  %4455 = vst [vmem:[#allocation84_spill] sm:$0xff] %v3361_v54  ;;  %1445 = vperm.xlu1 %2563, %v1099_v45   ;;  %1440 = vperm.xlu0 %2562, %v1098_v33   ;;  %v1086_v54 = vld [vmem:[%s4367_s3 + $0x148] sm:$0xff] }
 0x15f   :  { %v1102_v45 = vld [vmem:[%s4367_s3 + $0x1c8] sm:$0xff] }
 0x161   :  { %v3369_v2 = vpop.permute.xlu1 %844  ;;  %v3371_v61 = vpop.permute.xlu0 %839 }
 0x162   :  { %4456 = vst [vmem:[#allocation85_spill] sm:$0xff] %v3369_v2  ;;  %4457 = vst [vmem:[#allocation86_spill] sm:$0xff] %v3371_v61  ;;  %1455 = vperm.xlu1 %2563, %v1101_v53   ;;  %1450 = vperm.xlu0 %2562, %v1100_v1   ;;  %v1103_v53 = vld [vmem:[%s4367_s3 + $0x1d0] sm:$0xff]  ;;  %v2198_v2 = vld [vmem:[%s4368_s0 + $0x8] sm:$0x77] }
 0x165   :  { %v3379_v33 = vpop.permute.xlu1 %854  ;;  %v3381_v34 = vpop.permute.xlu0 %849 }
 0x166   :  { %4458 = vst [vmem:[#allocation87_spill] sm:$0xff] %v3379_v33  ;;  %4459 = vst [vmem:[#allocation88_spill] sm:$0xff] %v3381_v34  ;;  %1380 = vperm.xlu1 %2563, %v1086_v54   ;;  %1460 = vperm.xlu0 %2562, %v1102_v45   ;;  %v1088_v34 = vld [vmem:[%s4367_s3 + $0x158] sm:$0xff]  ;;  %v1087_v54 = vld [vmem:[%s4367_s3 + $0x150] sm:$0xff] }
 0x169   :  { %v3389_v1 = vpop.permute.xlu1 %864  ;;  %v3391_v61 = vpop.permute.xlu0 %859 }
 0x16a   :  { %4460 = vst [vmem:[#allocation89_spill] sm:$0xff] %v3389_v1  ;;  %4461 = vst [vmem:[#allocation90_spill] sm:$0xff] %v3391_v61  ;;  %1470 = vperm.xlu1 %2563, %v1104_v46   ;;  %1465 = vperm.xlu0 %2562, %v1103_v53   ;;  %v1106_v61 = vld [vmem:[%s4367_s3 + $0x1e8] sm:$0xff]  ;;  %v1105_v46 = vld [vmem:[%s4367_s3 + $0x1e0] sm:$0xff] }
 0x16d   :  { %v3399_v45 = vpop.permute.xlu1 %874  ;;  %v3401_v33 = vpop.permute.xlu0 %869 }
 0x16e   :  { %4462 = vst [vmem:[#allocation91_spill] sm:$0xff] %v3399_v45  ;;  %4463 = vst [vmem:[#allocation92_spill] sm:$0xff] %v3401_v33  ;;  %1390 = vperm.xlu1 %2563, %v1088_v34   ;;  %1385 = vperm.xlu0 %2562, %v1087_v54   ;;  %v1090_v33 = vld [vmem:[%s4367_s3 + $0x168] sm:$0xff]  ;;  %v1089_v34 = vld [vmem:[%s4367_s3 + $0x160] sm:$0xff] }
 0x171   :  { %v3409_v53 = vpop.permute.xlu1 %884  ;;  %v3411_v1 = vpop.permute.xlu0 %879 }
 0x172   :  { %4464 = vst [vmem:[#allocation93_spill] sm:$0xff] %v3409_v53  ;;  %4465 = vst [vmem:[#allocation94_spill] sm:$0xff] %v3411_v1  ;;  %1480 = vperm.xlu1 %2563, %v1106_v61   ;;  %1475 = vperm.xlu0 %2562, %v1105_v46   ;;  %v1108_v1 = vld [vmem:[%s4367_s3 + $0x1f8] sm:$0xff]  ;;  %v1107_v61 = vld [vmem:[%s4367_s3 + $0x1f0] sm:$0xff] }
 0x175   :  { %v3419_v54 = vpop.permute.xlu1 %894  ;;  %v3421_v45 = vpop.permute.xlu0 %889 }
 0x176   :  { %4466 = vst [vmem:[#allocation95_spill] sm:$0xff] %v3419_v54  ;;  %4467 = vst [vmem:[#allocation96_spill] sm:$0xff] %v3421_v45  ;;  %1400 = vperm.xlu1 %2563, %v1090_v33   ;;  %1395 = vperm.xlu0 %2562, %v1089_v34   ;;  %v1092_v45 = vld [vmem:[%s4367_s3 + $0x178] sm:$0xff]  ;;  %v1091_v33 = vld [vmem:[%s4367_s3 + $0x170] sm:$0xff] }
 0x179   :  { %v3429_v46 = vpop.permute.xlu1 %904  ;;  %v3431_v53 = vpop.permute.xlu0 %899 }
 0x17a   :  { %4468 = vst [vmem:[#allocation97_spill] sm:$0xff] %v3429_v46  ;;  %4469 = vst [vmem:[#allocation98_spill] sm:$0xff] %v3431_v53  ;;  %1490 = vperm.xlu1 %2563, %v1108_v1   ;;  %1485 = vperm.xlu0 %2562, %v1107_v61   ;;  %v1126_v53 = vld [vmem:[%s4367_s3 + $0x288] sm:$0xff]  ;;  %v1125_v1 = vld [vmem:[%s4367_s3 + $0x280] sm:$0xff] }
 0x17d   :  { %v3439_v34 = vpop.permute.xlu1 %914  ;;  %v3441_v54 = vpop.permute.xlu0 %909 }
 0x17e   :  { %4470 = vst [vmem:[#allocation99_spill] sm:$0xff] %v3439_v34  ;;  %4471 = vst [vmem:[#allocation100_spill] sm:$0xff] %v3441_v54  ;;  %1410 = vperm.xlu1 %2563, %v1092_v45   ;;  %1405 = vperm.xlu0 %2562, %v1091_v33   ;;  %v1110_v34 = vld [vmem:[%s4367_s3 + $0x208] sm:$0xff]  ;;  %v1109_v45 = vld [vmem:[%s4367_s3 + $0x200] sm:$0xff] }
 0x181   :  { %v1181_v61 = vpop.permute.xlu1 %1180  ;;  %v1176_v46 = vpop.permute.xlu0 %1175 }
 0x182   :  { %1580 = vperm.xlu1 %2563, %v1126_v53   ;;  %1575 = vperm.xlu0 %2562, %v1125_v1   ;;  %v1158_v53 = vld [vmem:[%s4367_s3 + $0x388] sm:$0xff]  ;;  %v2468_v1 = vcombine.high %v2198_v2, %v2198_v2  ;;  %v3543_v26 = vadd.f32 %v1176_v46, %v917_v25  ;;  %v919_v25 = vmul.f32 %v2802_v3, %v23_v42  ;;  %v31_v46 = vld [vmem:[%s4369_s1 + $0x50] sm:$0xff] }
 0x183   :  { %v922_v3 = vmul.f32 %v2822_v11, %v26_v22  ;;  %v36_v11 = vld [vmem:[%s4369_s1 + $0x78] sm:$0xff] }
 0x184   :  { %2371 = vmatprep.mubr.bf16.mxu1 %v2468_v1  ;;  %v1128_v1 = vld [vmem:[%s4367_s3 + $0x298] sm:$0xff] }
 0x185   :  { %v3455_v33 = vpop.permute.xlu1 %1190  ;;  %v3457_v54 = vpop.permute.xlu0 %1185 }
 0x186   :  { %1500 = vperm.xlu1 %2563, %v1110_v34   ;;  %1495 = vperm.xlu0 %2562, %v1109_v45   ;;  %v1142_v34 = vld [vmem:[%s4367_s3 + $0x308] sm:$0xff]  ;;  %v1141_v45 = vld [vmem:[%s4367_s3 + $0x300] sm:$0xff]  ;;  %v3612_v0 = vadd.f32 %v3457_v54, %v919_v25  ;;  %v3633_v25 = vmul.f32 %v2872_v31, %v36_v11 }
 0x189   :  { %v3468_v49 = vpop.permute.xlu1 %1200  ;;  %v3470_v17 = vpop.permute.xlu0 %1195 }
 0x18a   :  { %1740 = vperm.xlu1 %2563, %v1158_v53   ;;  %1735 = vperm.xlu0 %2562, %v1157_v50   ;;  %v1127_v50 = vld [vmem:[%s4367_s3 + $0x290] sm:$0xff] }
 0x18d   :  { %v3478_v2 = vpop.permute.xlu1 %1210  ;;  %v3480_v37 = vpop.permute.xlu0 %1205 }
 0x18e   :  { %1660 = vperm.xlu1 %2563, %v1142_v34   ;;  %1655 = vperm.xlu0 %2562, %v1141_v45   ;;  %v1111_v34 = vld [vmem:[%s4367_s3 + $0x210] sm:$0xff] }
 0x191   :  { %v3488_v53 = vpop.permute.xlu1 %1220  ;;  %v3490_v18 = vpop.permute.xlu0 %1215 }
 0x192   :  { %1590 = vperm.xlu1 %2563, %v1128_v1   ;;  %1585 = vperm.xlu0 %2562, %v1127_v50   ;;  %v22_v1 = vld [vmem:[%s4369_s1 + $0x8] sm:$0xff]  ;;  %v1160_v50 = vld [vmem:[%s4367_s3 + $0x398] sm:$0xff] }
 0x195   :  { %v3498_v45 = vpop.permute.xlu1 %1230  ;;  %v3500_v58 = vpop.permute.xlu0 %1225 }
 0x196   :  { %1510 = vperm.xlu1 %2563, %v1112_v57   ;;  %1505 = vperm.xlu0 %2562, %v1111_v34   ;;  %v918_v57 = vmul.f32 %v2814_v8, %v22_v1  ;;  %v27_v8 = vld [vmem:[%s4369_s1 + $0x30] sm:$0xff] }
 0x197   :  { %v3578_v42 = vmul.f32 %v2834_v16, %v27_v8  ;;  %v933_v8 = vmul.f32 %v2884_v36, %v37_v13  ;;  %v3627_v36 = vmul.f32 %v2864_v28, %v33_v62  ;;  %v39_v13 = vld [vmem:[%s4369_s1 + $0x90] sm:$0xff]  ;;  %v44_v28 = vld [vmem:[%s4369_s1 + $0xb8] sm:$0xff] }
 0x198   :  { %v3541_v1 = vadd.f32 %v1181_v61, %v918_v57  ;;  %v1143_v61 = vld [vmem:[%s4367_s3 + $0x310] sm:$0xff]  ;;  %v38_v57 = vld [vmem:[%s4369_s1 + $0x88] sm:$0xff] }
 0x199   :  { %v3522_v34 = vpop.permute.xlu1 %1240  ;;  %v3524_v29 = vpop.permute.xlu0 %1235 }
 0x19a   :  { %1750 = vperm.xlu1 %2563, %v1160_v50   ;;  %1745 = vperm.xlu0 %2562, %v1159_v38   ;;  %v29_v50 = vld [vmem:[%s4369_s1 + $0x40] sm:$0xff]  ;;  %v920_v38 = vmul.f32 %v2812_v7, %v24_v30  ;;  %v921_v7 = vmul.f32 %v2824_v12, %v25_v21  ;;  %v3575_v30 = vmul.f32 %v2832_v15, %v28_v4  ;;  %v35_v15 = vld [vmem:[%s4369_s1 + $0x70] sm:$0xff]  ;;  %v1942_v16 = vmul.f32 0.2, %v3541_v1  ;;  %v1130_v4 = vld [vmem:[%s4367_s3 + $0x2a8] sm:$0xff] }
 0x19b   :  { %v3590_v12 = vmul.f32 %v2842_v19, %v30_v41  ;;  %v1941_v21 = vmul.f32 0.2, %v3543_v26  ;;  %v934_v19 = vmul.f32 %v2882_v35, %v38_v57  ;;  %v40_v41 = vld [vmem:[%s4369_s1 + $0x98] sm:$0xff]  ;;  %v3624_v35 = vmul.f32 %v2862_v27, %v34_v5  ;;  %v41_v27 = vld [vmem:[%s4369_s1 + $0xa0] sm:$0xff] }
 0x19c   :  { %v3598_v22 = vadd.f32 %v3455_v33, %v920_v38  ;;  %v1129_v33 = vld [vmem:[%s4367_s3 + $0x2a0] sm:$0xff]  ;;  %v936_v31 = vmul.f32 %v2892_v39, %v40_v41  ;;  %v1114_v38 = vld [vmem:[%s4367_s3 + $0x228] sm:$0xff]  ;;  %v2070_v11 = vmax.f32 %v3541_v1, %v1942_v16  ;;  %v935_v39 = vmul.f32 %v2894_v40, %v39_v13 }
 0x19d   :  { %v3568_v10 = vpop.permute.xlu1 %1250  ;;  %v3570_v6 = vpop.permute.xlu0 %1245  ;;  %v2069_v57 = vmax.f32 %v3543_v26, %v1941_v21  ;;  %v937_v41 = vmul.f32 %v2904_v44, %v41_v27  ;;  %v940_v13 = vmul.f32 %v2912_v47, %v44_v28  ;;  %v1162_v44 = vld [vmem:[%s4367_s3 + $0x3a8] sm:$0xff]  ;;  %v1161_v47 = vld [vmem:[%s4367_s3 + $0x3a0] sm:$0xff]  ;;  %v3687_v28 = vadd.f32 %v3478_v2, %v3575_v30 }
 0x19e   :  { %1670 = vperm.xlu1 %2563, %v1144_v9   ;;  %1665 = vperm.xlu0 %2562, %v1143_v61   ;;  %v3604_v9 = vmul.f32 %v2844_v20, %v29_v50  ;;  %v3618_v61 = vmul.f32 %v2852_v23, %v32_v14  ;;  %v3621_v20 = vmul.f32 %v2854_v24, %v31_v46  ;;  %v42_v24 = vld [vmem:[%s4369_s1 + $0xa8] sm:$0xff]  ;;  %v1944_v62 = vmul.f32 0.2, %v3598_v22  ;;  %v1113_v46 = vld [vmem:[%s4367_s3 + $0x220] sm:$0xff] }
 0x19f   :  { %v3636_v23 = vmul.f32 %v2874_v32, %v35_v15  ;;  %v43_v32 = vld [vmem:[%s4369_s1 + $0xb0] sm:$0xff]  ;;  %v1943_v15 = vmul.f32 0.2, %v3612_v0  ;;  %v45_v30 = vld [vmem:[%s4369_s1 + $0xc0] sm:$0xff] }
 0x1a0   :  { %v939_v63 = vmul.f32 %v2914_v48, %v43_v32  ;;  %v3700_v2 = vadd.f32 %v3490_v18, %v3604_v9 }
 0x1a1   :  { %v1261_v54 = vpop.permute.xlu1 %1260  ;;  %v1256_v50 = vpop.permute.xlu0 %1255 }
 0x1a2   :  { %v1830_v5 = vadd.f32 %v1261_v54, %v934_v19  ;;  %v1829_v14 = vadd.f32 %v1256_v50, %v933_v8  ;;  %1600 = vperm.xlu1 %2563, %v1130_v4   ;;  %1595 = vperm.xlu0 %2562, %v1129_v33   ;;  %v938_v8 = vmul.f32 %v2902_v43, %v42_v24 }
 0x1a3   :  { %v3665_v33 = vadd.f32 %v3468_v49, %v922_v3  ;;  %v3668_v54 = vadd.f32 %v3470_v17, %v921_v7  ;;  %v2072_v43 = vmax.f32 %v3598_v22, %v1944_v62  ;;  %v2201_v17 = vpack.c.bf16 %v2070_v11, %v2069_v57  ;;  %v46_v49 = vld [vmem:[%s4369_s1 + $0xc8] sm:$0xff] }
 0x1a4   :  { %v1958_v4 = vmul.f32 0.2, %v1830_v5  ;;  %v1957_v19 = vmul.f32 0.2, %v1829_v14  ;;  %v2071_v3 = vmax.f32 %v3612_v0, %v1943_v15  ;;  %v3696_v57 = vadd.f32 %v3488_v53, %v3590_v12  ;;  %v1145_v53 = vld [vmem:[%s4367_s3 + $0x320] sm:$0xff] }
 0x1a5   :  { %v1271_v50 = vpop.permute.xlu1 %1270  ;;  %v1266_v26 = vpop.permute.xlu0 %1265  ;;  %v1946_v22 = vmul.f32 0.2, %v3665_v33  ;;  %v1945_v27 = vmul.f32 0.2, %v3668_v54 }
 0x1a6   :  { %v1832_v21 = vadd.f32 %v1271_v50, %v936_v31  ;;  %v1831_v1 = vadd.f32 %v1266_v26, %v935_v39  ;;  %1520 = vperm.xlu1 %2563, %v1114_v38   ;;  %v2085_v40 = vmax.f32 %v1829_v14, %v1957_v19  ;;  %v2086_v16 = vmax.f32 %v1830_v5, %v1958_v4 }
 0x1a7   :  { %1515 = vperm.xlu0 %2562, %v1113_v46   ;;  %v3691_v5 = vadd.f32 %v3480_v37, %v3578_v42  ;;  %v942_v46 = vmul.f32 %v2922_v51, %v46_v49  ;;  %v1146_v37 = vld [vmem:[%s4367_s3 + $0x328] sm:$0xff]  ;;  %v2202_v18 = vpack.c.bf16 %v2072_v43, %v2071_v3  ;;  %v2074_v9 = vmax.f32 %v3665_v33, %v1946_v22 }
 0x1a8   :  { %v1960_v7 = vmul.f32 0.2, %v1832_v21  ;;  %v1959_v24 = vmul.f32 0.2, %v1831_v1  ;;  %v2209_v48 = vpack.c.bf16 %v2086_v16, %v2085_v40  ;;  %v2073_v11 = vmax.f32 %v3668_v54, %v1945_v27  ;;  %v1132_v16 = vld [vmem:[%s4367_s3 + $0x2b8] sm:$0xff] }
 0x1a9   :  { %v1281_v0 = vpop.permute.xlu1 %1280  ;;  %v1276_v14 = vpop.permute.xlu0 %1275  ;;  %v1948_v39 = vmul.f32 0.2, %v3687_v28  ;;  %v1947_v15 = vmul.f32 0.2, %v3691_v5  ;;  %v1950_v33 = vmul.f32 0.2, %v3696_v57  ;;  %v3723_v40 = vadd.f32 %v3498_v45, %v3618_v61 }
 0x1aa   :  { %v2088_v31 = vmax.f32 %v1832_v21, %v1960_v7  ;;  %v2087_v32 = vmax.f32 %v1831_v1, %v1959_v24  ;;  %v1834_v62 = vadd.f32 %v1281_v0, %v938_v8  ;;  %v1833_v38 = vadd.f32 %v1276_v14, %v937_v41  ;;  %1760 = vperm.xlu1 %2563, %v1162_v44   ;;  %v48_v8 = vld [vmem:[%s4369_s1 + $0xd8] sm:$0xff]  ;;  %v1131_v45 = vld [vmem:[%s4367_s3 + $0x2b0] sm:$0xff] }
 0x1ab   :  { %1755 = vperm.xlu0 %2562, %v1161_v47   ;;  %2473 = vmatprep.subr.bf16.mxu0 %v2209_v48  ;;  %v941_v1 = vmul.f32 %v2924_v52, %v45_v30  ;;  %v1949_v54 = vmul.f32 0.2, %v3700_v2  ;;  %v3733_v52 = vadd.f32 %v3500_v58, %v3621_v20  ;;  %v944_v44 = vmul.f32 %v2932_v55, %v48_v8  ;;  %v50_v58 = vld [vmem:[%s4369_s1 + $0xe8] sm:$0xff]  ;;  %v49_v55 = vld [vmem:[%s4369_s1 + $0xe0] sm:$0xff]  ;;  %v1116_v14 = vld [vmem:[%s4367_s3 + $0x238] sm:$0xff] }
 0x1ac   :  { %v1962_v42 = vmul.f32 0.2, %v1834_v62  ;;  %v1961_v51 = vmul.f32 0.2, %v1833_v38  ;;  %2474 = vmatpush3.bf16.msra.mxu0 %v2201_v17  ;;  %v2210_v12 = vpack.c.bf16 %v2088_v31, %v2087_v32  ;;  %v2076_v17 = vmax.f32 %v3687_v28, %v1948_v39 }
 0x1ad   :  { %v1291_v4 = vpop.permute.xlu1 %1290  ;;  %v1286_v19 = vpop.permute.xlu0 %1285  ;;  %v2075_v49 = vmax.f32 %v3691_v5, %v1947_v15  ;;  %v2203_v24 = vpack.c.bf16 %v2074_v9, %v2073_v11  ;;  %v2078_v28 = vmax.f32 %v3696_v57, %v1950_v33  ;;  %v2077_v5 = vmax.f32 %v3700_v2, %v1949_v54  ;;  %v1163_v15 = vld [vmem:[%s4367_s3 + $0x3b0] sm:$0xff] }
 0x1ae   :  { %v2090_v41 = vmax.f32 %v1834_v62, %v1962_v42  ;;  %v2089_v50 = vmax.f32 %v1833_v38, %v1961_v51  ;;  %v1836_v26 = vadd.f32 %v1291_v4, %v940_v13  ;;  %v1835_v21 = vadd.f32 %v1286_v19, %v939_v63  ;;  %1680 = vperm.xlu1 %2563, %v1146_v37   ;;  %v47_v63 = vld [vmem:[%s4369_s1 + $0xd0] sm:$0xff] }
 0x1af   :  { %1675 = vperm.xlu0 %2562, %v1145_v53   ;;  %2475 = vmatprep.subr.bf16.mxu0 %v2210_v12  ;;  %v943_v27 = vmul.f32 %v2934_v56, %v47_v63  ;;  %v1952_v0 = vmul.f32 0.2, %v3723_v40  ;;  %v1115_v56 = vld [vmem:[%s4367_s3 + $0x230] sm:$0xff]  ;;  %v1951_v31 = vmul.f32 0.2, %v3733_v52  ;;  %v3761_v57 = vadd.f32 %v3522_v34, %v3624_v35 }
 0x1b0   :  { %v1964_v13 = vmul.f32 0.2, %v1836_v26  ;;  %v1963_v43 = vmul.f32 0.2, %v1835_v21  ;;  %2476 = vmatpush3.bf16.msra.mxu0 %v2202_v18  ;;  %v2211_v61 = vpack.c.bf16 %v2090_v41, %v2089_v50  ;;  %v3765_v2 = vadd.f32 %v3524_v29, %v3627_v36  ;;  %v1164_v29 = vld [vmem:[%s4367_s3 + $0x3b8] sm:$0xff]  ;;  %v51_v36 = vld [vmem:[%s4369_s1 + $0xf0] sm:$0xff] }
 0x1b1   :  { %v1301_v3 = vpop.permute.xlu1 %1300  ;;  %v1296_v7 = vpop.permute.xlu0 %1295  ;;  %v2204_v42 = vpack.c.bf16 %v2076_v17, %v2075_v49  ;;  %v945_v9 = vmul.f32 %v2944_v60, %v49_v55  ;;  %v2080_v34 = vmax.f32 %v3723_v40, %v1952_v0  ;;  %v2205_v35 = vpack.c.bf16 %v2078_v28, %v2077_v5  ;;  %v1133_v55 = vld [vmem:[%s4367_s3 + $0x2c0] sm:$0xff] }
 0x1b2   :  { %v2092_v20 = vmax.f32 %v1836_v26, %v1964_v13  ;;  %v2091_v47 = vmax.f32 %v1835_v21, %v1963_v43  ;;  %v1838_v48 = vadd.f32 %v1301_v3, %v942_v46  ;;  %v1837_v22 = vadd.f32 %v1296_v7, %v941_v1  ;;  %1610 = vperm.xlu1 %2563, %v1132_v16   ;;  %v4472_v16 = vld [vmem:[#allocation2_spill] sm:$0xff] }
 0x1b3   :  { %1605 = vperm.xlu0 %2562, %v1131_v45   ;;  %2477 = vmatprep.subr.bf16.mxu0 %v2211_v61  ;;  %v946_v46 = vmul.f32 %v2942_v59, %v50_v58  ;;  %v52_v59 = vld [vmem:[%s4369_s1 + $0xf8] sm:$0xff]  ;;  %v2079_v11 = vmax.f32 %v3733_v52, %v1951_v31  ;;  %v1954_v19 = vmul.f32 0.2, %v3761_v57  ;;  %v1953_v8 = vmul.f32 0.2, %v3765_v2  ;;  %v4473_v52 = vld [vmem:[#allocation3_spill] sm:$0xff] }
 0x1b4   :  { %v1966_v32 = vmul.f32 0.2, %v1838_v48  ;;  %v1965_v62 = vmul.f32 0.2, %v1837_v22  ;;  %2478 = vmatpush3.bf16.msra.mxu0 %v2203_v24  ;;  %v2212_v38 = vpack.c.bf16 %v2092_v20, %v2091_v47  ;;  %v1828_v41 = vadd.f32 %v3568_v10, %v3633_v25  ;;  %v1148_v10 = vld [vmem:[%s4367_s3 + $0x338] sm:$0xff] }
 0x1b5   :  { %v1311_v37 = vpop.permute.xlu1 %1310  ;;  %v1306_v30 = vpop.permute.xlu0 %1305  ;;  %v1827_v50 = vadd.f32 %v3570_v6, %v3636_v23  ;;  %v948_v63 = vmul.f32 %v4472_v16, %v52_v59  ;;  %v947_v13 = vmul.f32 %v4473_v52, %v51_v36  ;;  %v1147_v6 = vld [vmem:[%s4367_s3 + $0x330] sm:$0xff]  ;;  %v2206_v45 = vpack.c.bf16 %v2080_v34, %v2079_v11  ;;  %v1150_v59 = vld [vmem:[%s4367_s3 + $0x348] sm:$0xff]  ;;  %v69_v36 = vld [vmem:[%s4369_s1 + $0x180] sm:$0xff] }
 0x1b6   :  { %v2094_v51 = vmax.f32 %v1838_v48, %v1966_v32  ;;  %v2093_v53 = vmax.f32 %v1837_v22, %v1965_v62  ;;  %v1840_v12 = vadd.f32 %v1311_v37, %v944_v44  ;;  %v1839_v18 = vadd.f32 %v1306_v30, %v943_v27  ;;  %1530 = vperm.xlu1 %2563, %v1116_v14   ;;  %v1134_v48 = vld [vmem:[%s4367_s3 + $0x2c8] sm:$0xff]  ;;  %v71_v52 = vld [vmem:[%s4369_s1 + $0x190] sm:$0xff] }
 0x1b7   :  { %1525 = vperm.xlu0 %2562, %v1115_v56   ;;  %2479 = vmatprep.subr.bf16.mxu0 %v2212_v38  ;;  %v2082_v61 = vmax.f32 %v3761_v57, %v1954_v19  ;;  %v2081_v44 = vmax.f32 %v3765_v2, %v1953_v8  ;;  %v1956_v17 = vmul.f32 0.2, %v1828_v41  ;;  %v1955_v49 = vmul.f32 0.2, %v1827_v50  ;;  %v1118_v38 = vld [vmem:[%s4367_s3 + $0x248] sm:$0xff]  ;;  %v4476_v8 = vld [vmem:[#allocation5_spill] sm:$0xff] }
 0x1b8   :  { %v1968_v60 = vmul.f32 0.2, %v1840_v12  ;;  %v1967_v39 = vmul.f32 0.2, %v1839_v18  ;;  %2480 = vmatpush3.bf16.msra.mxu0 %v2204_v42  ;;  %v2213_v4 = vpack.c.bf16 %v2094_v51, %v2093_v53  ;;  %v4474_v42 = vld [vmem:[#allocation72_spill] sm:$0xff]  ;;  %v1166_v53 = vld [vmem:[%s4367_s3 + $0x3c8] sm:$0xff] }
 0x1b9   :  { %v1321_v26 = vpop.permute.xlu1 %1320  ;;  %v1316_v21 = vpop.permute.xlu0 %1315  ;;  %v2207_v14 = vpack.c.bf16 %v2082_v61, %v2081_v44  ;;  %v2084_v56 = vmax.f32 %v1828_v41, %v1956_v17  ;;  %v2083_v31 = vmax.f32 %v1827_v50, %v1955_v49  ;;  %v2465_v51 = vcombine.low %v4474_v42, %v4474_v42  ;;  %v54_v34 = vld [vmem:[%s4369_s1 + $0x108] sm:$0xff]  ;;  %v1136_v50 = vld [vmem:[%s4367_s3 + $0x2d8] sm:$0xff]  ;;  %v59_v44 = vld [vmem:[%s4369_s1 + $0x130] sm:$0xff] }
 0x1ba   :  { %v2096_v1 = vmax.f32 %v1840_v12, %v1968_v60  ;;  %v2095_v33 = vmax.f32 %v1839_v18, %v1967_v39  ;;  %v1842_v54 = vadd.f32 %v1321_v26, %v946_v46  ;;  %v1841_v40 = vadd.f32 %v1316_v21, %v945_v9  ;;  %1770 = vperm.xlu1 %2563, %v1164_v29   ;;  %v1117_v46 = vld [vmem:[%s4367_s3 + $0x240] sm:$0xff]  ;;  %v56_v39 = vld [vmem:[%s4369_s1 + $0x118] sm:$0xff] }
 0x1bb   :  { %1765 = vperm.xlu0 %2562, %v1163_v15   ;;  %2481 = vmatprep.subr.bf16.mxu0 %v2213_v4  ;;  %v2208_v30 = vpack.c.bf16 %v2084_v56, %v2083_v31  ;;  %v1165_v12 = vld [vmem:[%s4367_s3 + $0x3c0] sm:$0xff]  ;;  %v55_v15 = vld [vmem:[%s4369_s1 + $0x110] sm:$0xff]  ;;  %v4477_v26 = vld [vmem:[#allocation21_spill] sm:$0xff] }
 0x1bc   :  { %v1970_v25 = vmul.f32 0.2, %v1842_v54  ;;  %v1969_v43 = vmul.f32 0.2, %v1841_v40  ;;  %2482 = vmatpush3.bf16.msra.mxu0 %v2205_v35  ;;  %v2214_v23 = vpack.c.bf16 %v2096_v1, %v2095_v33  ;;  %v53_v29 = vld [vmem:[%s4369_s1 + $0x100] sm:$0xff]  ;;  %v4475_v4 = vld [vmem:[#allocation4_spill] sm:$0xff]  ;;  %v965_v21 = vmul.f32 %v4477_v26, %v69_v36 }
 0x1bd   :  { %v1331_v3 = vpop.permute.xlu1 %1330  ;;  %v1326_v7 = vpop.permute.xlu0 %1325  ;;  %v1149_v35 = vld [vmem:[%s4367_s3 + $0x340] sm:$0xff]  ;;  %v950_v19 = vmul.f32 %v4475_v4, %v54_v34  ;;  %v949_v41 = vmul.f32 %v4476_v8, %v53_v29  ;;  %v1135_v1 = vld [vmem:[%s4367_s3 + $0x2d0] sm:$0xff]  ;;  %v60_v61 = vld [vmem:[%s4369_s1 + $0x138] sm:$0xff] }
 0x1be   :  { %v2098_v24 = vmax.f32 %v1842_v54, %v1970_v25  ;;  %v2097_v58 = vmax.f32 %v1841_v40, %v1969_v43  ;;  %v1844_v20 = vadd.f32 %v1331_v3, %v948_v63  ;;  %v1843_v47 = vadd.f32 %v1326_v7, %v947_v13  ;;  %1690 = vperm.xlu1 %2563, %v1148_v10   ;;  %v4478_v33 = vld [vmem:[#allocation6_spill] sm:$0xff]  ;;  %v4479_v40 = vld [vmem:[#allocation7_spill] sm:$0xff]  ;;  %v1120_v3 = vld [vmem:[%s4367_s3 + $0x258] sm:$0xff] }
 0x1bf   :  { %1685 = vperm.xlu0 %2562, %v1147_v6   ;;  %2483 = vmatprep.subr.bf16.mxu0 %v2214_v23  ;;  %v952_v54 = vmul.f32 %v4478_v33, %v56_v39  ;;  %v951_v16 = vmul.f32 %v4479_v40, %v55_v15  ;;  %v70_v63 = vld [vmem:[%s4369_s1 + $0x188] sm:$0xff]  ;;  %v57_v23 = vld [vmem:[%s4369_s1 + $0x120] sm:$0xff]  ;;  %v4480_v7 = vld [vmem:[#allocation20_spill] sm:$0xff] }
 0x1c0   :  { %v1972_v22 = vmul.f32 0.2, %v1844_v20  ;;  %v1971_v27 = vmul.f32 0.2, %v1843_v47  ;;  %2484 = vmatpush3.bf16.msra.mxu0 %v2206_v45  ;;  %v2215_v28 = vpack.c.bf16 %v2098_v24, %v2097_v58  ;;  %v58_v6 = vld [vmem:[%s4369_s1 + $0x128] sm:$0xff]  ;;  %v966_v24 = vmul.f32 %v4480_v7, %v70_v63  ;;  %v72_v58 = vld [vmem:[%s4369_s1 + $0x198] sm:$0xff] }
 0x1c1   :  { %v1341_v5 = vpop.permute.xlu1 %1340  ;;  %v1336_v0 = vpop.permute.xlu0 %1335  ;;  %v4483_v31 = vld [vmem:[#allocation9_spill] sm:$0xff]  ;;  %v4486_v42 = vld [vmem:[#allocation22_spill] sm:$0xff]  ;;  %v74_v34 = vld [vmem:[%s4369_s1 + $0x1a8] sm:$0xff] }
 0x1c2   :  { %v2100_v32 = vmax.f32 %v1844_v20, %v1972_v22  ;;  %v2099_v62 = vmax.f32 %v1843_v47, %v1971_v27  ;;  %1620 = vperm.xlu1 %2563, %v1134_v48   ;;  %2485 = vmatprep.subr.bf16.mxu0 %v2215_v28  ;;  %v3864_v13 = vadd.f32 %v1341_v5, %v950_v19  ;;  %v4481_v20 = vld [vmem:[#allocation23_spill] sm:$0xff]  ;;  %v73_v48 = vld [vmem:[%s4369_s1 + $0x1a0] sm:$0xff]  ;;  %v1119_v22 = vld [vmem:[%s4367_s3 + $0x250] sm:$0xff] }
 0x1c3   :  { %1615 = vperm.xlu0 %2562, %v1133_v55   ;;  %v3866_v10 = vadd.f32 %v1336_v0, %v949_v41  ;;  %v967_v47 = vmul.f32 %v4481_v20, %v71_v52  ;;  %v4482_v27 = vld [vmem:[#allocation8_spill] sm:$0xff]  ;;  %v4487_v29 = vld [vmem:[#allocation25_spill] sm:$0xff] }
 0x1c4   :  { %2486 = vmatpush3.bf16.msra.mxu0 %v2207_v14  ;;  %v2216_v57 = vpack.c.bf16 %v2100_v32, %v2099_v62  ;;  %v954_v55 = vmul.f32 %v4482_v27, %v58_v6  ;;  %v1974_v28 = vmul.f32 0.2, %v3864_v13  ;;  %v953_v32 = vmul.f32 %v4483_v31, %v57_v23  ;;  %v4484_v62 = vld [vmem:[#allocation10_spill] sm:$0xff]  ;;  %v75_v36 = vld [vmem:[%s4369_s1 + $0x1b0] sm:$0xff]  ;;  %v4488_v8 = vld [vmem:[#allocation13_spill] sm:$0xff] }
 0x1c5   :  { %v1351_v2 = vpop.permute.xlu1 %1350  ;;  %v1346_v37 = vpop.permute.xlu0 %1345  ;;  %v1973_v5 = vmul.f32 0.2, %v3866_v10  ;;  %v1167_v19 = vld [vmem:[%s4367_s3 + $0x3d0] sm:$0xff]  ;;  %v62_v31 = vld [vmem:[%s4369_s1 + $0x148] sm:$0xff] }
 0x1c6   :  { %1540 = vperm.xlu1 %2563, %v1118_v38   ;;  %2487 = vmatprep.subr.bf16.mxu0 %v2216_v57  ;;  %v3882_v17 = vadd.f32 %v1351_v2, %v952_v54  ;;  %v3884_v49 = vadd.f32 %v1346_v37, %v951_v16  ;;  %v956_v38 = vmul.f32 %v4484_v62, %v60_v61  ;;  %v4485_v37 = vld [vmem:[#allocation11_spill] sm:$0xff]  ;;  %v4489_v63 = vld [vmem:[#allocation24_spill] sm:$0xff] }
 0x1c7   :  { %1535 = vperm.xlu0 %2562, %v1117_v46   ;;  %v61_v46 = vld [vmem:[%s4369_s1 + $0x140] sm:$0xff]  ;;  %v2101_v26 = vmax.f32 %v3866_v10, %v1973_v5  ;;  %v970_v52 = vmul.f32 %v4489_v63, %v74_v34  ;;  %v1151_v61 = vld [vmem:[%s4367_s3 + $0x350] sm:$0xff] }
 0x1c8   :  { %2488 = vmatpush3.bf16.msra.mxu0 %v2208_v30  ;;  %v955_v30 = vmul.f32 %v4485_v37, %v59_v44  ;;  %v957_v41 = vmul.f32 %v4488_v8, %v61_v46  ;;  %v4491_v5 = vld [vmem:[#allocation26_spill] sm:$0xff] }
 0x1c9   :  { %v3818_v18 = vpop.permute.xlu1 %1360  ;;  %v3820_v9 = vpop.permute.xlu0 %1355  ;;  %v1137_v46 = vld [vmem:[%s4367_s3 + $0x2e0] sm:$0xff] }
 0x1ca   :  { %1780 = vperm.xlu1 %2563, %v1166_v53   ;;  %v1976_v53 = vmul.f32 0.2, %v3882_v17  ;;  %v3925_v39 = vadd.f32 %v3818_v18, %v954_v55  ;;  %v3928_v15 = vadd.f32 %v3820_v9, %v953_v32  ;;  %v76_v18 = vld [vmem:[%s4369_s1 + $0x1b8] sm:$0xff] }
 0x1cb   :  { %1775 = vperm.xlu0 %2562, %v1165_v12   ;;  %2332 = vmatmul.mubr.bf16.vlgmr.msra.gmra.mrb[0].mxu0 %v2465_v51  ;;  %v968_v51 = vmul.f32 %v4486_v42, %v72_v58  ;;  %v1975_v12 = vmul.f32 0.2, %v3884_v49 }
 0x1cc   :  { %v2104_v10 = vmax.f32 %v3882_v17, %v1976_v53  ;;  %v1978_v44 = vmul.f32 0.2, %v3925_v39 }
 0x1cd   :  { %v3837_v11 = vpop.permute.xlu1 %1370  ;;  %v3839_v60 = vpop.permute.xlu0 %1365  ;;  %v2103_v23 = vmax.f32 %v3884_v49, %v1975_v12 }
 0x1ce   :  { %1700 = vperm.xlu1 %2563, %v1150_v59   ;;  %v1168_v59 = vld [vmem:[%s4367_s3 + $0x3d8] sm:$0xff]  ;;  %v3956_v58 = vadd.f32 %v3837_v11, %v956_v38  ;;  %v3959_v17 = vadd.f32 %v3839_v60, %v955_v30  ;;  %v1138_v11 = vld [vmem:[%s4367_s3 + $0x2e8] sm:$0xff]  ;;  %v2106_v32 = vmax.f32 %v3925_v39, %v1978_v44 }
 0x1cf   :  { %1695 = vperm.xlu0 %2562, %v1149_v35   ;;  %v969_v35 = vmul.f32 %v4487_v29, %v73_v48  ;;  %v2218_v60 = vpack.c.bf16 %v2104_v10, %v2103_v23  ;;  %v1170_v23 = vld [vmem:[%s4367_s3 + $0x3e8] sm:$0xff] }
 0x1d0   :  { %v1980_v37 = vmul.f32 0.2, %v3956_v58  ;;  %v1979_v30 = vmul.f32 0.2, %v3959_v17 }
 0x1d1   :  { %v1416_v25 = vpop.permute.xlu1 %1415  ;;  %v3868_v43 = vpop.permute.xlu0 %1375 }
 0x1d2   :  { %v1861_v45 = vadd.f32 %v1416_v25, %v965_v21  ;;  %1630 = vperm.xlu1 %2563, %v1136_v50   ;;  %v2102_v50 = vmax.f32 %v3864_v13, %v1974_v28  ;;  %v4490_v25 = vld [vmem:[#allocation27_spill] sm:$0xff]  ;;  %v77_v13 = vld [vmem:[%s4369_s1 + $0x1c0] sm:$0xff]  ;;  %v3983_v42 = vadd.f32 %v3868_v43, %v957_v41 }
 0x1d3   :  { %1625 = vperm.xlu0 %2562, %v1135_v1   ;;  %v971_v6 = vmul.f32 %v4490_v25, %v75_v36  ;;  %v4493_v36 = vld [vmem:[#allocation12_spill] sm:$0xff]  ;;  %v1121_v41 = vld [vmem:[%s4367_s3 + $0x260] sm:$0xff] }
 0x1d4   :  { %v1989_v0 = vmul.f32 0.2, %v1861_v45  ;;  %v2217_v48 = vpack.c.bf16 %v2102_v50, %v2101_v26  ;;  %v958_v39 = vmul.f32 %v4493_v36, %v62_v31 }
 0x1d5   :  { %v1426_v14 = vpop.permute.xlu1 %1425  ;;  %v1421_v56 = vpop.permute.xlu0 %1420 }
 0x1d6   :  { %v3908_v57 = vadd.f32 %v1426_v14, %v967_v47  ;;  %v1862_v2 = vadd.f32 %v1421_v56, %v966_v24  ;;  %1550 = vperm.xlu1 %2563, %v1120_v3   ;;  %v2117_v33 = vmax.f32 %v1861_v45, %v1989_v0  ;;  %v1152_v45 = vld [vmem:[%s4367_s3 + $0x358] sm:$0xff]  ;;  %v1977_v3 = vmul.f32 0.2, %v3928_v15 }
 0x1d7   :  { %1545 = vperm.xlu0 %2562, %v1119_v22   ;;  %v972_v0 = vmul.f32 %v4491_v5, %v76_v18  ;;  %v4492_v14 = vld [vmem:[#allocation29_spill] sm:$0xff]  ;;  %v1981_v18 = vmul.f32 0.2, %v3983_v42  ;;  %v4497_v5 = vld [vmem:[#allocation14_spill] sm:$0xff] }
 0x1d8   :  { %v1990_v4 = vmul.f32 0.2, %v1862_v2  ;;  %v1991_v9 = vmul.f32 0.2, %v3908_v57  ;;  %v973_v56 = vmul.f32 %v4492_v14, %v77_v13  ;;  %v2105_v62 = vmax.f32 %v3928_v15, %v1977_v3  ;;  %v1122_v15 = vld [vmem:[%s4367_s3 + $0x268] sm:$0xff]  ;;  %v4495_v13 = vld [vmem:[#allocation30_spill] sm:$0xff] }
 0x1d9   :  { %v1436_v21 = vpop.permute.xlu1 %1435  ;;  %v1431_v1 = vpop.permute.xlu0 %1430  ;;  %v4498_v14 = vld [vmem:[#allocation15_spill] sm:$0xff] }
 0x1da   :  { %v1865_v54 = vadd.f32 %v1436_v21, %v969_v35  ;;  %v1864_v40 = vadd.f32 %v1431_v1, %v968_v51  ;;  %1790 = vperm.xlu1 %2563, %v1168_v59   ;;  %v2118_v16 = vmax.f32 %v1862_v2, %v1990_v4  ;;  %v2119_v22 = vmax.f32 %v3908_v57, %v1991_v9  ;;  %v78_v2 = vld [vmem:[%s4369_s1 + $0x1c8] sm:$0xff]  ;;  %v4494_v4 = vld [vmem:[#allocation28_spill] sm:$0xff] }
 0x1db   :  { %1785 = vperm.xlu0 %2562, %v1167_v19   ;;  %v974_v43 = vmul.f32 %v4494_v4, %v78_v2  ;;  %v80_v19 = vld [vmem:[%s4369_s1 + $0x1d8] sm:$0xff]  ;;  %v2219_v26 = vpack.c.bf16 %v2106_v32, %v2105_v62  ;;  %v79_v21 = vld [vmem:[%s4369_s1 + $0x1d0] sm:$0xff]  ;;  %v2108_v1 = vmax.f32 %v3956_v58, %v1980_v37  ;;  %v1153_v62 = vld [vmem:[%s4367_s3 + $0x360] sm:$0xff] }
 0x1dc   :  { %v1992_v7 = vmul.f32 0.2, %v1864_v40  ;;  %v2225_v24 = vpack.c.bf16 %v2118_v16, %v2117_v33  ;;  %v1993_v49 = vmul.f32 0.2, %v1865_v54  ;;  %v2107_v33 = vmax.f32 %v3959_v17, %v1979_v30  ;;  %v1139_v4 = vld [vmem:[%s4367_s3 + $0x2f0] sm:$0xff] }
 0x1dd   :  { %v1446_v20 = vpop.permute.xlu1 %1445  ;;  %v1441_v47 = vpop.permute.xlu0 %1440  ;;  %v976_v10 = vmul.f32 %v4495_v13, %v80_v19  ;;  %v2109_v17 = vmax.f32 %v3983_v42, %v1981_v18  ;;  %v65_v19 = vld [vmem:[%s4369_s1 + $0x160] sm:$0xff]  ;;  %v83_v13 = vld [vmem:[%s4369_s1 + $0x1f0] sm:$0xff] }
 0x1de   :  { %v2120_v27 = vmax.f32 %v1864_v40, %v1992_v7  ;;  %v3962_v55 = vadd.f32 %v1446_v20, %v971_v6  ;;  %v1866_v28 = vadd.f32 %v1441_v47, %v970_v52  ;;  %1710 = vperm.xlu1 %2563, %v1152_v45   ;;  %2495 = vmatprep.subr.bf16.mxu1 %v2225_v24  ;;  %v64_v6 = vld [vmem:[%s4369_s1 + $0x158] sm:$0xff]  ;;  %v63_v45 = vld [vmem:[%s4369_s1 + $0x150] sm:$0xff]  ;;  %v1169_v24 = vld [vmem:[%s4367_s3 + $0x3e0] sm:$0xff] }
 0x1df   :  { %1705 = vperm.xlu0 %2562, %v1151_v61   ;;  %2496 = vmatpush3.bf16.msra.mxu1 %v2217_v48  ;;  %v2121_v51 = vmax.f32 %v1865_v54, %v1993_v49  ;;  %v4496_v61 = vld [vmem:[#allocation31_spill] sm:$0xff]  ;;  %v2220_v48 = vpack.c.bf16 %v2108_v1, %v2107_v33  ;;  %v4501_v33 = vld [vmem:[#allocation16_spill] sm:$0xff] }
 0x1e0   :  { %v1994_v38 = vmul.f32 0.2, %v1866_v28  ;;  %v2226_v57 = vpack.c.bf16 %v2120_v27, %v2119_v22  ;;  %v1995_v59 = vmul.f32 0.2, %v3962_v55  ;;  %v975_v44 = vmul.f32 %v4496_v61, %v79_v21 }
 0x1e1   :  { %v1456_v53 = vpop.permute.xlu1 %1455  ;;  %v1451_v12 = vpop.permute.xlu0 %1450 }
 0x1e2   :  { %v2122_v34 = vmax.f32 %v1866_v28, %v1994_v38  ;;  %v1869_v29 = vadd.f32 %v1456_v53, %v973_v56  ;;  %v1868_v35 = vadd.f32 %v1451_v12, %v972_v0  ;;  %1640 = vperm.xlu1 %2563, %v1138_v11   ;;  %2497 = vmatprep.subr.bf16.mxu1 %v2226_v57  ;;  %v1154_v11 = vld [vmem:[%s4367_s3 + $0x368] sm:$0xff]  ;;  %v81_v57 = vld [vmem:[%s4369_s1 + $0x1e0] sm:$0xff]  ;;  %v4499_v12 = vld [vmem:[#allocation32_spill] sm:$0xff] }
 0x1e3   :  { %1635 = vperm.xlu0 %2562, %v1137_v46   ;;  %2498 = vmatpush3.bf16.msra.mxu1 %v2218_v60  ;;  %v2123_v16 = vmax.f32 %v3962_v55, %v1995_v59  ;;  %v960_v0 = vmul.f32 %v4497_v5, %v64_v6  ;;  %v959_v56 = vmul.f32 %v4498_v14, %v63_v45  ;;  %v82_v60 = vld [vmem:[%s4369_s1 + $0x1e8] sm:$0xff] }
 0x1e4   :  { %v1996_v8 = vmul.f32 0.2, %v1868_v35  ;;  %v2227_v50 = vpack.c.bf16 %v2122_v34, %v2121_v51  ;;  %v1997_v9 = vmul.f32 0.2, %v1869_v29  ;;  %v978_v59 = vmul.f32 %v4499_v12, %v82_v60  ;;  %v1140_v34 = vld [vmem:[%s4367_s3 + $0x2f8] sm:$0xff]  ;;  %v4505_v60 = vld [vmem:[#allocation18_spill] sm:$0xff] }
 0x1e5   :  { %v1381_v54 = vpop.permute.xlu1 %1380  ;;  %v1461_v40 = vpop.permute.xlu0 %1460 }
 0x1e6   :  { %v2124_v63 = vmax.f32 %v1868_v35, %v1996_v8  ;;  %v1854_v52 = vadd.f32 %v1381_v54, %v958_v39  ;;  %v1870_v25 = vadd.f32 %v1461_v40, %v974_v43  ;;  %1560 = vperm.xlu1 %2563, %v1122_v15   ;;  %2499 = vmatprep.subr.bf16.mxu1 %v2227_v50  ;;  %v4500_v35 = vld [vmem:[#allocation33_spill] sm:$0xff] }
 0x1e7   :  { %1555 = vperm.xlu0 %2562, %v1121_v41   ;;  %2500 = vmatpush3.bf16.msra.mxu1 %v2219_v26  ;;  %v2125_v49 = vmax.f32 %v1869_v29, %v1997_v9  ;;  %v66_v29 = vld [vmem:[%s4369_s1 + $0x168] sm:$0xff]  ;;  %v977_v36 = vmul.f32 %v4500_v35, %v81_v57  ;;  %v1124_v9 = vld [vmem:[%s4367_s3 + $0x278] sm:$0xff]  ;;  %v4092_v35 = vld [vmem:[%s4368_s0 + $0x10] sm:$0x77] }
 0x1e8   :  { %v1982_v3 = vmul.f32 0.2, %v1854_v52  ;;  %v1998_v7 = vmul.f32 0.2, %v1870_v25  ;;  %v2228_v58 = vpack.c.bf16 %v2124_v63, %v2123_v16  ;;  %v962_v18 = vmul.f32 %v4501_v33, %v66_v29  ;;  %v4502_v54 = vld [vmem:[#allocation17_spill] sm:$0xff] }
 0x1e9   :  { %v1471_v20 = vpop.permute.xlu1 %1470  ;;  %v1466_v47 = vpop.permute.xlu0 %1465  ;;  %v961_v40 = vmul.f32 %v4502_v54, %v65_v19  ;;  %v84_v16 = vld [vmem:[%s4369_s1 + $0x1f8] sm:$0xff] }
 0x1ea   :  { %v2110_v22 = vmax.f32 %v1854_v52, %v1982_v3  ;;  %v2126_v27 = vmax.f32 %v1870_v25, %v1998_v7  ;;  %v1872_v55 = vadd.f32 %v1471_v20, %v976_v10  ;;  %v1871_v28 = vadd.f32 %v1466_v47, %v975_v44  ;;  %1800 = vperm.xlu1 %2563, %v1170_v23   ;;  %v1123_v25 = vld [vmem:[%s4367_s3 + $0x270] sm:$0xff]  ;;  %v4503_v7 = vld [vmem:[#allocation34_spill] sm:$0xff] }
 0x1eb   :  { %1795 = vperm.xlu0 %2562, %v1169_v24   ;;  %2501 = vmatprep.subr.bf16.mxu1 %v2228_v58  ;;  %v980_v24 = vmul.f32 %v4503_v7, %v84_v16  ;;  %v1172_v58 = vld [vmem:[%s4367_s3 + $0x3f8] sm:$0xff]  ;;  %v4509_v16 = vld [vmem:[#allocation36_spill] sm:$0xff]  ;;  %v133_v7 = vld [vmem:[%s4369_s1 + $0x380] sm:$0xff] }
 0x1ec   :  { %v2000_v31 = vmul.f32 0.2, %v1872_v55  ;;  %v1999_v32 = vmul.f32 0.2, %v1871_v28  ;;  %2502 = vmatpush3.bf16.msra.mxu1 %v2220_v48  ;;  %v2229_v38 = vpack.c.bf16 %v2126_v27, %v2125_v49  ;;  %v2221_v46 = vpack.c.bf16 %v2110_v22, %v2109_v17  ;;  %v68_v17 = vld [vmem:[%s4369_s1 + $0x178] sm:$0xff]  ;;  %v4504_v49 = vld [vmem:[#allocation35_spill] sm:$0xff] }
 0x1ed   :  { %v1391_v2 = vpop.permute.xlu1 %1390  ;;  %v1386_v37 = vpop.permute.xlu0 %1385  ;;  %v979_v20 = vmul.f32 %v4504_v49, %v83_v13  ;;  %v1171_v22 = vld [vmem:[%s4367_s3 + $0x3f0] sm:$0xff] }
 0x1ee   :  { %v2128_v30 = vmax.f32 %v1872_v55, %v2000_v31  ;;  %v2127_v42 = vmax.f32 %v1871_v28, %v1999_v32  ;;  %v1856_v51 = vadd.f32 %v1391_v2, %v960_v0  ;;  %v1855_v53 = vadd.f32 %v1386_v37, %v959_v56  ;;  %1720 = vperm.xlu1 %2563, %v1154_v11   ;;  %v67_v55 = vld [vmem:[%s4369_s1 + $0x170] sm:$0xff]  ;;  %v1156_v32 = vld [vmem:[%s4367_s3 + $0x378] sm:$0xff] }
 0x1ef   :  { %1715 = vperm.xlu0 %2562, %v1153_v62   ;;  %2503 = vmatprep.subr.bf16.mxu1 %v2229_v38  ;;  %v964_v31 = vmul.f32 %v4505_v60, %v68_v17  ;;  %v4506_v62 = vld [vmem:[#allocation19_spill] sm:$0xff]  ;;  %v1155_v37 = vld [vmem:[%s4367_s3 + $0x370] sm:$0xff] }
 0x1f0   :  { %v1984_v39 = vmul.f32 0.2, %v1856_v51  ;;  %v1983_v15 = vmul.f32 0.2, %v1855_v53  ;;  %2504 = vmatpush3.bf16.msra.mxu1 %v2221_v46  ;;  %v2230_v43 = vpack.c.bf16 %v2128_v30, %v2127_v42  ;;  %v963_v38 = vmul.f32 %v4506_v62, %v67_v55  ;;  %v102_v46 = vld [vmem:[%s4369_s1 + $0x288] sm:$0xff]  ;;  %v101_v42 = vld [vmem:[%s4369_s1 + $0x280] sm:$0xff] }
 0x1f1   :  { %v1481_v8 = vpop.permute.xlu1 %1480  ;;  %v1476_v41 = vpop.permute.xlu0 %1475 }
 0x1f2   :  { %v2112_v50 = vmax.f32 %v1856_v51, %v1984_v39  ;;  %v2111_v26 = vmax.f32 %v1855_v53, %v1983_v15  ;;  %v1874_v21 = vadd.f32 %v1481_v8, %v978_v59  ;;  %v1873_v1 = vadd.f32 %v1476_v41, %v977_v36  ;;  %1650 = vperm.xlu1 %2563, %v1140_v34   ;;  %v86_v36 = vld [vmem:[%s4369_s1 + $0x208] sm:$0xff]  ;;  %v4507_v39 = vld [vmem:[#allocation52_spill] sm:$0xff] }
 0x1f3   :  { %1645 = vperm.xlu0 %2562, %v1139_v4   ;;  %2505 = vmatprep.subr.bf16.mxu1 %v2230_v43  ;;  %v998_v15 = vmul.f32 %v4507_v39, %v102_v46  ;;  %v2470_v4 = vcombine.high %v4092_v35, %v4092_v35  ;;  %v4508_v43 = vld [vmem:[#allocation53_spill] sm:$0xff]  ;;  %v4513_v46 = vld [vmem:[#allocation68_spill] sm:$0xff] }
 0x1f4   :  { %v2002_v63 = vmul.f32 0.2, %v1874_v21  ;;  %v2001_v52 = vmul.f32 0.2, %v1873_v1  ;;  %v2222_v6 = vpack.c.bf16 %v2112_v50, %v2111_v26  ;;  %v997_v19 = vmul.f32 %v4508_v43, %v101_v42  ;;  %v2265_v50 = vld [vmem:[%s4370_s4] sm:$0x1f] }
 0x1f5   :  { %v1401_v10 = vpop.permute.xlu1 %1400  ;;  %v1396_v23 = vpop.permute.xlu0 %1395  ;;  %2411 = vmatprep.mubr.bf16.mxu0 %v2470_v4  ;;  %v4514_v42 = vld [vmem:[#allocation69_spill] sm:$0xff]  ;;  %v4515_v4 = vld [vmem:[#allocation54_spill] sm:$0xff] }
 0x1f6   :  { %v2130_v45 = vmax.f32 %v1874_v21, %v2002_v63  ;;  %v2129_v61 = vmax.f32 %v1873_v1, %v2001_v52  ;;  %v1858_v44 = vadd.f32 %v1401_v10, %v962_v18  ;;  %v1857_v3 = vadd.f32 %v1396_v23, %v961_v40  ;;  %1570 = vperm.xlu1 %2563, %v1124_v9   ;;  %v85_v21 = vld [vmem:[%s4369_s1 + $0x200] sm:$0xff]  ;;  %v4510_v52 = vld [vmem:[#allocation37_spill] sm:$0xff]  ;;  %v134_v23 = vld [vmem:[%s4369_s1 + $0x388] sm:$0xff] }
 0x1f7   :  { %1565 = vperm.xlu0 %2562, %v1123_v25   ;;  %2506 = vmatpush3.bf16.msra.mxu1 %v2222_v6  ;;  %v982_v63 = vmul.f32 %v4509_v16, %v86_v36  ;;  %v981_v25 = vmul.f32 %v4510_v52, %v85_v21 }
 0x1f8   :  { %v1986_v47 = vmul.f32 0.2, %v1858_v44  ;;  %v1985_v48 = vmul.f32 0.2, %v1857_v3  ;;  %v2231_v27 = vpack.c.bf16 %v2130_v45, %v2129_v61 }
 0x1f9   :  { %v1491_v28 = vpop.permute.xlu1 %1490  ;;  %v1486_v5 = vpop.permute.xlu0 %1485 }
 0x1fa   :  { %v2114_v0 = vmax.f32 %v1858_v44, %v1986_v47  ;;  %v2113_v14 = vmax.f32 %v1857_v3, %v1985_v48  ;;  %v1876_v56 = vadd.f32 %v1491_v28, %v980_v24  ;;  %v1875_v11 = vadd.f32 %v1486_v5, %v979_v20  ;;  %1810 = vperm.xlu1 %2563, %v1172_v58   ;;  %v2572_v44 = vld [vmem:[%s4368_s0 + $0x8] sm:$0x77]  ;;  %v4121_v20 = vld [vmem:[%s4368_s0 + $0x18] sm:$0x77] }
 0x1fb   :  { %1805 = vperm.xlu0 %2562, %v1171_v22   ;;  %2507 = vmatprep.subr.bf16.mxu1 %v2231_v27  ;;  %v2467_v3 = vcombine.low %v2572_v44, %v2572_v44  ;;  %v2472_v47 = vcombine.high %v4121_v20, %v4121_v20  ;;  %v4511_v48 = vld [vmem:[#allocation85_spill] sm:$0xff]  ;;  %v118_v5 = vld [vmem:[%s4369_s1 + $0x308] sm:$0xff]  ;;  %v135_v44 = vld [vmem:[%s4369_s1 + $0x390] sm:$0xff] }
 0x1fc   :  { %v2004_v57 = vmul.f32 0.2, %v1876_v56  ;;  %v2003_v2 = vmul.f32 0.2, %v1875_v11  ;;  %v2223_v30 = vpack.c.bf16 %v2114_v0, %v2113_v14  ;;  %v1030_v22 = vmul.f32 %v4511_v48, %v134_v23  ;;  %v4512_v0 = vld [vmem:[#allocation86_spill] sm:$0xff] }
 0x1fd   :  { %v1411_v51 = vpop.permute.xlu1 %1410  ;;  %v1406_v53 = vpop.permute.xlu0 %1405  ;;  %v1029_v14 = vmul.f32 %v4512_v0, %v133_v7 }
 0x1fe   :  { %v2132_v12 = vmax.f32 %v1876_v56, %v2004_v57  ;;  %v2131_v59 = vmax.f32 %v1875_v11, %v2003_v2  ;;  %v1860_v34 = vadd.f32 %v1411_v51, %v964_v31  ;;  %v1859_v29 = vadd.f32 %v1406_v53, %v963_v38  ;;  %1730 = vperm.xlu1 %2563, %v1156_v32   ;;  %v117_v11 = vld [vmem:[%s4369_s1 + $0x300] sm:$0xff] }
 0x1ff   :  { %1725 = vperm.xlu0 %2562, %v1155_v37   ;;  %2508 = vmatpush3.bf16.msra.mxu1 %v2223_v30  ;;  %v1014_v57 = vmul.f32 %v4513_v46, %v118_v5  ;;  %v104_v30 = vld [vmem:[%s4369_s1 + $0x298] sm:$0xff]  ;;  %v1013_v51 = vmul.f32 %v4514_v42, %v117_v11 }
 0x200   :  { %v1988_v8 = vmul.f32 0.2, %v1860_v34  ;;  %v1987_v41 = vmul.f32 0.2, %v1859_v29  ;;  %v2232_v26 = vpack.c.bf16 %v2132_v12, %v2131_v59  ;;  %v103_v59 = vld [vmem:[%s4369_s1 + $0x290] sm:$0xff]  ;;  %v1000_v43 = vmul.f32 %v4515_v4, %v104_v30 }
 0x201   :  { %v1581_v1 = vpop.permute.xlu1 %1580  ;;  %v1576_v33 = vpop.permute.xlu0 %1575 }
 0x202   :  { %v2116_v18 = vmax.f32 %v1860_v34, %v1988_v8  ;;  %v2115_v9 = vmax.f32 %v1859_v29, %v1987_v41  ;;  %v1894_v54 = vadd.f32 %v1581_v1, %v998_v15  ;;  %v1893_v40 = vadd.f32 %v1576_v33, %v997_v19  ;;  %2509 = vmatprep.subr.bf16.mxu1 %v2232_v26  ;;  %v88_v8 = vld [vmem:[%s4369_s1 + $0x218] sm:$0xff]  ;;  %v4516_v41 = vld [vmem:[#allocation55_spill] sm:$0xff]  ;;  %v87_v33 = vld [vmem:[%s4369_s1 + $0x210] sm:$0xff] }
 0x203   :  { %2268 = vperm.xlu0 %2562, %v2265_v50   ;;  %v999_v50 = vmul.f32 %v4516_v41, %v103_v59 }
 0x204   :  { %v2022_v6 = vmul.f32 0.2, %v1894_v54  ;;  %v2021_v13 = vmul.f32 0.2, %v1893_v40  ;;  %v2224_v10 = vpack.c.bf16 %v2116_v18, %v2115_v9 }
 0x205   :  { %v1501_v45 = vpop.permute.xlu1 %1500  ;;  %v1496_v61 = vpop.permute.xlu0 %1495 }
 0x206   :  { %v2150_v24 = vmax.f32 %v1894_v54, %v2022_v6  ;;  %v2149_v58 = vmax.f32 %v1893_v40, %v2021_v13  ;;  %v1878_v17 = vadd.f32 %v1501_v45, %v982_v63  ;;  %v1877_v49 = vadd.f32 %v1496_v61, %v981_v25  ;;  %2510 = vmatpush3.bf16.msra.mxu1 %v2224_v10  ;;  %v4517_v63 = vld [vmem:[#allocation38_spill] sm:$0xff]  ;;  %v4518_v6 = vld [vmem:[#allocation39_spill] sm:$0xff]  ;;  %v136_v10 = vld [vmem:[%s4369_s1 + $0x398] sm:$0xff] }
 0x207   :  { %v984_v52 = vmul.f32 %v4517_v63, %v88_v8  ;;  %v983_v13 = vmul.f32 %v4518_v6, %v87_v33  ;;  %v138_v6 = vld [vmem:[%s4369_s1 + $0x3a8] sm:$0xff] }
 0x208   :  { %v2006_v27 = vmul.f32 0.2, %v1878_v17  ;;  %v2005_v55 = vmul.f32 0.2, %v1877_v49  ;;  %v2241_v28 = vpack.c.bf16 %v2150_v24, %v2149_v58 }
 0x209   :  { %v1741_v56 = vpop.permute.xlu1 %1740  ;;  %2372 = vmatmul.mubr.bf16.vlgmr.msra.gmra.mrb[0].mxu1 %v2467_v3  ;;  %v1736_v62 = vpop.permute.xlu0 %1735 }
 0x20a   :  { %v2134_v60 = vmax.f32 %v1878_v17, %v2006_v27  ;;  %v2133_v31 = vmax.f32 %v1877_v49, %v2005_v55  ;;  %v1926_v32 = vadd.f32 %v1741_v56, %v1030_v22  ;;  %2517 = vmatprep.subr.bf16.mxu0 %v2241_v28  ;;  %2451 = vmatprep.mubr.bf16.mxu1 %v2472_v47  ;;  %v4519_v49 = vld [vmem:[#allocation87_spill] sm:$0xff]  ;;  %v120_v22 = vld [vmem:[%s4369_s1 + $0x318] sm:$0xff]  ;;  %v4520_v27 = vld [vmem:[#allocation88_spill] sm:$0xff] }
 0x20b   :  { %v1925_v38 = vadd.f32 %v1736_v62, %v1029_v14  ;;  %v1032_v47 = vmul.f32 %v4519_v49, %v136_v10  ;;  %v1031_v55 = vmul.f32 %v4520_v27, %v135_v44  ;;  %v119_v14 = vld [vmem:[%s4369_s1 + $0x310] sm:$0xff]  ;;  %v4521_v62 = vld [vmem:[#allocation70_spill] sm:$0xff] }
 0x20c   :  { %v2233_v2 = vpack.c.bf16 %v2134_v60, %v2133_v31  ;;  %v2054_v37 = vmul.f32 0.2, %v1926_v32 }
 0x20d   :  { %v2053_v53 = vmul.f32 0.2, %v1925_v38  ;;  %v1661_v12 = vpop.permute.xlu1 %1660  ;;  %v1656_v36 = vpop.permute.xlu0 %1655 }
 0x20e   :  { %v2182_v34 = vmax.f32 %v1926_v32, %v2054_v37  ;;  %v1910_v29 = vadd.f32 %v1661_v12, %v1014_v57  ;;  %2518 = vmatpush3.bf16.msra.mxu0 %v2233_v2  ;;  %v1909_v15 = vadd.f32 %v1656_v36, %v1013_v51  ;;  %v106_v57 = vld [vmem:[%s4369_s1 + $0x2a8] sm:$0xff] }
 0x20f   :  { %v2181_v39 = vmax.f32 %v1925_v38, %v2053_v53  ;;  %v1016_v38 = vmul.f32 %v4521_v62, %v120_v22  ;;  %v4522_v2 = vld [vmem:[#allocation71_spill] sm:$0xff]  ;;  %v105_v53 = vld [vmem:[%s4369_s1 + $0x2a0] sm:$0xff] }
 0x210   :  { %v2038_v19 = vmul.f32 0.2, %v1910_v29  ;;  %v2037_v26 = vmul.f32 0.2, %v1909_v15  ;;  %v1015_v37 = vmul.f32 %v4522_v2, %v119_v14 }
 0x211   :  { %v1591_v21 = vpop.permute.xlu1 %1590  ;;  %v2257_v1 = vpack.c.bf16 %v2182_v34, %v2181_v39  ;;  %v1586_v54 = vpop.permute.xlu0 %1585  ;;  %v4523_v39 = vld [vmem:[#allocation56_spill] sm:$0xff] }
 0x212   :  { %v2166_v18 = vmax.f32 %v1910_v29, %v2038_v19  ;;  %v1896_v9 = vadd.f32 %v1591_v21, %v1000_v43  ;;  %v2165_v40 = vmax.f32 %v1909_v15, %v2037_v26  ;;  %v1895_v16 = vadd.f32 %v1586_v54, %v999_v50  ;;  %v90_v43 = vld [vmem:[%s4369_s1 + $0x228] sm:$0xff]  ;;  %v4524_v19 = vld [vmem:[#allocation57_spill] sm:$0xff]  ;;  %v89_v21 = vld [vmem:[%s4369_s1 + $0x220] sm:$0xff] }
 0x213   :  { %2539 = vmatprep.subr.bf16.mxu1 %v2257_v1  ;;  %v1002_v15 = vmul.f32 %v4523_v39, %v106_v57  ;;  %v1001_v8 = vmul.f32 %v4524_v19, %v105_v53 }
 0x214   :  { %v2024_v25 = vmul.f32 0.2, %v1896_v9  ;;  %v2249_v23 = vpack.c.bf16 %v2166_v18, %v2165_v40  ;;  %v2023_v45 = vmul.f32 0.2, %v1895_v16  ;;  %v4525_v40 = vld [vmem:[#allocation40_spill] sm:$0xff] }
 0x215   :  { %v1511_v61 = vpop.permute.xlu1 %1510  ;;  %v1506_v24 = vpop.permute.xlu0 %1505 }
 0x216   :  { %v2152_v3 = vmax.f32 %v1896_v9, %v2024_v25  ;;  %v1880_v7 = vadd.f32 %v1511_v61, %v984_v52  ;;  %v2151_v58 = vmax.f32 %v1895_v16, %v2023_v45  ;;  %v1879_v17 = vadd.f32 %v1506_v24, %v983_v13  ;;  %2540 = vmatpush3.bf16.msra.mxu1 %v2249_v23  ;;  %v4526_v52 = vld [vmem:[#allocation41_spill] sm:$0xff]  ;;  %v137_v45 = vld [vmem:[%s4369_s1 + $0x3a0] sm:$0xff] }
 0x217   :  { %v986_v16 = vmul.f32 %v4525_v40, %v90_v43  ;;  %v985_v25 = vmul.f32 %v4526_v52, %v89_v21  ;;  %v140_v52 = vld [vmem:[%s4369_s1 + $0x3b8] sm:$0xff] }
 0x218   :  { %v2008_v48 = vmul.f32 0.2, %v1880_v7  ;;  %v2007_v28 = vmul.f32 0.2, %v1879_v17  ;;  %v2242_v0 = vpack.c.bf16 %v2152_v3, %v2151_v58  ;;  %v4527_v58 = vld [vmem:[#allocation89_spill] sm:$0xff] }
 0x219   :  { %v1751_v5 = vpop.permute.xlu1 %1750  ;;  %v1746_v60 = vpop.permute.xlu0 %1745 }
 0x21a   :  { %v2136_v56 = vmax.f32 %v1880_v7, %v2008_v48  ;;  %v1928_v11 = vadd.f32 %v1751_v5, %v1032_v47  ;;  %v2135_v31 = vmax.f32 %v1879_v17, %v2007_v28  ;;  %v1927_v32 = vadd.f32 %v1746_v60, %v1031_v55  ;;  %2519 = vmatprep.subr.bf16.mxu0 %v2242_v0  ;;  %v122_v47 = vld [vmem:[%s4369_s1 + $0x328] sm:$0xff]  ;;  %v4528_v48 = vld [vmem:[#allocation90_spill] sm:$0xff] }
 0x21b   :  { %v1034_v17 = vmul.f32 %v4527_v58, %v138_v6  ;;  %v1033_v22 = vmul.f32 %v4528_v48, %v137_v45  ;;  %v121_v5 = vld [vmem:[%s4369_s1 + $0x320] sm:$0xff] }
 0x21c   :  { %v2056_v46 = vmul.f32 0.2, %v1928_v11  ;;  %v2234_v30 = vpack.c.bf16 %v2136_v56, %v2135_v31  ;;  %v2055_v42 = vmul.f32 0.2, %v1927_v32  ;;  %v4529_v31 = vld [vmem:[#allocation73_spill] sm:$0xff] }
 0x21d   :  { %v1671_v51 = vpop.permute.xlu1 %1670  ;;  %v1666_v34 = vpop.permute.xlu0 %1665 }
 0x21e   :  { %v2184_v12 = vmax.f32 %v1928_v11, %v2056_v46  ;;  %v1912_v59 = vadd.f32 %v1671_v51, %v1016_v38  ;;  %v2183_v29 = vmax.f32 %v1927_v32, %v2055_v42  ;;  %v1911_v36 = vadd.f32 %v1666_v34, %v1015_v37  ;;  %2520 = vmatpush3.bf16.msra.mxu0 %v2234_v30  ;;  %v108_v38 = vld [vmem:[%s4369_s1 + $0x2b8] sm:$0xff]  ;;  %v4530_v46 = vld [vmem:[#allocation74_spill] sm:$0xff]  ;;  %v107_v42 = vld [vmem:[%s4369_s1 + $0x2b0] sm:$0xff] }
 0x21f   :  { %v1018_v32 = vmul.f32 %v4529_v31, %v122_v47  ;;  %v1017_v57 = vmul.f32 %v4530_v46, %v121_v5 }
 0x220   :  { %v2040_v4 = vmul.f32 0.2, %v1912_v59  ;;  %v2039_v41 = vmul.f32 0.2, %v1911_v36  ;;  %v2258_v26 = vpack.c.bf16 %v2184_v12, %v2183_v29  ;;  %v4531_v29 = vld [vmem:[#allocation58_spill] sm:$0xff] }
 0x221   :  { %v1601_v50 = vpop.permute.xlu1 %1600  ;;  %v1596_v18 = vpop.permute.xlu0 %1595 }
 0x222   :  { %v2168_v1 = vmax.f32 %v1912_v59, %v2040_v4  ;;  %v1898_v33 = vadd.f32 %v1601_v50, %v1002_v15  ;;  %v2167_v9 = vmax.f32 %v1911_v36, %v2039_v41  ;;  %v1897_v54 = vadd.f32 %v1596_v18, %v1001_v8  ;;  %2541 = vmatprep.subr.bf16.mxu1 %v2258_v26  ;;  %v92_v15 = vld [vmem:[%s4369_s1 + $0x238] sm:$0xff]  ;;  %v4532_v4 = vld [vmem:[#allocation59_spill] sm:$0xff]  ;;  %v91_v50 = vld [vmem:[%s4369_s1 + $0x230] sm:$0xff] }
 0x223   :  { %v1004_v36 = vmul.f32 %v4531_v29, %v108_v38  ;;  %v1003_v43 = vmul.f32 %v4532_v4, %v107_v42 }
 0x224   :  { %v2026_v63 = vmul.f32 0.2, %v1898_v33  ;;  %v2250_v13 = vpack.c.bf16 %v2168_v1, %v2167_v9  ;;  %v2025_v10 = vmul.f32 0.2, %v1897_v54  ;;  %v4533_v9 = vld [vmem:[#allocation42_spill] sm:$0xff] }
 0x225   :  { %v1521_v23 = vpop.permute.xlu1 %1520 }
 0x226   :  { %v2154_v61 = vmax.f32 %v1898_v33, %v2026_v63  ;;  %v1882_v44 = vadd.f32 %v1521_v23, %v986_v16  ;;  %v1516_v3 = vpop.permute.xlu0 %1515  ;;  %v2153_v7 = vmax.f32 %v1897_v54, %v2025_v10  ;;  %2542 = vmatpush3.bf16.msra.mxu1 %v2250_v13  ;;  %v988_v54 = vmul.f32 %v4533_v9, %v92_v15  ;;  %v4534_v16 = vld [vmem:[#allocation43_spill] sm:$0xff]  ;;  %v139_v10 = vld [vmem:[%s4369_s1 + $0x3b0] sm:$0xff] }
 0x227   :  { %v1881_v24 = vadd.f32 %v1516_v3, %v985_v25  ;;  %v987_v63 = vmul.f32 %v4534_v16, %v91_v50  ;;  %v142_v16 = vld [vmem:[%s4369_s1 + $0x3c8] sm:$0xff] }
 0x228   :  { %v2010_v49 = vmul.f32 0.2, %v1882_v44  ;;  %v2243_v28 = vpack.c.bf16 %v2154_v61, %v2153_v7  ;;  %v4535_v7 = vld [vmem:[#allocation91_spill] sm:$0xff] }
 0x229   :  { %v2009_v27 = vmul.f32 0.2, %v1881_v24  ;;  %v1761_v55 = vpop.permute.xlu1 %1760 }
 0x22a   :  { %v2138_v0 = vmax.f32 %v1882_v44, %v2010_v49  ;;  %v1930_v14 = vadd.f32 %v1761_v55, %v1034_v17  ;;  %v1756_v56 = vpop.permute.xlu0 %1755  ;;  %2521 = vmatprep.subr.bf16.mxu0 %v2243_v28  ;;  %v124_v17 = vld [vmem:[%s4369_s1 + $0x338] sm:$0xff]  ;;  %v4536_v49 = vld [vmem:[#allocation92_spill] sm:$0xff] }
 0x22b   :  { %v2137_v11 = vmax.f32 %v1881_v24, %v2009_v27  ;;  %v1929_v60 = vadd.f32 %v1756_v56, %v1033_v22  ;;  %v1036_v24 = vmul.f32 %v4535_v7, %v140_v52  ;;  %v1035_v47 = vmul.f32 %v4536_v49, %v139_v10  ;;  %v123_v55 = vld [vmem:[%s4369_s1 + $0x330] sm:$0xff] }
 0x22c   :  { %v2058_v62 = vmul.f32 0.2, %v1930_v14 }
 0x22d   :  { %v2235_v2 = vpack.c.bf16 %v2138_v0, %v2137_v11  ;;  %v2057_v37 = vmul.f32 0.2, %v1929_v60  ;;  %v1681_v30 = vpop.permute.xlu1 %1680  ;;  %v4537_v11 = vld [vmem:[#allocation75_spill] sm:$0xff] }
 0x22e   :  { %v2186_v51 = vmax.f32 %v1930_v14, %v2058_v62  ;;  %v1914_v53 = vadd.f32 %v1681_v30, %v1018_v32  ;;  %v1676_v12 = vpop.permute.xlu0 %1675  ;;  %v110_v32 = vld [vmem:[%s4369_s1 + $0x2c8] sm:$0xff]  ;;  %v4538_v62 = vld [vmem:[#allocation76_spill] sm:$0xff] }
 0x22f   :  { %v2185_v59 = vmax.f32 %v1929_v60, %v2057_v37  ;;  %v1913_v34 = vadd.f32 %v1676_v12, %v1017_v57  ;;  %2522 = vmatpush3.bf16.msra.mxu0 %v2235_v2  ;;  %v1020_v60 = vmul.f32 %v4537_v11, %v124_v17  ;;  %v1019_v38 = vmul.f32 %v4538_v62, %v123_v55  ;;  %v109_v37 = vld [vmem:[%s4369_s1 + $0x2c0] sm:$0xff] }
 0x230   :  { %v2042_v39 = vmul.f32 0.2, %v1914_v53 }
 0x231   :  { %v2041_v19 = vmul.f32 0.2, %v1913_v34  ;;  %v1611_v8 = vpop.permute.xlu1 %1610  ;;  %v2259_v41 = vpack.c.bf16 %v2186_v51, %v2185_v59  ;;  %v4539_v59 = vld [vmem:[#allocation60_spill] sm:$0xff] }
 0x232   :  { %v2170_v26 = vmax.f32 %v1914_v53, %v2042_v39  ;;  %v1900_v21 = vadd.f32 %v1611_v8, %v1004_v36  ;;  %v1606_v1 = vpop.permute.xlu0 %1605  ;;  %v94_v36 = vld [vmem:[%s4369_s1 + $0x248] sm:$0xff]  ;;  %v4540_v39 = vld [vmem:[#allocation61_spill] sm:$0xff]  ;;  %v93_v8 = vld [vmem:[%s4369_s1 + $0x240] sm:$0xff] }
 0x233   :  { %v2169_v33 = vmax.f32 %v1913_v34, %v2041_v19  ;;  %v1899_v18 = vadd.f32 %v1606_v1, %v1003_v43  ;;  %2543 = vmatprep.subr.bf16.mxu1 %v2259_v41  ;;  %v1006_v34 = vmul.f32 %v4539_v59, %v110_v32  ;;  %v1005_v15 = vmul.f32 %v4540_v39, %v109_v37 }
 0x234   :  { %v2028_v40 = vmul.f32 0.2, %v1900_v21 }
 0x235   :  { %v2251_v25 = vpack.c.bf16 %v2170_v26, %v2169_v33  ;;  %v2027_v6 = vmul.f32 0.2, %v1899_v18  ;;  %v1531_v13 = vpop.permute.xlu1 %1530  ;;  %v4541_v33 = vld [vmem:[#allocation44_spill] sm:$0xff] }
 0x236   :  { %v2156_v23 = vmax.f32 %v1900_v21, %v2028_v40  ;;  %v1884_v45 = vadd.f32 %v1531_v13, %v988_v54  ;;  %v1526_v61 = vpop.permute.xlu0 %1525  ;;  %v4542_v54 = vld [vmem:[#allocation45_spill] sm:$0xff] }
 0x237   :  { %v2155_v44 = vmax.f32 %v1899_v18, %v2027_v6  ;;  %v1883_v3 = vadd.f32 %v1526_v61, %v987_v63  ;;  %2544 = vmatpush3.bf16.msra.mxu1 %v2251_v25  ;;  %v990_v18 = vmul.f32 %v4541_v33, %v94_v36  ;;  %v989_v40 = vmul.f32 %v4542_v54, %v93_v8  ;;  %v141_v6 = vld [vmem:[%s4369_s1 + $0x3c0] sm:$0xff]  ;;  %v144_v54 = vld [vmem:[%s4369_s1 + $0x3d8] sm:$0xff] }
 0x238   :  { %v2012_v58 = vmul.f32 0.2, %v1884_v45 }
 0x239   :  { %v2011_v48 = vmul.f32 0.2, %v1883_v3  ;;  %v1771_v22 = vpop.permute.xlu1 %1770  ;;  %v2244_v27 = vpack.c.bf16 %v2156_v23, %v2155_v44  ;;  %v4543_v44 = vld [vmem:[#allocation93_spill] sm:$0xff] }
 0x23a   :  { %v2140_v28 = vmax.f32 %v1884_v45, %v2012_v58  ;;  %v1932_v5 = vadd.f32 %v1771_v22, %v1036_v24  ;;  %v1766_v0 = vpop.permute.xlu0 %1765  ;;  %v126_v24 = vld [vmem:[%s4369_s1 + $0x348] sm:$0xff]  ;;  %v4544_v58 = vld [vmem:[#allocation94_spill] sm:$0xff] }
 0x23b   :  { %v2139_v14 = vmax.f32 %v1883_v3, %v2011_v48  ;;  %v1931_v56 = vadd.f32 %v1766_v0, %v1035_v47  ;;  %2523 = vmatprep.subr.bf16.mxu0 %v2244_v27  ;;  %v1038_v3 = vmul.f32 %v4543_v44, %v142_v16  ;;  %v1037_v17 = vmul.f32 %v4544_v58, %v141_v6  ;;  %v125_v22 = vld [vmem:[%s4369_s1 + $0x340] sm:$0xff] }
 0x23c   :  { %v2060_v31 = vmul.f32 0.2, %v1932_v5 }
 0x23d   :  { %v2236_v46 = vpack.c.bf16 %v2140_v28, %v2139_v14  ;;  %v2059_v57 = vmul.f32 0.2, %v1931_v56  ;;  %v1691_v2 = vpop.permute.xlu1 %1690  ;;  %v4545_v14 = vld [vmem:[#allocation77_spill] sm:$0xff] }
 0x23e   :  { %v2188_v30 = vmax.f32 %v1932_v5, %v2060_v31  ;;  %v1916_v42 = vadd.f32 %v1691_v2, %v1020_v60  ;;  %v1686_v51 = vpop.permute.xlu0 %1685  ;;  %v112_v60 = vld [vmem:[%s4369_s1 + $0x2d8] sm:$0xff]  ;;  %v4546_v31 = vld [vmem:[#allocation78_spill] sm:$0xff] }
 0x23f   :  { %v2187_v53 = vmax.f32 %v1931_v56, %v2059_v57  ;;  %v1915_v12 = vadd.f32 %v1686_v51, %v1019_v38  ;;  %2524 = vmatpush3.bf16.msra.mxu0 %v2236_v46  ;;  %v1022_v56 = vmul.f32 %v4545_v14, %v126_v24  ;;  %v1021_v32 = vmul.f32 %v4546_v31, %v125_v22  ;;  %v111_v57 = vld [vmem:[%s4369_s1 + $0x2d0] sm:$0xff] }
 0x240   :  { %v2044_v29 = vmul.f32 0.2, %v1916_v42 }
 0x241   :  { %v2043_v4 = vmul.f32 0.2, %v1915_v12  ;;  %v1621_v43 = vpop.permute.xlu1 %1620  ;;  %v2260_v19 = vpack.c.bf16 %v2188_v30, %v2187_v53  ;;  %v4547_v53 = vld [vmem:[#allocation62_spill] sm:$0xff] }
 0x242   :  { %v2172_v41 = vmax.f32 %v1916_v42, %v2044_v29  ;;  %v1902_v50 = vadd.f32 %v1621_v43, %v1006_v34  ;;  %v1616_v26 = vpop.permute.xlu0 %1615  ;;  %v96_v34 = vld [vmem:[%s4369_s1 + $0x258] sm:$0xff]  ;;  %v4548_v29 = vld [vmem:[#allocation63_spill] sm:$0xff]  ;;  %v95_v43 = vld [vmem:[%s4369_s1 + $0x250] sm:$0xff] }
 0x243   :  { %v2171_v21 = vmax.f32 %v1915_v12, %v2043_v4  ;;  %v1901_v1 = vadd.f32 %v1616_v26, %v1005_v15  ;;  %2545 = vmatprep.subr.bf16.mxu1 %v2260_v19  ;;  %v1008_v12 = vmul.f32 %v4547_v53, %v112_v60  ;;  %v1007_v36 = vmul.f32 %v4548_v29, %v111_v57 }
 0x244   :  { %v2030_v9 = vmul.f32 0.2, %v1902_v50 }
 0x245   :  { %v2252_v63 = vpack.c.bf16 %v2172_v41, %v2171_v21  ;;  %v2029_v52 = vmul.f32 0.2, %v1901_v1  ;;  %v1541_v25 = vpop.permute.xlu1 %1540  ;;  %v4549_v21 = vld [vmem:[#allocation46_spill] sm:$0xff] }
 0x246   :  { %v2158_v13 = vmax.f32 %v1902_v50, %v2030_v9  ;;  %v1886_v10 = vadd.f32 %v1541_v25, %v990_v18  ;;  %v1536_v23 = vpop.permute.xlu0 %1535  ;;  %v4550_v18 = vld [vmem:[#allocation47_spill] sm:$0xff] }
 0x247   :  { %v2157_v45 = vmax.f32 %v1901_v1, %v2029_v52  ;;  %v1885_v61 = vadd.f32 %v1536_v23, %v989_v40  ;;  %2546 = vmatpush3.bf16.msra.mxu1 %v2252_v63  ;;  %v992_v1 = vmul.f32 %v4549_v21, %v96_v34  ;;  %v991_v9 = vmul.f32 %v4550_v18, %v95_v43  ;;  %v143_v52 = vld [vmem:[%s4369_s1 + $0x3d0] sm:$0xff]  ;;  %v146_v18 = vld [vmem:[%s4369_s1 + $0x3e8] sm:$0xff] }
 0x248   :  { %v2014_v7 = vmul.f32 0.2, %v1886_v10 }
 0x249   :  { %v2013_v49 = vmul.f32 0.2, %v1885_v61  ;;  %v1781_v47 = vpop.permute.xlu1 %1780  ;;  %v2245_v48 = vpack.c.bf16 %v2158_v13, %v2157_v45  ;;  %v4551_v45 = vld [vmem:[#allocation95_spill] sm:$0xff] }
 0x24a   :  { %v2142_v27 = vmax.f32 %v1886_v10, %v2014_v7  ;;  %v1934_v55 = vadd.f32 %v1781_v47, %v1038_v3  ;;  %v1776_v28 = vpop.permute.xlu0 %1775  ;;  %v128_v3 = vld [vmem:[%s4369_s1 + $0x358] sm:$0xff]  ;;  %v4552_v7 = vld [vmem:[#allocation96_spill] sm:$0xff] }
 0x24b   :  { %v2141_v5 = vmax.f32 %v1885_v61, %v2013_v49  ;;  %v1933_v0 = vadd.f32 %v1776_v28, %v1037_v17  ;;  %2525 = vmatprep.subr.bf16.mxu0 %v2245_v48  ;;  %v1040_v61 = vmul.f32 %v4551_v45, %v144_v54  ;;  %v1039_v24 = vmul.f32 %v4552_v7, %v143_v52  ;;  %v127_v47 = vld [vmem:[%s4369_s1 + $0x350] sm:$0xff] }
 0x24c   :  { %v2062_v11 = vmul.f32 0.2, %v1934_v55 }
 0x24d   :  { %v2237_v62 = vpack.c.bf16 %v2142_v27, %v2141_v5  ;;  %v2061_v38 = vmul.f32 0.2, %v1933_v0  ;;  %v1701_v46 = vpop.permute.xlu1 %1700  ;;  %v4553_v5 = vld [vmem:[#allocation79_spill] sm:$0xff] }
 0x24e   :  { %v2190_v2 = vmax.f32 %v1934_v55, %v2062_v11  ;;  %v1918_v37 = vadd.f32 %v1701_v46, %v1022_v56  ;;  %v1696_v30 = vpop.permute.xlu0 %1695  ;;  %v114_v56 = vld [vmem:[%s4369_s1 + $0x2e8] sm:$0xff]  ;;  %v4554_v11 = vld [vmem:[#allocation80_spill] sm:$0xff] }
 0x24f   :  { %v2189_v42 = vmax.f32 %v1933_v0, %v2061_v38  ;;  %v1917_v51 = vadd.f32 %v1696_v30, %v1021_v32  ;;  %2526 = vmatpush3.bf16.msra.mxu0 %v2237_v62  ;;  %v1024_v0 = vmul.f32 %v4553_v5, %v128_v3  ;;  %v1023_v60 = vmul.f32 %v4554_v11, %v127_v47  ;;  %v113_v38 = vld [vmem:[%s4369_s1 + $0x2e0] sm:$0xff] }
 0x250   :  { %v2046_v59 = vmul.f32 0.2, %v1918_v37 }
 0x251   :  { %v2045_v39 = vmul.f32 0.2, %v1917_v51  ;;  %v1631_v15 = vpop.permute.xlu1 %1630  ;;  %v2261_v4 = vpack.c.bf16 %v2190_v2, %v2189_v42  ;;  %v4555_v42 = vld [vmem:[#allocation64_spill] sm:$0xff] }
 0x252   :  { %v2174_v19 = vmax.f32 %v1918_v37, %v2046_v59  ;;  %v1904_v8 = vadd.f32 %v1631_v15, %v1008_v12  ;;  %v1626_v41 = vpop.permute.xlu0 %1625  ;;  %v98_v12 = vld [vmem:[%s4369_s1 + $0x268] sm:$0xff]  ;;  %v4556_v59 = vld [vmem:[#allocation65_spill] sm:$0xff]  ;;  %v97_v15 = vld [vmem:[%s4369_s1 + $0x260] sm:$0xff] }
 0x253   :  { %v2173_v50 = vmax.f32 %v1917_v51, %v2045_v39  ;;  %v1903_v26 = vadd.f32 %v1626_v41, %v1007_v36  ;;  %2547 = vmatprep.subr.bf16.mxu1 %v2261_v4  ;;  %v1010_v51 = vmul.f32 %v4555_v42, %v114_v56  ;;  %v1009_v34 = vmul.f32 %v4556_v59, %v113_v38 }
 0x254   :  { %v2032_v33 = vmul.f32 0.2, %v1904_v8 }
 0x255   :  { %v2253_v40 = vpack.c.bf16 %v2174_v19, %v2173_v50  ;;  %v2031_v16 = vmul.f32 0.2, %v1903_v26  ;;  %v1551_v63 = vpop.permute.xlu1 %1550  ;;  %v4557_v50 = vld [vmem:[#allocation48_spill] sm:$0xff] }
 0x256   :  { %v2160_v25 = vmax.f32 %v1904_v8, %v2032_v33  ;;  %v1888_v6 = vadd.f32 %v1551_v63, %v992_v1  ;;  %v1546_v13 = vpop.permute.xlu0 %1545  ;;  %v4558_v1 = vld [vmem:[#allocation49_spill] sm:$0xff] }
 0x257   :  { %v2159_v10 = vmax.f32 %v1903_v26, %v2031_v16  ;;  %v1887_v23 = vadd.f32 %v1546_v13, %v991_v9  ;;  %2548 = vmatpush3.bf16.msra.mxu1 %v2253_v40  ;;  %v994_v26 = vmul.f32 %v4557_v50, %v98_v12  ;;  %v993_v33 = vmul.f32 %v4558_v1, %v97_v15  ;;  %v145_v16 = vld [vmem:[%s4369_s1 + $0x3e0] sm:$0xff]  ;;  %v148_v1 = vld [vmem:[%s4369_s1 + $0x3f8] sm:$0xff] }
 0x258   :  { %v2016_v44 = vmul.f32 0.2, %v1888_v6 }
 0x259   :  { %v2015_v58 = vmul.f32 0.2, %v1887_v23  ;;  %v1791_v17 = vpop.permute.xlu1 %1790  ;;  %v2246_v49 = vpack.c.bf16 %v2160_v25, %v2159_v10  ;;  %v4559_v10 = vld [vmem:[#allocation97_spill] sm:$0xff] }
 0x25a   :  { %v2144_v48 = vmax.f32 %v1888_v6, %v2016_v44  ;;  %v1936_v22 = vadd.f32 %v1791_v17, %v1040_v61  ;;  %v1786_v27 = vpop.permute.xlu0 %1785  ;;  %v130_v61 = vld [vmem:[%s4369_s1 + $0x368] sm:$0xff]  ;;  %v4560_v44 = vld [vmem:[#allocation98_spill] sm:$0xff] }
 0x25b   :  { %v2143_v55 = vmax.f32 %v1887_v23, %v2015_v58  ;;  %v1935_v28 = vadd.f32 %v1786_v27, %v1039_v24  ;;  %2527 = vmatprep.subr.bf16.mxu0 %v2246_v49  ;;  %v1042_v23 = vmul.f32 %v4559_v10, %v146_v18  ;;  %v1041_v3 = vmul.f32 %v4560_v44, %v145_v16  ;;  %v129_v17 = vld [vmem:[%s4369_s1 + $0x360] sm:$0xff] }
 0x25c   :  { %v2064_v14 = vmul.f32 0.2, %v1936_v22 }
 0x25d   :  { %v2238_v31 = vpack.c.bf16 %v2144_v48, %v2143_v55  ;;  %v2063_v32 = vmul.f32 0.2, %v1935_v28  ;;  %v1711_v62 = vpop.permute.xlu1 %1710  ;;  %v4561_v55 = vld [vmem:[#allocation81_spill] sm:$0xff] }
 0x25e   :  { %v2192_v46 = vmax.f32 %v1936_v22, %v2064_v14  ;;  %v1920_v57 = vadd.f32 %v1711_v62, %v1024_v0  ;;  %v1706_v2 = vpop.permute.xlu0 %1705  ;;  %v116_v0 = vld [vmem:[%s4369_s1 + $0x2f8] sm:$0xff]  ;;  %v4562_v14 = vld [vmem:[#allocation82_spill] sm:$0xff] }
 0x25f   :  { %v2191_v37 = vmax.f32 %v1935_v28, %v2063_v32  ;;  %v1919_v30 = vadd.f32 %v1706_v2, %v1023_v60  ;;  %2528 = vmatpush3.bf16.msra.mxu0 %v2238_v31  ;;  %v1026_v28 = vmul.f32 %v4561_v55, %v130_v61  ;;  %v1025_v56 = vmul.f32 %v4562_v14, %v129_v17  ;;  %v115_v32 = vld [vmem:[%s4369_s1 + $0x2f0] sm:$0xff] }
 0x260   :  { %v2048_v53 = vmul.f32 0.2, %v1920_v57 }
 0x261   :  { %v2047_v29 = vmul.f32 0.2, %v1919_v30  ;;  %v1641_v36 = vpop.permute.xlu1 %1640  ;;  %v2262_v39 = vpack.c.bf16 %v2192_v46, %v2191_v37  ;;  %v4563_v37 = vld [vmem:[#allocation66_spill] sm:$0xff] }
 0x262   :  { %v2176_v4 = vmax.f32 %v1920_v57, %v2048_v53  ;;  %v1906_v43 = vadd.f32 %v1641_v36, %v1010_v51  ;;  %v1636_v19 = vpop.permute.xlu0 %1635  ;;  %v100_v51 = vld [vmem:[%s4369_s1 + $0x278] sm:$0xff]  ;;  %v4564_v53 = vld [vmem:[#allocation67_spill] sm:$0xff]  ;;  %v99_v36 = vld [vmem:[%s4369_s1 + $0x270] sm:$0xff] }
 0x263   :  { %v2175_v8 = vmax.f32 %v1919_v30, %v2047_v29  ;;  %v1905_v41 = vadd.f32 %v1636_v19, %v1009_v34  ;;  %2549 = vmatprep.subr.bf16.mxu1 %v2262_v39  ;;  %v1012_v30 = vmul.f32 %v4563_v37, %v116_v0  ;;  %v1011_v12 = vmul.f32 %v4564_v53, %v115_v32 }
 0x264   :  { %v2034_v21 = vmul.f32 0.2, %v1906_v43  ;;  %v2469_v32 = vcombine.low %v4092_v35, %v4092_v35 }
 0x265   :  { %v2254_v9 = vpack.c.bf16 %v2176_v4, %v2175_v8  ;;  %v2033_v54 = vmul.f32 0.2, %v1905_v41  ;;  %v1561_v40 = vpop.permute.xlu1 %1560  ;;  %v4565_v8 = vld [vmem:[#allocation50_spill] sm:$0xff] }
 0x266   :  { %v2162_v63 = vmax.f32 %v1906_v43, %v2034_v21  ;;  %v1890_v52 = vadd.f32 %v1561_v40, %v994_v26  ;;  %v1556_v25 = vpop.permute.xlu0 %1555  ;;  %v4566_v26 = vld [vmem:[#allocation51_spill] sm:$0xff] }
 0x267   :  { %v2161_v6 = vmax.f32 %v1905_v41, %v2033_v54  ;;  %v1889_v13 = vadd.f32 %v1556_v25, %v993_v33  ;;  %2550 = vmatpush3.bf16.msra.mxu1 %v2254_v9  ;;  %v996_v41 = vmul.f32 %v4565_v8, %v100_v51  ;;  %v995_v21 = vmul.f32 %v4566_v26, %v99_v36  ;;  %v147_v54 = vld [vmem:[%s4369_s1 + $0x3f0] sm:$0xff] }
 0x268   :  { %v2018_v45 = vmul.f32 0.2, %v1890_v52  ;;  %v2471_v51 = vcombine.low %v4121_v20, %v4121_v20 }
 0x269   :  { %v2017_v7 = vmul.f32 0.2, %v1889_v13  ;;  %v1801_v24 = vpop.permute.xlu1 %1800  ;;  %v2247_v58 = vpack.c.bf16 %v2162_v63, %v2161_v6  ;;  %v4567_v6 = vld [vmem:[#allocation99_spill] sm:$0xff] }
 0x26a   :  { %v2146_v49 = vmax.f32 %v1890_v52, %v2018_v45  ;;  %v1938_v47 = vadd.f32 %v1801_v24, %v1042_v23  ;;  %v1796_v48 = vpop.permute.xlu0 %1795  ;;  %v132_v23 = vld [vmem:[%s4369_s1 + $0x378] sm:$0xff]  ;;  %v4568_v45 = vld [vmem:[#allocation100_spill] sm:$0xff] }
 0x26b   :  { %v2145_v22 = vmax.f32 %v1889_v13, %v2017_v7  ;;  %v1937_v27 = vadd.f32 %v1796_v48, %v1041_v3  ;;  %2529 = vmatprep.subr.bf16.mxu0 %v2247_v58  ;;  %v1044_v13 = vmul.f32 %v4567_v6, %v148_v1  ;;  %v1043_v61 = vmul.f32 %v4568_v45, %v147_v54  ;;  %v131_v24 = vld [vmem:[%s4369_s1 + $0x370] sm:$0xff] }
 0x26c   :  { %v2066_v5 = vmul.f32 0.2, %v1938_v47 }
 0x26d   :  { %v2239_v11 = vpack.c.bf16 %v2146_v49, %v2145_v22  ;;  %v2065_v60 = vmul.f32 0.2, %v1937_v27  ;;  %v1721_v31 = vpop.permute.xlu1 %1720  ;;  %v4569_v22 = vld [vmem:[#allocation83_spill] sm:$0xff] }
 0x26e   :  { %v2194_v62 = vmax.f32 %v1938_v47, %v2066_v5  ;;  %v1922_v38 = vadd.f32 %v1721_v31, %v1026_v28  ;;  %v1716_v46 = vpop.permute.xlu0 %1715  ;;  %v4570_v28 = vld [vmem:[#allocation84_spill] sm:$0xff] }
 0x26f   :  { %v2193_v57 = vmax.f32 %v1937_v27, %v2065_v60  ;;  %v1921_v2 = vadd.f32 %v1716_v46, %v1025_v56  ;;  %2530 = vmatpush3.bf16.msra.mxu0 %v2239_v11  ;;  %v1028_v27 = vmul.f32 %v4569_v22, %v132_v23  ;;  %v1027_v5 = vmul.f32 %v4570_v28, %v131_v24 }
 0x270   :  { %v2050_v42 = vmul.f32 0.2, %v1922_v38 }
 0x271   :  { %v2049_v59 = vmul.f32 0.2, %v1921_v2  ;;  %v1651_v34 = vpop.permute.xlu1 %1650  ;;  %v2263_v29 = vpack.c.bf16 %v2194_v62, %v2193_v57 }
 0x272   :  { %v2178_v39 = vmax.f32 %v1922_v38, %v2050_v42  ;;  %v1908_v15 = vadd.f32 %v1651_v34, %v1012_v30  ;;  %v1646_v4 = vpop.permute.xlu0 %1645 }
 0x273   :  { %v2177_v43 = vmax.f32 %v1921_v2, %v2049_v59  ;;  %v1907_v19 = vadd.f32 %v1646_v4, %v1011_v12  ;;  %2551 = vmatprep.subr.bf16.mxu1 %v2263_v29 }
 0x274   :  { %v2036_v50 = vmul.f32 0.2, %v1908_v15 }
 0x275   :  { %v2255_v33 = vpack.c.bf16 %v2178_v39, %v2177_v43  ;;  %v2035_v18 = vmul.f32 0.2, %v1907_v19  ;;  %v1571_v9 = vpop.permute.xlu1 %1570 }
 0x276   :  { %v2164_v40 = vmax.f32 %v1908_v15, %v2036_v50  ;;  %v1892_v16 = vadd.f32 %v1571_v9, %v996_v41  ;;  %v1566_v63 = vpop.permute.xlu0 %1565 }
 0x277   :  { %v2163_v52 = vmax.f32 %v1907_v19, %v2035_v18  ;;  %v1891_v25 = vadd.f32 %v1566_v63, %v995_v21  ;;  %2552 = vmatpush3.bf16.msra.mxu1 %v2255_v33 }
 0x278   :  { %v2020_v10 = vmul.f32 0.2, %v1892_v16 }
 0x279   :  { %v2019_v44 = vmul.f32 0.2, %v1891_v25  ;;  %v1811_v3 = vpop.permute.xlu1 %1810  ;;  %v2248_v7 = vpack.c.bf16 %v2164_v40, %v2163_v52 }
 0x27a   :  { %v2148_v58 = vmax.f32 %v1892_v16, %v2020_v10  ;;  %v1940_v17 = vadd.f32 %v1811_v3, %v1044_v13  ;;  %v1806_v49 = vpop.permute.xlu0 %1805 }
 0x27b   :  { %v2147_v47 = vmax.f32 %v1891_v25, %v2019_v44  ;;  %v1939_v48 = vadd.f32 %v1806_v49, %v1043_v61  ;;  %2531 = vmatprep.subr.bf16.mxu0 %v2248_v7 }
 0x27c   :  { %v2068_v55 = vmul.f32 0.2, %v1940_v17 }
 0x27d   :  { %v2240_v0 = vpack.c.bf16 %v2148_v58, %v2147_v47  ;;  %v2067_v14 = vmul.f32 0.2, %v1939_v48  ;;  %v1731_v56 = vpop.permute.xlu1 %1730 }
 0x27e   :  { %v2196_v11 = vmax.f32 %v1940_v17, %v2068_v55  ;;  %v1924_v60 = vadd.f32 %v1731_v56, %v1028_v27  ;;  %v1726_v31 = vpop.permute.xlu0 %1725 }
 0x27f   :  { %v2195_v62 = vmax.f32 %v1939_v48, %v2067_v14  ;;  %v1923_v38 = vadd.f32 %v1726_v31, %v1027_v5  ;;  %2532 = vmatpush3.bf16.msra.mxu0 %v2240_v0 }
 0x280   :  { %v2052_v46 = vmul.f32 0.2, %v1924_v60 }
 0x281   :  { %v2051_v57 = vmul.f32 0.2, %v1923_v38  ;;  %v2264_v2 = vpack.c.bf16 %v2196_v11, %v2195_v62 }
 0x282   :  { %v2180_v37 = vmax.f32 %v1924_v60, %v2052_v46  ;;  %2412 = vmatmul.mubr.bf16.vlgmr.msra.gmra.mrb[4].mxu0 %v2469_v32  ;;  %v2269_v36 = vpop.permute.xlu0 %2268 }
 0x283   :  { %v2179_v30 = vmax.f32 %v1923_v38, %v2051_v57  ;;  %2553 = vmatprep.subr.bf16.mxu1 %v2264_v2 }
 0x285   :  { %v2256_v42 = vpack.c.bf16 %v2180_v37, %v2179_v30 }
 0x287   :  { %2554 = vmatpush3.bf16.msra.mxu1 %v2256_v42 }
 0x28a   :  { %2452 = vmatmul.mubr.bf16.vlgmr.msra.gmra.mrb[4].mxu1 %v2471_v51 }
 0x29e   :  { %v2489_v53 = vpop.f32.mrb[0].mxu0 }
 0x29f   :  { %v2490_v12 = vpop.f32.mrb[1].mxu0 }
 0x2a0   :  { %v2491_v59 = vadd.f32 %v2490_v12, %v2489_v53  ;;  %v2492_v35 = vpop.f32.mrb[2].mxu0 }
 0x2a1   :  { %v2493_v34 = vpop.f32.mrb[3].mxu0 }
 0x2a2   :  { %v2334_v15 = vadd.f32 %v2491_v59, %v2269_v36 }
 0x2dc   :  { %v2511_v29 = vpop.f32.mrb[0].mxu1 }
 0x2dd   :  { %v2512_v39 = vpop.f32.mrb[1].mxu1 }
 0x2de   :  { %v2513_v4 = vadd.f32 %v2512_v39, %v2511_v29  ;;  %v2514_v43 = vpop.f32.mrb[2].mxu1 }
 0x2df   :  { %v2515_v19 = vpop.f32.mrb[3].mxu1 }
 0x2e0   :  { %v2374_v8 = vadd.f32 %v2513_v4, %v2334_v15 }
 0x355   :  { %v2533_v41 = vpop.f32.mrb[4].mxu0 }
 0x356   :  { %v2534_v50 = vpop.f32.mrb[5].mxu0 }
 0x357   :  { %v2535_v26 = vadd.f32 %v2534_v50, %v2533_v41  ;;  %v2536_v21 = vpop.f32.mrb[6].mxu0 }
 0x358   :  { %v2537_v20 = vpop.f32.mrb[7].mxu0 }
 0x359   :  { %v2414_v1 = vadd.f32 %v2535_v26, %v2374_v8 }
 0x35d   :  { %v2555_v33 = vpop.f32.mrb[4].mxu1 }
 0x35e   :  { %v2556_v18 = vpop.f32.mrb[5].mxu1 }
 0x35f   :  { %v2557_v9 = vadd.f32 %v2556_v18, %v2555_v33  ;;  %v2558_v54 = vpop.f32.mrb[6].mxu1 }
 0x360   :  { %v2559_v40 = vpop.f32.mrb[7].mxu1 }
 0x361   :  { %v2454_v16 = vadd.f32 %v2557_v9, %v2414_v1 }
 0x363   :  { %2460 = vst.msk [vmem:[%s4371_s5] sm:$0x1f] %vm2459_vm0, %v2454_v16 }

</bundles_post_ra>
